<compile_context>
chip_gen: v5e
topology: v5e:2x2
jax: 0.10.0
libtpu: 0.0.40
codegen_flags: <defaults>
</compile_context>

<pallas_src>
import jax
import jax.numpy as jnp
from jax.experimental import pallas as pl
from jax.experimental.pallas import tpu as pltpu


# ----------------------------------------------------------------------------
# Bilinear (align_corners=True) interpolation operator: out = M @ in.
# ----------------------------------------------------------------------------
def bilinear_matrix(n_in, n_out):
    if n_in == 1:
        return jnp.ones((n_out, 1), jnp.float32)
    src = jnp.arange(n_out, dtype=jnp.float32) * (n_in - 1) / (n_out - 1)
    lo = jnp.clip(jnp.floor(src), 0, n_in - 1).astype(jnp.int32)
    hi = jnp.clip(lo + 1, 0, n_in - 1)
    frac = src - lo.astype(jnp.float32)
    m = ((1.0 - frac)[:, None] * jax.nn.one_hot(lo, n_in, dtype=jnp.float32)
         + frac[:, None] * jax.nn.one_hot(hi, n_in, dtype=jnp.float32))
    return m.astype(jnp.float32)


# ----------------------------------------------------------------------------
# In-kernel helper: Conv3x3 (input slab already zero-padded) + GroupNorm + ELU,
# channels-last orientation.  Returns (H*W, Cout) f32.
# ----------------------------------------------------------------------------
def _conv3x3_gn_elu_rows(xpad, p_ref, w_ref, b_ref, g_ref, be_ref, gavg_ref,
                         H, W, Cc):
    HW = H * W
    # im2col: stage one (H, W, 9*Cc) bf16 patch slab in VMEM -> one fat matmul.
    t = 0
    for dy in range(3):
        for dx in range(3):
            p_ref[:, :, t * Cc:(t + 1) * Cc] = (
                xpad[dy:dy + H, dx:dx + W, :].astype(jnp.bfloat16))
            t += 1
    patches = p_ref[...].reshape(HW, 9 * Cc)          # leading-dim merge only
    acc = jnp.dot(patches, w_ref[...], preferred_element_type=jnp.float32)
    acc = acc + b_ref[...]                            # (HW, Cout) f32

    # GroupNorm (eps=1e-5), centered statistics.  Group combine via the tiny
    # symmetric group-averaging matrix gavg[c,c'] = 1/cpg if same group.
    gsum = jnp.dot(acc, gavg_ref[...], preferred_element_type=jnp.float32)
    mean = jnp.sum(gsum, axis=0, keepdims=True) / HW  # (1, Cout) group mean
    cen = acc - mean
    gsq = jnp.dot(cen * cen, gavg_ref[...], preferred_element_type=jnp.float32)
    var = jnp.sum(gsq, axis=0, keepdims=True) / HW    # >= 0 by construction
    y = cen * jax.lax.rsqrt(var + 1e-5) * g_ref[...] + be_ref[...]
    return jnp.where(y > 0, y, jnp.exp(jnp.minimum(y, 0.0)) - 1.0)   # ELU


# ----------------------------------------------------------------------------
# Fused kernel: one grid step per batch element.
# ----------------------------------------------------------------------------
def _up_fused_kernel(x1_ref, x2_ref, a_ref, kb_ref,
                     w1_ref, b1_ref, g1_ref, be1_ref,
                     w2t_ref, b2_ref, g2_ref, be2_ref, gavg_ref,
                     o_ref, xpad1, xpad2, p1_ref, p2_ref):
    _, H, W, C2 = x2_ref.shape
    Cin = xpad1.shape[2]
    C1 = Cin - C2
    Cout = o_ref.shape[1]
    HW = H * W
    H2u = a_ref.shape[0]
    W2u = kb_ref.shape[1] // C1
    offY = (H - H2u) // 2
    offX = (W - W2u) // 2

    # ---- fused input assembly: upsample + pad + concat, all in VMEM --------
    xpad1[...] = jnp.zeros_like(xpad1)
    xpad1[1:H + 1, 1:W + 1, 0:C2] = x2_ref[0]                      # skip branch

    # Bilinear 2x upsample of x1 as two matmuls (channels stay on lanes).
    z = jnp.dot(x1_ref[0], kb_ref[...], preferred_element_type=jnp.float32)
    up = jnp.dot(a_ref[...], z, preferred_element_type=jnp.float32)  # (H2u, W2u*C1)
    for w in range(W2u):      # static unroll: lane-flat -> HWC slab columns
        xpad1[1 + offY:1 + offY + H2u, 1 + offX + w, C2:Cin] = (
            up[:, w * C1:(w + 1) * C1])

    # ---- conv1 + GN + ELU (channels-last) -----------------------------------
    y1 = _conv3x3_gn_elu_rows(xpad1, p1_ref, w1_ref, b1_ref, g1_ref, be1_ref,
                              gavg_ref, H, W, Cin)                 # (HW, Cout)

    # ---- conv2 + GN + ELU, channel-major -> lane-dense (Cout, H*W) output ---
    xpad2[...] = jnp.zeros_like(xpad2)
    xpad2[1:H + 1, 1:W + 1, :] = y1.reshape(H, W, Cout)
    t = 0
    for dy in range(3):
        for dx in range(3):
            p2_ref[:, :, t * Cout:(t + 1) * Cout] = (
                xpad2[dy:dy + H, dx:dx + W, :].astype(jnp.bfloat16))
            t += 1
    patches2 = p2_ref[...].reshape(HW, 9 * Cout)
    # (Cout, 9*Cout) contracted with (HW, 9*Cout) on the K axis -> (Cout, HW).
    acc2 = jax.lax.dot_general(w2t_ref[...], patches2,
                               (((1,), (1,)), ((), ())),
                               preferred_element_type=jnp.float32)
    acc2 = acc2 + b2_ref[...]
    gsum = jnp.dot(gavg_ref[...], acc2, preferred_element_type=jnp.float32)
    mean = jnp.sum(gsum, axis=1, keepdims=True) / HW               # (Cout, 1)
    cen = acc2 - mean
    gsq = jnp.dot(gavg_ref[...], cen * cen, preferred_element_type=jnp.float32)
    var = jnp.sum(gsq, axis=1, keepdims=True) / HW
    y2 = cen * jax.lax.rsqrt(var + 1e-5) * g2_ref[...] + be2_ref[...]
    y2 = jnp.where(y2 > 0, y2, jnp.exp(jnp.minimum(y2, 0.0)) - 1.0)
    o_ref[0] = y2.astype(o_ref.dtype)          # lane-dense (Cout, H*W) store


# ----------------------------------------------------------------------------
# `up` forward: NCHW in, NCHW out (matches the PyTorch module).
# ----------------------------------------------------------------------------
def up_forward(x1, x2, params):
    B, C1, H1, W1 = x1.shape
    _, C2, H, W = x2.shape
    Cin = C1 + C2
    Cout = params["w1"].shape[-1]
    ng = params["ng"]
    cpg = Cout // ng
    H2u, W2u = 2 * H1, 2 * W1

    # Upsample operators.
    A = bilinear_matrix(H1, H2u)                                   # (H2u, H1)
    Bm = bilinear_matrix(W1, W2u)                                  # (W2u, W1)
    KB = jnp.kron(Bm.T, jnp.eye(C1, dtype=jnp.float32))            # (W1*C1, W2u*C1)

    # Tiny input-layout glue (the only XLA ops left outside the kernel).
    x1f = jnp.transpose(x1, (0, 2, 3, 1)).reshape(B, H1, W1 * C1)
    x2h = jnp.transpose(x2, (0, 2, 3, 1))                          # (B, H, W, C2)

    # Fold 3x3 taps into im2col weight matrices; bf16 MXU operands.
    w1f = params["w1"].reshape(9 * Cin, Cout).astype(jnp.bfloat16)
    w2t = params["w2"].reshape(9 * Cout, Cout).T.astype(jnp.bfloat16)
    b1r = params["b1"].reshape(1, Cout).astype(jnp.float32)
    g1r = params["g1"].reshape(1, Cout).astype(jnp.float32)
    be1r = params["be1"].reshape(1, Cout).astype(jnp.float32)
    b2c = params["b2"].reshape(Cout, 1).astype(jnp.float32)
    g2c = params["g2"].reshape(Cout, 1).astype(jnp.float32)
    be2c = params["be2"].reshape(Cout, 1).astype(jnp.float32)
    ch = jnp.arange(Cout)
    gavg = ((ch[:, None] // cpg) == (ch[None, :] // cpg)).astype(jnp.float32) / cpg

    out = pl.pallas_call(
        _up_fused_kernel,
        out_shape=jax.ShapeDtypeStruct((B, Cout, H * W), x2.dtype),
        grid=(B,),
        in_specs=[
            pl.BlockSpec((1, H1, W1 * C1), lambda b: (b, 0, 0)),      # x1 (flat HWC)
            pl.BlockSpec((1, H, W, C2), lambda b: (b, 0, 0, 0)),      # x2 (NHWC)
            pl.BlockSpec((H2u, H1), lambda b: (0, 0)),                # A  (H upsample)
            pl.BlockSpec((W1 * C1, W2u * C1), lambda b: (0, 0)),      # kron(Bm^T, I)
            pl.BlockSpec((9 * Cin, Cout), lambda b: (0, 0)),          # w1 im2col (bf16)
            pl.BlockSpec((1, Cout), lambda b: (0, 0)),                # b1
            pl.BlockSpec((1, Cout), lambda b: (0, 0)),                # gamma1
            pl.BlockSpec((1, Cout), lambda b: (0, 0)),                # beta1
            pl.BlockSpec((Cout, 9 * Cout), lambda b: (0, 0)),         # w2^T im2col (bf16)
            pl.BlockSpec((Cout, 1), lambda b: (0, 0)),                # b2
            pl.BlockSpec((Cout, 1), lambda b: (0, 0)),                # gamma2
            pl.BlockSpec((Cout, 1), lambda b: (0, 0)),                # beta2
            pl.BlockSpec((Cout, Cout), lambda b: (0, 0)),             # group-avg matrix
        ],
        out_specs=pl.BlockSpec((1, Cout, H * W), lambda b: (b, 0, 0)),
        scratch_shapes=[
            pltpu.VMEM((H + 2, W + 2, Cin), jnp.float32),             # conv1 input slab
            pltpu.VMEM((H + 2, W + 2, Cout), jnp.float32),            # conv2 input slab
            pltpu.VMEM((H, W, 9 * Cin), jnp.bfloat16),                # conv1 im2col
            pltpu.VMEM((H, W, 9 * Cout), jnp.bfloat16),               # conv2 im2col
        ],
        compiler_params=pltpu.CompilerParams(
            dimension_semantics=("parallel",),
            vmem_limit_bytes=32 * 1024 * 1024,
        ),
    )(x1f, x2h, A, KB, w1f, b1r, g1r, be1r, w2t, b2c, g2c, be2c, gavg)

    # (B, Cout, H*W) is already NCHW-ordered: free reshape, no transpose.
    return out.reshape(B, Cout, H, W)


# ----------------------------------------------------------------------------
# Reference (same bf16-operand / f32-accumulate policy as the kernel).
# ----------------------------------------------------------------------------
def _ref_conv_gn_elu(x_nhwc, w, b, gamma, beta, ng):
    y = jax.lax.conv_general_dilated(
        x_nhwc.astype(jnp.bfloat16), w.astype(jnp.bfloat16), (1, 1),
        ((1, 1), (1, 1)), dimension_numbers=("NHWC", "HWIO", "NHWC"),
        preferred_element_type=jnp.float32)
    y = y + b.reshape(1, 1, 1, -1)
    B, H, W, C = y.shape
    yg = y.reshape(B, H, W, ng, C // ng)
    mean = yg.mean(axis=(1, 2, 4), keepdims=True)
    var = yg.var(axis=(1, 2, 4), keepdims=True)
    yn = ((yg - mean) * jax.lax.rsqrt(var + 1e-5)).reshape(B, H, W, C)
    yn = yn * gamma.reshape(1, 1, 1, -1) + beta.reshape(1, 1, 1, -1)
    return jnp.where(yn > 0, yn, jnp.exp(jnp.minimum(yn, 0.0)) - 1.0)


def reference_forward(x1, x2, params):
    B, C1, H1, W1 = x1.shape
    A = bilinear_matrix(H1, 2 * H1)
    Bm = bilinear_matrix(W1, 2 * W1)
    hp = jax.lax.Precision.HIGHEST
    x1u = jnp.einsum("oh,bchw->bcow", A, x1, precision=hp)
    x1u = jnp.einsum("pw,bcow->bcop", Bm, x1u, precision=hp)
    diffY = x2.shape[2] - x1u.shape[2]
    diffX = x2.shape[3] - x1u.shape[3]
    x1u = jnp.pad(x1u, ((0, 0), (0, 0),
                        (diffY // 2, diffY - diffY // 2),
                        (diffX // 2, diffX - diffX // 2)))
    x = jnp.concatenate([x2, x1u], axis=1)
    xh = jnp.transpose(x, (0, 2, 3, 1))
    y = _ref_conv_gn_elu(xh, params["w1"], params["b1"],
                         params["g1"], params["be1"], params["ng"])
    y = _ref_conv_gn_elu(y, params["w2"], params["b2"],
                         params["g2"], params["be2"], params["ng"])
    return jnp.transpose(y, (0, 3, 1, 2))


if __name__ == "__main__":
    # x1 = low-res decoder feature, x2 = skip connection.
    # in_ch = C(x1) + C(x2), out_ch = 16, num_groups = out_ch // 8.
    B, C1, C2 = 2, 8, 8
    H1, W1 = 8, 8                # x1 spatial (upsampled to 16x16)
    H2, W2 = 16, 16              # x2 spatial
    in_ch = C1 + C2
    out_ch = 16
    num_groups = out_ch // 8

    key = jax.random.PRNGKey(0)
    k = jax.random.split(key, 10)
    x1 = jax.random.normal(k[0], (B, C1, H1, W1), jnp.float32)
    x2 = jax.random.normal(k[1], (B, C2, H2, W2), jnp.float32)

    # Synthetic parameters (conv weights in HWIO layout, used consistently by
    # both the kernel and the reference).
    params = {
        "w1": 0.1 * jax.random.normal(k[2], (3, 3, in_ch, out_ch), jnp.float32),
        "b1": 0.1 * jax.random.normal(k[3], (out_ch,), jnp.float32),
        "g1": 1.0 + 0.1 * jax.random.normal(k[4], (out_ch,), jnp.float32),
        "be1": 0.1 * jax.random.normal(k[5], (out_ch,), jnp.float32),
        "w2": 0.1 * jax.random.normal(k[6], (3, 3, out_ch, out_ch), jnp.float32),
        "b2": 0.1 * jax.random.normal(k[7], (out_ch,), jnp.float32),
        "g2": 1.0 + 0.1 * jax.random.normal(k[8], (out_ch,), jnp.float32),
        "be2": 0.1 * jax.random.normal(k[9], (out_ch,), jnp.float32),
        "ng": num_groups,
    }

    out = jax.block_until_ready(up_forward(x1, x2, params))
    ref = jax.block_until_ready(reference_forward(x1, x2, params))

    assert out.shape == (B, out_ch, H2, W2), out.shape
    # Tolerance accounts for bf16 MXU operands (f32 accumulation) on both sides
    # plus f32 accumulation-order differences.
    max_err = float(jnp.max(jnp.abs(out - ref)))
    assert max_err < 1e-2, f"max abs error {max_err}"
    print("KERNEL_OK")
</pallas_src>

<mosaic_0001>
module attributes {stable_mosaic.version = 11 : i64} {
  func.func @_up_fused_kernel(%arg0: i32, %arg1: memref<1x8x64xf32, #tpu.memory_space<vmem>>, %arg2: memref<1x16x16x8xf32, #tpu.memory_space<vmem>>, %arg3: memref<16x8xf32, #tpu.memory_space<vmem>>, %arg4: memref<64x128xf32, #tpu.memory_space<vmem>>, %arg5: memref<144x16xbf16, #tpu.memory_space<vmem>>, %arg6: memref<1x16xf32, #tpu.memory_space<vmem>>, %arg7: memref<1x16xf32, #tpu.memory_space<vmem>>, %arg8: memref<1x16xf32, #tpu.memory_space<vmem>>, %arg9: memref<16x144xbf16, #tpu.memory_space<vmem>>, %arg10: memref<16x1xf32, #tpu.memory_space<vmem>>, %arg11: memref<16x1xf32, #tpu.memory_space<vmem>>, %arg12: memref<16x1xf32, #tpu.memory_space<vmem>>, %arg13: memref<16x16xf32, #tpu.memory_space<vmem>>, %arg14: memref<1x16x256xf32, #tpu.memory_space<vmem>>, %arg15: memref<18x18x16xf32, #tpu.memory_space<vmem>>, %arg16: memref<18x18x16xf32, #tpu.memory_space<vmem>>, %arg17: memref<16x16x144xbf16, #tpu.memory_space<vmem>>, %arg18: memref<16x16x144xbf16, #tpu.memory_space<vmem>>) attributes {dimension_semantics = [#tpu.dimension_semantics<parallel>], iteration_bounds = array<i64: 2>, scalar_prefetch = 0 : i64, scratch_operands = 4 : i64, tpu.core_type = #tpu.core_type<tc>, window_params = [{transform_indices = @transform_0, window_bounds = array<i64: 1, 8, 64>}, {transform_indices = @transform_1, window_bounds = array<i64: 1, 16, 16, 8>}, {pipeline_mode = #tpu.pipeline_mode<synchronous>, transform_indices = @transform_2, window_bounds = array<i64: 16, 8>}, {pipeline_mode = #tpu.pipeline_mode<synchronous>, transform_indices = @transform_3, window_bounds = array<i64: 64, 128>}, {pipeline_mode = #tpu.pipeline_mode<synchronous>, transform_indices = @transform_4, window_bounds = array<i64: 144, 16>}, {pipeline_mode = #tpu.pipeline_mode<synchronous>, transform_indices = @transform_5, window_bounds = array<i64: 1, 16>}, {pipeline_mode = #tpu.pipeline_mode<synchronous>, transform_indices = @transform_6, window_bounds = array<i64: 1, 16>}, {pipeline_mode = #tpu.pipeline_mode<synchronous>, transform_indices = @transform_7, window_bounds = array<i64: 1, 16>}, {pipeline_mode = #tpu.pipeline_mode<synchronous>, transform_indices = @transform_8, window_bounds = array<i64: 16, 144>}, {pipeline_mode = #tpu.pipeline_mode<synchronous>, transform_indices = @transform_9, window_bounds = array<i64: 16, 1>}, {pipeline_mode = #tpu.pipeline_mode<synchronous>, transform_indices = @transform_10, window_bounds = array<i64: 16, 1>}, {pipeline_mode = #tpu.pipeline_mode<synchronous>, transform_indices = @transform_11, window_bounds = array<i64: 16, 1>}, {pipeline_mode = #tpu.pipeline_mode<synchronous>, transform_indices = @transform_12, window_bounds = array<i64: 16, 16>}, {transform_indices = @transform_13, window_bounds = array<i64: 1, 16, 256>}]} {
    %cst = arith.constant 0.000000e+00 : f32
    %0 = vector.broadcast %cst : f32 to vector<18x18x16xf32>
    %c0 = arith.constant 0 : index
    %c0_0 = arith.constant 0 : index
    %c0_1 = arith.constant 0 : index
    %1 = vector.load %arg15[%c0, %c0_0, %c0_1] : memref<18x18x16xf32, #tpu.memory_space<vmem>>, vector<18x18x16xf32>
    tpu.vector_store %arg15[%c0, %c0_0, %c0_1], %0 {strides = array<i32>} : memref<18x18x16xf32, #tpu.memory_space<vmem>>, vector<18x18x16xf32>,
    %c0_2 = arith.constant 0 : index
    %c0_3 = arith.constant 0 : index
    %c0_4 = arith.constant 0 : index
    %c0_5 = arith.constant 0 : index
    %2 = vector.load %arg2[%c0_2, %c0_3, %c0_4, %c0_5] : memref<1x16x16x8xf32, #tpu.memory_space<vmem>>, vector<1x16x16x8xf32>
    %3 = vector.shape_cast %2 : vector<1x16x16x8xf32> to vector<16x16x8xf32>
    %c1 = arith.constant 1 : index
    %c1_6 = arith.constant 1 : index
    %c0_7 = arith.constant 0 : index
    %4 = vector.load %arg15[%c1, %c1_6, %c0_7] : memref<18x18x16xf32, #tpu.memory_space<vmem>>, vector<16x16x8xf32>
    tpu.vector_store %arg15[%c1, %c1_6, %c0_7], %3 {strides = array<i32>} : memref<18x18x16xf32, #tpu.memory_space<vmem>>, vector<16x16x8xf32>,
    %c0_8 = arith.constant 0 : index
    %c0_9 = arith.constant 0 : index
    %c0_10 = arith.constant 0 : index
    %5 = vector.load %arg1[%c0_8, %c0_9, %c0_10] : memref<1x8x64xf32, #tpu.memory_space<vmem>>, vector<1x8x64xf32>
    %6 = vector.shape_cast %5 : vector<1x8x64xf32> to vector<8x64xf32>
    %c0_11 = arith.constant 0 : index
    %c0_12 = arith.constant 0 : index
    %7 = vector.load %arg4[%c0_11, %c0_12] : memref<64x128xf32, #tpu.memory_space<vmem>>, vector<64x128xf32>
    %cst_13 = arith.constant dense<0.000000e+00> : vector<8x128xf32>
    %8 = tpu.matmul %6, %7, %cst_13 {dimension_numbers = #tpu.dot_dimension_numbers<[1], [0], [0], [1], [0, 0, 1, 1], [], []>} : vector<8x64xf32>, vector<64x128xf32>, vector<8x128xf32> -> vector<8x128xf32>
    %c0_14 = arith.constant 0 : index
    %c0_15 = arith.constant 0 : index
    %9 = vector.load %arg3[%c0_14, %c0_15] : memref<16x8xf32, #tpu.memory_space<vmem>>, vector<16x8xf32>
    %cst_16 = arith.constant dense<0.000000e+00> : vector<16x128xf32>
    %10 = tpu.matmul %9, %8, %cst_16 {dimension_numbers = #tpu.dot_dimension_numbers<[1], [0], [0], [1], [0, 0, 1, 1], [], []>} : vector<16x8xf32>, vector<8x128xf32>, vector<16x128xf32> -> vector<16x128xf32>
    %11 = vector.extract_strided_slice %10 {offsets = [0, 0], sizes = [16, 8], strides = [1, 1]} : vector<16x128xf32> to vector<16x8xf32>
    %c1_17 = arith.constant 1 : index
    %c1_18 = arith.constant 1 : index
    %c8 = arith.constant 8 : index
    %12 = vector.load %arg15[%c1_17, %c1_18, %c8] : memref<18x18x16xf32, #tpu.memory_space<vmem>>, vector<16x1x8xf32>
    %13 = vector.shape_cast %12 : vector<16x1x8xf32> to vector<16x8xf32>
    %14 = vector.shape_cast %11 : vector<16x8xf32> to vector<16x1x8xf32>
    tpu.vector_store %arg15[%c1_17, %c1_18, %c8], %14 {strides = array<i32>} : memref<18x18x16xf32, #tpu.memory_space<vmem>>, vector<16x1x8xf32>,
    %15 = vector.extract_strided_slice %10 {offsets = [0, 8], sizes = [16, 8], strides = [1, 1]} : vector<16x128xf32> to vector<16x8xf32>
    %c1_19 = arith.constant 1 : index
    %c2 = arith.constant 2 : index
    %c8_20 = arith.constant 8 : index
    %16 = vector.load %arg15[%c1_19, %c2, %c8_20] : memref<18x18x16xf32, #tpu.memory_space<vmem>>, vector<16x1x8xf32>
    %17 = vector.shape_cast %16 : vector<16x1x8xf32> to vector<16x8xf32>
    %18 = vector.shape_cast %15 : vector<16x8xf32> to vector<16x1x8xf32>
    tpu.vector_store %arg15[%c1_19, %c2, %c8_20], %18 {strides = array<i32>} : memref<18x18x16xf32, #tpu.memory_space<vmem>>, vector<16x1x8xf32>,
    %19 = vector.extract_strided_slice %10 {offsets = [0, 16], sizes = [16, 8], strides = [1, 1]} : vector<16x128xf32> to vector<16x8xf32>
    %c1_21 = arith.constant 1 : index
    %c3 = arith.constant 3 : index
    %c8_22 = arith.constant 8 : index
    %20 = vector.load %arg15[%c1_21, %c3, %c8_22] : memref<18x18x16xf32, #tpu.memory_space<vmem>>, vector<16x1x8xf32>
    %21 = vector.shape_cast %20 : vector<16x1x8xf32> to vector<16x8xf32>
    %22 = vector.shape_cast %19 : vector<16x8xf32> to vector<16x1x8xf32>
    tpu.vector_store %arg15[%c1_21, %c3, %c8_22], %22 {strides = array<i32>} : memref<18x18x16xf32, #tpu.memory_space<vmem>>, vector<16x1x8xf32>,
    %23 = vector.extract_strided_slice %10 {offsets = [0, 24], sizes = [16, 8], strides = [1, 1]} : vector<16x128xf32> to vector<16x8xf32>
    %c1_23 = arith.constant 1 : index
    %c4 = arith.constant 4 : index
    %c8_24 = arith.constant 8 : index
    %24 = vector.load %arg15[%c1_23, %c4, %c8_24] : memref<18x18x16xf32, #tpu.memory_space<vmem>>, vector<16x1x8xf32>
    %25 = vector.shape_cast %24 : vector<16x1x8xf32> to vector<16x8xf32>
    %26 = vector.shape_cast %23 : vector<16x8xf32> to vector<16x1x8xf32>
    tpu.vector_store %arg15[%c1_23, %c4, %c8_24], %26 {strides = array<i32>} : memref<18x18x16xf32, #tpu.memory_space<vmem>>, vector<16x1x8xf32>,
    %27 = vector.extract_strided_slice %10 {offsets = [0, 32], sizes = [16, 8], strides = [1, 1]} : vector<16x128xf32> to vector<16x8xf32>
    %c1_25 = arith.constant 1 : index
    %c5 = arith.constant 5 : index
    %c8_26 = arith.constant 8 : index
    %28 = vector.load %arg15[%c1_25, %c5, %c8_26] : memref<18x18x16xf32, #tpu.memory_space<vmem>>, vector<16x1x8xf32>
    %29 = vector.shape_cast %28 : vector<16x1x8xf32> to vector<16x8xf32>
    %30 = vector.shape_cast %27 : vector<16x8xf32> to vector<16x1x8xf32>
    tpu.vector_store %arg15[%c1_25, %c5, %c8_26], %30 {strides = array<i32>} : memref<18x18x16xf32, #tpu.memory_space<vmem>>, vector<16x1x8xf32>,
    %31 = vector.extract_strided_slice %10 {offsets = [0, 40], sizes = [16, 8], strides = [1, 1]} : vector<16x128xf32> to vector<16x8xf32>
    %c1_27 = arith.constant 1 : index
    %c6 = arith.constant 6 : index
    %c8_28 = arith.constant 8 : index
    %32 = vector.load %arg15[%c1_27, %c6, %c8_28] : memref<18x18x16xf32, #tpu.memory_space<vmem>>, vector<16x1x8xf32>
    %33 = vector.shape_cast %32 : vector<16x1x8xf32> to vector<16x8xf32>
    %34 = vector.shape_cast %31 : vector<16x8xf32> to vector<16x1x8xf32>
    tpu.vector_store %arg15[%c1_27, %c6, %c8_28], %34 {strides = array<i32>} : memref<18x18x16xf32, #tpu.memory_space<vmem>>, vector<16x1x8xf32>,
    %35 = vector.extract_strided_slice %10 {offsets = [0, 48], sizes = [16, 8], strides = [1, 1]} : vector<16x128xf32> to vector<16x8xf32>
    %c1_29 = arith.constant 1 : index
    %c7 = arith.constant 7 : index
    %c8_30 = arith.constant 8 : index
    %36 = vector.load %arg15[%c1_29, %c7, %c8_30] : memref<18x18x16xf32, #tpu.memory_space<vmem>>, vector<16x1x8xf32>
    %37 = vector.shape_cast %36 : vector<16x1x8xf32> to vector<16x8xf32>
    %38 = vector.shape_cast %35 : vector<16x8xf32> to vector<16x1x8xf32>
    tpu.vector_store %arg15[%c1_29, %c7, %c8_30], %38 {strides = array<i32>} : memref<18x18x16xf32, #tpu.memory_space<vmem>>, vector<16x1x8xf32>,
    %39 = vector.extract_strided_slice %10 {offsets = [0, 56], sizes = [16, 8], strides = [1, 1]} : vector<16x128xf32> to vector<16x8xf32>
    %c1_31 = arith.constant 1 : index
    %c8_32 = arith.constant 8 : index
    %c8_33 = arith.constant 8 : index
    %40 = vector.load %arg15[%c1_31, %c8_32, %c8_33] : memref<18x18x16xf32, #tpu.memory_space<vmem>>, vector<16x1x8xf32>
    %41 = vector.shape_cast %40 : vector<16x1x8xf32> to vector<16x8xf32>
    %42 = vector.shape_cast %39 : vector<16x8xf32> to vector<16x1x8xf32>
    tpu.vector_store %arg15[%c1_31, %c8_32, %c8_33], %42 {strides = array<i32>} : memref<18x18x16xf32, #tpu.memory_space<vmem>>, vector<16x1x8xf32>,
    %43 = vector.extract_strided_slice %10 {offsets = [0, 64], sizes = [16, 8], strides = [1, 1]} : vector<16x128xf32> to vector<16x8xf32>
    %c1_34 = arith.constant 1 : index
    %c9 = arith.constant 9 : index
    %c8_35 = arith.constant 8 : index
    %44 = vector.load %arg15[%c1_34, %c9, %c8_35] : memref<18x18x16xf32, #tpu.memory_space<vmem>>, vector<16x1x8xf32>
    %45 = vector.shape_cast %44 : vector<16x1x8xf32> to vector<16x8xf32>
    %46 = vector.shape_cast %43 : vector<16x8xf32> to vector<16x1x8xf32>
    tpu.vector_store %arg15[%c1_34, %c9, %c8_35], %46 {strides = array<i32>} : memref<18x18x16xf32, #tpu.memory_space<vmem>>, vector<16x1x8xf32>,
    %47 = vector.extract_strided_slice %10 {offsets = [0, 72], sizes = [16, 8], strides = [1, 1]} : vector<16x128xf32> to vector<16x8xf32>
    %c1_36 = arith.constant 1 : index
    %c10 = arith.constant 10 : index
    %c8_37 = arith.constant 8 : index
    %48 = vector.load %arg15[%c1_36, %c10, %c8_37] : memref<18x18x16xf32, #tpu.memory_space<vmem>>, vector<16x1x8xf32>
    %49 = vector.shape_cast %48 : vector<16x1x8xf32> to vector<16x8xf32>
    %50 = vector.shape_cast %47 : vector<16x8xf32> to vector<16x1x8xf32>
    tpu.vector_store %arg15[%c1_36, %c10, %c8_37], %50 {strides = array<i32>} : memref<18x18x16xf32, #tpu.memory_space<vmem>>, vector<16x1x8xf32>,
    %51 = vector.extract_strided_slice %10 {offsets = [0, 80], sizes = [16, 8], strides = [1, 1]} : vector<16x128xf32> to vector<16x8xf32>
    %c1_38 = arith.constant 1 : index
    %c11 = arith.constant 11 : index
    %c8_39 = arith.constant 8 : index
    %52 = vector.load %arg15[%c1_38, %c11, %c8_39] : memref<18x18x16xf32, #tpu.memory_space<vmem>>, vector<16x1x8xf32>
    %53 = vector.shape_cast %52 : vector<16x1x8xf32> to vector<16x8xf32>
    %54 = vector.shape_cast %51 : vector<16x8xf32> to vector<16x1x8xf32>
    tpu.vector_store %arg15[%c1_38, %c11, %c8_39], %54 {strides = array<i32>} : memref<18x18x16xf32, #tpu.memory_space<vmem>>, vector<16x1x8xf32>,
    %55 = vector.extract_strided_slice %10 {offsets = [0, 88], sizes = [16, 8], strides = [1, 1]} : vector<16x128xf32> to vector<16x8xf32>
    %c1_40 = arith.constant 1 : index
    %c12 = arith.constant 12 : index
    %c8_41 = arith.constant 8 : index
    %56 = vector.load %arg15[%c1_40, %c12, %c8_41] : memref<18x18x16xf32, #tpu.memory_space<vmem>>, vector<16x1x8xf32>
    %57 = vector.shape_cast %56 : vector<16x1x8xf32> to vector<16x8xf32>
    %58 = vector.shape_cast %55 : vector<16x8xf32> to vector<16x1x8xf32>
    tpu.vector_store %arg15[%c1_40, %c12, %c8_41], %58 {strides = array<i32>} : memref<18x18x16xf32, #tpu.memory_space<vmem>>, vector<16x1x8xf32>,
    %59 = vector.extract_strided_slice %10 {offsets = [0, 96], sizes = [16, 8], strides = [1, 1]} : vector<16x128xf32> to vector<16x8xf32>
    %c1_42 = arith.constant 1 : index
    %c13 = arith.constant 13 : index
    %c8_43 = arith.constant 8 : index
    %60 = vector.load %arg15[%c1_42, %c13, %c8_43] : memref<18x18x16xf32, #tpu.memory_space<vmem>>, vector<16x1x8xf32>
    %61 = vector.shape_cast %60 : vector<16x1x8xf32> to vector<16x8xf32>
    %62 = vector.shape_cast %59 : vector<16x8xf32> to vector<16x1x8xf32>
    tpu.vector_store %arg15[%c1_42, %c13, %c8_43], %62 {strides = array<i32>} : memref<18x18x16xf32, #tpu.memory_space<vmem>>, vector<16x1x8xf32>,
    %63 = vector.extract_strided_slice %10 {offsets = [0, 104], sizes = [16, 8], strides = [1, 1]} : vector<16x128xf32> to vector<16x8xf32>
    %c1_44 = arith.constant 1 : index
    %c14 = arith.constant 14 : index
    %c8_45 = arith.constant 8 : index
    %64 = vector.load %arg15[%c1_44, %c14, %c8_45] : memref<18x18x16xf32, #tpu.memory_space<vmem>>, vector<16x1x8xf32>
    %65 = vector.shape_cast %64 : vector<16x1x8xf32> to vector<16x8xf32>
    %66 = vector.shape_cast %63 : vector<16x8xf32> to vector<16x1x8xf32>
    tpu.vector_store %arg15[%c1_44, %c14, %c8_45], %66 {strides = array<i32>} : memref<18x18x16xf32, #tpu.memory_space<vmem>>, vector<16x1x8xf32>,
    %67 = vector.extract_strided_slice %10 {offsets = [0, 112], sizes = [16, 8], strides = [1, 1]} : vector<16x128xf32> to vector<16x8xf32>
    %c1_46 = arith.constant 1 : index
    %c15 = arith.constant 15 : index
    %c8_47 = arith.constant 8 : index
    %68 = vector.load %arg15[%c1_46, %c15, %c8_47] : memref<18x18x16xf32, #tpu.memory_space<vmem>>, vector<16x1x8xf32>
    %69 = vector.shape_cast %68 : vector<16x1x8xf32> to vector<16x8xf32>
    %70 = vector.shape_cast %67 : vector<16x8xf32> to vector<16x1x8xf32>
    tpu.vector_store %arg15[%c1_46, %c15, %c8_47], %70 {strides = array<i32>} : memref<18x18x16xf32, #tpu.memory_space<vmem>>, vector<16x1x8xf32>,
    %71 = vector.extract_strided_slice %10 {offsets = [0, 120], sizes = [16, 8], strides = [1, 1]} : vector<16x128xf32> to vector<16x8xf32>
    %c1_48 = arith.constant 1 : index
    %c16 = arith.constant 16 : index
    %c8_49 = arith.constant 8 : index
    %72 = vector.load %arg15[%c1_48, %c16, %c8_49] : memref<18x18x16xf32, #tpu.memory_space<vmem>>, vector<16x1x8xf32>
    %73 = vector.shape_cast %72 : vector<16x1x8xf32> to vector<16x8xf32>
    %74 = vector.shape_cast %71 : vector<16x8xf32> to vector<16x1x8xf32>
    tpu.vector_store %arg15[%c1_48, %c16, %c8_49], %74 {strides = array<i32>} : memref<18x18x16xf32, #tpu.memory_space<vmem>>, vector<16x1x8xf32>,
    %c0_50 = arith.constant 0 : index
    %c0_51 = arith.constant 0 : index
    %c0_52 = arith.constant 0 : index
    %75 = vector.load %arg15[%c0_50, %c0_51, %c0_52] : memref<18x18x16xf32, #tpu.memory_space<vmem>>, vector<16x16x16xf32>
    %76 = arith.truncf %75 : vector<16x16x16xf32> to vector<16x16x16xbf16>
    %c0_53 = arith.constant 0 : index
    %c0_54 = arith.constant 0 : index
    %c0_55 = arith.constant 0 : index
    %77 = vector.load %arg17[%c0_53, %c0_54, %c0_55] : memref<16x16x144xbf16, #tpu.memory_space<vmem>>, vector<16x16x16xbf16>
    tpu.vector_store %arg17[%c0_53, %c0_54, %c0_55], %76 {strides = array<i32>} : memref<16x16x144xbf16, #tpu.memory_space<vmem>>, vector<16x16x16xbf16>,
    %c0_56 = arith.constant 0 : index
    %c1_57 = arith.constant 1 : index
    %c0_58 = arith.constant 0 : index
    %78 = vector.load %arg15[%c0_56, %c1_57, %c0_58] : memref<18x18x16xf32, #tpu.memory_space<vmem>>, vector<16x16x16xf32>
    %79 = arith.truncf %78 : vector<16x16x16xf32> to vector<16x16x16xbf16>
    %c0_59 = arith.constant 0 : index
    %c0_60 = arith.constant 0 : index
    %c16_61 = arith.constant 16 : index
    %80 = vector.load %arg17[%c0_59, %c0_60, %c16_61] : memref<16x16x144xbf16, #tpu.memory_space<vmem>>, vector<16x16x16xbf16>
    tpu.vector_store %arg17[%c0_59, %c0_60, %c16_61], %79 {strides = array<i32>} : memref<16x16x144xbf16, #tpu.memory_space<vmem>>, vector<16x16x16xbf16>,
    %c0_62 = arith.constant 0 : index
    %c2_63 = arith.constant 2 : index
    %c0_64 = arith.constant 0 : index
    %81 = vector.load %arg15[%c0_62, %c2_63, %c0_64] : memref<18x18x16xf32, #tpu.memory_space<vmem>>, vector<16x16x16xf32>
    %82 = arith.truncf %81 : vector<16x16x16xf32> to vector<16x16x16xbf16>
    %c0_65 = arith.constant 0 : index
    %c0_66 = arith.constant 0 : index
    %c32 = arith.constant 32 : index
    %83 = vector.load %arg17[%c0_65, %c0_66, %c32] : memref<16x16x144xbf16, #tpu.memory_space<vmem>>, vector<16x16x16xbf16>
    tpu.vector_store %arg17[%c0_65, %c0_66, %c32], %82 {strides = array<i32>} : memref<16x16x144xbf16, #tpu.memory_space<vmem>>, vector<16x16x16xbf16>,
    %c1_67 = arith.constant 1 : index
    %c0_68 = arith.constant 0 : index
    %c0_69 = arith.constant 0 : index
    %84 = vector.load %arg15[%c1_67, %c0_68, %c0_69] : memref<18x18x16xf32, #tpu.memory_space<vmem>>, vector<16x16x16xf32>
    %85 = arith.truncf %84 : vector<16x16x16xf32> to vector<16x16x16xbf16>
    %c0_70 = arith.constant 0 : index
    %c0_71 = arith.constant 0 : index
    %c48 = arith.constant 48 : index
    %86 = vector.load %arg17[%c0_70, %c0_71, %c48] : memref<16x16x144xbf16, #tpu.memory_space<vmem>>, vector<16x16x16xbf16>
    tpu.vector_store %arg17[%c0_70, %c0_71, %c48], %85 {strides = array<i32>} : memref<16x16x144xbf16, #tpu.memory_space<vmem>>, vector<16x16x16xbf16>,
    %c1_72 = arith.constant 1 : index
    %c1_73 = arith.constant 1 : index
    %c0_74 = arith.constant 0 : index
    %87 = vector.load %arg15[%c1_72, %c1_73, %c0_74] : memref<18x18x16xf32, #tpu.memory_space<vmem>>, vector<16x16x16xf32>
    %88 = arith.truncf %87 : vector<16x16x16xf32> to vector<16x16x16xbf16>
    %c0_75 = arith.constant 0 : index
    %c0_76 = arith.constant 0 : index
    %c64 = arith.constant 64 : index
    %89 = vector.load %arg17[%c0_75, %c0_76, %c64] : memref<16x16x144xbf16, #tpu.memory_space<vmem>>, vector<16x16x16xbf16>
    tpu.vector_store %arg17[%c0_75, %c0_76, %c64], %88 {strides = array<i32>} : memref<16x16x144xbf16, #tpu.memory_space<vmem>>, vector<16x16x16xbf16>,
    %c1_77 = arith.constant 1 : index
    %c2_78 = arith.constant 2 : index
    %c0_79 = arith.constant 0 : index
    %90 = vector.load %arg15[%c1_77, %c2_78, %c0_79] : memref<18x18x16xf32, #tpu.memory_space<vmem>>, vector<16x16x16xf32>
    %91 = arith.truncf %90 : vector<16x16x16xf32> to vector<16x16x16xbf16>
    %c0_80 = arith.constant 0 : index
    %c0_81 = arith.constant 0 : index
    %c80 = arith.constant 80 : index
    %92 = vector.load %arg17[%c0_80, %c0_81, %c80] : memref<16x16x144xbf16, #tpu.memory_space<vmem>>, vector<16x16x16xbf16>
    tpu.vector_store %arg17[%c0_80, %c0_81, %c80], %91 {strides = array<i32>} : memref<16x16x144xbf16, #tpu.memory_space<vmem>>, vector<16x16x16xbf16>,
    %c2_82 = arith.constant 2 : index
    %c0_83 = arith.constant 0 : index
    %c0_84 = arith.constant 0 : index
    %93 = vector.load %arg15[%c2_82, %c0_83, %c0_84] : memref<18x18x16xf32, #tpu.memory_space<vmem>>, vector<16x16x16xf32>
    %94 = arith.truncf %93 : vector<16x16x16xf32> to vector<16x16x16xbf16>
    %c0_85 = arith.constant 0 : index
    %c0_86 = arith.constant 0 : index
    %c96 = arith.constant 96 : index
    %95 = vector.load %arg17[%c0_85, %c0_86, %c96] : memref<16x16x144xbf16, #tpu.memory_space<vmem>>, vector<16x16x16xbf16>
    tpu.vector_store %arg17[%c0_85, %c0_86, %c96], %94 {strides = array<i32>} : memref<16x16x144xbf16, #tpu.memory_space<vmem>>, vector<16x16x16xbf16>,
    %c2_87 = arith.constant 2 : index
    %c1_88 = arith.constant 1 : index
    %c0_89 = arith.constant 0 : index
    %96 = vector.load %arg15[%c2_87, %c1_88, %c0_89] : memref<18x18x16xf32, #tpu.memory_space<vmem>>, vector<16x16x16xf32>
    %97 = arith.truncf %96 : vector<16x16x16xf32> to vector<16x16x16xbf16>
    %c0_90 = arith.constant 0 : index
    %c0_91 = arith.constant 0 : index
    %c112 = arith.constant 112 : index
    %98 = vector.load %arg17[%c0_90, %c0_91, %c112] : memref<16x16x144xbf16, #tpu.memory_space<vmem>>, vector<16x16x16xbf16>
    tpu.vector_store %arg17[%c0_90, %c0_91, %c112], %97 {strides = array<i32>} : memref<16x16x144xbf16, #tpu.memory_space<vmem>>, vector<16x16x16xbf16>,
    %c2_92 = arith.constant 2 : index
    %c2_93 = arith.constant 2 : index
    %c0_94 = arith.constant 0 : index
    %99 = vector.load %arg15[%c2_92, %c2_93, %c0_94] : memref<18x18x16xf32, #tpu.memory_space<vmem>>, vector<16x16x16xf32>
    %100 = arith.truncf %99 : vector<16x16x16xf32> to vector<16x16x16xbf16>
    %c0_95 = arith.constant 0 : index
    %c0_96 = arith.constant 0 : index
    %c128 = arith.constant 128 : index
    %101 = vector.load %arg17[%c0_95, %c0_96, %c128] : memref<16x16x144xbf16, #tpu.memory_space<vmem>>, vector<16x16x16xbf16>
    tpu.vector_store %arg17[%c0_95, %c0_96, %c128], %100 {strides = array<i32>} : memref<16x16x144xbf16, #tpu.memory_space<vmem>>, vector<16x16x16xbf16>,
    %c0_97 = arith.constant 0 : index
    %c0_98 = arith.constant 0 : index
    %c0_99 = arith.constant 0 : index
    %102 = vector.load %arg17[%c0_97, %c0_98, %c0_99] : memref<16x16x144xbf16, #tpu.memory_space<vmem>>, vector<16x16x144xbf16>
    %103 = vector.shape_cast %102 : vector<16x16x144xbf16> to vector<256x144xbf16>
    %c0_100 = arith.constant 0 : index
    %c0_101 = arith.constant 0 : index
    %104 = vector.load %arg5[%c0_100, %c0_101] : memref<144x16xbf16, #tpu.memory_space<vmem>>, vector<144x16xbf16>
    %cst_102 = arith.constant dense<0.000000e+00> : vector<256x16xf32>
    %105 = tpu.matmul %103, %104, %cst_102 {dimension_numbers = #tpu.dot_dimension_numbers<[1], [0], [0], [1], [0, 0, 1, 1], [], []>} : vector<256x144xbf16>, vector<144x16xbf16>, vector<256x16xf32> -> vector<256x16xf32>
    %c0_103 = arith.constant 0 : index
    %c0_104 = arith.constant 0 : index
    %106 = vector.load %arg6[%c0_103, %c0_104] : memref<1x16xf32, #tpu.memory_space<vmem>>, vector<1x16xf32>
    %107 = vector.broadcast %106 : vector<1x16xf32> to vector<256x16xf32>
    %108 = arith.addf %105, %107 : vector<256x16xf32>
    %c0_105 = arith.constant 0 : index
    %c0_106 = arith.constant 0 : index
    %109 = vector.load %arg13[%c0_105, %c0_106] : memref<16x16xf32, #tpu.memory_space<vmem>>, vector<16x16xf32>
    %cst_107 = arith.constant dense<0.000000e+00> : vector<256x16xf32>
    %110 = tpu.matmul %108, %109, %cst_107 {dimension_numbers = #tpu.dot_dimension_numbers<[1], [0], [0], [1], [0, 0, 1, 1], [], []>} : vector<256x16xf32>, vector<16x16xf32>, vector<256x16xf32> -> vector<256x16xf32>
    %cst_108 = arith.constant dense<0.000000e+00> : vector<16xf32>
    %111 = vector.multi_reduction <add>, %110, %cst_108 [0] : vector<256x16xf32> to vector<16xf32>
    %112 = vector.shape_cast %111 : vector<16xf32> to vector<1x16xf32>
    %cst_109 = arith.constant 2.560000e+02 : f32
    %113 = vector.broadcast %cst_109 : f32 to vector<1x16xf32>
    %114 = arith.divf %112, %113 : vector<1x16xf32>
    %115 = vector.broadcast %114 : vector<1x16xf32> to vector<256x16xf32>
    %116 = arith.subf %108, %115 : vector<256x16xf32>
    %117 = arith.mulf %116, %116 : vector<256x16xf32>
    %c0_110 = arith.constant 0 : index
    %c0_111 = arith.constant 0 : index
    %118 = vector.load %arg13[%c0_110, %c0_111] : memref<16x16xf32, #tpu.memory_space<vmem>>, vector<16x16xf32>
    %cst_112 = arith.constant dense<0.000000e+00> : vector<256x16xf32>
    %119 = tpu.matmul %117, %118, %cst_112 {dimension_numbers = #tpu.dot_dimension_numbers<[1], [0], [0], [1], [0, 0, 1, 1], [], []>} : vector<256x16xf32>, vector<16x16xf32>, vector<256x16xf32> -> vector<256x16xf32>
    %cst_113 = arith.constant dense<0.000000e+00> : vector<16xf32>
    %120 = vector.multi_reduction <add>, %119, %cst_113 [0] : vector<256x16xf32> to vector<16xf32>
    %121 = vector.shape_cast %120 : vector<16xf32> to vector<1x16xf32>
    %cst_114 = arith.constant 2.560000e+02 : f32
    %122 = vector.broadcast %cst_114 : f32 to vector<1x16xf32>
    %123 = arith.divf %121, %122 : vector<1x16xf32>
    %cst_115 = arith.constant 9.99999974E-6 : f32
    %124 = vector.broadcast %cst_115 : f32 to vector<1x16xf32>
    %125 = arith.addf %123, %124 : vector<1x16xf32>
    %126 = math.rsqrt %125 : vector<1x16xf32>
    %127 = vector.broadcast %126 : vector<1x16xf32> to vector<256x16xf32>
    %128 = arith.mulf %116, %127 : vector<256x16xf32>
    %c0_116 = arith.constant 0 : index
    %c0_117 = arith.constant 0 : index
    %129 = vector.load %arg7[%c0_116, %c0_117] : memref<1x16xf32, #tpu.memory_space<vmem>>, vector<1x16xf32>
    %130 = vector.broadcast %129 : vector<1x16xf32> to vector<256x16xf32>
    %131 = arith.mulf %128, %130 : vector<256x16xf32>
    %c0_118 = arith.constant 0 : index
    %c0_119 = arith.constant 0 : index
    %132 = vector.load %arg8[%c0_118, %c0_119] : memref<1x16xf32, #tpu.memory_space<vmem>>, vector<1x16xf32>
    %133 = vector.broadcast %132 : vector<1x16xf32> to vector<256x16xf32>
    %134 = arith.addf %131, %133 : vector<256x16xf32>
    %cst_120 = arith.constant 0.000000e+00 : f32
    %135 = vector.broadcast %cst_120 : f32 to vector<256x16xf32>
    %136 = arith.cmpf ogt, %134, %135 : vector<256x16xf32>
    %cst_121 = arith.constant 0.000000e+00 : f32
    %137 = vector.broadcast %cst_121 : f32 to vector<256x16xf32>
    %138 = arith.minimumf %134, %137 : vector<256x16xf32>
    %139 = math.exp %138 : vector<256x16xf32>
    %cst_122 = arith.constant 1.000000e+00 : f32
    %140 = vector.broadcast %cst_122 : f32 to vector<256x16xf32>
    %141 = arith.subf %139, %140 : vector<256x16xf32>
    %142 = arith.select %136, %134, %141 : vector<256x16xi1>, vector<256x16xf32>
    %cst_123 = arith.constant 0.000000e+00 : f32
    %143 = vector.broadcast %cst_123 : f32 to vector<18x18x16xf32>
    %c0_124 = arith.constant 0 : index
    %c0_125 = arith.constant 0 : index
    %c0_126 = arith.constant 0 : index
    %144 = vector.load %arg16[%c0_124, %c0_125, %c0_126] : memref<18x18x16xf32, #tpu.memory_space<vmem>>, vector<18x18x16xf32>
    tpu.vector_store %arg16[%c0_124, %c0_125, %c0_126], %143 {strides = array<i32>} : memref<18x18x16xf32, #tpu.memory_space<vmem>>, vector<18x18x16xf32>,
    %145 = vector.shape_cast %142 : vector<256x16xf32> to vector<16x16x16xf32>
    %c1_127 = arith.constant 1 : index
    %c1_128 = arith.constant 1 : index
    %c0_129 = arith.constant 0 : index
    %146 = vector.load %arg16[%c1_127, %c1_128, %c0_129] : memref<18x18x16xf32, #tpu.memory_space<vmem>>, vector<16x16x16xf32>
    tpu.vector_store %arg16[%c1_127, %c1_128, %c0_129], %145 {strides = array<i32>} : memref<18x18x16xf32, #tpu.memory_space<vmem>>, vector<16x16x16xf32>,
    %c0_130 = arith.constant 0 : index
    %c0_131 = arith.constant 0 : index
    %c0_132 = arith.constant 0 : index
    %147 = vector.load %arg16[%c0_130, %c0_131, %c0_132] : memref<18x18x16xf32, #tpu.memory_space<vmem>>, vector<16x16x16xf32>
    %148 = arith.truncf %147 : vector<16x16x16xf32> to vector<16x16x16xbf16>
    %c0_133 = arith.constant 0 : index
    %c0_134 = arith.constant 0 : index
    %c0_135 = arith.constant 0 : index
    %149 = vector.load %arg18[%c0_133, %c0_134, %c0_135] : memref<16x16x144xbf16, #tpu.memory_space<vmem>>, vector<16x16x16xbf16>
    tpu.vector_store %arg18[%c0_133, %c0_134, %c0_135], %148 {strides = array<i32>} : memref<16x16x144xbf16, #tpu.memory_space<vmem>>, vector<16x16x16xbf16>,
    %c0_136 = arith.constant 0 : index
    %c1_137 = arith.constant 1 : index
    %c0_138 = arith.constant 0 : index
    %150 = vector.load %arg16[%c0_136, %c1_137, %c0_138] : memref<18x18x16xf32, #tpu.memory_space<vmem>>, vector<16x16x16xf32>
    %151 = arith.truncf %150 : vector<16x16x16xf32> to vector<16x16x16xbf16>
    %c0_139 = arith.constant 0 : index
    %c0_140 = arith.constant 0 : index
    %c16_141 = arith.constant 16 : index
    %152 = vector.load %arg18[%c0_139, %c0_140, %c16_141] : memref<16x16x144xbf16, #tpu.memory_space<vmem>>, vector<16x16x16xbf16>
    tpu.vector_store %arg18[%c0_139, %c0_140, %c16_141], %151 {strides = array<i32>} : memref<16x16x144xbf16, #tpu.memory_space<vmem>>, vector<16x16x16xbf16>,
    %c0_142 = arith.constant 0 : index
    %c2_143 = arith.constant 2 : index
    %c0_144 = arith.constant 0 : index
    %153 = vector.load %arg16[%c0_142, %c2_143, %c0_144] : memref<18x18x16xf32, #tpu.memory_space<vmem>>, vector<16x16x16xf32>
    %154 = arith.truncf %153 : vector<16x16x16xf32> to vector<16x16x16xbf16>
    %c0_145 = arith.constant 0 : index
    %c0_146 = arith.constant 0 : index
    %c32_147 = arith.constant 32 : index
    %155 = vector.load %arg18[%c0_145, %c0_146, %c32_147] : memref<16x16x144xbf16, #tpu.memory_space<vmem>>, vector<16x16x16xbf16>
    tpu.vector_store %arg18[%c0_145, %c0_146, %c32_147], %154 {strides = array<i32>} : memref<16x16x144xbf16, #tpu.memory_space<vmem>>, vector<16x16x16xbf16>,
    %c1_148 = arith.constant 1 : index
    %c0_149 = arith.constant 0 : index
    %c0_150 = arith.constant 0 : index
    %156 = vector.load %arg16[%c1_148, %c0_149, %c0_150] : memref<18x18x16xf32, #tpu.memory_space<vmem>>, vector<16x16x16xf32>
    %157 = arith.truncf %156 : vector<16x16x16xf32> to vector<16x16x16xbf16>
    %c0_151 = arith.constant 0 : index
    %c0_152 = arith.constant 0 : index
    %c48_153 = arith.constant 48 : index
    %158 = vector.load %arg18[%c0_151, %c0_152, %c48_153] : memref<16x16x144xbf16, #tpu.memory_space<vmem>>, vector<16x16x16xbf16>
    tpu.vector_store %arg18[%c0_151, %c0_152, %c48_153], %157 {strides = array<i32>} : memref<16x16x144xbf16, #tpu.memory_space<vmem>>, vector<16x16x16xbf16>,
    %c1_154 = arith.constant 1 : index
    %c1_155 = arith.constant 1 : index
    %c0_156 = arith.constant 0 : index
    %159 = vector.load %arg16[%c1_154, %c1_155, %c0_156] : memref<18x18x16xf32, #tpu.memory_space<vmem>>, vector<16x16x16xf32>
    %160 = arith.truncf %159 : vector<16x16x16xf32> to vector<16x16x16xbf16>
    %c0_157 = arith.constant 0 : index
    %c0_158 = arith.constant 0 : index
    %c64_159 = arith.constant 64 : index
    %161 = vector.load %arg18[%c0_157, %c0_158, %c64_159] : memref<16x16x144xbf16, #tpu.memory_space<vmem>>, vector<16x16x16xbf16>
    tpu.vector_store %arg18[%c0_157, %c0_158, %c64_159], %160 {strides = array<i32>} : memref<16x16x144xbf16, #tpu.memory_space<vmem>>, vector<16x16x16xbf16>,
    %c1_160 = arith.constant 1 : index
    %c2_161 = arith.constant 2 : index
    %c0_162 = arith.constant 0 : index
    %162 = vector.load %arg16[%c1_160, %c2_161, %c0_162] : memref<18x18x16xf32, #tpu.memory_space<vmem>>, vector<16x16x16xf32>
    %163 = arith.truncf %162 : vector<16x16x16xf32> to vector<16x16x16xbf16>
    %c0_163 = arith.constant 0 : index
    %c0_164 = arith.constant 0 : index
    %c80_165 = arith.constant 80 : index
    %164 = vector.load %arg18[%c0_163, %c0_164, %c80_165] : memref<16x16x144xbf16, #tpu.memory_space<vmem>>, vector<16x16x16xbf16>
    tpu.vector_store %arg18[%c0_163, %c0_164, %c80_165], %163 {strides = array<i32>} : memref<16x16x144xbf16, #tpu.memory_space<vmem>>, vector<16x16x16xbf16>,
    %c2_166 = arith.constant 2 : index
    %c0_167 = arith.constant 0 : index
    %c0_168 = arith.constant 0 : index
    %165 = vector.load %arg16[%c2_166, %c0_167, %c0_168] : memref<18x18x16xf32, #tpu.memory_space<vmem>>, vector<16x16x16xf32>
    %166 = arith.truncf %165 : vector<16x16x16xf32> to vector<16x16x16xbf16>
    %c0_169 = arith.constant 0 : index
    %c0_170 = arith.constant 0 : index
    %c96_171 = arith.constant 96 : index
    %167 = vector.load %arg18[%c0_169, %c0_170, %c96_171] : memref<16x16x144xbf16, #tpu.memory_space<vmem>>, vector<16x16x16xbf16>
    tpu.vector_store %arg18[%c0_169, %c0_170, %c96_171], %166 {strides = array<i32>} : memref<16x16x144xbf16, #tpu.memory_space<vmem>>, vector<16x16x16xbf16>,
    %c2_172 = arith.constant 2 : index
    %c1_173 = arith.constant 1 : index
    %c0_174 = arith.constant 0 : index
    %168 = vector.load %arg16[%c2_172, %c1_173, %c0_174] : memref<18x18x16xf32, #tpu.memory_space<vmem>>, vector<16x16x16xf32>
    %169 = arith.truncf %168 : vector<16x16x16xf32> to vector<16x16x16xbf16>
    %c0_175 = arith.constant 0 : index
    %c0_176 = arith.constant 0 : index
    %c112_177 = arith.constant 112 : index
    %170 = vector.load %arg18[%c0_175, %c0_176, %c112_177] : memref<16x16x144xbf16, #tpu.memory_space<vmem>>, vector<16x16x16xbf16>
    tpu.vector_store %arg18[%c0_175, %c0_176, %c112_177], %169 {strides = array<i32>} : memref<16x16x144xbf16, #tpu.memory_space<vmem>>, vector<16x16x16xbf16>,
    %c2_178 = arith.constant 2 : index
    %c2_179 = arith.constant 2 : index
    %c0_180 = arith.constant 0 : index
    %171 = vector.load %arg16[%c2_178, %c2_179, %c0_180] : memref<18x18x16xf32, #tpu.memory_space<vmem>>, vector<16x16x16xf32>
    %172 = arith.truncf %171 : vector<16x16x16xf32> to vector<16x16x16xbf16>
    %c0_181 = arith.constant 0 : index
    %c0_182 = arith.constant 0 : index
    %c128_183 = arith.constant 128 : index
    %173 = vector.load %arg18[%c0_181, %c0_182, %c128_183] : memref<16x16x144xbf16, #tpu.memory_space<vmem>>, vector<16x16x16xbf16>
    tpu.vector_store %arg18[%c0_181, %c0_182, %c128_183], %172 {strides = array<i32>} : memref<16x16x144xbf16, #tpu.memory_space<vmem>>, vector<16x16x16xbf16>,
    %c0_184 = arith.constant 0 : index
    %c0_185 = arith.constant 0 : index
    %c0_186 = arith.constant 0 : index
    %174 = vector.load %arg18[%c0_184, %c0_185, %c0_186] : memref<16x16x144xbf16, #tpu.memory_space<vmem>>, vector<16x16x144xbf16>
    %175 = vector.shape_cast %174 : vector<16x16x144xbf16> to vector<256x144xbf16>
    %c0_187 = arith.constant 0 : index
    %c0_188 = arith.constant 0 : index
    %176 = vector.load %arg9[%c0_187, %c0_188] : memref<16x144xbf16, #tpu.memory_space<vmem>>, vector<16x144xbf16>
    %cst_189 = arith.constant dense<0.000000e+00> : vector<16x256xf32>
    %177 = tpu.matmul %176, %175, %cst_189 {dimension_numbers = #tpu.dot_dimension_numbers<[1], [1], [0], [0], [0, 0, 1, 0], [], []>} : vector<16x144xbf16>, vector<256x144xbf16>, vector<16x256xf32> -> vector<16x256xf32>
    %c0_190 = arith.constant 0 : index
    %c0_191 = arith.constant 0 : index
    %178 = vector.load %arg10[%c0_190, %c0_191] : memref<16x1xf32, #tpu.memory_space<vmem>>, vector<16x1xf32>
    %179 = vector.broadcast %178 : vector<16x1xf32> to vector<16x256xf32>
    %180 = arith.addf %177, %179 : vector<16x256xf32>
    %c0_192 = arith.constant 0 : index
    %c0_193 = arith.constant 0 : index
    %181 = vector.load %arg13[%c0_192, %c0_193] : memref<16x16xf32, #tpu.memory_space<vmem>>, vector<16x16xf32>
    %cst_194 = arith.constant dense<0.000000e+00> : vector<16x256xf32>
    %182 = tpu.matmul %181, %180, %cst_194 {dimension_numbers = #tpu.dot_dimension_numbers<[1], [0], [0], [1], [0, 0, 1, 1], [], []>} : vector<16x16xf32>, vector<16x256xf32>, vector<16x256xf32> -> vector<16x256xf32>
    %cst_195 = arith.constant dense<0.000000e+00> : vector<16xf32>
    %183 = vector.multi_reduction <add>, %182, %cst_195 [1] : vector<16x256xf32> to vector<16xf32>
    %184 = vector.shape_cast %183 : vector<16xf32> to vector<16x1xf32>
    %cst_196 = arith.constant 2.560000e+02 : f32
    %185 = vector.broadcast %cst_196 : f32 to vector<16x1xf32>
    %186 = arith.divf %184, %185 : vector<16x1xf32>
    %187 = vector.broadcast %186 : vector<16x1xf32> to vector<16x256xf32>
    %188 = arith.subf %180, %187 : vector<16x256xf32>
    %c0_197 = arith.constant 0 : index
    %c0_198 = arith.constant 0 : index
    %189 = vector.load %arg13[%c0_197, %c0_198] : memref<16x16xf32, #tpu.memory_space<vmem>>, vector<16x16xf32>
    %190 = arith.mulf %188, %188 : vector<16x256xf32>
    %cst_199 = arith.constant dense<0.000000e+00> : vector<16x256xf32>
    %191 = tpu.matmul %189, %190, %cst_199 {dimension_numbers = #tpu.dot_dimension_numbers<[1], [0], [0], [1], [0, 0, 1, 1], [], []>} : vector<16x16xf32>, vector<16x256xf32>, vector<16x256xf32> -> vector<16x256xf32>
    %cst_200 = arith.constant dense<0.000000e+00> : vector<16xf32>
    %192 = vector.multi_reduction <add>, %191, %cst_200 [1] : vector<16x256xf32> to vector<16xf32>
    %193 = vector.shape_cast %192 : vector<16xf32> to vector<16x1xf32>
    %cst_201 = arith.constant 2.560000e+02 : f32
    %194 = vector.broadcast %cst_201 : f32 to vector<16x1xf32>
    %195 = arith.divf %193, %194 : vector<16x1xf32>
    %cst_202 = arith.constant 9.99999974E-6 : f32
    %196 = vector.broadcast %cst_202 : f32 to vector<16x1xf32>
    %197 = arith.addf %195, %196 : vector<16x1xf32>
    %198 = math.rsqrt %197 : vector<16x1xf32>
    %199 = vector.broadcast %198 : vector<16x1xf32> to vector<16x256xf32>
    %200 = arith.mulf %188, %199 : vector<16x256xf32>
    %c0_203 = arith.constant 0 : index
    %c0_204 = arith.constant 0 : index
    %201 = vector.load %arg11[%c0_203, %c0_204] : memref<16x1xf32, #tpu.memory_space<vmem>>, vector<16x1xf32>
    %202 = vector.broadcast %201 : vector<16x1xf32> to vector<16x256xf32>
    %203 = arith.mulf %200, %202 : vector<16x256xf32>
    %c0_205 = arith.constant 0 : index
    %c0_206 = arith.constant 0 : index
    %204 = vector.load %arg12[%c0_205, %c0_206] : memref<16x1xf32, #tpu.memory_space<vmem>>, vector<16x1xf32>
    %205 = vector.broadcast %204 : vector<16x1xf32> to vector<16x256xf32>
    %206 = arith.addf %203, %205 : vector<16x256xf32>
    %cst_207 = arith.constant 0.000000e+00 : f32
    %207 = vector.broadcast %cst_207 : f32 to vector<16x256xf32>
    %208 = arith.cmpf ogt, %206, %207 : vector<16x256xf32>
    %cst_208 = arith.constant 0.000000e+00 : f32
    %209 = vector.broadcast %cst_208 : f32 to vector<16x256xf32>
    %210 = arith.minimumf %206, %209 : vector<16x256xf32>
    %211 = math.exp %210 : vector<16x256xf32>
    %cst_209 = arith.constant 1.000000e+00 : f32
    %212 = vector.broadcast %cst_209 : f32 to vector<16x256xf32>
    %213 = arith.subf %211, %212 : vector<16x256xf32>
    %214 = arith.select %208, %206, %213 : vector<16x256xi1>, vector<16x256xf32>
    %c0_210 = arith.constant 0 : index
    %c0_211 = arith.constant 0 : index
    %c0_212 = arith.constant 0 : index
    %215 = vector.load %arg14[%c0_210, %c0_211, %c0_212] : memref<1x16x256xf32, #tpu.memory_space<vmem>>, vector<1x16x256xf32>
    %216 = vector.shape_cast %215 : vector<1x16x256xf32> to vector<16x256xf32>
    %217 = vector.shape_cast %214 : vector<16x256xf32> to vector<1x16x256xf32>
    tpu.vector_store %arg14[%c0_210, %c0_211, %c0_212], %217 {strides = array<i32>} : memref<1x16x256xf32, #tpu.memory_space<vmem>>, vector<1x16x256xf32>,
    return
  }
  func.func @transform_0(%arg0: i32) -> (i32, i32, i32) {
    %c0_i32 = arith.constant 0 : i32
    %c0_i32_0 = arith.constant 0 : i32
    %c0_i32_1 = arith.constant 0 : i32
    return %arg0, %c0_i32, %c0_i32_0 : i32, i32, i32
  }
  func.func @transform_1(%arg0: i32) -> (i32, i32, i32, i32) {
    %c0_i32 = arith.constant 0 : i32
    %c0_i32_0 = arith.constant 0 : i32
    %c0_i32_1 = arith.constant 0 : i32
    %c0_i32_2 = arith.constant 0 : i32
    return %arg0, %c0_i32, %c0_i32_0, %c0_i32_1 : i32, i32, i32, i32
  }
  func.func @transform_2(%arg0: i32) -> (i32, i32) {
    %c0_i32 = arith.constant 0 : i32
    %c0_i32_0 = arith.constant 0 : i32
    %c0_i32_1 = arith.constant 0 : i32
    return %c0_i32, %c0_i32_0 : i32, i32
  }
  func.func @transform_3(%arg0: i32) -> (i32, i32) {
    %c0_i32 = arith.constant 0 : i32
    %c0_i32_0 = arith.constant 0 : i32
    %c0_i32_1 = arith.constant 0 : i32
    return %c0_i32, %c0_i32_0 : i32, i32
  }
  func.func @transform_4(%arg0: i32) -> (i32, i32) {
    %c0_i32 = arith.constant 0 : i32
    %c0_i32_0 = arith.constant 0 : i32
    %c0_i32_1 = arith.constant 0 : i32
    return %c0_i32, %c0_i32_0 : i32, i32
  }
  func.func @transform_5(%arg0: i32) -> (i32, i32) {
    %c0_i32 = arith.constant 0 : i32
    %c0_i32_0 = arith.constant 0 : i32
    %c0_i32_1 = arith.constant 0 : i32
    return %c0_i32, %c0_i32_0 : i32, i32
  }
  func.func @transform_6(%arg0: i32) -> (i32, i32) {
    %c0_i32 = arith.constant 0 : i32
    %c0_i32_0 = arith.constant 0 : i32
    %c0_i32_1 = arith.constant 0 : i32
    return %c0_i32, %c0_i32_0 : i32, i32
  }
  func.func @transform_7(%arg0: i32) -> (i32, i32) {
    %c0_i32 = arith.constant 0 : i32
    %c0_i32_0 = arith.constant 0 : i32
    %c0_i32_1 = arith.constant 0 : i32
    return %c0_i32, %c0_i32_0 : i32, i32
  }
  func.func @transform_8(%arg0: i32) -> (i32, i32) {
    %c0_i32 = arith.constant 0 : i32
    %c0_i32_0 = arith.constant 0 : i32
    %c0_i32_1 = arith.constant 0 : i32
    return %c0_i32, %c0_i32_0 : i32, i32
  }
  func.func @transform_9(%arg0: i32) -> (i32, i32) {
    %c0_i32 = arith.constant 0 : i32
    %c0_i32_0 = arith.constant 0 : i32
    %c0_i32_1 = arith.constant 0 : i32
    return %c0_i32, %c0_i32_0 : i32, i32
  }
  func.func @transform_10(%arg0: i32) -> (i32, i32) {
    %c0_i32 = arith.constant 0 : i32
    %c0_i32_0 = arith.constant 0 : i32
    %c0_i32_1 = arith.constant 0 : i32
    return %c0_i32, %c0_i32_0 : i32, i32
  }
  func.func @transform_11(%arg0: i32) -> (i32, i32) {
    %c0_i32 = arith.constant 0 : i32
    %c0_i32_0 = arith.constant 0 : i32
    %c0_i32_1 = arith.constant 0 : i32
    return %c0_i32, %c0_i32_0 : i32, i32
  }
  func.func @transform_12(%arg0: i32) -> (i32, i32) {
    %c0_i32 = arith.constant 0 : i32
    %c0_i32_0 = arith.constant 0 : i32
    %c0_i32_1 = arith.constant 0 : i32
    return %c0_i32, %c0_i32_0 : i32, i32
  }
  func.func @transform_13(%arg0: i32) -> (i32, i32, i32) {
    %c0_i32 = arith.constant 0 : i32
    %c0_i32_0 = arith.constant 0 : i32
    %c0_i32_1 = arith.constant 0 : i32
    return %arg0, %c0_i32, %c0_i32_0 : i32, i32, i32
  }
}

</mosaic_0001>

<bundles_post_ra>
// kernel: tpu_custom_call.1
= control target key start
LH: loop header
LB: loop body
LE: loop exit
PB: predicated region body
PF: predicated region fallthrough
CT: control target
= control target key end

     0   :  { %18 = vsyncpa [#allocation7], 0  ;;  %s12059_s0 = inlined_call_operand.vmem [shape: f32[2,8,64], index: 0, kind: input, shape index: {}]   ;;  %s12060_s1 = inlined_call_operand.vmem [shape: f32[2,16,16,8], index: 1, kind: input, shape index: {}]   ;;  %s12061_s2 = inlined_call_operand.vmem [shape: f32[16,8], index: 2, kind: input, shape index: {}]   ;;  %s12062_s3 = inlined_call_operand.vmem [shape: f32[64,128], index: 3, kind: input, shape index: {}]   ;;  %s12063_s4 = inlined_call_operand.vmem [shape: bf16[144,16], index: 4, kind: input, shape index: {}]   ;;  %s12064_s5 = inlined_call_operand.vmem [shape: f32[1,16], index: 5, kind: input, shape index: {}]   ;;  %s12065_s6 = inlined_call_operand.vmem [shape: f32[1,16], index: 6, kind: input, shape index: {}]   ;;  %s12066_s7 = inlined_call_operand.vmem [shape: f32[1,16], index: 7, kind: input, shape index: {}]   ;;  %s12067_s8 = inlined_call_operand.vmem [shape: bf16[16,144], index: 8, kind: input, shape index: {}]   ;;  %s12068_s9 = inlined_call_operand.vmem [shape: f32[16,1], index: 9, kind: input, shape index: {}]   ;;  %s12069_s10 = inlined_call_operand.vmem [shape: f32[16,1], index: 10, kind: input, shape index: {}]   ;;  %s12070_s11 = inlined_call_operand.vmem [shape: f32[16,1], index: 11, kind: input, shape index: {}]   ;;  %s12071_s12 = inlined_call_operand.vmem [shape: f32[16,16], index: 12, kind: input, shape index: {}]   ;;  %s12072_s13 = inlined_call_operand.hbm [shape: f32[2,16,256], index: 13, kind: output, shape index: {}]  }
   0x1   :  { %20 = vsyncpa [#allocation7 + $0x1], 0  ;;  %s8123_s25 = smov 0   ;;  %s8125_s26 = smov 0  }
   0x2   :  { %s8127_s27 = smov 0   ;;  %s8129_s28 = smov 0  }
   0x3 LB: > { %12093 = sst [smem:[#allocation9_spill]] %s8020_s25  ;;  %s8144_s29 = sadd.s32 4294967295, %s8032_s28   ;;  %s8032_s28 = sphi %s8129_s28, %s12272_s28   ;;  %s8028_s27 = sphi %s8127_s27, %s12277_s27   ;;  %s8024_s26 = sphi %s8125_s26, %s12276_s26   ;;  %s8020_s25 = sphi %s8123_s25, %s12275_s25  }
   0x4   : > { %12094 = sst [smem:[#allocation10_spill]] %s8028_s27  ;;  %s7305_s30 = sadd.s32 4294967294, %s8032_s28  }
   0x5   : > { %s8148_s14 = sadd.s32 1, %s8032_s28   ;;  %s316_s15 = sadd.s32 1, %s8028_s27 }
   0x6   : > { %12095 = sst [smem:[#allocation11_spill]] %s8148_s14  ;;  %s313_s16 = ssub.s32 %s8032_s28, %s8148_s14 }
   0x7   : > { %p326_p0 = scmp.ne.s32.totalorder %s8028_s27, %s8024_s26  ;;  %p314_p1 = scmp.eq.s32.totalorder %s313_s16, 0 }
   0x8   : > { %p327_p2 = scmp.eq.s32.totalorder %s8144_s29, 1  ;;  %p332_p3 = scmp.ne.s32.totalorder %s8024_s26, %s8020_s25 }
   0x9   : > { %p333_p4 = scmp.eq.s32.totalorder %s7305_s30, 1  ;;  %p7308_p7 = scmp.ge.s32.totalorder %s8032_s28, 1 }
   0xa   : > { %s8159_s17 = scalar_select %p314_p1, %s8028_s27, %s316_s15  }
   0xb   : > { %p8161_p5 = por %p327_p2, %p326_p0  ;;  %p8165_p6 = por %p333_p4, %p332_p3 }
   0xc   : > { %12096 = sst [smem:[#allocation12_spill]] %s8159_s17  ;;  %p399_p8 = scmp.lt.s32.totalorder %s8032_s28, 3 }
   0xd   : > { %s12098_s19 = scalar_select %p8165_p6, 1, 0 }
   0xe   : > { %p400_p9 = pnand %p7308_p7, %p399_p8 }
   0xf   : > { %12099 = sst [smem:[#allocation13_spill]] %s12098_s19 }
  0x10   : > { %403 = sbr.rel (%p400_p9) target bundleno = 3872 (0xf20), region = 72 }
  0x15   : > { %v587_v0 = vld [vmem:[%s12062_s3 + $0x38] sm:$0xff]  ;;  %v586_v1 = vld [vmem:[%s12062_s3 + $0x30] sm:$0xff]  ;;  %p447_p10 = scmp.lt.s32.totalorder %s8144_s29, 1  ;;  %v585_v2 = vld [vmem:[%s12062_s3 + $0x28] sm:$0xff]  ;;  %vm588_vm0 = vcmask 523264   ;;  %vm546_vm1 = vcmask 64512  }
  0x16   : > { %600 = vmatpush.msra.mxu0 %v587_v0  ;;  %v584_v3 = vld [vmem:[%s12062_s3 + $0x20] sm:$0xff]  ;;  %v583_v4 = vld [vmem:[%s12062_s3 + $0x18] sm:$0xff]  ;;  %v582_v5 = vld [vmem:[%s12062_s3 + $0x10] sm:$0xff]  ;;  %vm457_vm2 = vcmask 130048   ;;  %v8034_v11 = vmov 0.0   ;;  %vm723_vm3 = vcmask 122944  }
  0x17   : > { %s448_s15 = scalar_select %p447_p10, %s8144_s29, 1  ;;  %v581_v6 = vld [vmem:[%s12062_s3 + $0x8] sm:$0xff]  ;;  %v580_v7 = vld [vmem:[%s12062_s3] sm:$0xff]  ;;  %462 = vst.msk [vmem:[#allocation2 + $0x18] sm:$0xff] %vm457_vm2, %v8034_v11  ;;  %vm1730_vm4 = vcmask 125952   ;;  %vm460_vm5 = vcmask 123904  }
  0x18   : > { %601 = vmatpush.msra.mxu0 %v586_v1  ;;  %v612_v9 = vld [vmem:[%s12061_s2] sm:$0xff]  ;;  %463 = vst.msk [vmem:[#allocation2 + $0x20] sm:$0xff] %vm457_vm2, %v8034_v11  ;;  %v613_v13 = vld [vmem:[%s12061_s2 + $0x8] sm:$0xff]  ;;  %s12082_s23 = smov 112   ;;  %s8036_s24 = smov 120   ;;  %vm1955_vm6 = vcmask 257152  }
  0x19   : > { %s7310_s22 = sshll.u32 %s448_s15, 3  ;;  %s7747_s14 = sshll.u32 %s448_s15, 8  ;;  %458 = vst.msk [vmem:[#allocation2] sm:$0xff] %vm457_vm2, %v8034_v11  ;;  %vm2180_vm7 = vcmask 388352   ;;  %vm12092_vm8 = vcmask 519552   ;;  %vm12091_vm9 = vcmask 650752  }
  0x1a   : > { %602 = vmatpush.msra.mxu0 %v585_v2  ;;  %s450_s17 = scalar_lea.vmem %s12059_s0, %s7310_s22  ;;  %s8207_s25 = scalar_lea.vmem %s12060_s1, %s7747_s14  ;;  %459 = vst.msk [vmem:[#allocation2 + $0x8] sm:$0xff] %vm457_vm2, %v8034_v11  ;;  %vm12090_vm10 = vcmask 781952   ;;  %vm12089_vm11 = vcmask 913152   ;;  %vm12088_vm12 = vcmask 1044352  }
  0x1b   : > { %v579_v8 = vld [vmem:[%s450_s17] sm:$0xff]  ;;  %465 = vst.msk [vmem:[#allocation2 + $0x30] sm:$0xff] %vm457_vm2, %v8034_v11  ;;  %s8037_s30 = smov 8   ;;  %s8038_s17 = smov 88   ;;  %v523_v31 = vld [vmem:[%s8207_s25 + $0x50] sm:$0xff] }
  0x1c   : > { %603 = vmatpush.msra.mxu0 %v584_v3  ;;  %v513_v12 = vld [vmem:[%s8207_s25] sm:$0xff]  ;;  %466 = vst.msk [vmem:[#allocation2 + $0x38] sm:$0xff] %vm457_vm2, %v8034_v11  ;;  %s8039_s16 = smov 96   ;;  %s8040_s27 = smov 104   ;;  %v515_v32 = vld [vmem:[%s8207_s25 + $0x10] sm:$0xff] }
  0x1d   : > { %547 = vst.msk [vmem:[#allocation2 + $0x19] sm:$0xff] %vm546_vm1, %v513_v12  ;;  %s8041_s20 = smov 80   ;;  %v521_v30 = vld [vmem:[%s8207_s25 + $0x40] sm:$0xff]  ;;  %v519_v34 = vld [vmem:[%s8207_s25 + $0x30] sm:$0xff]  ;;  %s12078_s14 = smov 72  }
  0x1e   : > { %604 = vmatpush.msra.mxu0 %v583_v4  ;;  %468 = vst.msk [vmem:[#allocation2 + $0x48] sm:$0xff] %vm457_vm2, %v8034_v11  ;;  %v517_v33 = vld [vmem:[%s8207_s25 + $0x20] sm:$0xff]  ;;  %v527_v35 = vld [vmem:[%s8207_s25 + $0x70] sm:$0xff]  ;;  %s8043_s19 = smov 48   ;;  %s8044_s21 = smov 56  }
  0x1f   : > { %469 = vst.msk [vmem:[#allocation2 + $0x50] sm:$0xff] %vm457_vm2, %v8034_v11  ;;  %v525_v36 = vld [vmem:[%s8207_s25 + $0x60] sm:$0xff]  ;;  %s8045_s15 = smov 64   ;;  %s12080_s22 = smov 24  }
  0x20   : > { %605 = vmatpush.msra.mxu0 %v582_v5  ;;  %471 = vst.msk [vmem:[#allocation2 + $0x60] sm:$0xff] %vm457_vm2, %v8034_v11 }
  0x21   : > { %472 = vst.msk [vmem:[#allocation2 + $0x68] sm:$0xff] %vm457_vm2, %v8034_v11 }
  0x22   : > { %606 = vmatpush.msra.mxu0 %v581_v6  ;;  %474 = vst.msk [vmem:[#allocation2 + $0x78] sm:$0xff] %vm457_vm2, %v8034_v11 }
  0x23   : > { %475 = vst.msk [vmem:[#allocation2 + $0x80] sm:$0xff] %vm457_vm2, %v8034_v11 }
  0x24   : > { %607 = vmatpush.msra.mxu0 %v580_v7  ;;  %477 = vst.msk [vmem:[#allocation2 + $0x90] sm:$0xff] %vm457_vm2, %v8034_v11  ;;  %v529_v7 = vld [vmem:[%s8207_s25 + $0x80] sm:$0xff] }
  0x25   : > { %7313 = vmatmul.msk.f32.vlgmr.msra.gmra.mxu0 %vm588_vm0, %v579_v8  ;;  %478 = vst.msk [vmem:[#allocation2 + $0x98] sm:$0xff] %vm457_vm2, %v8034_v11 }
  0x26   : > { %480 = vst.msk [vmem:[#allocation2 + $0xa8] sm:$0xff] %vm457_vm2, %v8034_v11 }
  0x27   : > { %481 = vst.msk [vmem:[#allocation2 + $0xb0] sm:$0xff] %vm457_vm2, %v8034_v11 }
  0x28   : > { %483 = vst.msk [vmem:[#allocation2 + $0xc0] sm:$0xff] %vm457_vm2, %v8034_v11 }
  0x29   : > { %484 = vst.msk [vmem:[#allocation2 + $0xc8] sm:$0xff] %vm457_vm2, %v8034_v11 }
  0x2a   : > { %486 = vst.msk [vmem:[#allocation2 + $0xd8] sm:$0xff] %vm457_vm2, %v8034_v11 }
  0x2b   : > { %487 = vst.msk [vmem:[#allocation2 + $0xe0] sm:$0xff] %vm457_vm2, %v8034_v11 }
  0x2c   : > { %489 = vst.msk [vmem:[#allocation2 + $0xf0] sm:$0xff] %vm457_vm2, %v8034_v11 }
  0x2d   : > { %490 = vst.msk [vmem:[#allocation2 + $0xf8] sm:$0xff] %vm457_vm2, %v8034_v11 }
  0x2e   : > { %492 = vst.msk [vmem:[#allocation2 + $0x108] sm:$0xff] %vm457_vm2, %v8034_v11 }
  0x2f   : > { %493 = vst.msk [vmem:[#allocation2 + $0x110] sm:$0xff] %vm457_vm2, %v8034_v11 }
  0x30   : > { %495 = vst.msk [vmem:[#allocation2 + $0x120] sm:$0xff] %vm457_vm2, %v8034_v11 }
  0x31   : > { %496 = vst.msk [vmem:[#allocation2 + $0x128] sm:$0xff] %vm457_vm2, %v8034_v11 }
  0x32   : > { %498 = vst.msk [vmem:[#allocation2 + $0x138] sm:$0xff] %vm457_vm2, %v8034_v11 }
  0x33   : > { %499 = vst.msk [vmem:[#allocation2 + $0x140] sm:$0xff] %vm457_vm2, %v8034_v11 }
  0x34   : > { %501 = vst.msk [vmem:[#allocation2 + $0x150] sm:$0xff] %vm457_vm2, %v8034_v11 }
  0x35   : > { %502 = vst.msk [vmem:[#allocation2 + $0x158] sm:$0xff] %vm457_vm2, %v8034_v11 }
  0x36   : > { %504 = vst.msk [vmem:[#allocation2 + $0x168] sm:$0xff] %vm457_vm2, %v8034_v11 }
  0x37   : > { %505 = vst.msk [vmem:[#allocation2 + $0x170] sm:$0xff] %vm457_vm2, %v8034_v11 }
  0x38   : > { %507 = vst.msk [vmem:[#allocation2 + $0x180] sm:$0xff] %vm457_vm2, %v8034_v11 }
  0x39   : > { %508 = vst.msk [vmem:[#allocation2 + $0x188] sm:$0xff] %vm457_vm2, %v8034_v11 }
  0x3a   : > { %510 = vst.msk [vmem:[#allocation2 + $0x198] sm:$0xff] %vm457_vm2, %v8034_v11 }
  0x3b   : > { %511 = vst.msk [vmem:[#allocation2 + $0x1a0] sm:$0xff] %vm457_vm2, %v8034_v11 }
  0x3c   : > { %4851 = vst.msk [vmem:[#allocation3] sm:$0xff] %vm457_vm2, %v8034_v11 }
  0x3d   : > { %4852 = vst.msk [vmem:[#allocation3 + $0x8] sm:$0xff] %vm457_vm2, %v8034_v11 }
  0x3e   : > { %4854 = vst.msk [vmem:[#allocation3 + $0x18] sm:$0xff] %vm457_vm2, %v8034_v11 }
  0x3f   : > { %4855 = vst.msk [vmem:[#allocation3 + $0x20] sm:$0xff] %vm457_vm2, %v8034_v11 }
  0x40   : > { %4857 = vst.msk [vmem:[#allocation3 + $0x30] sm:$0xff] %vm457_vm2, %v8034_v11 }
  0x41   : > { %4858 = vst.msk [vmem:[#allocation3 + $0x38] sm:$0xff] %vm457_vm2, %v8034_v11 }
  0x42   : > { %4860 = vst.msk [vmem:[#allocation3 + $0x48] sm:$0xff] %vm457_vm2, %v8034_v11 }
  0x43   : > { %4861 = vst.msk [vmem:[#allocation3 + $0x50] sm:$0xff] %vm457_vm2, %v8034_v11 }
  0x44   : > { %4863 = vst.msk [vmem:[#allocation3 + $0x60] sm:$0xff] %vm457_vm2, %v8034_v11 }
  0x45   : > { %4864 = vst.msk [vmem:[#allocation3 + $0x68] sm:$0xff] %vm457_vm2, %v8034_v11 }
  0x46   : > { %4866 = vst.msk [vmem:[#allocation3 + $0x78] sm:$0xff] %vm457_vm2, %v8034_v11 }
  0x47   : > { %4867 = vst.msk [vmem:[#allocation3 + $0x80] sm:$0xff] %vm457_vm2, %v8034_v11 }
  0x48   : > { %4869 = vst.msk [vmem:[#allocation3 + $0x90] sm:$0xff] %vm457_vm2, %v8034_v11 }
  0x49   : > { %4870 = vst.msk [vmem:[#allocation3 + $0x98] sm:$0xff] %vm457_vm2, %v8034_v11 }
  0x4a   : > { %4872 = vst.msk [vmem:[#allocation3 + $0xa8] sm:$0xff] %vm457_vm2, %v8034_v11 }
  0x4b   : > { %4873 = vst.msk [vmem:[#allocation3 + $0xb0] sm:$0xff] %vm457_vm2, %v8034_v11 }
  0x4c   : > { %4875 = vst.msk [vmem:[#allocation3 + $0xc0] sm:$0xff] %vm457_vm2, %v8034_v11 }
  0x4d   : > { %4876 = vst.msk [vmem:[#allocation3 + $0xc8] sm:$0xff] %vm457_vm2, %v8034_v11 }
  0x4e   : > { %4878 = vst.msk [vmem:[#allocation3 + $0xd8] sm:$0xff] %vm457_vm2, %v8034_v11 }
  0x4f   : > { %4879 = vst.msk [vmem:[#allocation3 + $0xe0] sm:$0xff] %vm457_vm2, %v8034_v11 }
  0x50   : > { %4881 = vst.msk [vmem:[#allocation3 + $0xf0] sm:$0xff] %vm457_vm2, %v8034_v11 }
  0x51   : > { %4882 = vst.msk [vmem:[#allocation3 + $0xf8] sm:$0xff] %vm457_vm2, %v8034_v11 }
  0x52   : > { %4884 = vst.msk [vmem:[#allocation3 + $0x108] sm:$0xff] %vm457_vm2, %v8034_v11 }
  0x53   : > { %4885 = vst.msk [vmem:[#allocation3 + $0x110] sm:$0xff] %vm457_vm2, %v8034_v11 }
  0x54   : > { %4887 = vst.msk [vmem:[#allocation3 + $0x120] sm:$0xff] %vm457_vm2, %v8034_v11 }
  0x55   : > { %4888 = vst.msk [vmem:[#allocation3 + $0x128] sm:$0xff] %vm457_vm2, %v8034_v11 }
  0x56   : > { %4890 = vst.msk [vmem:[#allocation3 + $0x138] sm:$0xff] %vm457_vm2, %v8034_v11 }
  0x57   : > { %4891 = vst.msk [vmem:[#allocation3 + $0x140] sm:$0xff] %vm457_vm2, %v8034_v11 }
  0x58   : > { %4893 = vst.msk [vmem:[#allocation3 + $0x150] sm:$0xff] %vm457_vm2, %v8034_v11 }
  0x59   : > { %4894 = vst.msk [vmem:[#allocation3 + $0x158] sm:$0xff] %vm457_vm2, %v8034_v11 }
  0x5a   : > { %4896 = vst.msk [vmem:[#allocation3 + $0x168] sm:$0xff] %vm457_vm2, %v8034_v11 }
  0x5b   : > { %4897 = vst.msk [vmem:[#allocation3 + $0x170] sm:$0xff] %vm457_vm2, %v8034_v11 }
  0x5c   : > { %4899 = vst.msk [vmem:[#allocation3 + $0x180] sm:$0xff] %vm457_vm2, %v8034_v11 }
  0x5d   : > { %4900 = vst.msk [vmem:[#allocation3 + $0x188] sm:$0xff] %vm457_vm2, %v8034_v11 }
  0x5e   : > { %4902 = vst.msk [vmem:[#allocation3 + $0x198] sm:$0xff] %vm457_vm2, %v8034_v11 }
  0x5f   : > { %4903 = vst.msk [vmem:[#allocation3 + $0x1a0] sm:$0xff] %vm457_vm2, %v8034_v11 }
  0x60   : > { %555 = vst.msk [vmem:[#allocation2 + $0x79] sm:$0xff] %vm546_vm1, %v521_v30 }
  0x61   : > { %557 = vst.msk [vmem:[#allocation2 + $0x91] sm:$0xff] %vm546_vm1, %v523_v31 }
  0x62   : > { %549 = vst.msk [vmem:[#allocation2 + $0x31] sm:$0xff] %vm546_vm1, %v515_v32 }
  0x63   : > { %551 = vst.msk [vmem:[#allocation2 + $0x49] sm:$0xff] %vm546_vm1, %v517_v33  ;;  %v539_v33 = vld [vmem:[%s8207_s25 + $0xd0] sm:$0xff] }
  0x64   : > { %553 = vst.msk [vmem:[#allocation2 + $0x61] sm:$0xff] %vm546_vm1, %v519_v34  ;;  %v531_v34 = vld [vmem:[%s8207_s25 + $0x90] sm:$0xff] }
  0x65   : > { %561 = vst.msk [vmem:[#allocation2 + $0xc1] sm:$0xff] %vm546_vm1, %v527_v35 }
  0x66   : > { %559 = vst.msk [vmem:[#allocation2 + $0xa9] sm:$0xff] %vm546_vm1, %v525_v36 }
  0x67   : > { %563 = vst.msk [vmem:[#allocation2 + $0xd9] sm:$0xff] %vm546_vm1, %v529_v7 }
  0x68   : > { %573 = vst.msk [vmem:[#allocation2 + $0x151] sm:$0xff] %vm546_vm1, %v539_v33 }
  0x69   : > { %565 = vst.msk [vmem:[#allocation2 + $0xf1] sm:$0xff] %vm546_vm1, %v531_v34 }
  0x6a   : > { %467 = vst.msk [vmem:[#allocation2 + $0x40] sm:$0x3] %vm460_vm5, %v8034_v11 }
  0x6b   : > { %461 = vst.msk [vmem:[#allocation2 + $0x10] sm:$0x3] %vm460_vm5, %v8034_v11 }
  0x6c   : > { %464 = vst.msk [vmem:[#allocation2 + $0x28] sm:$0x3] %vm460_vm5, %v8034_v11 }
  0x6d   : > { %470 = vst.msk [vmem:[#allocation2 + $0x58] sm:$0x3] %vm460_vm5, %v8034_v11 }
  0x6e   : > { %473 = vst.msk [vmem:[#allocation2 + $0x70] sm:$0x3] %vm460_vm5, %v8034_v11 }
  0x6f   : > { %476 = vst.msk [vmem:[#allocation2 + $0x88] sm:$0x3] %vm460_vm5, %v8034_v11 }
  0x70   : > { %479 = vst.msk [vmem:[#allocation2 + $0xa0] sm:$0x3] %vm460_vm5, %v8034_v11 }
  0x71   : > { %482 = vst.msk [vmem:[#allocation2 + $0xb8] sm:$0x3] %vm460_vm5, %v8034_v11 }
  0x72   : > { %485 = vst.msk [vmem:[#allocation2 + $0xd0] sm:$0x3] %vm460_vm5, %v8034_v11 }
  0x73   : > { %488 = vst.msk [vmem:[#allocation2 + $0xe8] sm:$0x3] %vm460_vm5, %v8034_v11 }
  0x74   : > { %491 = vst.msk [vmem:[#allocation2 + $0x100] sm:$0x3] %vm460_vm5, %v8034_v11 }
  0x75   : > { %494 = vst.msk [vmem:[#allocation2 + $0x118] sm:$0x3] %vm460_vm5, %v8034_v11 }
  0x76   : > { %497 = vst.msk [vmem:[#allocation2 + $0x130] sm:$0x3] %vm460_vm5, %v8034_v11 }
  0x77   : > { %500 = vst.msk [vmem:[#allocation2 + $0x148] sm:$0x3] %vm460_vm5, %v8034_v11 }
  0x78   : > { %503 = vst.msk [vmem:[#allocation2 + $0x160] sm:$0x3] %vm460_vm5, %v8034_v11 }
  0x79   : > { %506 = vst.msk [vmem:[#allocation2 + $0x178] sm:$0x3] %vm460_vm5, %v8034_v11 }
  0x7a   : > { %509 = vst.msk [vmem:[#allocation2 + $0x190] sm:$0x3] %vm460_vm5, %v8034_v11 }
  0x7b   : > { %512 = vst.msk [vmem:[#allocation2 + $0x1a8] sm:$0x3] %vm460_vm5, %v8034_v11 }
  0x7c   : > { %4853 = vst.msk [vmem:[#allocation3 + $0x10] sm:$0x3] %vm460_vm5, %v8034_v11 }
  0x7d   : > { %4856 = vst.msk [vmem:[#allocation3 + $0x28] sm:$0x3] %vm460_vm5, %v8034_v11 }
  0x7e   : > { %4859 = vst.msk [vmem:[#allocation3 + $0x40] sm:$0x3] %vm460_vm5, %v8034_v11 }
  0x7f   : > { %4862 = vst.msk [vmem:[#allocation3 + $0x58] sm:$0x3] %vm460_vm5, %v8034_v11 }
  0x80   : > { %4865 = vst.msk [vmem:[#allocation3 + $0x70] sm:$0x3] %vm460_vm5, %v8034_v11 }
  0x81   : > { %4868 = vst.msk [vmem:[#allocation3 + $0x88] sm:$0x3] %vm460_vm5, %v8034_v11 }
  0x82   : > { %4871 = vst.msk [vmem:[#allocation3 + $0xa0] sm:$0x3] %vm460_vm5, %v8034_v11 }
  0x83   : > { %4874 = vst.msk [vmem:[#allocation3 + $0xb8] sm:$0x3] %vm460_vm5, %v8034_v11 }
  0x84   : > { %4877 = vst.msk [vmem:[#allocation3 + $0xd0] sm:$0x3] %vm460_vm5, %v8034_v11 }
  0x85   : > { %4880 = vst.msk [vmem:[#allocation3 + $0xe8] sm:$0x3] %vm460_vm5, %v8034_v11 }
  0x86   : > { %4883 = vst.msk [vmem:[#allocation3 + $0x100] sm:$0x3] %vm460_vm5, %v8034_v11 }
  0x87   : > { %4886 = vst.msk [vmem:[#allocation3 + $0x118] sm:$0x3] %vm460_vm5, %v8034_v11 }
  0x88   : > { %4889 = vst.msk [vmem:[#allocation3 + $0x130] sm:$0x3] %vm460_vm5, %v8034_v11 }
  0x89   : > { %4892 = vst.msk [vmem:[#allocation3 + $0x148] sm:$0x3] %vm460_vm5, %v8034_v11 }
  0x8a   : > { %4895 = vst.msk [vmem:[#allocation3 + $0x160] sm:$0x3] %vm460_vm5, %v8034_v11 }
  0x8b   : > { %4898 = vst.msk [vmem:[#allocation3 + $0x178] sm:$0x3] %vm460_vm5, %v8034_v11 }
  0x8c   : > { %4901 = vst.msk [vmem:[#allocation3 + $0x190] sm:$0x3] %vm460_vm5, %v8034_v11 }
  0x8d   : > { %4904 = vst.msk [vmem:[#allocation3 + $0x1a8] sm:$0x3] %vm460_vm5, %v8034_v11  ;;  %v1989_v11 = vld [vmem:[#allocation2 + $0xa] sm:$0xff] }
  0xa2   : > { %v609_v10 = vpop.f32.mrf.mxu0 }
  0xa3   : > { %635 = vmatpush.msra.mxu1 %v609_v10 }
  0xa4   : > { %7314 = vmatmul.msk.f32.vlgmr.msra.gmra.mxu1 %vm546_vm1, %v612_v9 }
  0xac   : > { %7315 = vmatmul.msk.f32.gmra.mxu1 %vm546_vm1, %v613_v13 }
 0x121   : > { %v8275_v14 = vpop.f32.mrf.mxu1 }
 0x122   : > { %754 = vst.msk [vmem:[#allocation2 + $0x1a] sm:$0x1] %vm723_vm3, %v8275_v14  ;;  %v8282_v15 = vperm.slane %v8275_v14, 0  ;;  %v646_v16 = vrot.slane %v8275_v14, 2  ;;  %v648_v17 = vrot.slane %v8275_v14, 4  ;;  %v647_v20 = vrot.slane %v8275_v14, 3 }
 0x123   : > { %v649_v21 = vrot.slane %v8275_v14, 5  ;;  %v645_v22 = vrot.slane %v8275_v14, 1  ;;  %v651_v26 = vrot.slane %v8275_v14, 7  ;;  %v650_v27 = vrot.slane %v8275_v14, 6 }
 0x124   : > { %834 = vrot.lane.b32.xlu2 %v8282_v15, %s12082_s23  ;;  %770 = vrot.lane.b32.xlu1 %v8282_v15, %s8036_s24  ;;  %v8332_v18 = vperm.slane %v646_v16, 0  ;;  %v8334_v19 = vperm.slane %v648_v17, 0  ;;  %v8361_v23 = vperm.slane %v647_v20, 0  ;;  %758 = vst.msk [vmem:[#allocation2 + $0x7a] sm:$0x1] %vm723_vm3, %v648_v17  ;;  %v541_v17 = vld [vmem:[%s8207_s25 + $0xe0] sm:$0xff] }
 0x125   : > { %675 = vrot.lane.b32.xlu0 %v8282_v15, %s8037_s30  ;;  %v8363_v24 = vperm.slane %v649_v21, 0  ;;  %v8367_v25 = vperm.slane %v645_v22, 0  ;;  %v8391_v28 = vperm.slane %v651_v26, 0  ;;  %v8395_v29 = vperm.slane %v650_v27, 0  ;;  %759 = vst.msk [vmem:[#allocation2 + $0x92] sm:$0x1] %vm723_vm3, %v649_v21 }
 0x126   : > { %755 = vst.msk [vmem:[#allocation2 + $0x32] sm:$0x1] %vm723_vm3, %v645_v22 }
 0x127   : > { %756 = vst.msk [vmem:[#allocation2 + $0x4a] sm:$0x1] %vm723_vm3, %v646_v16  ;;  %v535_v16 = vld [vmem:[%s8207_s25 + $0xb0] sm:$0xff] }
 0x128   : > { %757 = vst.msk [vmem:[#allocation2 + $0x62] sm:$0x1] %vm723_vm3, %v647_v20 }
 0x129   : > { %761 = vst.msk [vmem:[#allocation2 + $0xc2] sm:$0x1] %vm723_vm3, %v651_v26  ;;  %v8532_v49 = vpop.f32.mrf.mxu1  ;;  %v533_v26 = vld [vmem:[%s8207_s25 + $0xa0] sm:$0xff] }
 0x12a   : > { %760 = vst.msk [vmem:[#allocation2 + $0xaa] sm:$0x1] %vm723_vm3, %v650_v27  ;;  %v8537_v53 = vperm.slane %v8532_v49, 0  ;;  %v653_v62 = vrot.slane %v8532_v49, 2  ;;  %v654_v63 = vrot.slane %v8532_v49, 3  ;;  %v652_v2 = vrot.slane %v8532_v49, 1 }
 0x12b   : > { %v656_v8 = vrot.slane %v8532_v49, 5  ;;  %v657_v9 = vrot.slane %v8532_v49, 6  ;;  %762 = vst.msk [vmem:[#allocation2 + $0xda] sm:$0x1] %vm723_vm3, %v8532_v49  ;;  %v655_v13 = vrot.slane %v8532_v49, 4  ;;  %v658_v31 = vrot.slane %v8532_v49, 7 }
 0x12c   : > { %1026 = vrot.lane.b32.xlu2 %v8282_v15, %s8038_s17  ;;  %962 = vrot.lane.b32.xlu1 %v8282_v15, %s8039_s16  ;;  %v8574_v4 = vperm.slane %v653_v62, 0  ;;  %v8576_v5 = vperm.slane %v654_v63, 0  ;;  %v8578_v6 = vperm.slane %v652_v2, 0  ;;  %569 = vst.msk [vmem:[#allocation2 + $0x121] sm:$0xff] %vm546_vm1, %v535_v16 }
 0x12d   : > { %898 = vrot.lane.b32.xlu0 %v8282_v15, %s8040_s27  ;;  %v8598_v20 = vperm.slane %v656_v8, 0  ;;  %v8600_v21 = vperm.slane %v657_v9, 0  ;;  %v8603_v22 = vperm.slane %v655_v13, 0  ;;  %765 = vst.msk [vmem:[#allocation2 + $0x122] sm:$0x1] %vm723_vm3, %v654_v63  ;;  %v8623_v35 = vperm.slane %v658_v31, 0 }
 0x12e   : > { %575 = vst.msk [vmem:[#allocation2 + $0x169] sm:$0xff] %vm546_vm1, %v541_v17 }
 0x12f   : > { %768 = vst.msk [vmem:[#allocation2 + $0x16a] sm:$0x1] %vm723_vm3, %v657_v9 }
 0x130   : > { %567 = vst.msk [vmem:[#allocation2 + $0x109] sm:$0xff] %vm546_vm1, %v533_v26 }
 0x131   : > { %764 = vst.msk [vmem:[#allocation2 + $0x10a] sm:$0x1] %vm723_vm3, %v653_v62 }
 0x132   : > { %767 = vst.msk [vmem:[#allocation2 + $0x152] sm:$0x1] %vm723_vm3, %v656_v8 }
 0x133   : > { %763 = vst.msk [vmem:[#allocation2 + $0xf2] sm:$0x1] %vm723_vm3, %v652_v2 }
 0x134   : > { %683 = vrot.lane.b32.xlu2 %v8334_v19, %s8037_s30  ;;  %679 = vrot.lane.b32.xlu1 %v8332_v18, %s8037_s30 }
 0x135   : > { %1090 = vrot.lane.b32.xlu0 %v8282_v15, %s8041_s20 }
 0x13c   : > { %685 = vrot.lane.b32.xlu2 %v8363_v24, %s8037_s30  ;;  %681 = vrot.lane.b32.xlu1 %v8361_v23, %s8037_s30 }
 0x13d   : > { %677 = vrot.lane.b32.xlu0 %v8367_v25, %s8037_s30 }
 0x144   : > { %689 = vrot.lane.b32.xlu1 %v8391_v28, %s8037_s30  ;;  %772 = vrot.lane.b32.xlu2 %v8367_v25, %s8036_s24 }
 0x145   : > { %687 = vrot.lane.b32.xlu0 %v8395_v29, %s8037_s30 }
 0x14c   : > { %776 = vrot.lane.b32.xlu1 %v8361_v23, %s8036_s24  ;;  %778 = vrot.lane.b32.xlu2 %v8334_v19, %s8036_s24 }
 0x14d   : > { %774 = vrot.lane.b32.xlu0 %v8332_v18, %s8036_s24 }
 0x154   : > { %782 = vrot.lane.b32.xlu1 %v8395_v29, %s8036_s24  ;;  %784 = vrot.lane.b32.xlu2 %v8391_v28, %s8036_s24 }
 0x155   : > { %780 = vrot.lane.b32.xlu0 %v8363_v24, %s8036_s24 }
 0x15c   : > { %838 = vrot.lane.b32.xlu1 %v8332_v18, %s12082_s23  ;;  %840 = vrot.lane.b32.xlu2 %v8361_v23, %s12082_s23 }
 0x15d   : > { %836 = vrot.lane.b32.xlu0 %v8367_v25, %s12082_s23 }
 0x164   : > { %844 = vrot.lane.b32.xlu1 %v8363_v24, %s12082_s23  ;;  %846 = vrot.lane.b32.xlu2 %v8395_v29, %s12082_s23 }
 0x165   : > { %842 = vrot.lane.b32.xlu0 %v8334_v19, %s12082_s23 }
 0x16c   : > { %900 = vrot.lane.b32.xlu1 %v8367_v25, %s8040_s27  ;;  %902 = vrot.lane.b32.xlu2 %v8332_v18, %s8040_s27 }
 0x16d   : > { %848 = vrot.lane.b32.xlu0 %v8391_v28, %s12082_s23 }
 0x174   : > { %906 = vrot.lane.b32.xlu1 %v8334_v19, %s8040_s27  ;;  %908 = vrot.lane.b32.xlu2 %v8363_v24, %s8040_s27 }
 0x175   : > { %904 = vrot.lane.b32.xlu0 %v8361_v23, %s8040_s27 }
 0x17c   : > { %912 = vrot.lane.b32.xlu1 %v8391_v28, %s8040_s27  ;;  %964 = vrot.lane.b32.xlu2 %v8367_v25, %s8039_s16 }
 0x17d   : > { %910 = vrot.lane.b32.xlu0 %v8395_v29, %s8040_s27 }
 0x17e   : > { %v835_v37 = vpop.permute.xlu2 %834 }
 0x17f   : > { %882 = vst.msk [vmem:[#allocation2 + $0x1c] sm:$0x1] %vm723_vm3, %v835_v37 }
 0x184   : > { %968 = vrot.lane.b32.xlu1 %v8361_v23, %s8039_s16  ;;  %970 = vrot.lane.b32.xlu2 %v8334_v19, %s8039_s16 }
 0x185   : > { %966 = vrot.lane.b32.xlu0 %v8332_v18, %s8039_s16 }
 0x186   : > { %v1027_v38 = vpop.permute.xlu2 %1026 }
 0x187   : > { %1074 = vst.msk [vmem:[#allocation2 + $0x1f] sm:$0x1] %vm723_vm3, %v1027_v38 }
 0x18c   : > { %974 = vrot.lane.b32.xlu1 %v8395_v29, %s8039_s16  ;;  %976 = vrot.lane.b32.xlu2 %v8391_v28, %s8039_s16 }
 0x18d   : > { %972 = vrot.lane.b32.xlu0 %v8363_v24, %s8039_s16 }
 0x18e   : > { %v684_v39 = vpop.permute.xlu2 %683 }
 0x18f   : > { %728 = vst.msk [vmem:[#allocation2 + $0x79] sm:$0x1] %vm723_vm3, %v684_v39  ;;  %v537_v39 = vld [vmem:[%s8207_s25 + $0xc0] sm:$0xff] }
 0x190   : > { %571 = vst.msk [vmem:[#allocation2 + $0x139] sm:$0xff] %vm546_vm1, %v537_v39 }
 0x191   : > { %766 = vst.msk [vmem:[#allocation2 + $0x13a] sm:$0x1] %vm723_vm3, %v655_v13 }
 0x194   : > { %1030 = vrot.lane.b32.xlu1 %v8332_v18, %s8038_s17  ;;  %1032 = vrot.lane.b32.xlu2 %v8361_v23, %s8038_s17 }
 0x195   : > { %1028 = vrot.lane.b32.xlu0 %v8367_v25, %s8038_s17 }
 0x196   : > { %v771_v40 = vpop.permute.xlu1 %770  ;;  %v686_v41 = vpop.permute.xlu2 %685 }
 0x197   : > { %818 = vst.msk [vmem:[#allocation2 + $0x1b] sm:$0x1] %vm723_vm3, %v771_v40  ;;  %v676_v42 = vpop.permute.xlu0 %675  ;;  %v543_v40 = vld [vmem:[%s8207_s25 + $0xf0] sm:$0xff] }
 0x198   : > { %724 = vst.msk [vmem:[#allocation2 + $0x19] sm:$0x1] %vm723_vm3, %v676_v42 }
 0x199   : > { %729 = vst.msk [vmem:[#allocation2 + $0x91] sm:$0x1] %vm723_vm3, %v686_v41 }
 0x19a   : > { %577 = vst.msk [vmem:[#allocation2 + $0x181] sm:$0xff] %vm546_vm1, %v543_v40 }
 0x19b   : > { %769 = vst.msk [vmem:[#allocation2 + $0x182] sm:$0x1] %vm723_vm3, %v658_v31 }
 0x19c   : > { %1036 = vrot.lane.b32.xlu1 %v8363_v24, %s8038_s17  ;;  %1038 = vrot.lane.b32.xlu2 %v8395_v29, %s8038_s17 }
 0x19d   : > { %1034 = vrot.lane.b32.xlu0 %v8334_v19, %s8038_s17 }
 0x19e   : > { %v963_v43 = vpop.permute.xlu1 %962  ;;  %v773_v44 = vpop.permute.xlu2 %772 }
 0x19f   : > { %1010 = vst.msk [vmem:[#allocation2 + $0x1e] sm:$0x1] %vm723_vm3, %v963_v43  ;;  %v899_v45 = vpop.permute.xlu0 %898 }
 0x1a0   : > { %946 = vst.msk [vmem:[#allocation2 + $0x1d] sm:$0x1] %vm723_vm3, %v899_v45 }
 0x1a1   : > { %819 = vst.msk [vmem:[#allocation2 + $0x33] sm:$0x1] %vm723_vm3, %v773_v44 }
 0x1a4   : > { %1092 = vrot.lane.b32.xlu1 %v8367_v25, %s8041_s20  ;;  %1094 = vrot.lane.b32.xlu2 %v8332_v18, %s8041_s20 }
 0x1a5   : > { %1040 = vrot.lane.b32.xlu0 %v8391_v28, %s8038_s17 }
 0x1a6   : > { %v680_v46 = vpop.permute.xlu1 %679  ;;  %v779_v47 = vpop.permute.xlu2 %778 }
 0x1a7   : > { %v1091_v48 = vpop.permute.xlu0 %1090  ;;  %726 = vst.msk [vmem:[#allocation2 + $0x49] sm:$0x1] %vm723_vm3, %v680_v46  ;;  %v2213_v57 = vld [vmem:[#allocation2 + $0x18] sm:$0xff] }
 0x1a8   : > { %1138 = vst.msk [vmem:[#allocation2 + $0x20] sm:$0x1] %vm723_vm3, %v1091_v48  ;;  %v8549_v58 = vpack.c.bf16 %v2213_v57, %v2213_v57 }
 0x1a9   : > { %822 = vst.msk [vmem:[#allocation2 + $0x7b] sm:$0x1] %vm723_vm3, %v779_v47 }
 0x1aa   : > { %1733 = vst.msk [vmem:[#allocation4 + $0x10] sm:$0xf] %vm1730_vm4, %v8549_v58 }
 0x1ac   : > { %1098 = vrot.lane.b32.xlu1 %v8334_v19, %s8041_s20  ;;  %1100 = vrot.lane.b32.xlu2 %v8363_v24, %s8041_s20 }
 0x1ad   : > { %1096 = vrot.lane.b32.xlu0 %v8361_v23, %s8041_s20 }
 0x1ae   : > { %v682_v50 = vpop.permute.xlu1 %681  ;;  %v785_v51 = vpop.permute.xlu2 %784 }
 0x1af   : > { %727 = vst.msk [vmem:[#allocation2 + $0x61] sm:$0x1] %vm723_vm3, %v682_v50  ;;  %v678_v52 = vpop.permute.xlu0 %677 }
 0x1b0   : > { %825 = vst.msk [vmem:[#allocation2 + $0xc3] sm:$0x1] %vm723_vm3, %v785_v51 }
 0x1b1   : > { %725 = vst.msk [vmem:[#allocation2 + $0x31] sm:$0x1] %vm723_vm3, %v678_v52 }
 0x1b4   : > { %1104 = vrot.lane.b32.xlu1 %v8391_v28, %s8041_s20  ;;  %691 = vrot.lane.b32.xlu2 %v8537_v53, %s8037_s30 }
 0x1b5   : > { %1102 = vrot.lane.b32.xlu0 %v8395_v29, %s8041_s20 }
 0x1b6   : > { %v690_v54 = vpop.permute.xlu1 %689  ;;  %v841_v55 = vpop.permute.xlu2 %840 }
 0x1b7   : > { %731 = vst.msk [vmem:[#allocation2 + $0xc1] sm:$0x1] %vm723_vm3, %v690_v54  ;;  %v688_v56 = vpop.permute.xlu0 %687 }
 0x1b8   : > { %885 = vst.msk [vmem:[#allocation2 + $0x64] sm:$0x1] %vm723_vm3, %v841_v55 }
 0x1b9   : > { %730 = vst.msk [vmem:[#allocation2 + $0xa9] sm:$0x1] %vm723_vm3, %v688_v56 }
 0x1bc   : > { %850 = vrot.lane.b32.xlu1 %v8537_v53, %s12082_s23  ;;  %914 = vrot.lane.b32.xlu2 %v8537_v53, %s8040_s27 }
 0x1bd   : > { %786 = vrot.lane.b32.xlu0 %v8537_v53, %s8036_s24 }
 0x1be   : > { %v777_v59 = vpop.permute.xlu1 %776  ;;  %v847_v60 = vpop.permute.xlu2 %846 }
 0x1bf   : > { %821 = vst.msk [vmem:[#allocation2 + $0x63] sm:$0x1] %vm723_vm3, %v777_v59  ;;  %v775_v61 = vpop.permute.xlu0 %774 }
 0x1c0   : > { %888 = vst.msk [vmem:[#allocation2 + $0xac] sm:$0x1] %vm723_vm3, %v847_v60 }
 0x1c1   : > { %820 = vst.msk [vmem:[#allocation2 + $0x4b] sm:$0x1] %vm723_vm3, %v775_v61 }
 0x1c4   : > { %1042 = vrot.lane.b32.xlu1 %v8537_v53, %s8038_s17  ;;  %1106 = vrot.lane.b32.xlu2 %v8537_v53, %s8041_s20 }
 0x1c5   : > { %978 = vrot.lane.b32.xlu0 %v8537_v53, %s8039_s16 }
 0x1c6   : > { %v783_v0 = vpop.permute.xlu1 %782  ;;  %v903_v1 = vpop.permute.xlu2 %902 }
 0x1c7   : > { %824 = vst.msk [vmem:[#allocation2 + $0xab] sm:$0x1] %vm723_vm3, %v783_v0  ;;  %v781_v3 = vpop.permute.xlu0 %780 }
 0x1c8   : > { %948 = vst.msk [vmem:[#allocation2 + $0x4d] sm:$0x1] %vm723_vm3, %v903_v1 }
 0x1c9   : > { %823 = vst.msk [vmem:[#allocation2 + $0x93] sm:$0x1] %vm723_vm3, %v781_v3 }
 0x1cc   : > { %697 = vrot.lane.b32.xlu2 %v8576_v5, %s8037_s30  ;;  %695 = vrot.lane.b32.xlu1 %v8574_v4, %s8037_s30 }
 0x1cd   : > { %693 = vrot.lane.b32.xlu0 %v8578_v6, %s8037_s30 }
 0x1ce   : > { %v839_v10 = vpop.permute.xlu1 %838  ;;  %v909_v12 = vpop.permute.xlu2 %908 }
 0x1cf   : > { %884 = vst.msk [vmem:[#allocation2 + $0x4c] sm:$0x1] %vm723_vm3, %v839_v10  ;;  %v837_v14 = vpop.permute.xlu0 %836 }
 0x1d0   : > { %951 = vst.msk [vmem:[#allocation2 + $0x95] sm:$0x1] %vm723_vm3, %v909_v12 }
 0x1d1   : > { %883 = vst.msk [vmem:[#allocation2 + $0x34] sm:$0x1] %vm723_vm3, %v837_v14 }
 0x1d4   : > { %703 = vrot.lane.b32.xlu2 %v8600_v21, %s8037_s30  ;;  %701 = vrot.lane.b32.xlu1 %v8598_v20, %s8037_s30 }
 0x1d5   : > { %699 = vrot.lane.b32.xlu0 %v8603_v22, %s8037_s30 }
 0x1d6   : > { %v845_v27 = vpop.permute.xlu1 %844  ;;  %v965_v30 = vpop.permute.xlu2 %964 }
 0x1d7   : > { %887 = vst.msk [vmem:[#allocation2 + $0x94] sm:$0x1] %vm723_vm3, %v845_v27  ;;  %v843_v32 = vpop.permute.xlu0 %842 }
 0x1d8   : > { %1011 = vst.msk [vmem:[#allocation2 + $0x36] sm:$0x1] %vm723_vm3, %v965_v30 }
 0x1d9   : > { %886 = vst.msk [vmem:[#allocation2 + $0x7c] sm:$0x1] %vm723_vm3, %v843_v32 }
 0x1dc   : > { %790 = vrot.lane.b32.xlu2 %v8574_v4, %s8036_s24  ;;  %788 = vrot.lane.b32.xlu1 %v8578_v6, %s8036_s24 }
 0x1dd   : > { %705 = vrot.lane.b32.xlu0 %v8623_v35, %s8037_s30  ;;  %s12084_s30 = smov 40  }
 0x1de   : > { %v901_v36 = vpop.permute.xlu1 %900  ;;  %v971_v37 = vpop.permute.xlu2 %970 }
 0x1df   : > { %947 = vst.msk [vmem:[#allocation2 + $0x35] sm:$0x1] %vm723_vm3, %v901_v36  ;;  %v849_v38 = vpop.permute.xlu0 %848 }
 0x1e0   : > { %1014 = vst.msk [vmem:[#allocation2 + $0x7e] sm:$0x1] %vm723_vm3, %v971_v37 }
 0x1e1   : > { %889 = vst.msk [vmem:[#allocation2 + $0xc4] sm:$0x1] %vm723_vm3, %v849_v38 }
 0x1e4   : > { %796 = vrot.lane.b32.xlu2 %v8598_v20, %s8036_s24  ;;  %794 = vrot.lane.b32.xlu1 %v8603_v22, %s8036_s24 }
 0x1e5   : > { %792 = vrot.lane.b32.xlu0 %v8576_v5, %s8036_s24 }
 0x1e6   : > { %v907_v41 = vpop.permute.xlu1 %906  ;;  %v977_v42 = vpop.permute.xlu2 %976 }
 0x1e7   : > { %950 = vst.msk [vmem:[#allocation2 + $0x7d] sm:$0x1] %vm723_vm3, %v907_v41  ;;  %v905_v43 = vpop.permute.xlu0 %904 }
 0x1e8   : > { %1017 = vst.msk [vmem:[#allocation2 + $0xc6] sm:$0x1] %vm723_vm3, %v977_v42 }
 0x1e9   : > { %949 = vst.msk [vmem:[#allocation2 + $0x65] sm:$0x1] %vm723_vm3, %v905_v43 }
 0x1ec   : > { %852 = vrot.lane.b32.xlu2 %v8578_v6, %s12082_s23  ;;  %800 = vrot.lane.b32.xlu1 %v8623_v35, %s8036_s24 }
 0x1ed   : > { %798 = vrot.lane.b32.xlu0 %v8600_v21, %s8036_s24  ;;  %s8047_s24 = smov 32  }
 0x1ee   : > { %v913_v44 = vpop.permute.xlu1 %912  ;;  %v1033_v45 = vpop.permute.xlu2 %1032 }
 0x1ef   : > { %953 = vst.msk [vmem:[#allocation2 + $0xc5] sm:$0x1] %vm723_vm3, %v913_v44  ;;  %v911_v46 = vpop.permute.xlu0 %910 }
 0x1f0   : > { %1077 = vst.msk [vmem:[#allocation2 + $0x67] sm:$0x1] %vm723_vm3, %v1033_v45 }
 0x1f1   : > { %952 = vst.msk [vmem:[#allocation2 + $0xad] sm:$0x1] %vm723_vm3, %v911_v46 }
 0x1f4   : > { %858 = vrot.lane.b32.xlu2 %v8603_v22, %s12082_s23  ;;  %856 = vrot.lane.b32.xlu1 %v8576_v5, %s12082_s23 }
 0x1f5   : > { %854 = vrot.lane.b32.xlu0 %v8574_v4, %s12082_s23 }
 0x1f6   : > { %v969_v47 = vpop.permute.xlu1 %968  ;;  %v1039_v48 = vpop.permute.xlu2 %1038 }
 0x1f7   : > { %1013 = vst.msk [vmem:[#allocation2 + $0x66] sm:$0x1] %vm723_vm3, %v969_v47  ;;  %v967_v49 = vpop.permute.xlu0 %966 }
 0x1f8   : > { %1080 = vst.msk [vmem:[#allocation2 + $0xaf] sm:$0x1] %vm723_vm3, %v1039_v48 }
 0x1f9   : > { %1012 = vst.msk [vmem:[#allocation2 + $0x4e] sm:$0x1] %vm723_vm3, %v967_v49 }
 0x1fc   : > { %864 = vrot.lane.b32.xlu2 %v8623_v35, %s12082_s23  ;;  %862 = vrot.lane.b32.xlu1 %v8600_v21, %s12082_s23 }
 0x1fd   : > { %860 = vrot.lane.b32.xlu0 %v8598_v20, %s12082_s23 }
 0x1fe   : > { %v975_v50 = vpop.permute.xlu1 %974  ;;  %v1095_v51 = vpop.permute.xlu2 %1094  ;;  %v2893_v61 = vld [vmem:[#allocation2 + $0x60] sm:$0xff] }
 0x1ff   : > { %1016 = vst.msk [vmem:[#allocation2 + $0xae] sm:$0x1] %vm723_vm3, %v975_v50  ;;  %v973_v52 = vpop.permute.xlu0 %972  ;;  %v8698_v62 = vpack.c.bf16 %v2893_v61, %v2893_v61 }
 0x200   : > { %1140 = vst.msk [vmem:[#allocation2 + $0x50] sm:$0x1] %vm723_vm3, %v1095_v51 }
 0x201   : > { %1015 = vst.msk [vmem:[#allocation2 + $0x96] sm:$0x1] %vm723_vm3, %v973_v52 }
 0x202   : > { %1739 = vst.msk [vmem:[#allocation4 + $0x40] sm:$0xf] %vm1730_vm4, %v8698_v62 }
 0x204   : > { %920 = vrot.lane.b32.xlu2 %v8576_v5, %s8040_s27  ;;  %918 = vrot.lane.b32.xlu1 %v8574_v4, %s8040_s27 }
 0x205   : > { %916 = vrot.lane.b32.xlu0 %v8578_v6, %s8040_s27 }
 0x206   : > { %v1031_v54 = vpop.permute.xlu1 %1030  ;;  %v1101_v55 = vpop.permute.xlu2 %1100  ;;  %v2899_v2 = vld [vmem:[#allocation2 + $0xa8] sm:$0xff] }
 0x207   : > { %1076 = vst.msk [vmem:[#allocation2 + $0x4f] sm:$0x1] %vm723_vm3, %v1031_v54  ;;  %v1029_v56 = vpop.permute.xlu0 %1028  ;;  %v8711_v3 = vpack.c.bf16 %v2899_v2, %v2899_v2 }
 0x208   : > { %1143 = vst.msk [vmem:[#allocation2 + $0x98] sm:$0x1] %vm723_vm3, %v1101_v55 }
 0x209   : > { %1075 = vst.msk [vmem:[#allocation2 + $0x37] sm:$0x1] %vm723_vm3, %v1029_v56 }
 0x20a   : > { %1745 = vst.msk [vmem:[#allocation4 + $0x70] sm:$0xf] %vm1730_vm4, %v8711_v3 }
 0x20c   : > { %926 = vrot.lane.b32.xlu2 %v8600_v21, %s8040_s27  ;;  %924 = vrot.lane.b32.xlu1 %v8598_v20, %s8040_s27 }
 0x20d   : > { %922 = vrot.lane.b32.xlu0 %v8603_v22, %s8040_s27 }
 0x20e   : > { %v1037_v57 = vpop.permute.xlu1 %1036  ;;  %v692_v59 = vpop.permute.xlu2 %691  ;;  %v2891_v12 = vld [vmem:[#allocation2 + $0x48] sm:$0xff] }
 0x20f   : > { %1079 = vst.msk [vmem:[#allocation2 + $0x97] sm:$0x1] %vm723_vm3, %v1037_v57  ;;  %v1035_v60 = vpop.permute.xlu0 %1034  ;;  %v8726_v14 = vpack.c.bf16 %v2891_v12, %v2891_v12 }
 0x210   : > { %1078 = vst.msk [vmem:[#allocation2 + $0x7f] sm:$0x1] %vm723_vm3, %v1035_v60  ;;  %v2889_v10 = vld [vmem:[#allocation2 + $0x30] sm:$0xff] }
 0x211   : > { %732 = vst.msk [vmem:[#allocation2 + $0xd9] sm:$0x1] %vm723_vm3, %v692_v59  ;;  %v8724_v13 = vpack.c.bf16 %v2889_v10, %v2889_v10 }
 0x212   : > { %1737 = vst.msk [vmem:[#allocation4 + $0x30] sm:$0xf] %vm1730_vm4, %v8726_v14 }
 0x213   : > { %1735 = vst.msk [vmem:[#allocation4 + $0x20] sm:$0xf] %vm1730_vm4, %v8724_v13 }
 0x214   : > { %982 = vrot.lane.b32.xlu2 %v8574_v4, %s8039_s16  ;;  %980 = vrot.lane.b32.xlu1 %v8578_v6, %s8039_s16 }
 0x215   : > { %928 = vrot.lane.b32.xlu0 %v8623_v35, %s8040_s27  ;;  %s12102_s27 = smov 40  }
 0x216   : > { %v1093_v63 = vpop.permute.xlu1 %1092  ;;  %v915_v0 = vpop.permute.xlu2 %914  ;;  %v2897_v30 = vld [vmem:[#allocation2 + $0x90] sm:$0xff] }
 0x217   : > { %1139 = vst.msk [vmem:[#allocation2 + $0x38] sm:$0x1] %vm723_vm3, %v1093_v63  ;;  %v1041_v1 = vpop.permute.xlu0 %1040  ;;  %v2895_v27 = vld [vmem:[#allocation2 + $0x78] sm:$0xff]  ;;  %v8743_v32 = vpack.c.bf16 %v2897_v30, %v2897_v30 }
 0x218   : > { %1081 = vst.msk [vmem:[#allocation2 + $0xc7] sm:$0x1] %vm723_vm3, %v1041_v1  ;;  %v8741_v31 = vpack.c.bf16 %v2895_v27, %v2895_v27 }
 0x219   : > { %954 = vst.msk [vmem:[#allocation2 + $0xdd] sm:$0x1] %vm723_vm3, %v915_v0 }
 0x21a   : > { %1741 = vst.msk [vmem:[#allocation4 + $0x50] sm:$0xf] %vm1730_vm4, %v8741_v31 }
 0x21b   : > { %1743 = vst.msk [vmem:[#allocation4 + $0x60] sm:$0xf] %vm1730_vm4, %v8743_v32 }
 0x21c   : > { %988 = vrot.lane.b32.xlu2 %v8598_v20, %s8039_s16  ;;  %986 = vrot.lane.b32.xlu1 %v8603_v22, %s8039_s16 }
 0x21d   : > { %984 = vrot.lane.b32.xlu0 %v8576_v5, %s8039_s16 }
 0x21e   : > { %v1099_v7 = vpop.permute.xlu1 %1098  ;;  %v1107_v8 = vpop.permute.xlu2 %1106 }
 0x21f   : > { %1142 = vst.msk [vmem:[#allocation2 + $0x80] sm:$0x1] %vm723_vm3, %v1099_v7  ;;  %v1097_v9 = vpop.permute.xlu0 %1096  ;;  %v2901_v37 = vld [vmem:[#allocation2 + $0xc0] sm:$0xff] }
 0x220   : > { %1141 = vst.msk [vmem:[#allocation2 + $0x68] sm:$0x1] %vm723_vm3, %v1097_v9  ;;  %v8758_v38 = vpack.c.bf16 %v2901_v37, %v2901_v37 }
 0x221   : > { %1146 = vst.msk [vmem:[#allocation2 + $0xe0] sm:$0x1] %vm723_vm3, %v1107_v8 }
 0x222   : > { %1747 = vst.msk [vmem:[#allocation4 + $0x80] sm:$0xf] %vm1730_vm4, %v8758_v38 }
 0x224   : > { %1044 = vrot.lane.b32.xlu2 %v8578_v6, %s8038_s17  ;;  %992 = vrot.lane.b32.xlu1 %v8623_v35, %s8039_s16 }
 0x225   : > { %990 = vrot.lane.b32.xlu0 %v8600_v21, %s8039_s16 }
 0x226   : > { %v1105_v16 = vpop.permute.xlu1 %1104  ;;  %v698_v17 = vpop.permute.xlu2 %697 }
 0x227   : > { %1145 = vst.msk [vmem:[#allocation2 + $0xc8] sm:$0x1] %vm723_vm3, %v1105_v16  ;;  %v1103_v26 = vpop.permute.xlu0 %1102 }
 0x228   : > { %1144 = vst.msk [vmem:[#allocation2 + $0xb0] sm:$0x1] %vm723_vm3, %v1103_v26 }
 0x229   : > { %735 = vst.msk [vmem:[#allocation2 + $0x121] sm:$0x1] %vm723_vm3, %v698_v17 }
 0x22c   : > { %1050 = vrot.lane.b32.xlu2 %v8603_v22, %s8038_s17  ;;  %1048 = vrot.lane.b32.xlu1 %v8576_v5, %s8038_s17 }
 0x22d   : > { %1046 = vrot.lane.b32.xlu0 %v8574_v4, %s8038_s17 }
 0x22e   : > { %v851_v33 = vpop.permute.xlu1 %850  ;;  %v704_v34 = vpop.permute.xlu2 %703 }
 0x22f   : > { %890 = vst.msk [vmem:[#allocation2 + $0xdc] sm:$0x1] %vm723_vm3, %v851_v33  ;;  %v787_v36 = vpop.permute.xlu0 %786  ;;  %v516_v33 = vld [vmem:[%s8207_s25 + $0x18] sm:$0xff] }
 0x230   : > { %826 = vst.msk [vmem:[#allocation2 + $0xdb] sm:$0x1] %vm723_vm3, %v787_v36 }
 0x231   : > { %738 = vst.msk [vmem:[#allocation2 + $0x169] sm:$0x1] %vm723_vm3, %v704_v34 }
 0x232   : > { %550 = vst.msk [vmem:[#allocation2 + $0x39] sm:$0xff] %vm546_vm1, %v516_v33  ;;  %v2438_v33 = vld [vmem:[#allocation2 + $0x19] sm:$0xff] }
 0x234   : > { %1056 = vrot.lane.b32.xlu2 %v8623_v35, %s8038_s17  ;;  %1054 = vrot.lane.b32.xlu1 %v8600_v21, %s8038_s17 }
 0x235   : > { %1052 = vrot.lane.b32.xlu0 %v8598_v20, %s8038_s17  ;;  %s8049_s17 = smov 16  }
 0x236   : > { %v1043_v39 = vpop.permute.xlu1 %1042  ;;  %v791_v40 = vpop.permute.xlu2 %790 }
 0x237   : > { %1082 = vst.msk [vmem:[#allocation2 + $0xdf] sm:$0x1] %vm723_vm3, %v1043_v39  ;;  %v979_v41 = vpop.permute.xlu0 %978 }
 0x238   : > { %1018 = vst.msk [vmem:[#allocation2 + $0xde] sm:$0x1] %vm723_vm3, %v979_v41 }
 0x239   : > { %828 = vst.msk [vmem:[#allocation2 + $0x10b] sm:$0x1] %vm723_vm3, %v791_v40 }
 0x23c   : > { %1112 = vrot.lane.b32.xlu2 %v8576_v5, %s8041_s20  ;;  %1110 = vrot.lane.b32.xlu1 %v8574_v4, %s8041_s20 }
 0x23d   : > { %1108 = vrot.lane.b32.xlu0 %v8578_v6, %s8041_s20 }
 0x23e   : > { %v797_v42 = vpop.permute.xlu2 %796  ;;  %v696_v43 = vpop.permute.xlu1 %695 }
 0x23f   : > { %831 = vst.msk [vmem:[#allocation2 + $0x153] sm:$0x1] %vm723_vm3, %v797_v42  ;;  %v694_v44 = vpop.permute.xlu0 %693  ;;  %v2903_v51 = vld [vmem:[#allocation2 + $0xd8] sm:$0xff] }
 0x240   : > { %734 = vst.msk [vmem:[#allocation2 + $0x109] sm:$0x1] %vm723_vm3, %v696_v43  ;;  %v8798_v52 = vpack.c.bf16 %v2903_v51, %v2903_v51  ;;  %v1763_v51 = vld [vmem:[#allocation2 + $0x1] sm:$0xff] }
 0x241   : > { %733 = vst.msk [vmem:[#allocation2 + $0xf1] sm:$0x1] %vm723_vm3, %v694_v44 }
 0x242   : > { %1749 = vst.msk [vmem:[#allocation4 + $0x90] sm:$0xf] %vm1730_vm4, %v8798_v52 }
 0x244   : > { %1118 = vrot.lane.b32.xlu2 %v8600_v21, %s8041_s20  ;;  %1116 = vrot.lane.b32.xlu1 %v8598_v20, %s8041_s20 }
 0x245   : > { %1114 = vrot.lane.b32.xlu0 %v8603_v22, %s8041_s20 }
 0x246   : > { %v702_v45 = vpop.permute.xlu1 %701  ;;  %v853_v46 = vpop.permute.xlu2 %852 }
 0x247   : > { %737 = vst.msk [vmem:[#allocation2 + $0x151] sm:$0x1] %vm723_vm3, %v702_v45  ;;  %v700_v47 = vpop.permute.xlu0 %699 }
 0x248   : > { %891 = vst.msk [vmem:[#allocation2 + $0xf4] sm:$0x1] %vm723_vm3, %v853_v46 }
 0x249   : > { %736 = vst.msk [vmem:[#allocation2 + $0x139] sm:$0x1] %vm723_vm3, %v700_v47 }
 0x24c   : > { %1156 = vrot.lane.b32.xlu2 %v8367_v25, %s12078_s14  ;;  %1154 = vrot.lane.b32.xlu1 %v8282_v15, %s12078_s14 }
 0x24d   : > { %1120 = vrot.lane.b32.xlu0 %v8623_v35, %s8041_s20 }
 0x24e   : > { %v859_v48 = vpop.permute.xlu2 %858  ;;  %v789_v49 = vpop.permute.xlu1 %788 }
 0x24f   : > { %894 = vst.msk [vmem:[#allocation2 + $0x13c] sm:$0x1] %vm723_vm3, %v859_v48  ;;  %v706_v50 = vpop.permute.xlu0 %705 }
 0x250   : > { %827 = vst.msk [vmem:[#allocation2 + $0xf3] sm:$0x1] %vm723_vm3, %v789_v49 }
 0x251   : > { %739 = vst.msk [vmem:[#allocation2 + $0x181] sm:$0x1] %vm723_vm3, %v706_v50  ;;  %v1764_v50 = vld [vmem:[#allocation2 + $0x9] sm:$0xff] }
 0x254   : > { %1162 = vrot.lane.b32.xlu2 %v8334_v19, %s12078_s14  ;;  %1160 = vrot.lane.b32.xlu1 %v8361_v23, %s12078_s14 }
 0x255   : > { %1158 = vrot.lane.b32.xlu0 %v8332_v18, %s12078_s14 }
 0x256   : > { %v865_v54 = vpop.permute.xlu2 %864  ;;  %v795_v55 = vpop.permute.xlu1 %794 }
 0x257   : > { %897 = vst.msk [vmem:[#allocation2 + $0x184] sm:$0x1] %vm723_vm3, %v865_v54  ;;  %v793_v56 = vpop.permute.xlu0 %792 }
 0x258   : > { %830 = vst.msk [vmem:[#allocation2 + $0x13b] sm:$0x1] %vm723_vm3, %v795_v55 }
 0x259   : > { %829 = vst.msk [vmem:[#allocation2 + $0x123] sm:$0x1] %vm723_vm3, %v793_v56 }
 0x25c   : > { %1168 = vrot.lane.b32.xlu2 %v8391_v28, %s12078_s14  ;;  %1166 = vrot.lane.b32.xlu1 %v8395_v29, %s12078_s14 }
 0x25d   : > { %1164 = vrot.lane.b32.xlu0 %v8363_v24, %s12078_s14 }
 0x25e   : > { %v921_v57 = vpop.permute.xlu2 %920  ;;  %v801_v59 = vpop.permute.xlu1 %800 }
 0x25f   : > { %957 = vst.msk [vmem:[#allocation2 + $0x125] sm:$0x1] %vm723_vm3, %v921_v57  ;;  %v799_v60 = vpop.permute.xlu0 %798  ;;  %v522_v57 = vld [vmem:[%s8207_s25 + $0x48] sm:$0xff] }
 0x260   : > { %833 = vst.msk [vmem:[#allocation2 + $0x183] sm:$0x1] %vm723_vm3, %v801_v59  ;;  %v1796_v59 = vpack.c.bf16 %v1764_v50, %v1764_v50 }
 0x261   : > { %832 = vst.msk [vmem:[#allocation2 + $0x16b] sm:$0x1] %vm723_vm3, %v799_v60  ;;  %v1795_v60 = vpack.c.bf16 %v1763_v51, %v1763_v51 }
 0x262   : > { %556 = vst.msk [vmem:[#allocation2 + $0x81] sm:$0xff] %vm546_vm1, %v522_v57 }
 0x264   : > { %1174 = vrot.lane.b32.xlu2 %v8574_v4, %s12078_s14  ;;  %1172 = vrot.lane.b32.xlu1 %v8578_v6, %s12078_s14 }
 0x265   : > { %1170 = vrot.lane.b32.xlu0 %v8537_v53, %s12078_s14 }
 0x266   : > { %v927_v61 = vpop.permute.xlu2 %926  ;;  %v857_v63 = vpop.permute.xlu1 %856 }
 0x267   : > { %960 = vst.msk [vmem:[#allocation2 + $0x16d] sm:$0x1] %vm723_vm3, %v927_v61  ;;  %v855_v0 = vpop.permute.xlu0 %854  ;;  %v528_v61 = vld [vmem:[%s8207_s25 + $0x78] sm:$0xff] }
 0x268   : > { %893 = vst.msk [vmem:[#allocation2 + $0x124] sm:$0x1] %vm723_vm3, %v857_v63 }
 0x269   : > { %892 = vst.msk [vmem:[#allocation2 + $0x10c] sm:$0x1] %vm723_vm3, %v855_v0 }
 0x26a   : > { %562 = vst.msk [vmem:[#allocation2 + $0xc9] sm:$0xff] %vm546_vm1, %v528_v61 }
 0x26c   : > { %1180 = vrot.lane.b32.xlu2 %v8598_v20, %s12078_s14  ;;  %1178 = vrot.lane.b32.xlu1 %v8603_v22, %s12078_s14 }
 0x26d   : > { %1176 = vrot.lane.b32.xlu0 %v8576_v5, %s12078_s14  ;;  %s12101_s14 = smov 112  }
 0x26e   : > { %v983_v1 = vpop.permute.xlu2 %982  ;;  %v863_v2 = vpop.permute.xlu1 %862 }
 0x26f   : > { %1020 = vst.msk [vmem:[#allocation2 + $0x10e] sm:$0x1] %vm723_vm3, %v983_v1  ;;  %v861_v7 = vpop.permute.xlu0 %860  ;;  %v1988_v1 = vld [vmem:[#allocation2 + $0x2] sm:$0xff] }
 0x270   : > { %896 = vst.msk [vmem:[#allocation2 + $0x16c] sm:$0x1] %vm723_vm3, %v863_v2 }
 0x271   : > { %895 = vst.msk [vmem:[#allocation2 + $0x154] sm:$0x1] %vm723_vm3, %v861_v7  ;;  %v534_v7 = vld [vmem:[%s8207_s25 + $0xa8] sm:$0xff] }
 0x272   : > { %568 = vst.msk [vmem:[#allocation2 + $0x111] sm:$0xff] %vm546_vm1, %v534_v7  ;;  %v536_v7 = vld [vmem:[%s8207_s25 + $0xb8] sm:$0xff] }
 0x273   : > { %570 = vst.msk [vmem:[#allocation2 + $0x129] sm:$0xff] %vm546_vm1, %v536_v7  ;;  %v7788_v7 = vld [vmem:[%s12063_s4 + $0x40] sm:$0xff] }
 0x274   : > { %1346 = vrot.lane.b32.xlu2 %v8282_v15, %s8043_s19  ;;  %1282 = vrot.lane.b32.xlu1 %v8282_v15, %s8044_s21 }
 0x275   : > { %1218 = vrot.lane.b32.xlu0 %v8282_v15, %s8045_s15  ;;  %3831 = vmatpush.bf16.msra.mxu3 %v7788_v7 }
 0x276   : > { %v989_v8 = vpop.permute.xlu2 %988  ;;  %v919_v9 = vpop.permute.xlu1 %918 }
 0x277   : > { %1023 = vst.msk [vmem:[#allocation2 + $0x156] sm:$0x1] %vm723_vm3, %v989_v8  ;;  %v917_v10 = vpop.permute.xlu0 %916  ;;  %v2021_v8 = vpack.c.bf16 %v1989_v11, %v1989_v11 }
 0x278   : > { %956 = vst.msk [vmem:[#allocation2 + $0x10d] sm:$0x1] %vm723_vm3, %v919_v9  ;;  %v2020_v9 = vpack.c.bf16 %v1988_v1, %v1988_v1 }
 0x279   : > { %955 = vst.msk [vmem:[#allocation2 + $0xf5] sm:$0x1] %vm723_vm3, %v917_v10 }
 0x27c   : > { %1538 = vrot.lane.b32.xlu2 %v8282_v15, %s12080_s22  ;;  %1474 = vrot.lane.b32.xlu1 %v8282_v15, %s8047_s24 }
 0x27d   : > { %1410 = vrot.lane.b32.xlu0 %v8282_v15, %s12084_s30 }
 0x27e   : > { %v1045_v12 = vpop.permute.xlu2 %1044  ;;  %v925_v16 = vpop.permute.xlu1 %924 }
 0x27f   : > { %1083 = vst.msk [vmem:[#allocation2 + $0xf7] sm:$0x1] %vm723_vm3, %v1045_v12  ;;  %v923_v17 = vpop.permute.xlu0 %922 }
 0x280   : > { %959 = vst.msk [vmem:[#allocation2 + $0x155] sm:$0x1] %vm723_vm3, %v925_v16  ;;  %v540_v16 = vld [vmem:[%s8207_s25 + $0xd8] sm:$0xff] }
 0x281   : > { %958 = vst.msk [vmem:[#allocation2 + $0x13d] sm:$0x1] %vm723_vm3, %v923_v17 }
 0x282   : > { %574 = vst.msk [vmem:[#allocation2 + $0x159] sm:$0xff] %vm546_vm1, %v540_v16 }
 0x284   : > { %1284 = vrot.lane.b32.xlu2 %v8367_v25, %s8044_s21  ;;  %1220 = vrot.lane.b32.xlu1 %v8367_v25, %s8045_s15 }
 0x285   : > { %1602 = vrot.lane.b32.xlu0 %v8282_v15, %s8049_s17 }
 0x286   : > { %v1051_v26 = vpop.permute.xlu2 %1050  ;;  %v981_v27 = vpop.permute.xlu1 %980 }
 0x287   : > { %1086 = vst.msk [vmem:[#allocation2 + $0x13f] sm:$0x1] %vm723_vm3, %v1051_v26  ;;  %v929_v30 = vpop.permute.xlu0 %928 }
 0x288   : > { %1019 = vst.msk [vmem:[#allocation2 + $0xf6] sm:$0x1] %vm723_vm3, %v981_v27 }
 0x289   : > { %961 = vst.msk [vmem:[#allocation2 + $0x185] sm:$0x1] %vm723_vm3, %v929_v30 }
 0x28c   : > { %1476 = vrot.lane.b32.xlu2 %v8367_v25, %s8047_s24  ;;  %1412 = vrot.lane.b32.xlu1 %v8367_v25, %s12084_s30 }
 0x28d   : > { %1348 = vrot.lane.b32.xlu0 %v8367_v25, %s8043_s19 }
 0x28e   : > { %v1057_v15 = vpop.permute.xlu2 %1056  ;;  %v987_v34 = vpop.permute.xlu1 %986 }
 0x28f   : > { %1089 = vst.msk [vmem:[#allocation2 + $0x187] sm:$0x1] %vm723_vm3, %v1057_v15  ;;  %v985_v36 = vpop.permute.xlu0 %984 }
 0x290   : > { %1022 = vst.msk [vmem:[#allocation2 + $0x13e] sm:$0x1] %vm723_vm3, %v987_v34  ;;  %v9021_v34 = vpack.c.bf16 %v2438_v33, %v2438_v33 }
 0x291   : > { %1021 = vst.msk [vmem:[#allocation2 + $0x126] sm:$0x1] %vm723_vm3, %v985_v36 }
 0x294   : > { %1222 = vrot.lane.b32.xlu2 %v8332_v18, %s8045_s15  ;;  %1604 = vrot.lane.b32.xlu1 %v8367_v25, %s8049_s17 }
 0x295   : > { %1540 = vrot.lane.b32.xlu0 %v8367_v25, %s12080_s22 }
 0x296   : > { %v1113_v37 = vpop.permute.xlu2 %1112  ;;  %v993_v39 = vpop.permute.xlu1 %992 }
 0x297   : > { %1149 = vst.msk [vmem:[#allocation2 + $0x128] sm:$0x1] %vm723_vm3, %v1113_v37  ;;  %v991_v40 = vpop.permute.xlu0 %990 }
 0x298   : > { %1025 = vst.msk [vmem:[#allocation2 + $0x186] sm:$0x1] %vm723_vm3, %v993_v39  ;;  %v518_v39 = vld [vmem:[%s8207_s25 + $0x28] sm:$0xff] }
 0x299   : > { %1024 = vst.msk [vmem:[#allocation2 + $0x16e] sm:$0x1] %vm723_vm3, %v991_v40 }
 0x29a   : > { %552 = vst.msk [vmem:[#allocation2 + $0x51] sm:$0xff] %vm546_vm1, %v518_v39  ;;  %v2911_v39 = vld [vmem:[#allocation2 + $0x138] sm:$0xff] }
 0x29c   : > { %1414 = vrot.lane.b32.xlu2 %v8332_v18, %s12084_s30  ;;  %1350 = vrot.lane.b32.xlu1 %v8332_v18, %s8043_s19 }
 0x29d   : > { %1286 = vrot.lane.b32.xlu0 %v8332_v18, %s8044_s21 }
 0x29e   : > { %v1119_v25 = vpop.permute.xlu2 %1118  ;;  %v1049_v41 = vpop.permute.xlu1 %1048 }
 0x29f   : > { %1152 = vst.msk [vmem:[#allocation2 + $0x170] sm:$0x1] %vm723_vm3, %v1119_v25  ;;  %v1047_v42 = vpop.permute.xlu0 %1046 }
 0x2a0   : > { %1085 = vst.msk [vmem:[#allocation2 + $0x127] sm:$0x1] %vm723_vm3, %v1049_v41  ;;  %v526_v41 = vld [vmem:[%s8207_s25 + $0x68] sm:$0xff] }
 0x2a1   : > { %1084 = vst.msk [vmem:[#allocation2 + $0x10f] sm:$0x1] %vm723_vm3, %v1047_v42 }
 0x2a2   : > { %560 = vst.msk [vmem:[#allocation2 + $0xb1] sm:$0xff] %vm546_vm1, %v526_v41 }
 0x2a4   : > { %1606 = vrot.lane.b32.xlu2 %v8332_v18, %s8049_s17  ;;  %1542 = vrot.lane.b32.xlu1 %v8332_v18, %s12080_s22 }
 0x2a5   : > { %1478 = vrot.lane.b32.xlu0 %v8332_v18, %s8047_s24 }
 0x2a6   : > { %v1157_v43 = vpop.permute.xlu2 %1156  ;;  %v1055_v44 = vpop.permute.xlu1 %1054 }
 0x2a7   : > { %1203 = vst.msk [vmem:[#allocation2 + $0x39] sm:$0x1] %vm723_vm3, %v1157_v43  ;;  %v1053_v45 = vpop.permute.xlu0 %1052  ;;  %v524_v43 = vld [vmem:[%s8207_s25 + $0x58] sm:$0xff] }
 0x2a8   : > { %1088 = vst.msk [vmem:[#allocation2 + $0x16f] sm:$0x1] %vm723_vm3, %v1055_v44 }
 0x2a9   : > { %1087 = vst.msk [vmem:[#allocation2 + $0x157] sm:$0x1] %vm723_vm3, %v1053_v45 }
 0x2aa   : > { %558 = vst.msk [vmem:[#allocation2 + $0x99] sm:$0xff] %vm546_vm1, %v524_v43  ;;  %v9087_v43 = vpack.c.bf16 %v2911_v39, %v2911_v39 }
 0x2ac   : > { %1352 = vrot.lane.b32.xlu2 %v8361_v23, %s8043_s19  ;;  %1288 = vrot.lane.b32.xlu1 %v8361_v23, %s8044_s21  ;;  %1757 = vst.msk [vmem:[#allocation4 + $0xd0] sm:$0xf] %vm1730_vm4, %v9087_v43 }
 0x2ad   : > { %1224 = vrot.lane.b32.xlu0 %v8361_v23, %s8045_s15 }
 0x2ae   : > { %v3339_v18 = vld [vmem:[#allocation2 + $0x32] sm:$0xff]  ;;  %v1163_v46 = vpop.permute.xlu2 %1162  ;;  %v1111_v47 = vpop.permute.xlu1 %1110 }
 0x2af   : > { %v8961_v48 = vpack.c.bf16 %v3339_v18, %v3339_v18  ;;  %v1109_v49 = vpop.permute.xlu0 %1108  ;;  %1206 = vst.msk [vmem:[#allocation2 + $0x81] sm:$0x1] %vm723_vm3, %v1163_v46 }
 0x2b0   : > { %1148 = vst.msk [vmem:[#allocation2 + $0x110] sm:$0x1] %vm723_vm3, %v1111_v47 }
 0x2b1   : > { %3403 = vst.msk [vmem:[#allocation4 + $0x4] sm:$0xf] %vm1730_vm4, %v8961_v48 }
 0x2b2   : > { %1147 = vst.msk [vmem:[#allocation2 + $0xf8] sm:$0x1] %vm723_vm3, %v1109_v49  ;;  %v532_v49 = vld [vmem:[%s8207_s25 + $0x98] sm:$0xff] }
 0x2b3   : > { %566 = vst.msk [vmem:[#allocation2 + $0xf9] sm:$0xff] %vm546_vm1, %v532_v49  ;;  %v1667_v49 = vld [vmem:[#allocation2 + $0x8] sm:$0xff] }
 0x2b4   : > { %1544 = vrot.lane.b32.xlu2 %v8361_v23, %s12080_s22  ;;  %1480 = vrot.lane.b32.xlu1 %v8361_v23, %s8047_s24 }
 0x2b5   : > { %1416 = vrot.lane.b32.xlu0 %v8361_v23, %s12084_s30 }
 0x2b6   : > { %v1169_v54 = vpop.permute.xlu2 %1168  ;;  %v1117_v55 = vpop.permute.xlu1 %1116  ;;  %v3345_v10 = vld [vmem:[#allocation2 + $0x7a] sm:$0xff] }
 0x2b7   : > { %v1115_v56 = vpop.permute.xlu0 %1114  ;;  %1209 = vst.msk [vmem:[#allocation2 + $0xc9] sm:$0x1] %vm723_vm3, %v1169_v54  ;;  %v3377_v12 = vpack.c.bf16 %v3345_v10, %v3345_v10  ;;  %v2907_v10 = vld [vmem:[#allocation2 + $0x108] sm:$0xff] }
 0x2b8   : > { %1151 = vst.msk [vmem:[#allocation2 + $0x158] sm:$0x1] %vm723_vm3, %v1117_v55  ;;  %v9074_v33 = vpack.c.bf16 %v2907_v10, %v2907_v10 }
 0x2b9   : > { %1150 = vst.msk [vmem:[#allocation2 + $0x140] sm:$0x1] %vm723_vm3, %v1115_v56  ;;  %v530_v56 = vld [vmem:[%s8207_s25 + $0x88] sm:$0xff] }
 0x2ba   : > { %3409 = vst.msk [vmem:[#allocation4 + $0x34] sm:$0xf] %vm1730_vm4, %v3377_v12 }
 0x2bb   : > { %564 = vst.msk [vmem:[#allocation2 + $0xe1] sm:$0xff] %vm546_vm1, %v530_v56 }
 0x2bc   : > { %1861 = vrot.lane.b32.xlu2 %v1796_v59, %s8049_s17  ;;  %1859 = vrot.lane.b32.xlu1 %v1795_v60, %s8049_s17  ;;  %1753 = vst.msk [vmem:[#allocation4 + $0xb0] sm:$0xf] %vm1730_vm4, %v9074_v33 }
 0x2bd   : > { %1608 = vrot.lane.b32.xlu0 %v8361_v23, %s8049_s17  ;;  %v514_v23 = vld [vmem:[%s8207_s25 + $0x8] sm:$0xff] }
 0x2be   : > { %v1175_v63 = vpop.permute.xlu2 %1174  ;;  %v1155_v0 = vpop.permute.xlu1 %1154  ;;  %548 = vst.msk [vmem:[#allocation2 + $0x21] sm:$0xff] %vm546_vm1, %v514_v23  ;;  %v3351_v27 = vld [vmem:[#allocation2 + $0xc2] sm:$0xff] }
 0x2bf   : > { %v1121_v2 = vpop.permute.xlu0 %1120  ;;  %1212 = vst.msk [vmem:[#allocation2 + $0x111] sm:$0x1] %vm723_vm3, %v1175_v63  ;;  %v3383_v15 = vpack.c.bf16 %v3351_v27, %v3351_v27  ;;  %v538_v63 = vld [vmem:[%s8207_s25 + $0xc8] sm:$0xff]  ;;  %v2909_v27 = vld [vmem:[#allocation2 + $0x120] sm:$0xff] }
 0x2c0   : > { %1202 = vst.msk [vmem:[#allocation2 + $0x21] sm:$0x1] %vm723_vm3, %v1155_v0 }
 0x2c1   : > { %1153 = vst.msk [vmem:[#allocation2 + $0x188] sm:$0x1] %vm723_vm3, %v1121_v2  ;;  %v2905_v2 = vld [vmem:[#allocation2 + $0xf0] sm:$0xff] }
 0x2c2   : > { %3415 = vst.msk [vmem:[#allocation4 + $0x64] sm:$0xf] %vm1730_vm4, %v3383_v15 }
 0x2c3   : > { %572 = vst.msk [vmem:[#allocation2 + $0x141] sm:$0xff] %vm546_vm1, %v538_v63 }
 0x2c4   : > { %2309 = vrot.lane.b32.xlu2 %v8549_v58, %s8043_s19  ;;  %2086 = vrot.lane.b32.xlu1 %v2021_v8, %s8047_s24  ;;  %v520_v58 = vld [vmem:[%s8207_s25 + $0x38] sm:$0xff] }
 0x2c5   : > { %2084 = vrot.lane.b32.xlu0 %v2020_v9, %s8047_s24  ;;  %554 = vst.msk [vmem:[#allocation2 + $0x69] sm:$0xff] %vm546_vm1, %v520_v58  ;;  %v9066_v9 = vpack.c.bf16 %v2905_v2, %v2905_v2  ;;  %v9078_v58 = vpack.c.bf16 %v2909_v27, %v2909_v27 }
 0x2c6   : > { %v1181_v17 = vpop.permute.xlu2 %1180  ;;  %v1161_v26 = vpop.permute.xlu1 %1160  ;;  %v3357_v36 = vld [vmem:[#allocation2 + $0x10a] sm:$0xff] }
 0x2c7   : > { %v1159_v30 = vpop.permute.xlu0 %1158  ;;  %1215 = vst.msk [vmem:[#allocation2 + $0x159] sm:$0x1] %vm723_vm3, %v1181_v17  ;;  %v3389_v37 = vpack.c.bf16 %v3357_v36, %v3357_v36 }
 0x2c8   : > { %1205 = vst.msk [vmem:[#allocation2 + $0x69] sm:$0x1] %vm723_vm3, %v1161_v26 }
 0x2c9   : > { %3421 = vst.msk [vmem:[#allocation4 + $0x94] sm:$0xf] %vm1730_vm4, %v3389_v37 }
 0x2ca   : > { %1204 = vst.msk [vmem:[#allocation2 + $0x51] sm:$0x1] %vm723_vm3, %v1159_v30 }
 0x2cb   : > { %1751 = vst.msk [vmem:[#allocation4 + $0xa0] sm:$0xf] %vm1730_vm4, %v9066_v9 }
 0x2cc   : > { %2534 = vrot.lane.b32.xlu1 %v9021_v34, %s8045_s15  ;;  %1755 = vst.msk [vmem:[#allocation4 + $0xc0] sm:$0xf] %vm1730_vm4, %v9078_v58 }
 0x2ce   : > { %v1347_v40 = vpop.permute.xlu2 %1346  ;;  %v1167_v25 = vpop.permute.xlu1 %1166  ;;  %v3363_v44 = vld [vmem:[#allocation2 + $0x152] sm:$0xff] }
 0x2cf   : > { %v1165_v42 = vpop.permute.xlu0 %1164  ;;  %1394 = vst.msk [vmem:[#allocation2 + $0x24] sm:$0x1] %vm723_vm3, %v1347_v40  ;;  %v3395_v45 = vpack.c.bf16 %v3363_v44, %v3363_v44  ;;  %v3343_v18 = vld [vmem:[#allocation2 + $0x62] sm:$0xff] }
 0x2d0   : > { %1208 = vst.msk [vmem:[#allocation2 + $0xb1] sm:$0x1] %vm723_vm3, %v1167_v25  ;;  %v9041_v46 = vpack.c.bf16 %v3343_v18, %v3343_v18  ;;  %v2913_v25 = vld [vmem:[#allocation2 + $0x150] sm:$0xff]  ;;  %v2915_v44 = vld [vmem:[#allocation2 + $0x168] sm:$0xff] }
 0x2d1   : > { %3427 = vst.msk [vmem:[#allocation4 + $0xc4] sm:$0xf] %vm1730_vm4, %v3395_v45  ;;  %v3341_v51 = vld [vmem:[#allocation2 + $0x4a] sm:$0xff]  ;;  %v9090_v18 = vpack.c.bf16 %v2913_v25, %v2913_v25 }
 0x2d2   : > { %1207 = vst.msk [vmem:[#allocation2 + $0x99] sm:$0x1] %vm723_vm3, %v1165_v42  ;;  %v9047_v55 = vpack.c.bf16 %v3341_v51, %v3341_v51 }
 0x2d3   : > { %3407 = vst.msk [vmem:[#allocation4 + $0x24] sm:$0xf] %vm1730_vm4, %v9041_v46 }
 0x2d4   : > { %1290 = vrot.lane.b32.xlu1 %v8334_v19, %s8044_s21  ;;  %3405 = vst.msk [vmem:[#allocation4 + $0x14] sm:$0xf] %vm1730_vm4, %v9047_v55 }
 0x2d5   : > { %1759 = vst.msk [vmem:[#allocation4 + $0xe0] sm:$0xf] %vm1730_vm4, %v9090_v18 }
 0x2d6   : > { %v1539_v47 = vpop.permute.xlu2 %1538  ;;  %v1173_v50 = vpop.permute.xlu1 %1172 }
 0x2d7   : > { %v1171_v54 = vpop.permute.xlu0 %1170  ;;  %1586 = vst.msk [vmem:[#allocation2 + $0x27] sm:$0x1] %vm723_vm3, %v1539_v47  ;;  %v3349_v57 = vld [vmem:[#allocation2 + $0xaa] sm:$0xff]  ;;  %v9094_v47 = vpack.c.bf16 %v2915_v44, %v2915_v44  ;;  %v7748_v44 = vld [vmem:[#allocation4 + $0x4] sm:$0xf] }
 0x2d8   : > { %v3381_v59 = vpack.c.bf16 %v3349_v57, %v3349_v57  ;;  %1211 = vst.msk [vmem:[#allocation2 + $0xf9] sm:$0x1] %vm723_vm3, %v1173_v50 }
 0x2d9   : > { %v3347_v60 = vld [vmem:[#allocation2 + $0x92] sm:$0xff]  ;;  %1210 = vst.msk [vmem:[#allocation2 + $0xe1] sm:$0x1] %vm723_vm3, %v1171_v54  ;;  %v1699_v54 = vpack.c.bf16 %v1667_v49, %v1667_v49 }
 0x2da   : > { %3413 = vst.msk [vmem:[#allocation4 + $0x54] sm:$0xf] %vm1730_vm4, %v3381_v59  ;;  %v3379_v61 = vpack.c.bf16 %v3347_v60, %v3347_v60 }
 0x2db   : > { %1761 = vst.msk [vmem:[#allocation4 + $0xf0] sm:$0xf] %vm1730_vm4, %v9094_v47 }
 0x2dc   : > { %1482 = vrot.lane.b32.xlu1 %v8334_v19, %s8047_s24  ;;  %3411 = vst.msk [vmem:[#allocation4 + $0x44] sm:$0xf] %vm1730_vm4, %v3379_v61 }
 0x2dd   : > { %1732 = vst.msk [vmem:[#allocation4 + $0x8] sm:$0xf] %vm1730_vm4, %v1699_v54 }
 0x2de   : > { %v1285_v11 = vpop.permute.xlu2 %1284  ;;  %v1179_v0 = vpop.permute.xlu1 %1178 }
 0x2df   : > { %1331 = vst.msk [vmem:[#allocation2 + $0x3b] sm:$0x1] %vm723_vm3, %v1285_v11  ;;  %v1177_v1 = vpop.permute.xlu0 %1176  ;;  %v3355_v8 = vld [vmem:[#allocation2 + $0xf2] sm:$0xff] }
 0x2e0   : > { %1214 = vst.msk [vmem:[#allocation2 + $0x141] sm:$0x1] %vm723_vm3, %v1179_v0  ;;  %v3387_v23 = vpack.c.bf16 %v3355_v8, %v3355_v8  ;;  %v3353_v12 = vld [vmem:[#allocation2 + $0xda] sm:$0xff] }
 0x2e1   : > { %1213 = vst.msk [vmem:[#allocation2 + $0x129] sm:$0x1] %vm723_vm3, %v1177_v1  ;;  %v3385_v16 = vpack.c.bf16 %v3353_v12, %v3353_v12  ;;  %v1666_v12 = vld [vmem:[#allocation2] sm:$0xff] }
 0x2e2   : > { %3419 = vst.msk [vmem:[#allocation4 + $0x84] sm:$0xf] %vm1730_vm4, %v3387_v23  ;;  %v1698_v27 = vpack.c.bf16 %v1666_v12, %v1666_v12 }
 0x2e3   : > { %3417 = vst.msk [vmem:[#allocation4 + $0x74] sm:$0xf] %vm1730_vm4, %v3385_v16 }
 0x2e4   : > { %1731 = vst.msk [vmem:[#allocation4] sm:$0xf] %vm1730_vm4, %v1698_v27 }
 0x2e6   : > { %v1477_v17 = vpop.permute.xlu2 %1476  ;;  %v1283_v26 = vpop.permute.xlu1 %1282 }
 0x2e7   : > { %1523 = vst.msk [vmem:[#allocation2 + $0x3e] sm:$0x1] %vm723_vm3, %v1477_v17  ;;  %v1219_v30 = vpop.permute.xlu0 %1218  ;;  %v3361_v15 = vld [vmem:[#allocation2 + $0x13a] sm:$0xff] }
 0x2e8   : > { %1330 = vst.msk [vmem:[#allocation2 + $0x23] sm:$0x1] %vm723_vm3, %v1283_v26  ;;  %v3393_v36 = vpack.c.bf16 %v3361_v15, %v3361_v15  ;;  %v3359_v37 = vld [vmem:[#allocation2 + $0x122] sm:$0xff]  ;;  %v2663_v26 = vld [vmem:[#allocation2 + $0x1a] sm:$0xff] }
 0x2e9   : > { %1266 = vst.msk [vmem:[#allocation2 + $0x22] sm:$0x1] %vm723_vm3, %v1219_v30  ;;  %v3391_v40 = vpack.c.bf16 %v3359_v37, %v3359_v37  ;;  %v2695_v39 = vpack.c.bf16 %v2663_v26, %v2663_v26  ;;  %v7752_v26 = vld [vmem:[#allocation4 + $0x24] sm:$0xf] }
 0x2ea   : > { %3425 = vst.msk [vmem:[#allocation4 + $0xb4] sm:$0xf] %vm1730_vm4, %v3393_v36 }
 0x2eb   : > { %3423 = vst.msk [vmem:[#allocation4 + $0xa4] sm:$0xf] %vm1730_vm4, %v3391_v40 }
 0x2ee   : > { %v1223_v41 = vpop.permute.xlu2 %1222  ;;  %v1475_v42 = vpop.permute.xlu1 %1474 }
 0x2ef   : > { %1268 = vst.msk [vmem:[#allocation2 + $0x52] sm:$0x1] %vm723_vm3, %v1223_v41  ;;  %v1411_v45 = vpop.permute.xlu0 %1410 }
 0x2f0   : > { %1522 = vst.msk [vmem:[#allocation2 + $0x26] sm:$0x1] %vm723_vm3, %v1475_v42 }
 0x2f1   : > { %1458 = vst.msk [vmem:[#allocation2 + $0x25] sm:$0x1] %vm723_vm3, %v1411_v45 }
 0x2f6   : > { %v1415_v50 = vpop.permute.xlu2 %1414  ;;  %v1221_v51 = vpop.permute.xlu1 %1220 }
 0x2f7   : > { %1460 = vst.msk [vmem:[#allocation2 + $0x55] sm:$0x1] %vm723_vm3, %v1415_v50  ;;  %v1603_v56 = vpop.permute.xlu0 %1602 }
 0x2f8   : > { %1267 = vst.msk [vmem:[#allocation2 + $0x3a] sm:$0x1] %vm723_vm3, %v1221_v51  ;;  %v2214_v57 = vld [vmem:[#allocation2 + $0x20] sm:$0xff] }
 0x2f9   : > { %1650 = vst.msk [vmem:[#allocation2 + $0x28] sm:$0x1] %vm723_vm3, %v1603_v56  ;;  %v2246_v59 = vpack.c.bf16 %v2214_v57, %v2214_v57  ;;  %v3114_v56 = vld [vmem:[#allocation2 + $0x31] sm:$0xff] }
 0x2fb   : > { %2311 = vrot.lane.b32.xlu0 %v2246_v59, %s8043_s19  ;;  %1734 = vst.msk [vmem:[#allocation4 + $0x18] sm:$0xf] %vm1730_vm4, %v2246_v59 }
 0x2fe   : > { %v1607_v60 = vpop.permute.xlu2 %1606  ;;  %v1413_v61 = vpop.permute.xlu1 %1412 }
 0x2ff   : > { %1652 = vst.msk [vmem:[#allocation2 + $0x58] sm:$0x1] %vm723_vm3, %v1607_v60  ;;  %v1349_v11 = vpop.permute.xlu0 %1348 }
 0x300   : > { %1459 = vst.msk [vmem:[#allocation2 + $0x3d] sm:$0x1] %vm723_vm3, %v1413_v61  ;;  %v2664_v63 = vld [vmem:[#allocation2 + $0x22] sm:$0xff] }
 0x301   : > { %v2439_v0 = vld [vmem:[#allocation2 + $0x21] sm:$0xff]  ;;  %1395 = vst.msk [vmem:[#allocation2 + $0x3c] sm:$0x1] %vm723_vm3, %v1349_v11  ;;  %v2696_v1 = vpack.c.bf16 %v2664_v63, %v2664_v63  ;;  %v7750_v11 = vld [vmem:[#allocation4 + $0x14] sm:$0xf] }
 0x302   : > { %v9111_v2 = vpack.c.bf16 %v2439_v0, %v2439_v0 }
 0x303   : > { %1226 = vrot.lane.b32.xlu0 %v8334_v19, %s8045_s15  ;;  %2761 = vrot.lane.b32.xlu1 %v2696_v1, %s8041_s20 }
 0x304   : > { %2536 = vrot.lane.b32.xlu2 %v9111_v2, %s8045_s15 }
 0x306   : > { %v1353_v8 = vpop.permute.xlu2 %1352  ;;  %v1605_v23 = vpop.permute.xlu1 %1604 }
 0x307   : > { %1397 = vst.msk [vmem:[#allocation2 + $0x6c] sm:$0x1] %vm723_vm3, %v1353_v8  ;;  %v1541_v10 = vpop.permute.xlu0 %1540 }
 0x308   : > { %1651 = vst.msk [vmem:[#allocation2 + $0x40] sm:$0x1] %vm723_vm3, %v1605_v23 }
 0x309   : > { %1587 = vst.msk [vmem:[#allocation2 + $0x3f] sm:$0x1] %vm723_vm3, %v1541_v10 }
 0x30b   : > { %1418 = vrot.lane.b32.xlu0 %v8334_v19, %s12084_s30 }
 0x30c   : > { %1354 = vrot.lane.b32.xlu2 %v8334_v19, %s8043_s19 }
 0x30e   : > { %v1545_v16 = vpop.permute.xlu2 %1544  ;;  %v1351_v17 = vpop.permute.xlu1 %1350 }
 0x30f   : > { %1589 = vst.msk [vmem:[#allocation2 + $0x6f] sm:$0x1] %vm723_vm3, %v1545_v16  ;;  %v1287_v30 = vpop.permute.xlu0 %1286 }
 0x310   : > { %v3340_v15 = vld [vmem:[#allocation2 + $0x3a] sm:$0xff]  ;;  %1396 = vst.msk [vmem:[#allocation2 + $0x54] sm:$0x1] %vm723_vm3, %v1351_v17 }
 0x311   : > { %v2890_v36 = vld [vmem:[#allocation2 + $0x38] sm:$0xff]  ;;  %v9130_v37 = vpack.c.bf16 %v3340_v15, %v3340_v15  ;;  %1332 = vst.msk [vmem:[#allocation2 + $0x53] sm:$0x1] %vm723_vm3, %v1287_v30 }
 0x312   : > { %v2922_v40 = vpack.c.bf16 %v2890_v36, %v2890_v36  ;;  %v3115_v51 = vld [vmem:[#allocation2 + $0x39] sm:$0xff] }
 0x313   : > { %3404 = vst.msk [vmem:[#allocation4 + $0xc] sm:$0xf] %vm1730_vm4, %v9130_v37  ;;  %2759 = vrot.lane.b32.xlu0 %v2695_v39, %s8041_s20  ;;  %v9155_v60 = vpack.c.bf16 %v3115_v51, %v3115_v51  ;;  %v7785_v51 = vld [vmem:[%s12063_s4 + $0x28] sm:$0xff] }
 0x314   : > { %2987 = vrot.lane.b32.xlu1 %v2922_v40, %s8039_s16  ;;  %1546 = vrot.lane.b32.xlu2 %v8334_v19, %s12080_s22  ;;  %1736 = vst.msk [vmem:[#allocation4 + $0x28] sm:$0xf] %vm1730_vm4, %v2922_v40 }
 0x316   : > { %v1862_v25 = vpop.permute.xlu2 %1861  ;;  %v1543_v41 = vpop.permute.xlu1 %1542 }
 0x317   : > { %1957 = vst.msk [vmem:[#allocation4 + $0x8] sm:$0xf] %vm1955_vm6, %v1862_v25  ;;  %v1479_v42 = vpop.permute.xlu0 %1478 }
 0x318   : > { %1588 = vst.msk [vmem:[#allocation2 + $0x57] sm:$0x1] %vm723_vm3, %v1543_v41  ;;  %v3116_v41 = vld [vmem:[#allocation2 + $0x49] sm:$0xff] }
 0x319   : > { %1524 = vst.msk [vmem:[#allocation2 + $0x56] sm:$0x1] %vm723_vm3, %v1479_v42 }
 0x31a   : > { %v7320_v45 = vld [vmem:[#allocation4 + $0x8] sm:$0xf0] }
 0x31b   : > { %2985 = vrot.lane.b32.xlu0 %v8724_v13, %s8039_s16  ;;  %v7323_v49 = vor.u32 %v7748_v44, %v7320_v45  ;;  %v9217_v44 = vpack.c.bf16 %v3116_v41, %v3116_v41 }
 0x31c   : > { %1863 = vrot.lane.b32.xlu1 %v9021_v34, %s8049_s17  ;;  %1610 = vrot.lane.b32.xlu2 %v8334_v19, %s8049_s17  ;;  %v3146_v34 = vpack.c.bf16 %v3114_v56, %v3114_v56 }
 0x31d   : > { %7480 = vmatmul.msk.bf16.vlgmr.msra.gmra.mxu3 %vm457_vm2, %v7323_v49  ;;  %v7786_v49 = vld [vmem:[%s12063_s4 + $0x30] sm:$0xff] }
 0x31e   : > { %v1289_v50 = vpop.permute.xlu1 %1288  ;;  %v2310_v16 = vpop.permute.xlu2 %2309 }
 0x31f   : > { %1333 = vst.msk [vmem:[#allocation2 + $0x6b] sm:$0x1] %vm723_vm3, %v1289_v50  ;;  %v1225_v54 = vpop.permute.xlu0 %1224 }
 0x320   : > { %v3342_v57 = vld [vmem:[#allocation2 + $0x52] sm:$0xff]  ;;  %1269 = vst.msk [vmem:[#allocation2 + $0x6a] sm:$0x1] %vm723_vm3, %v1225_v54  ;;  %v7784_v54 = vld [vmem:[%s12063_s4 + $0x20] sm:$0xff] }
 0x321   : > { %v9153_v59 = vpack.c.bf16 %v3342_v57, %v3342_v57  ;;  %v2892_v7 = vld [vmem:[#allocation2 + $0x50] sm:$0xff] }
 0x322   : > { %v3117_v25 = vld [vmem:[#allocation2 + $0x51] sm:$0xff] }
 0x323   : > { %3406 = vst.msk [vmem:[#allocation4 + $0x1c] sm:$0xf] %vm1730_vm4, %v9153_v59  ;;  %3212 = vrot.lane.b32.xlu0 %v9155_v60, %s12082_s23  ;;  %v9215_v42 = vpack.c.bf16 %v3117_v25, %v3117_v25 }
 0x324   : > { %2090 = vrot.lane.b32.xlu1 %v2696_v1, %s8047_s24  ;;  %3210 = vrot.lane.b32.xlu2 %v3146_v34, %s12082_s23  ;;  %v2924_v1 = vpack.c.bf16 %v2892_v7, %v2892_v7 }
 0x326   : > { %v1481_v19 = vpop.permute.xlu1 %1480  ;;  %1738 = vst.msk [vmem:[#allocation4 + $0x38] sm:$0xf] %vm1730_vm4, %v2924_v1 }
 0x327   : > { %1525 = vst.msk [vmem:[#allocation2 + $0x6e] sm:$0x1] %vm723_vm3, %v1481_v19  ;;  %v1417_v61 = vpop.permute.xlu0 %1416 }
 0x328   : > { %1461 = vst.msk [vmem:[#allocation2 + $0x6d] sm:$0x1] %vm723_vm3, %v1417_v61 }
 0x32a   : > { %v7328_v63 = vld [vmem:[#allocation4 + $0x18] sm:$0xf0] }
 0x32b   : > { %2088 = vrot.lane.b32.xlu0 %v2695_v39, %s8047_s24  ;;  %v7331_v0 = vor.u32 %v7750_v11, %v7328_v63  ;;  %v7781_v11 = vld [vmem:[%s12063_s4 + $0x8] sm:$0xff]  ;;  %v7780_v63 = vld [vmem:[%s12063_s4] sm:$0xff] }
 0x32c   : > { %2538 = vrot.lane.b32.xlu1 %v3146_v34, %s8045_s15  ;;  %1865 = vrot.lane.b32.xlu2 %v9111_v2, %s8049_s17 }
 0x32d   : > { %7481 = vmatmul.msk.bf16.gmra.mxu3 %vm457_vm2, %v7331_v0 }
 0x32e   : > { %v1860_v8 = vpop.permute.xlu1 %1859 }
 0x32f   : > { %1956 = vst.msk [vmem:[#allocation4] sm:$0xf] %vm1955_vm6, %v1860_v8  ;;  %v1609_v23 = vpop.permute.xlu0 %1608  ;;  %v2894_v15 = vld [vmem:[#allocation2 + $0x68] sm:$0xff] }
 0x330   : > { %1653 = vst.msk [vmem:[#allocation2 + $0x70] sm:$0x1] %vm723_vm3, %v1609_v23  ;;  %v9196_v36 = vpack.c.bf16 %v2894_v15, %v2894_v15 }
 0x332   : > { %1740 = vst.msk [vmem:[#allocation4 + $0x48] sm:$0xf] %vm1730_vm4, %v9196_v36 }
 0x333   : > { %2315 = vrot.lane.b32.xlu0 %v2922_v40, %s8043_s19 }
 0x334   : > { %1292 = vrot.lane.b32.xlu1 %v8363_v24, %s8044_s21  ;;  %2313 = vrot.lane.b32.xlu2 %v8724_v13, %s8043_s19 }
 0x336   : > { %v2087_v2 = vpop.permute.xlu1 %2086 }
 0x337   : > { %v3344_v10 = vld [vmem:[#allocation2 + $0x6a] sm:$0xff]  ;;  %2182 = vst.msk [vmem:[#allocation4 + $0x8] sm:$0xf] %vm2180_vm7, %v2087_v2  ;;  %v2085_v12 = vpop.permute.xlu0 %2084 }
 0x338   : > { %v9179_v17 = vpack.c.bf16 %v3344_v10, %v3344_v10  ;;  %2181 = vst.msk [vmem:[#allocation4] sm:$0xf] %vm2180_vm7, %v2085_v12 }
 0x339   : > { %2406 = vst.msk [vmem:[#allocation4] sm:$0xf] %vm12092_vm8, %v2310_v16  ;;  %v3118_v16 = vld [vmem:[#allocation2 + $0x61] sm:$0xff] }
 0x33a   : > { %3408 = vst.msk [vmem:[#allocation4 + $0x2c] sm:$0xf] %vm1730_vm4, %v9179_v17 }
 0x33b   : > { %1228 = vrot.lane.b32.xlu0 %v8363_v24, %s8045_s15 }
 0x33c   : > { %1484 = vrot.lane.b32.xlu1 %v8363_v24, %s8047_s24  ;;  %2540 = vrot.lane.b32.xlu2 %v9155_v60, %s8045_s15 }
 0x33e   : > { %v2535_v13 = vpop.permute.xlu1 %2534 }
 0x33f   : > { %2631 = vst.msk [vmem:[#allocation4] sm:$0xf] %vm12091_vm9, %v2535_v13  ;;  %v3119_v13 = vld [vmem:[#allocation2 + $0x69] sm:$0xff] }
 0x340   : > { %v9302_v15 = vpack.c.bf16 %v3119_v13, %v3119_v13 }
 0x341   : > { %v7336_v27 = vld [vmem:[#allocation4 + $0x28] sm:$0xf0] }
 0x342   : > { %v7339_v30 = vor.u32 %v7752_v26, %v7336_v27  ;;  %v7754_v26 = vld [vmem:[#allocation4 + $0x34] sm:$0xf] }
 0x343   : > { %1420 = vrot.lane.b32.xlu0 %v8363_v24, %s12084_s30 }
 0x344   : > { %2765 = vrot.lane.b32.xlu1 %v9130_v37, %s8041_s20  ;;  %1356 = vrot.lane.b32.xlu2 %v8363_v24, %s8043_s19 }
 0x345   : > { %7482 = vmatmul.msk.bf16.gmra.mxu3 %vm457_vm2, %v7339_v30 }
 0x346   : > { %v1291_v39 = vpop.permute.xlu1 %1290 }
 0x347   : > { %1334 = vst.msk [vmem:[#allocation2 + $0x83] sm:$0x1] %vm723_vm3, %v1291_v39 }
 0x34b   : > { %2763 = vrot.lane.b32.xlu0 %v8961_v48, %s8041_s20 }
 0x34c   : > { %2991 = vrot.lane.b32.xlu1 %v2924_v1, %s8039_s16  ;;  %1548 = vrot.lane.b32.xlu2 %v8363_v24, %s12080_s22 }
 0x34e   : > { %v1483_v40 = vpop.permute.xlu1 %1482 }
 0x34f   : > { %1526 = vst.msk [vmem:[#allocation2 + $0x86] sm:$0x1] %vm723_vm3, %v1483_v40 }
 0x353   : > { %2989 = vrot.lane.b32.xlu0 %v8726_v14, %s8039_s16 }
 0x354   : > { %1867 = vrot.lane.b32.xlu1 %v3146_v34, %s8049_s17  ;;  %1612 = vrot.lane.b32.xlu2 %v8363_v24, %s8049_s17  ;;  %v7782_v34 = vld [vmem:[%s12063_s4 + $0x10] sm:$0xff] }
 0x35b   : > { %3216 = vrot.lane.b32.xlu0 %v9215_v42, %s12082_s23 }
 0x35c   : > { %2094 = vrot.lane.b32.xlu1 %v9130_v37, %s8047_s24  ;;  %3214 = vrot.lane.b32.xlu2 %v9217_v44, %s12082_s23  ;;  %v7787_v37 = vld [vmem:[%s12063_s4 + $0x38] sm:$0xff]  ;;  %s12103_s23 = smov 72  }
 0x35d   : > { %3735 = vmatpush.bf16.msra.mxu2 %v7787_v37 }
 0x35e   : > { %v2537_v45 = vpop.permute.xlu2 %2536 }
 0x361   : > { %3736 = vmatpush.bf16.msra.mxu2 %v7786_v49 }
 0x363   : > { %2092 = vrot.lane.b32.xlu0 %v8961_v48, %s8047_s24 }
 0x364   : > { %2542 = vrot.lane.b32.xlu1 %v9217_v44, %s8045_s15  ;;  %1869 = vrot.lane.b32.xlu2 %v9155_v60, %s8049_s17  ;;  %v7783_v60 = vld [vmem:[%s12063_s4 + $0x18] sm:$0xff] }
 0x365   : > { %3737 = vmatpush.bf16.msra.mxu2 %v7785_v51 }
 0x366   : > { %v1355_v24 = vpop.permute.xlu2 %1354 }
 0x367   : > { %1398 = vst.msk [vmem:[#allocation2 + $0x84] sm:$0x1] %vm723_vm3, %v1355_v24 }
 0x369   : > { %3738 = vmatpush.bf16.msra.mxu2 %v7784_v54 }
 0x36b   : > { %2319 = vrot.lane.b32.xlu0 %v2924_v1, %s8043_s19 }
 0x36c   : > { %1294 = vrot.lane.b32.xlu1 %v8395_v29, %s8044_s21  ;;  %2317 = vrot.lane.b32.xlu2 %v8726_v14, %s8043_s19 }
 0x36d   : > { %v2312_v48 = vpop.permute.xlu0 %2311  ;;  %3739 = vmatpush.bf16.msra.mxu2 %v7783_v60 }
 0x36e   : > { %v1547_v50 = vpop.permute.xlu2 %1546  ;;  %2407 = vst.msk [vmem:[#allocation4 + $0x8] sm:$0xf] %vm12092_vm8, %v2312_v48 }
 0x36f   : > { %1590 = vst.msk [vmem:[#allocation2 + $0x87] sm:$0x1] %vm723_vm3, %v1547_v50 }
 0x370   : > { %2632 = vst.msk [vmem:[#allocation4 + $0x8] sm:$0xf] %vm12091_vm9, %v2537_v45 }
 0x371   : > { %3740 = vmatpush.bf16.msra.mxu2 %v7782_v34 }
 0x373   : > { %1230 = vrot.lane.b32.xlu0 %v8395_v29, %s8045_s15 }
 0x374   : > { %1486 = vrot.lane.b32.xlu1 %v8395_v29, %s8047_s24  ;;  %2544 = vrot.lane.b32.xlu2 %v9215_v42, %s8045_s15 }
 0x375   : > { %v2762_v14 = vpop.permute.xlu1 %2761  ;;  %v1227_v56 = vpop.permute.xlu0 %1226  ;;  %3741 = vmatpush.bf16.msra.mxu2 %v7781_v11 }
 0x376   : > { %2857 = vst.msk [vmem:[#allocation4 + $0x8] sm:$0xf] %vm12090_vm10, %v2762_v14  ;;  %v1611_v57 = vpop.permute.xlu2 %1610 }
 0x377   : > { %1654 = vst.msk [vmem:[#allocation2 + $0x88] sm:$0x1] %vm723_vm3, %v1611_v57 }
 0x378   : > { %1270 = vst.msk [vmem:[#allocation2 + $0x82] sm:$0x1] %vm723_vm3, %v1227_v56 }
 0x379   : > { %3742 = vmatpush.bf16.msra.mxu2 %v7780_v63 }
 0x37b   : > { %1422 = vrot.lane.b32.xlu0 %v8395_v29, %s12084_s30  ;;  %s12100_s30 = smov 24  }
 0x37c   : > { %2769 = vrot.lane.b32.xlu1 %v9153_v59, %s8041_s20  ;;  %1358 = vrot.lane.b32.xlu2 %v8395_v29, %s8043_s19 }
 0x37d   : > { %v1419_v19 = vpop.permute.xlu0 %1418 }
 0x37e   : > { %v3211_v61 = vpop.permute.xlu2 %3210  ;;  %1462 = vst.msk [vmem:[#allocation2 + $0x85] sm:$0x1] %vm723_vm3, %v1419_v19 }
 0x383   : > { %2767 = vrot.lane.b32.xlu0 %v9047_v55, %s8041_s20 }
 0x384   : > { %2995 = vrot.lane.b32.xlu1 %v9196_v36, %s8039_s16  ;;  %1550 = vrot.lane.b32.xlu2 %v8395_v29, %s12100_s30 }
 0x385   : > { %v3346_v0 = vld [vmem:[#allocation2 + $0x82] sm:$0xff]  ;;  %v2760_v1 = vpop.permute.xlu0 %2759 }
 0x386   : > { %v2988_v7 = vpop.permute.xlu1 %2987  ;;  %v9286_v8 = vpack.c.bf16 %v3346_v0, %v3346_v0  ;;  %v1866_v23 = vpop.permute.xlu2 %1865  ;;  %2856 = vst.msk [vmem:[#allocation4] sm:$0xf] %vm12090_vm10, %v2760_v1  ;;  %v2896_v41 = vld [vmem:[#allocation2 + $0x80] sm:$0xff] }
 0x387   : > { %3083 = vst.msk [vmem:[#allocation4 + $0x8] sm:$0xf] %vm12089_vm11, %v2988_v7  ;;  %v3121_v7 = vld [vmem:[#allocation2 + $0x81] sm:$0xff]  ;;  %v3120_v1 = vld [vmem:[#allocation2 + $0x79] sm:$0xff] }
 0x388   : > { %1959 = vst.msk [vmem:[#allocation4 + $0x18] sm:$0xf] %vm1955_vm6, %v1866_v23  ;;  %v7756_v23 = vld [vmem:[#allocation4 + $0x44] sm:$0xf] }
 0x389   : > { %3410 = vst.msk [vmem:[#allocation4 + $0x3c] sm:$0xf] %vm1730_vm4, %v9286_v8 }
 0x38b   : > { %2993 = vrot.lane.b32.xlu0 %v8698_v62, %s8039_s16 }
 0x38c   : > { %1871 = vrot.lane.b32.xlu1 %v9217_v44, %s8049_s17  ;;  %1614 = vrot.lane.b32.xlu2 %v8395_v29, %s8049_s17  ;;  %v9305_v29 = vpack.c.bf16 %v3118_v16, %v3118_v16  ;;  %v9315_v44 = vpack.c.bf16 %v2896_v41, %v2896_v41  ;;  %v9380_v16 = vpack.c.bf16 %v3120_v1, %v3120_v1 }
 0x38d   : > { %v2986_v10 = vpop.permute.xlu0 %2985 }
 0x38e   : > { %v1864_v2 = vpop.permute.xlu1 %1863  ;;  %v2314_v12 = vpop.permute.xlu2 %2313  ;;  %3082 = vst.msk [vmem:[#allocation4] sm:$0xf] %vm12089_vm11, %v2986_v10 }
 0x38f   : > { %1958 = vst.msk [vmem:[#allocation4 + $0x10] sm:$0xf] %vm1955_vm6, %v1864_v2 }
 0x390   : > { %v7344_v27 = vld [vmem:[#allocation4 + $0x38] sm:$0xf0]  ;;  %3307 = vst.msk [vmem:[#allocation4] sm:$0xf] %vm12088_vm12, %v3211_v61 }
 0x391   : > { %v7347_v30 = vor.u32 %v7754_v26, %v7344_v27  ;;  %1742 = vst.msk [vmem:[#allocation4 + $0x58] sm:$0xf] %vm1730_vm4, %v9315_v44 }
 0x393   : > { %7483 = vmatmul.msk.bf16.gmra.mxu3 %vm457_vm2, %v7347_v30  ;;  %3220 = vrot.lane.b32.xlu0 %v9302_v15, %s12101_s14 }
 0x394   : > { %2098 = vrot.lane.b32.xlu1 %v9153_v59, %s8047_s24  ;;  %3218 = vrot.lane.b32.xlu2 %v9305_v29, %s12101_s14 }
 0x395   : > { %v3213_v40 = vpop.permute.xlu0 %3212 }
 0x396   : > { %v2091_v39 = vpop.permute.xlu1 %2090  ;;  %v2541_v25 = vpop.permute.xlu2 %2540  ;;  %3308 = vst.msk [vmem:[#allocation4 + $0x8] sm:$0xf] %vm12088_vm12, %v3213_v40 }
 0x397   : > { %2184 = vst.msk [vmem:[#allocation4 + $0x18] sm:$0xf] %vm2180_vm7, %v2091_v39  ;;  %v7318_v37 = vld [vmem:[#allocation4] sm:$0xf] }
 0x39b   : > { %2096 = vrot.lane.b32.xlu0 %v9047_v55, %s8047_s24 }
 0x39c   : > { %2546 = vrot.lane.b32.xlu1 %v9305_v29, %s8045_s15  ;;  %1873 = vrot.lane.b32.xlu2 %v9215_v42, %s8049_s17 }
 0x39d   : > { %v2089_v45 = vpop.permute.xlu0 %2088  ;;  %v7749_v49 = vld [vmem:[#allocation4 + $0x4] sm:$0xf0] }
 0x39e   : > { %v2539_v59 = vpop.permute.xlu1 %2538  ;;  %v1357_v24 = vpop.permute.xlu2 %1356  ;;  %2183 = vst.msk [vmem:[#allocation4 + $0x10] sm:$0xf] %vm2180_vm7, %v2089_v45  ;;  %v7319_v48 = vor.u32 %v7749_v49, %v7318_v37 }
 0x39f   : > { %1399 = vst.msk [vmem:[#allocation2 + $0x9c] sm:$0x1] %vm723_vm3, %v1357_v24 }
 0x3a0   : > { %2408 = vst.msk [vmem:[#allocation4 + $0x10] sm:$0xf] %vm12092_vm8, %v2314_v12  ;;  %3743 = vmatmul.bf16.vlgmr.msra.gmra.mxu2 %v7319_v48  ;;  %v9378_v12 = vpack.c.bf16 %v3121_v7, %v3121_v7  ;;  %v2671_v48 = vld [vmem:[#allocation2 + $0x7a] sm:$0xff] }
 0x3a1   : > { %2633 = vst.msk [vmem:[#allocation4 + $0x10] sm:$0xf] %vm12091_vm9, %v2539_v59 }
 0x3a3   : > { %2323 = vrot.lane.b32.xlu0 %v9196_v36, %s8043_s19 }
 0x3a4   : > { %1296 = vrot.lane.b32.xlu1 %v8391_v28, %s8044_s21  ;;  %2321 = vrot.lane.b32.xlu2 %v8698_v62, %s8043_s19 }
 0x3a5   : > { %v2316_v42 = vpop.permute.xlu0 %2315 }
 0x3a6   : > { %v1293_v55 = vpop.permute.xlu1 %1292  ;;  %v1549_v50 = vpop.permute.xlu2 %1548  ;;  %2409 = vst.msk [vmem:[#allocation4 + $0x18] sm:$0xf] %vm12092_vm8, %v2316_v42 }
 0x3a7   : > { %1335 = vst.msk [vmem:[#allocation2 + $0x9b] sm:$0x1] %vm723_vm3, %v1293_v55  ;;  %v2703_v55 = vpack.c.bf16 %v2671_v48, %v2671_v48 }
 0x3a8   : > { %1591 = vst.msk [vmem:[#allocation2 + $0x9f] sm:$0x1] %vm723_vm3, %v1549_v50 }
 0x3a9   : > { %2634 = vst.msk [vmem:[#allocation4 + $0x18] sm:$0xf] %vm12091_vm9, %v2541_v25 }
 0x3ab   : > { %1232 = vrot.lane.b32.xlu0 %v8391_v28, %s8045_s15 }
 0x3ac   : > { %1488 = vrot.lane.b32.xlu1 %v8391_v28, %s8047_s24  ;;  %2548 = vrot.lane.b32.xlu2 %v9302_v15, %s8045_s15 }
 0x3ad   : > { %v1229_v36 = vpop.permute.xlu0 %1228 }
 0x3ae   : > { %v1485_v62 = vpop.permute.xlu1 %1484  ;;  %v1613_v51 = vpop.permute.xlu2 %1612  ;;  %1271 = vst.msk [vmem:[#allocation2 + $0x9a] sm:$0x1] %vm723_vm3, %v1229_v36 }
 0x3af   : > { %1527 = vst.msk [vmem:[#allocation2 + $0x9e] sm:$0x1] %vm723_vm3, %v1485_v62 }
 0x3b0   : > { %1655 = vst.msk [vmem:[#allocation2 + $0xa0] sm:$0x1] %vm723_vm3, %v1613_v51 }
 0x3b3   : > { %1424 = vrot.lane.b32.xlu0 %v8391_v28, %s12102_s27 }
 0x3b4   : > { %2773 = vrot.lane.b32.xlu1 %v9179_v17, %s8041_s20  ;;  %1360 = vrot.lane.b32.xlu2 %v8391_v28, %s8043_s19 }
 0x3b5   : > { %v1421_v14 = vpop.permute.xlu0 %1420 }
 0x3b6   : > { %v2766_v54 = vpop.permute.xlu1 %2765  ;;  %v3215_v56 = vpop.permute.xlu2 %3214  ;;  %1463 = vst.msk [vmem:[#allocation2 + $0x9d] sm:$0x1] %vm723_vm3, %v1421_v14 }
 0x3b7   : > { %2859 = vst.msk [vmem:[#allocation4 + $0x18] sm:$0xf] %vm12090_vm10, %v2766_v54 }
 0x3bb   : > { %2771 = vrot.lane.b32.xlu0 %v9041_v46, %s8041_s20 }
 0x3bc   : > { %2999 = vrot.lane.b32.xlu1 %v9315_v44, %s8039_s16  ;;  %1552 = vrot.lane.b32.xlu2 %v8391_v28, %s12100_s30 }
 0x3bd   : > { %v2764_v60 = vpop.permute.xlu0 %2763  ;;  %v3348_v34 = vld [vmem:[#allocation2 + $0x9a] sm:$0xff] }
 0x3be   : > { %v2992_v57 = vpop.permute.xlu1 %2991  ;;  %v1870_v19 = vpop.permute.xlu2 %1869  ;;  %v9363_v61 = vpack.c.bf16 %v3348_v34, %v3348_v34  ;;  %2858 = vst.msk [vmem:[#allocation4 + $0x10] sm:$0xf] %vm12090_vm10, %v2764_v60  ;;  %v2898_v27 = vld [vmem:[#allocation2 + $0x98] sm:$0xff]  ;;  %v7758_v34 = vld [vmem:[#allocation4 + $0x54] sm:$0xf] }
 0x3bf   : > { %3085 = vst.msk [vmem:[#allocation4 + $0x18] sm:$0xf] %vm12089_vm11, %v2992_v57  ;;  %v9391_v30 = vpack.c.bf16 %v2898_v27, %v2898_v27  ;;  %v3123_v57 = vld [vmem:[#allocation2 + $0x99] sm:$0xff]  ;;  %v3122_v60 = vld [vmem:[#allocation2 + $0x91] sm:$0xff] }
 0x3c0   : > { %1961 = vst.msk [vmem:[#allocation4 + $0x28] sm:$0xf] %vm1955_vm6, %v1870_v19 }
 0x3c1   : > { %3412 = vst.msk [vmem:[#allocation4 + $0x4c] sm:$0xf] %vm1730_vm4, %v9363_v61 }
 0x3c2   : > { %1744 = vst.msk [vmem:[#allocation4 + $0x68] sm:$0xf] %vm1730_vm4, %v9391_v30 }
 0x3c3   : > { %2997 = vrot.lane.b32.xlu0 %v8741_v31, %s8039_s16 }
 0x3c4   : > { %1875 = vrot.lane.b32.xlu1 %v9305_v29, %s8049_s17  ;;  %1616 = vrot.lane.b32.xlu2 %v8391_v28, %s8049_s17 }
 0x3c5   : > { %v2990_v63 = vpop.permute.xlu0 %2989 }
 0x3c6   : > { %v1868_v11 = vpop.permute.xlu1 %1867  ;;  %v2318_v0 = vpop.permute.xlu2 %2317  ;;  %3084 = vst.msk [vmem:[#allocation4 + $0x10] sm:$0xf] %vm12089_vm11, %v2990_v63  ;;  %v9453_v63 = vpack.c.bf16 %v3123_v57, %v3123_v57 }
 0x3c7   : > { %1960 = vst.msk [vmem:[#allocation4 + $0x20] sm:$0xf] %vm1955_vm6, %v1868_v11 }
 0x3c8   : > { %3309 = vst.msk [vmem:[#allocation4 + $0x10] sm:$0xf] %vm12088_vm12, %v3215_v56  ;;  %v7352_v2 = vld [vmem:[#allocation4 + $0x48] sm:$0xf0] }
 0x3c9   : > { %v7355_v10 = vor.u32 %v7756_v23, %v7352_v2  ;;  %v3914_v23 = vld [vmem:[%s12071_s12 + $0x8] sm:$0xff] }
 0x3ca   : > { %4025 = vmatpush.msrb.mxu1 %v3914_v23  ;;  %4375 = vmatpush.msrb.mxu0 %v3914_v23 }
 0x3cb   : > { %7484 = vmatmul.msk.bf16.gmra.mxu3 %vm457_vm2, %v7355_v10  ;;  %3224 = vrot.lane.b32.xlu0 %v9378_v12, %s12101_s14 }
 0x3cc   : > { %3222 = vrot.lane.b32.xlu2 %v9380_v16, %s12101_s14  ;;  %2102 = vrot.lane.b32.xlu1 %v9179_v17, %s8047_s24 }
 0x3cd   : > { %v3217_v13 = vpop.permute.xlu0 %3216 }
 0x3ce   : > { %v2095_v28 = vpop.permute.xlu1 %2094  ;;  %v2545_v26 = vpop.permute.xlu2 %2544  ;;  %3310 = vst.msk [vmem:[#allocation4 + $0x18] sm:$0xf] %vm12088_vm12, %v3217_v13 }
 0x3cf   : > { %2186 = vst.msk [vmem:[#allocation4 + $0x28] sm:$0xf] %vm2180_vm7, %v2095_v28  ;;  %v7326_v40 = vld [vmem:[#allocation4 + $0x10] sm:$0xf] }
 0x3d3   : > { %2100 = vrot.lane.b32.xlu0 %v9041_v46, %s8047_s24 }
 0x3d4   : > { %1877 = vrot.lane.b32.xlu2 %v9302_v15, %s8049_s17  ;;  %2550 = vrot.lane.b32.xlu1 %v9380_v16, %s8045_s15 }
 0x3d5   : > { %v2093_v29 = vpop.permute.xlu0 %2092  ;;  %v7751_v25 = vld [vmem:[#allocation4 + $0x14] sm:$0xf0] }
 0x3d6   : > { %v2543_v17 = vpop.permute.xlu1 %2542  ;;  %v1359_v39 = vpop.permute.xlu2 %1358  ;;  %2185 = vst.msk [vmem:[#allocation4 + $0x20] sm:$0xf] %vm2180_vm7, %v2093_v29  ;;  %v7327_v41 = vor.u32 %v7751_v25, %v7326_v40  ;;  %v9507_v25 = vld [vmem:[%s12064_s5] ss:$0 sm:$0xff] }
 0x3d7   : > { %1400 = vst.msk [vmem:[#allocation2 + $0xb4] sm:$0x1] %vm723_vm3, %v1359_v39 }
 0x3d8   : > { %2410 = vst.msk [vmem:[#allocation4 + $0x20] sm:$0xf] %vm12092_vm8, %v2318_v0  ;;  %3748 = vmatmul.bf16.gmra.mxu2 %v7327_v41  ;;  %v3833_v41 = vpop.f32.mrf.mxu3 }
 0x3d9   : > { %2635 = vst.msk [vmem:[#allocation4 + $0x20] sm:$0xf] %vm12091_vm9, %v2543_v17 }
 0x3db   : > { %2327 = vrot.lane.b32.xlu0 %v9315_v44, %s8043_s19 }
 0x3dc   : > { %2325 = vrot.lane.b32.xlu2 %v8741_v31, %s8043_s19  ;;  %1298 = vrot.lane.b32.xlu1 %v8537_v53, %s8044_s21 }
 0x3dd   : > { %v2320_v15 = vpop.permute.xlu0 %2319 }
 0x3de   : > { %v1295_v46 = vpop.permute.xlu1 %1294  ;;  %v1551_v59 = vpop.permute.xlu2 %1550  ;;  %2411 = vst.msk [vmem:[#allocation4 + $0x28] sm:$0xf] %vm12092_vm8, %v2320_v15 }
 0x3df   : > { %1336 = vst.msk [vmem:[#allocation2 + $0xb3] sm:$0x1] %vm723_vm3, %v1295_v46 }
 0x3e0   : > { %1592 = vst.msk [vmem:[#allocation2 + $0xb7] sm:$0x1] %vm723_vm3, %v1551_v59  ;;  %v3835_v48 = vpop.f32.mrf.mxu3 }
 0x3e1   : > { %2636 = vst.msk [vmem:[#allocation4 + $0x28] sm:$0xf] %vm12091_vm9, %v2545_v26 }
 0x3e3   : > { %1234 = vrot.lane.b32.xlu0 %v8537_v53, %s8045_s15 }
 0x3e4   : > { %1490 = vrot.lane.b32.xlu1 %v8537_v53, %s8047_s24  ;;  %2552 = vrot.lane.b32.xlu2 %v9378_v12, %s8045_s15 }
 0x3e5   : > { %v1231_v44 = vpop.permute.xlu0 %1230 }
 0x3e6   : > { %v1487_v31 = vpop.permute.xlu1 %1486  ;;  %v1615_v45 = vpop.permute.xlu2 %1614  ;;  %1272 = vst.msk [vmem:[#allocation2 + $0xb2] sm:$0x1] %vm723_vm3, %v1231_v44 }
 0x3e7   : > { %1528 = vst.msk [vmem:[#allocation2 + $0xb6] sm:$0x1] %vm723_vm3, %v1487_v31 }
 0x3e8   : > { %1656 = vst.msk [vmem:[#allocation2 + $0xb8] sm:$0x1] %vm723_vm3, %v1615_v45  ;;  %v2673_v45 = vld [vmem:[#allocation2 + $0x92] sm:$0xff] }
 0x3eb   : > { %1426 = vrot.lane.b32.xlu0 %v8537_v53, %s12102_s27 }
 0x3ec   : > { %2777 = vrot.lane.b32.xlu1 %v9286_v8, %s8041_s20  ;;  %1362 = vrot.lane.b32.xlu2 %v8537_v53, %s8043_s19 }
 0x3ed   : > { %v1423_v37 = vpop.permute.xlu0 %1422 }
 0x3ee   : > { %v2770_v24 = vpop.permute.xlu1 %2769  ;;  %v3219_v49 = vpop.permute.xlu2 %3218  ;;  %1464 = vst.msk [vmem:[#allocation2 + $0xb5] sm:$0x1] %vm723_vm3, %v1423_v37  ;;  %v2705_v37 = vpack.c.bf16 %v2673_v45, %v2673_v45 }
 0x3ef   : > { %2861 = vst.msk [vmem:[#allocation4 + $0x28] sm:$0xf] %vm12090_vm10, %v2770_v24 }
 0x3f3   : > { %2775 = vrot.lane.b32.xlu0 %v2703_v55, %s8041_s20 }
 0x3f4   : > { %1554 = vrot.lane.b32.xlu2 %v8537_v53, %s12100_s30  ;;  %3003 = vrot.lane.b32.xlu1 %v9391_v30, %s8039_s16 }
 0x3f5   : > { %v2768_v50 = vpop.permute.xlu0 %2767  ;;  %v3350_v62 = vld [vmem:[#allocation2 + $0xb2] sm:$0xff] }
 0x3f6   : > { %v2996_v42 = vpop.permute.xlu1 %2995  ;;  %v1874_v36 = vpop.permute.xlu2 %1873  ;;  %v9438_v51 = vpack.c.bf16 %v3350_v62, %v3350_v62  ;;  %2860 = vst.msk [vmem:[#allocation4 + $0x20] sm:$0xf] %vm12090_vm10, %v2768_v50  ;;  %v2900_v2 = vld [vmem:[#allocation2 + $0xb0] sm:$0xff] }
 0x3f7   : > { %3087 = vst.msk [vmem:[#allocation4 + $0x28] sm:$0xf] %vm12089_vm11, %v2996_v42  ;;  %v9469_v10 = vpack.c.bf16 %v2900_v2, %v2900_v2 }
 0x3f8   : > { %1963 = vst.msk [vmem:[#allocation4 + $0x38] sm:$0xf] %vm1955_vm6, %v1874_v36 }
 0x3f9   : > { %3414 = vst.msk [vmem:[#allocation4 + $0x5c] sm:$0xf] %vm1730_vm4, %v9438_v51 }
 0x3fa   : > { %1746 = vst.msk [vmem:[#allocation4 + $0x78] sm:$0xf] %vm1730_vm4, %v9469_v10 }
 0x3fb   : > { %3001 = vrot.lane.b32.xlu0 %v8743_v32, %s8039_s16 }
 0x3fc   : > { %1618 = vrot.lane.b32.xlu2 %v8537_v53, %s8049_s17  ;;  %1879 = vrot.lane.b32.xlu1 %v9380_v16, %s8049_s17  ;;  %v9455_v53 = vpack.c.bf16 %v3122_v60, %v3122_v60 }
 0x3fd   : > { %v2994_v14 = vpop.permute.xlu0 %2993 }
 0x3fe   : > { %v1872_v54 = vpop.permute.xlu1 %1871  ;;  %v2322_v56 = vpop.permute.xlu2 %2321  ;;  %3086 = vst.msk [vmem:[#allocation4 + $0x20] sm:$0xf] %vm12089_vm11, %v2994_v14 }
 0x3ff   : > { %1962 = vst.msk [vmem:[#allocation4 + $0x30] sm:$0xf] %vm1955_vm6, %v1872_v54 }
 0x400   : > { %3311 = vst.msk [vmem:[#allocation4 + $0x20] sm:$0xf] %vm12088_vm12, %v3219_v49  ;;  %v7360_v19 = vld [vmem:[#allocation4 + $0x58] sm:$0xf0] }
 0x401   : > { %v7363_v11 = vor.u32 %v7758_v34, %v7360_v19  ;;  %v3125_v34 = vld [vmem:[#allocation2 + $0xb1] sm:$0xff]  ;;  %v3124_v19 = vld [vmem:[#allocation2 + $0xa9] sm:$0xff] }
 0x403   : > { %7485 = vmatmul.msk.bf16.gmra.mxu3 %vm457_vm2, %v7363_v11  ;;  %3228 = vrot.lane.b32.xlu0 %v9453_v63, %s12101_s14  ;;  %v7760_v11 = vld [vmem:[#allocation4 + $0x64] sm:$0xf] }
 0x404   : > { %3226 = vrot.lane.b32.xlu2 %v9455_v53, %s12101_s14  ;;  %2106 = vrot.lane.b32.xlu1 %v9286_v8, %s8047_s24 }
 0x405   : > { %v3221_v7 = vpop.permute.xlu0 %3220 }
 0x406   : > { %v2099_v0 = vpop.permute.xlu1 %2098  ;;  %v2549_v1 = vpop.permute.xlu2 %2548  ;;  %3312 = vst.msk [vmem:[#allocation4 + $0x28] sm:$0xf] %vm12088_vm12, %v3221_v7 }
 0x407   : > { %2188 = vst.msk [vmem:[#allocation4 + $0x38] sm:$0xf] %vm2180_vm7, %v2099_v0  ;;  %v7334_v13 = vld [vmem:[#allocation4 + $0x20] sm:$0xf] }
 0x40b   : > { %2104 = vrot.lane.b32.xlu0 %v2703_v55, %s8047_s24 }
 0x40c   : > { %1881 = vrot.lane.b32.xlu2 %v9378_v12, %s8049_s17  ;;  %2554 = vrot.lane.b32.xlu1 %v9455_v53, %s8045_s15  ;;  %v3913_v12 = vld [vmem:[%s12071_s12] sm:$0xff] }
 0x40d   : > { %v2097_v16 = vpop.permute.xlu0 %2096  ;;  %v7753_v26 = vld [vmem:[#allocation4 + $0x24] sm:$0xf0]  ;;  %4026 = vmatpush.msrb.mxu1 %v3913_v12  ;;  %4376 = vmatpush.msrb.mxu0 %v3913_v12 }
 0x40e   : > { %v2547_v8 = vpop.permute.xlu1 %2546  ;;  %v1361_v28 = vpop.permute.xlu2 %1360  ;;  %2187 = vst.msk [vmem:[#allocation4 + $0x30] sm:$0xf] %vm2180_vm7, %v2097_v16  ;;  %v7335_v27 = vor.u32 %v7753_v26, %v7334_v13 }
 0x40f   : > { %1401 = vst.msk [vmem:[#allocation2 + $0xcc] sm:$0x1] %vm723_vm3, %v1361_v28 }
 0x410   : > { %2412 = vst.msk [vmem:[#allocation4 + $0x30] sm:$0xf] %vm12092_vm8, %v2322_v56  ;;  %3753 = vmatmul.bf16.gmra.mxu2 %v7335_v27 }
 0x411   : > { %2637 = vst.msk [vmem:[#allocation4 + $0x30] sm:$0xf] %vm12091_vm9, %v2547_v8 }
 0x413   : > { %2331 = vrot.lane.b32.xlu0 %v9391_v30, %s8043_s19 }
 0x414   : > { %2329 = vrot.lane.b32.xlu2 %v8743_v32, %s8043_s19  ;;  %1300 = vrot.lane.b32.xlu1 %v8578_v6, %s8044_s21 }
 0x415   : > { %v2324_v39 = vpop.permute.xlu0 %2323 }
 0x416   : > { %v1297_v17 = vpop.permute.xlu1 %1296  ;;  %v1553_v29 = vpop.permute.xlu2 %1552  ;;  %2413 = vst.msk [vmem:[#allocation4 + $0x38] sm:$0xf] %vm12092_vm8, %v2324_v39 }
 0x417   : > { %1337 = vst.msk [vmem:[#allocation2 + $0xcb] sm:$0x1] %vm723_vm3, %v1297_v17 }
 0x418   : > { %1593 = vst.msk [vmem:[#allocation2 + $0xcf] sm:$0x1] %vm723_vm3, %v1553_v29 }
 0x419   : > { %2638 = vst.msk [vmem:[#allocation4 + $0x38] sm:$0xf] %vm12091_vm9, %v2549_v1  ;;  %v9548_v1 = vpack.c.bf16 %v3125_v34, %v3125_v34 }
 0x41b   : > { %1236 = vrot.lane.b32.xlu0 %v8578_v6, %s8045_s15 }
 0x41c   : > { %1492 = vrot.lane.b32.xlu1 %v8578_v6, %s8047_s24  ;;  %2556 = vrot.lane.b32.xlu2 %v9453_v63, %s8045_s15 }
 0x41d   : > { %v1233_v40 = vpop.permute.xlu0 %1232 }
 0x41e   : > { %v1489_v32 = vpop.permute.xlu1 %1488  ;;  %v1617_v30 = vpop.permute.xlu2 %1616  ;;  %1273 = vst.msk [vmem:[#allocation2 + $0xca] sm:$0x1] %vm723_vm3, %v1233_v40 }
 0x41f   : > { %1529 = vst.msk [vmem:[#allocation2 + $0xce] sm:$0x1] %vm723_vm3, %v1489_v32  ;;  %v3838_v32 = vpop.f32.mrf.mxu3 }
 0x420   : > { %1657 = vst.msk [vmem:[#allocation2 + $0xd0] sm:$0x1] %vm723_vm3, %v1617_v30 }
 0x423   : > { %1428 = vrot.lane.b32.xlu0 %v8578_v6, %s12102_s27  ;;  %v3744_v46 = vpop.f32.mrf.mxu2 }
 0x424   : > { %2781 = vrot.lane.b32.xlu1 %v9363_v61, %s8041_s20  ;;  %1364 = vrot.lane.b32.xlu2 %v8578_v6, %s8043_s19  ;;  %v3745_v15 = vadd.f32 %v9507_v25, %v3744_v46 }
 0x425   : > { %v1425_v44 = vpop.permute.xlu0 %1424 }
 0x426   : > { %v2774_v59 = vpop.permute.xlu1 %2773  ;;  %v3223_v31 = vpop.permute.xlu2 %3222  ;;  %v9517_v24 = vadd.f32 %v3833_v41, %v3745_v15  ;;  %1465 = vst.msk [vmem:[#allocation2 + $0xcd] sm:$0x1] %vm723_vm3, %v1425_v44  ;;  %v2675_v15 = vld [vmem:[#allocation2 + $0xaa] sm:$0xff] }
 0x427   : > { %2863 = vst.msk [vmem:[#allocation4 + $0x38] sm:$0xf] %vm12090_vm10, %v2774_v59  ;;  %v2707_v44 = vpack.c.bf16 %v2675_v15, %v2675_v15 }
 0x428   : > { %7496 = vmatmul.msk.f32.vlgmr.msrb.gmra.mxu1 %vm457_vm2, %v9517_v24 }
 0x42b   : > { %2779 = vrot.lane.b32.xlu0 %v2705_v37, %s8041_s20  ;;  %v3746_v49 = vpop.f32.mrf.mxu2 }
 0x42c   : > { %1556 = vrot.lane.b32.xlu2 %v8578_v6, %s12100_s30  ;;  %3007 = vrot.lane.b32.xlu1 %v9469_v10, %s8039_s16  ;;  %v3747_v55 = vadd.f32 %v9507_v25, %v3746_v49 }
 0x42d   : > { %v3352_v50 = vld [vmem:[#allocation2 + $0xca] sm:$0xff]  ;;  %v2772_v36 = vpop.permute.xlu0 %2771 }
 0x42e   : > { %v3000_v42 = vpop.permute.xlu1 %2999  ;;  %v1878_v62 = vpop.permute.xlu2 %1877  ;;  %v9529_v54 = vpack.c.bf16 %v3352_v50, %v3352_v50  ;;  %v9531_v14 = vadd.f32 %v3835_v48, %v3747_v55  ;;  %2862 = vst.msk [vmem:[#allocation4 + $0x30] sm:$0xf] %vm12090_vm10, %v2772_v36  ;;  %v2902_v8 = vld [vmem:[#allocation2 + $0xc8] sm:$0xff] }
 0x42f   : > { %3089 = vst.msk [vmem:[#allocation4 + $0x38] sm:$0xf] %vm12089_vm11, %v3000_v42  ;;  %v9561_v16 = vpack.c.bf16 %v2902_v8, %v2902_v8 }
 0x430   : > { %1965 = vst.msk [vmem:[#allocation4 + $0x48] sm:$0xf] %vm1955_vm6, %v1878_v62  ;;  %7497 = vmatmul.msk.f32.gmra.mxu1 %vm457_vm2, %v9531_v14 }
 0x431   : > { %3416 = vst.msk [vmem:[#allocation4 + $0x6c] sm:$0xf] %vm1730_vm4, %v9529_v54 }
 0x432   : > { %1748 = vst.msk [vmem:[#allocation4 + $0x88] sm:$0xf] %vm1730_vm4, %v9561_v16 }
 0x433   : > { %3005 = vrot.lane.b32.xlu0 %v8711_v3, %s8039_s16 }
 0x434   : > { %1620 = vrot.lane.b32.xlu2 %v8578_v6, %s8049_s17  ;;  %1883 = vrot.lane.b32.xlu1 %v9455_v53, %s8049_s17  ;;  %v9550_v6 = vpack.c.bf16 %v3124_v19, %v3124_v19  ;;  %v3126_v19 = vld [vmem:[#allocation2 + $0xc1] sm:$0xff] }
 0x435   : > { %v2998_v60 = vpop.permute.xlu0 %2997 }
 0x436   : > { %v1876_v56 = vpop.permute.xlu1 %1875  ;;  %v2326_v57 = vpop.permute.xlu2 %2325  ;;  %3088 = vst.msk [vmem:[#allocation4 + $0x30] sm:$0xf] %vm12089_vm11, %v2998_v60  ;;  %v3127_v60 = vld [vmem:[#allocation2 + $0xc9] sm:$0xff] }
 0x437   : > { %1964 = vst.msk [vmem:[#allocation4 + $0x40] sm:$0xf] %vm1955_vm6, %v1876_v56 }
 0x438   : > { %3313 = vst.msk [vmem:[#allocation4 + $0x30] sm:$0xf] %vm12088_vm12, %v3223_v31  ;;  %v7368_v0 = vld [vmem:[#allocation4 + $0x68] sm:$0xf0] }
 0x439   : > { %v7371_v7 = vor.u32 %v7760_v11, %v7368_v0  ;;  %v7762_v11 = vld [vmem:[#allocation4 + $0x74] sm:$0xf] }
 0x43b   : > { %7486 = vmatmul.msk.bf16.gmra.mxu3 %vm457_vm2, %v7371_v7  ;;  %3232 = vrot.lane.b32.xlu0 %v9548_v1, %s12101_s14  ;;  %v9632_v7 = vpack.c.bf16 %v3127_v60, %v3127_v60 }
 0x43c   : > { %3230 = vrot.lane.b32.xlu2 %v9550_v6, %s12101_s14  ;;  %2110 = vrot.lane.b32.xlu1 %v9363_v61, %s8047_s24 }
 0x43d   : > { %v3225_v2 = vpop.permute.xlu0 %3224 }
 0x43e   : > { %v2103_v53 = vpop.permute.xlu1 %2102  ;;  %v2553_v23 = vpop.permute.xlu2 %2552  ;;  %3314 = vst.msk [vmem:[#allocation4 + $0x38] sm:$0xf] %vm12088_vm12, %v3225_v2 }
 0x43f   : > { %2190 = vst.msk [vmem:[#allocation4 + $0x48] sm:$0xf] %vm2180_vm7, %v2103_v53  ;;  %v7342_v26 = vld [vmem:[#allocation4 + $0x30] sm:$0xf] }
 0x443   : > { %2108 = vrot.lane.b32.xlu0 %v2705_v37, %s8047_s24  ;;  %v3840_v37 = vpop.f32.mrf.mxu3 }
 0x444   : > { %1885 = vrot.lane.b32.xlu2 %v9453_v63, %s8049_s17  ;;  %2558 = vrot.lane.b32.xlu1 %v9550_v6, %s8045_s15 }
 0x445   : > { %v2101_v13 = vpop.permute.xlu0 %2100  ;;  %v7755_v27 = vld [vmem:[#allocation4 + $0x34] sm:$0xf0] }
 0x446   : > { %v2551_v61 = vpop.permute.xlu1 %2550  ;;  %v1363_v28 = vpop.permute.xlu2 %1362  ;;  %2189 = vst.msk [vmem:[#allocation4 + $0x40] sm:$0xf] %vm2180_vm7, %v2101_v13  ;;  %v7343_v12 = vor.u32 %v7755_v27, %v7342_v26 }
 0x447   : > { %1402 = vst.msk [vmem:[#allocation2 + $0xe4] sm:$0x1] %vm723_vm3, %v1363_v28 }
 0x448   : > { %2414 = vst.msk [vmem:[#allocation4 + $0x40] sm:$0xf] %vm12092_vm8, %v2326_v57  ;;  %3758 = vmatmul.bf16.gmra.mxu2 %v7343_v12 }
 0x449   : > { %2639 = vst.msk [vmem:[#allocation4 + $0x40] sm:$0xf] %vm12091_vm9, %v2551_v61 }
 0x44b   : > { %2335 = vrot.lane.b32.xlu0 %v9469_v10, %s8043_s19 }
 0x44c   : > { %2333 = vrot.lane.b32.xlu2 %v8711_v3, %s8043_s19  ;;  %1302 = vrot.lane.b32.xlu1 %v8574_v4, %s8044_s21 }
 0x44d   : > { %v2328_v29 = vpop.permute.xlu0 %2327 }
 0x44e   : > { %v1299_v63 = vpop.permute.xlu1 %1298  ;;  %v1555_v17 = vpop.permute.xlu2 %1554  ;;  %2415 = vst.msk [vmem:[#allocation4 + $0x48] sm:$0xf] %vm12092_vm8, %v2328_v29 }
 0x44f   : > { %1338 = vst.msk [vmem:[#allocation2 + $0xe3] sm:$0x1] %vm723_vm3, %v1299_v63 }
 0x450   : > { %1594 = vst.msk [vmem:[#allocation2 + $0xe7] sm:$0x1] %vm723_vm3, %v1555_v17 }
 0x451   : > { %2640 = vst.msk [vmem:[#allocation4 + $0x48] sm:$0xf] %vm12091_vm9, %v2553_v23 }
 0x453   : > { %1238 = vrot.lane.b32.xlu0 %v8574_v4, %s8045_s15 }
 0x454   : > { %1494 = vrot.lane.b32.xlu1 %v8574_v4, %s8047_s24  ;;  %2560 = vrot.lane.b32.xlu2 %v9548_v1, %s8045_s15 }
 0x455   : > { %v1235_v39 = vpop.permute.xlu0 %1234 }
 0x456   : > { %v1491_v3 = vpop.permute.xlu1 %1490  ;;  %v1619_v10 = vpop.permute.xlu2 %1618  ;;  %1274 = vst.msk [vmem:[#allocation2 + $0xe2] sm:$0x1] %vm723_vm3, %v1235_v39 }
 0x457   : > { %1530 = vst.msk [vmem:[#allocation2 + $0xe6] sm:$0x1] %vm723_vm3, %v1491_v3  ;;  %v3843_v3 = vpop.f32.mrf.mxu3 }
 0x458   : > { %1658 = vst.msk [vmem:[#allocation2 + $0xe8] sm:$0x1] %vm723_vm3, %v1619_v10 }
 0x45b   : > { %1430 = vrot.lane.b32.xlu0 %v8574_v4, %s12102_s27  ;;  %v3749_v30 = vpop.f32.mrf.mxu2 }
 0x45c   : > { %2785 = vrot.lane.b32.xlu1 %v9438_v51, %s8041_s20  ;;  %1366 = vrot.lane.b32.xlu2 %v8574_v4, %s8043_s19  ;;  %v3750_v40 = vadd.f32 %v9507_v25, %v3749_v30 }
 0x45d   : > { %v1427_v31 = vpop.permute.xlu0 %1426 }
 0x45e   : > { %v2778_v41 = vpop.permute.xlu1 %2777  ;;  %v3227_v46 = vpop.permute.xlu2 %3226  ;;  %v9600_v59 = vadd.f32 %v3838_v32, %v3750_v40  ;;  %1466 = vst.msk [vmem:[#allocation2 + $0xe5] sm:$0x1] %vm723_vm3, %v1427_v31  ;;  %v2677_v40 = vld [vmem:[#allocation2 + $0xc2] sm:$0xff] }
 0x45f   : > { %2865 = vst.msk [vmem:[#allocation4 + $0x48] sm:$0xf] %vm12090_vm10, %v2778_v41  ;;  %v2709_v15 = vpack.c.bf16 %v2677_v40, %v2677_v40 }
 0x460   : > { %7498 = vmatmul.msk.f32.gmra.mxu1 %vm457_vm2, %v9600_v59 }
 0x463   : > { %2783 = vrot.lane.b32.xlu0 %v2707_v44, %s8041_s20  ;;  %v3751_v45 = vpop.f32.mrf.mxu2 }
 0x464   : > { %1558 = vrot.lane.b32.xlu2 %v8574_v4, %s12100_s30  ;;  %3011 = vrot.lane.b32.xlu1 %v9561_v16, %s8039_s16  ;;  %v3752_v49 = vadd.f32 %v9507_v25, %v3751_v45 }
 0x465   : > { %v3354_v42 = vld [vmem:[#allocation2 + $0xe2] sm:$0xff]  ;;  %v2776_v62 = vpop.permute.xlu0 %2775 }
 0x466   : > { %v1882_v48 = vpop.permute.xlu2 %1881  ;;  %v3004_v55 = vpop.permute.xlu1 %3003  ;;  %v9612_v50 = vadd.f32 %v3840_v37, %v3752_v49  ;;  %v9615_v36 = vpack.c.bf16 %v3354_v42, %v3354_v42  ;;  %2864 = vst.msk [vmem:[#allocation4 + $0x40] sm:$0xf] %vm12090_vm10, %v2776_v62  ;;  %v2904_v8 = vld [vmem:[#allocation2 + $0xe0] sm:$0xff] }
 0x467   : > { %1967 = vst.msk [vmem:[#allocation4 + $0x58] sm:$0xf] %vm1955_vm6, %v1882_v48  ;;  %v9645_v61 = vpack.c.bf16 %v2904_v8, %v2904_v8 }
 0x468   : > { %3091 = vst.msk [vmem:[#allocation4 + $0x48] sm:$0xf] %vm12089_vm11, %v3004_v55  ;;  %7499 = vmatmul.msk.f32.gmra.mxu1 %vm457_vm2, %v9612_v50 }
 0x469   : > { %3418 = vst.msk [vmem:[#allocation4 + $0x7c] sm:$0xf] %vm1730_vm4, %v9615_v36 }
 0x46a   : > { %1750 = vst.msk [vmem:[#allocation4 + $0x98] sm:$0xf] %vm1730_vm4, %v9645_v61 }
 0x46b   : > { %3009 = vrot.lane.b32.xlu0 %v8758_v38, %s8039_s16 }
 0x46c   : > { %1622 = vrot.lane.b32.xlu2 %v8574_v4, %s8049_s17  ;;  %1887 = vrot.lane.b32.xlu1 %v9550_v6, %s8049_s17  ;;  %v9634_v4 = vpack.c.bf16 %v3126_v19, %v3126_v19  ;;  %v3128_v19 = vld [vmem:[#allocation2 + $0xd9] sm:$0xff] }
 0x46d   : > { %v3002_v34 = vpop.permute.xlu0 %3001 }
 0x46e   : > { %v2330_v56 = vpop.permute.xlu2 %2329  ;;  %v1880_v57 = vpop.permute.xlu1 %1879  ;;  %3090 = vst.msk [vmem:[#allocation4 + $0x40] sm:$0xf] %vm12089_vm11, %v3002_v34 }
 0x46f   : > { %1966 = vst.msk [vmem:[#allocation4 + $0x50] sm:$0xf] %vm1955_vm6, %v1880_v57  ;;  %v3129_v57 = vld [vmem:[#allocation2 + $0xe1] sm:$0xff] }
 0x470   : > { %3315 = vst.msk [vmem:[#allocation4 + $0x40] sm:$0xf] %vm12088_vm12, %v3227_v46  ;;  %v7376_v0 = vld [vmem:[#allocation4 + $0x78] sm:$0xf0] }
 0x471   : > { %v7379_v53 = vor.u32 %v7762_v11, %v7376_v0  ;;  %v7764_v11 = vld [vmem:[#allocation4 + $0x84] sm:$0xf] }
 0x473   : > { %3236 = vrot.lane.b32.xlu0 %v9632_v7, %s12101_s14  ;;  %7487 = vmatmul.msk.bf16.gmra.mxu3 %vm457_vm2, %v7379_v53  ;;  %v9715_v53 = vpack.c.bf16 %v3129_v57, %v3129_v57 }
 0x474   : > { %3234 = vrot.lane.b32.xlu2 %v9634_v4, %s12101_s14  ;;  %2114 = vrot.lane.b32.xlu1 %v9438_v51, %s8047_s24 }
 0x475   : > { %v3229_v2 = vpop.permute.xlu0 %3228 }
 0x476   : > { %v2107_v6 = vpop.permute.xlu1 %2106  ;;  %v2557_v23 = vpop.permute.xlu2 %2556  ;;  %3316 = vst.msk [vmem:[#allocation4 + $0x48] sm:$0xf] %vm12088_vm12, %v3229_v2 }
 0x477   : > { %2192 = vst.msk [vmem:[#allocation4 + $0x58] sm:$0xf] %vm2180_vm7, %v2107_v6  ;;  %v7350_v26 = vld [vmem:[#allocation4 + $0x40] sm:$0xf] }
 0x47b   : > { %2112 = vrot.lane.b32.xlu0 %v2707_v44, %s8047_s24  ;;  %v3845_v44 = vpop.f32.mrf.mxu3 }
 0x47c   : > { %1889 = vrot.lane.b32.xlu2 %v9548_v1, %s8049_s17  ;;  %2562 = vrot.lane.b32.xlu1 %v9634_v4, %s8045_s15 }
 0x47d   : > { %v2105_v13 = vpop.permute.xlu0 %2104  ;;  %v7757_v27 = vld [vmem:[#allocation4 + $0x44] sm:$0xf0] }
 0x47e   : > { %v2555_v51 = vpop.permute.xlu1 %2554  ;;  %v1365_v28 = vpop.permute.xlu2 %1364  ;;  %2191 = vst.msk [vmem:[#allocation4 + $0x50] sm:$0xf] %vm2180_vm7, %v2105_v13  ;;  %v7351_v12 = vor.u32 %v7757_v27, %v7350_v26 }
 0x47f   : > { %1403 = vst.msk [vmem:[#allocation2 + $0xfc] sm:$0x1] %vm723_vm3, %v1365_v28 }
 0x480   : > { %2416 = vst.msk [vmem:[#allocation4 + $0x50] sm:$0xf] %vm12092_vm8, %v2330_v56  ;;  %3763 = vmatmul.bf16.gmra.mxu2 %v7351_v12 }
 0x481   : > { %2641 = vst.msk [vmem:[#allocation4 + $0x50] sm:$0xf] %vm12091_vm9, %v2555_v51 }
 0x483   : > { %2339 = vrot.lane.b32.xlu0 %v9561_v16, %s8043_s19 }
 0x484   : > { %2337 = vrot.lane.b32.xlu2 %v8758_v38, %s8043_s19  ;;  %1304 = vrot.lane.b32.xlu1 %v8576_v5, %s8044_s21 }
 0x485   : > { %v2332_v17 = vpop.permute.xlu0 %2331 }
 0x486   : > { %v1301_v1 = vpop.permute.xlu1 %1300  ;;  %v1557_v63 = vpop.permute.xlu2 %1556  ;;  %2417 = vst.msk [vmem:[#allocation4 + $0x58] sm:$0xf] %vm12092_vm8, %v2332_v17 }
 0x487   : > { %1339 = vst.msk [vmem:[#allocation2 + $0xfb] sm:$0x1] %vm723_vm3, %v1301_v1 }
 0x488   : > { %1595 = vst.msk [vmem:[#allocation2 + $0xff] sm:$0x1] %vm723_vm3, %v1557_v63 }
 0x489   : > { %2642 = vst.msk [vmem:[#allocation4 + $0x58] sm:$0xf] %vm12091_vm9, %v2557_v23 }
 0x48b   : > { %1240 = vrot.lane.b32.xlu0 %v8576_v5, %s8045_s15 }
 0x48c   : > { %2564 = vrot.lane.b32.xlu2 %v9632_v7, %s8045_s15  ;;  %1496 = vrot.lane.b32.xlu1 %v8576_v5, %s8047_s24 }
 0x48d   : > { %v1237_v29 = vpop.permute.xlu0 %1236 }
 0x48e   : > { %v1493_v38 = vpop.permute.xlu1 %1492  ;;  %v1621_v16 = vpop.permute.xlu2 %1620  ;;  %1275 = vst.msk [vmem:[#allocation2 + $0xfa] sm:$0x1] %vm723_vm3, %v1237_v29 }
 0x48f   : > { %1531 = vst.msk [vmem:[#allocation2 + $0xfe] sm:$0x1] %vm723_vm3, %v1493_v38  ;;  %v3848_v38 = vpop.f32.mrf.mxu3 }
 0x490   : > { %1659 = vst.msk [vmem:[#allocation2 + $0x100] sm:$0x1] %vm723_vm3, %v1621_v16 }
 0x493   : > { %1432 = vrot.lane.b32.xlu0 %v8576_v5, %s12102_s27  ;;  %v3754_v10 = vpop.f32.mrf.mxu2 }
 0x494   : > { %1368 = vrot.lane.b32.xlu2 %v8576_v5, %s8043_s19  ;;  %v3755_v39 = vadd.f32 %v9507_v25, %v3754_v10  ;;  %2789 = vrot.lane.b32.xlu1 %v9529_v54, %s8041_s20  ;;  %v2679_v10 = vld [vmem:[#allocation2 + $0xda] sm:$0xff] }
 0x495   : > { %v1429_v46 = vpop.permute.xlu0 %1428  ;;  %v2711_v40 = vpack.c.bf16 %v2679_v10, %v2679_v10 }
 0x496   : > { %v2782_v32 = vpop.permute.xlu1 %2781  ;;  %v3231_v30 = vpop.permute.xlu2 %3230  ;;  %v9684_v41 = vadd.f32 %v3843_v3, %v3755_v39  ;;  %1467 = vst.msk [vmem:[#allocation2 + $0xfd] sm:$0x1] %vm723_vm3, %v1429_v46 }
 0x497   : > { %2867 = vst.msk [vmem:[#allocation4 + $0x58] sm:$0xf] %vm12090_vm10, %v2782_v32 }
 0x498   : > { %7500 = vmatmul.msk.f32.gmra.mxu1 %vm457_vm2, %v9684_v41 }
 0x49b   : > { %2787 = vrot.lane.b32.xlu0 %v2709_v15, %s8041_s20  ;;  %v3756_v31 = vpop.f32.mrf.mxu2 }
 0x49c   : > { %1560 = vrot.lane.b32.xlu2 %v8576_v5, %s12100_s30  ;;  %v3757_v45 = vadd.f32 %v9507_v25, %v3756_v31  ;;  %3015 = vrot.lane.b32.xlu1 %v9645_v61, %s8039_s16 }
 0x49d   : > { %v3356_v48 = vld [vmem:[#allocation2 + $0xfa] sm:$0xff]  ;;  %v2780_v42 = vpop.permute.xlu0 %2779 }
 0x49e   : > { %v1886_v37 = vpop.permute.xlu2 %1885  ;;  %v3008_v49 = vpop.permute.xlu1 %3007  ;;  %v9696_v55 = vadd.f32 %v3845_v44, %v3757_v45  ;;  %v9699_v62 = vpack.c.bf16 %v3356_v48, %v3356_v48  ;;  %2866 = vst.msk [vmem:[#allocation4 + $0x50] sm:$0xf] %vm12090_vm10, %v2780_v42  ;;  %v2906_v8 = vld [vmem:[#allocation2 + $0xf8] sm:$0xff] }
 0x49f   : > { %1969 = vst.msk [vmem:[#allocation4 + $0x68] sm:$0xf] %vm1955_vm6, %v1886_v37  ;;  %v9728_v51 = vpack.c.bf16 %v2906_v8, %v2906_v8  ;;  %v3131_v57 = vld [vmem:[#allocation2 + $0xf9] sm:$0xff] }
 0x4a0   : > { %3093 = vst.msk [vmem:[#allocation4 + $0x58] sm:$0xf] %vm12089_vm11, %v3008_v49  ;;  %7501 = vmatmul.msk.f32.gmra.mxu1 %vm457_vm2, %v9696_v55 }
 0x4a1   : > { %3420 = vst.msk [vmem:[#allocation4 + $0x8c] sm:$0xf] %vm1730_vm4, %v9699_v62 }
 0x4a2   : > { %1752 = vst.msk [vmem:[#allocation4 + $0xa8] sm:$0xf] %vm1730_vm4, %v9728_v51 }
 0x4a3   : > { %3013 = vrot.lane.b32.xlu0 %v8798_v52, %s8039_s16 }
 0x4a4   : > { %1624 = vrot.lane.b32.xlu2 %v8576_v5, %s8049_s17  ;;  %1891 = vrot.lane.b32.xlu1 %v9634_v4, %s8049_s17  ;;  %v9718_v5 = vpack.c.bf16 %v3128_v19, %v3128_v19  ;;  %v3130_v19 = vld [vmem:[#allocation2 + $0xf1] sm:$0xff] }
 0x4a5   : > { %v3006_v34 = vpop.permute.xlu0 %3005 }
 0x4a6   : > { %v2334_v56 = vpop.permute.xlu2 %2333  ;;  %v1884_v60 = vpop.permute.xlu1 %1883  ;;  %3092 = vst.msk [vmem:[#allocation4 + $0x50] sm:$0xf] %vm12089_vm11, %v3006_v34 }
 0x4a7   : > { %1968 = vst.msk [vmem:[#allocation4 + $0x60] sm:$0xf] %vm1955_vm6, %v1884_v60 }
 0x4a8   : > { %v7384_v0 = vld [vmem:[#allocation4 + $0x88] sm:$0xf0]  ;;  %3317 = vst.msk [vmem:[#allocation4 + $0x50] sm:$0xf] %vm12088_vm12, %v3231_v30 }
 0x4a9   : > { %v7387_v6 = vor.u32 %v7764_v11, %v7384_v0  ;;  %v9799_v11 = vpack.c.bf16 %v3131_v57, %v3131_v57  ;;  %v7766_v0 = vld [vmem:[#allocation4 + $0x94] sm:$0xf] }
 0x4ab   : > { %3240 = vrot.lane.b32.xlu0 %v9715_v53, %s12101_s14  ;;  %7488 = vmatmul.msk.bf16.gmra.mxu3 %vm457_vm2, %v7387_v6 }
 0x4ac   : > { %3238 = vrot.lane.b32.xlu2 %v9718_v5, %s12101_s14  ;;  %2118 = vrot.lane.b32.xlu1 %v9529_v54, %s8047_s24 }
 0x4ad   : > { %v3233_v2 = vpop.permute.xlu0 %3232 }
 0x4ae   : > { %v2561_v4 = vpop.permute.xlu2 %2560  ;;  %v2111_v23 = vpop.permute.xlu1 %2110  ;;  %3318 = vst.msk [vmem:[#allocation4 + $0x58] sm:$0xf] %vm12088_vm12, %v3233_v2 }
 0x4af   : > { %2194 = vst.msk [vmem:[#allocation4 + $0x68] sm:$0xf] %vm2180_vm7, %v2111_v23  ;;  %v7358_v26 = vld [vmem:[#allocation4 + $0x50] sm:$0xf] }
 0x4b3   : > { %2116 = vrot.lane.b32.xlu0 %v2709_v15, %s8047_s24  ;;  %v3850_v15 = vpop.f32.mrf.mxu3 }
 0x4b4   : > { %1893 = vrot.lane.b32.xlu2 %v9632_v7, %s8049_s17  ;;  %2566 = vrot.lane.b32.xlu1 %v9718_v5, %s8045_s15 }
 0x4b5   : > { %v2109_v13 = vpop.permute.xlu0 %2108  ;;  %v7759_v27 = vld [vmem:[#allocation4 + $0x54] sm:$0xf0] }
 0x4b6   : > { %v1367_v54 = vpop.permute.xlu2 %1366  ;;  %v2559_v28 = vpop.permute.xlu1 %2558  ;;  %2193 = vst.msk [vmem:[#allocation4 + $0x60] sm:$0xf] %vm2180_vm7, %v2109_v13  ;;  %v7359_v12 = vor.u32 %v7759_v27, %v7358_v26 }
 0x4b7   : > { %1404 = vst.msk [vmem:[#allocation2 + $0x114] sm:$0x1] %vm723_vm3, %v1367_v54 }
 0x4b8   : > { %2418 = vst.msk [vmem:[#allocation4 + $0x60] sm:$0xf] %vm12092_vm8, %v2334_v56  ;;  %3768 = vmatmul.bf16.gmra.mxu2 %v7359_v12 }
 0x4b9   : > { %2643 = vst.msk [vmem:[#allocation4 + $0x60] sm:$0xf] %vm12091_vm9, %v2559_v28 }
 0x4bb   : > { %2343 = vrot.lane.b32.xlu0 %v9645_v61, %s8043_s19 }
 0x4bc   : > { %2341 = vrot.lane.b32.xlu2 %v8798_v52, %s8043_s19  ;;  %1306 = vrot.lane.b32.xlu1 %v8603_v22, %s8044_s21 }
 0x4bd   : > { %v2336_v63 = vpop.permute.xlu0 %2335 }
 0x4be   : > { %v1559_v7 = vpop.permute.xlu2 %1558  ;;  %v1303_v1 = vpop.permute.xlu1 %1302  ;;  %2419 = vst.msk [vmem:[#allocation4 + $0x68] sm:$0xf] %vm12092_vm8, %v2336_v63 }
 0x4bf   : > { %1596 = vst.msk [vmem:[#allocation2 + $0x117] sm:$0x1] %vm723_vm3, %v1559_v7 }
 0x4c0   : > { %1340 = vst.msk [vmem:[#allocation2 + $0x113] sm:$0x1] %vm723_vm3, %v1303_v1 }
 0x4c1   : > { %2644 = vst.msk [vmem:[#allocation4 + $0x68] sm:$0xf] %vm12091_vm9, %v2561_v4  ;;  %v9802_v4 = vpack.c.bf16 %v3130_v19, %v3130_v19 }
 0x4c3   : > { %1242 = vrot.lane.b32.xlu0 %v8603_v22, %s8045_s15 }
 0x4c4   : > { %2568 = vrot.lane.b32.xlu2 %v9715_v53, %s8045_s15  ;;  %1498 = vrot.lane.b32.xlu1 %v8603_v22, %s8047_s24 }
 0x4c5   : > { %v1239_v17 = vpop.permute.xlu0 %1238 }
 0x4c6   : > { %v1623_v52 = vpop.permute.xlu2 %1622  ;;  %v1495_v61 = vpop.permute.xlu1 %1494  ;;  %1276 = vst.msk [vmem:[#allocation2 + $0x112] sm:$0x1] %vm723_vm3, %v1239_v17 }
 0x4c7   : > { %1660 = vst.msk [vmem:[#allocation2 + $0x118] sm:$0x1] %vm723_vm3, %v1623_v52  ;;  %v3853_v52 = vpop.f32.mrf.mxu3 }
 0x4c8   : > { %1532 = vst.msk [vmem:[#allocation2 + $0x116] sm:$0x1] %vm723_vm3, %v1495_v61 }
 0x4cb   : > { %1434 = vrot.lane.b32.xlu0 %v8603_v22, %s12102_s27  ;;  %v3759_v16 = vpop.f32.mrf.mxu2 }
 0x4cc   : > { %1370 = vrot.lane.b32.xlu2 %v8603_v22, %s8043_s19  ;;  %2793 = vrot.lane.b32.xlu1 %v9615_v36, %s8041_s20  ;;  %v3760_v29 = vadd.f32 %v9507_v25, %v3759_v16  ;;  %v2681_v16 = vld [vmem:[#allocation2 + $0xf2] sm:$0xff] }
 0x4cd   : > { %v1431_v32 = vpop.permute.xlu0 %1430 }
 0x4ce   : > { %v3235_v3 = vpop.permute.xlu2 %3234  ;;  %v2786_v39 = vpop.permute.xlu1 %2785  ;;  %v9768_v30 = vadd.f32 %v3848_v38, %v3760_v29  ;;  %1468 = vst.msk [vmem:[#allocation2 + $0x115] sm:$0x1] %vm723_vm3, %v1431_v32 }
 0x4cf   : > { %2869 = vst.msk [vmem:[#allocation4 + $0x68] sm:$0xf] %vm12090_vm10, %v2786_v39  ;;  %v2713_v39 = vpack.c.bf16 %v2681_v16, %v2681_v16 }
 0x4d0   : > { %7502 = vmatmul.msk.f32.gmra.mxu1 %vm457_vm2, %v9768_v30 }
 0x4d3   : > { %2791 = vrot.lane.b32.xlu0 %v2711_v40, %s8041_s20  ;;  %v3761_v46 = vpop.f32.mrf.mxu2 }
 0x4d4   : > { %1562 = vrot.lane.b32.xlu2 %v8603_v22, %s12100_s30  ;;  %3019 = vrot.lane.b32.xlu1 %v9728_v51, %s8039_s16  ;;  %v3762_v31 = vadd.f32 %v9507_v25, %v3761_v46 }
 0x4d5   : > { %v2784_v37 = vpop.permute.xlu0 %2783  ;;  %v3358_v49 = vld [vmem:[#allocation2 + $0x112] sm:$0xff] }
 0x4d6   : > { %v1890_v44 = vpop.permute.xlu2 %1889  ;;  %v3012_v45 = vpop.permute.xlu1 %3011  ;;  %v9781_v48 = vadd.f32 %v3850_v15, %v3762_v31  ;;  %v9784_v42 = vpack.c.bf16 %v3358_v49, %v3358_v49  ;;  %2868 = vst.msk [vmem:[#allocation4 + $0x60] sm:$0xf] %vm12090_vm10, %v2784_v37  ;;  %v2908_v8 = vld [vmem:[#allocation2 + $0x110] sm:$0xff] }
 0x4d7   : > { %1971 = vst.msk [vmem:[#allocation4 + $0x78] sm:$0xf] %vm1955_vm6, %v1890_v44  ;;  %v9812_v54 = vpack.c.bf16 %v2908_v8, %v2908_v8  ;;  %v3855_v15 = vpop.f32.mrf.mxu3  ;;  %v3133_v57 = vld [vmem:[#allocation2 + $0x111] sm:$0xff] }
 0x4d8   : > { %3095 = vst.msk [vmem:[#allocation4 + $0x68] sm:$0xf] %vm12089_vm11, %v3012_v45  ;;  %7503 = vmatmul.msk.f32.gmra.mxu1 %vm457_vm2, %v9781_v48 }
 0x4d9   : > { %3422 = vst.msk [vmem:[#allocation4 + $0x9c] sm:$0xf] %vm1730_vm4, %v9784_v42 }
 0x4da   : > { %1754 = vst.msk [vmem:[#allocation4 + $0xb8] sm:$0xf] %vm1730_vm4, %v9812_v54 }
 0x4db   : > { %3017 = vrot.lane.b32.xlu0 %v9066_v9, %s8039_s16 }
 0x4dc   : > { %1626 = vrot.lane.b32.xlu2 %v8603_v22, %s8049_s17  ;;  %1895 = vrot.lane.b32.xlu1 %v9718_v5, %s8049_s17 }
 0x4dd   : > { %v3010_v34 = vpop.permute.xlu0 %3009 }
 0x4de   : > { %v2338_v56 = vpop.permute.xlu2 %2337  ;;  %v1888_v60 = vpop.permute.xlu1 %1887  ;;  %3094 = vst.msk [vmem:[#allocation4 + $0x60] sm:$0xf] %vm12089_vm11, %v3010_v34  ;;  %v3132_v34 = vld [vmem:[#allocation2 + $0x109] sm:$0xff] }
 0x4df   : > { %1970 = vst.msk [vmem:[#allocation4 + $0x70] sm:$0xf] %vm1955_vm6, %v1888_v60 }
 0x4e0   : > { %3319 = vst.msk [vmem:[#allocation4 + $0x60] sm:$0xf] %vm12088_vm12, %v3235_v3  ;;  %v7392_v6 = vld [vmem:[#allocation4 + $0x98] sm:$0xf0] }
 0x4e1   : > { %v7395_v22 = vor.u32 %v7766_v0, %v7392_v6  ;;  %v9883_v0 = vpack.c.bf16 %v3133_v57, %v3133_v57  ;;  %v7768_v6 = vld [vmem:[#allocation4 + $0xa4] sm:$0xf] }
 0x4e3   : > { %3244 = vrot.lane.b32.xlu0 %v9799_v11, %s12101_s14  ;;  %7489 = vmatmul.msk.bf16.gmra.mxu3 %vm457_vm2, %v7395_v22 }
 0x4e4   : > { %3242 = vrot.lane.b32.xlu2 %v9802_v4, %s12101_s14  ;;  %2122 = vrot.lane.b32.xlu1 %v9615_v36, %s8047_s24 }
 0x4e5   : > { %v3237_v2 = vpop.permute.xlu0 %3236 }
 0x4e6   : > { %v2565_v5 = vpop.permute.xlu2 %2564  ;;  %v2115_v23 = vpop.permute.xlu1 %2114  ;;  %3320 = vst.msk [vmem:[#allocation4 + $0x68] sm:$0xf] %vm12088_vm12, %v3237_v2 }
 0x4e7   : > { %2196 = vst.msk [vmem:[#allocation4 + $0x78] sm:$0xf] %vm2180_vm7, %v2115_v23  ;;  %v7366_v26 = vld [vmem:[#allocation4 + $0x60] sm:$0xf] }
 0x4eb   : > { %2120 = vrot.lane.b32.xlu0 %v2711_v40, %s8047_s24 }
 0x4ec   : > { %1897 = vrot.lane.b32.xlu2 %v9715_v53, %s8049_s17  ;;  %2570 = vrot.lane.b32.xlu1 %v9802_v4, %s8045_s15 }
 0x4ed   : > { %v2113_v13 = vpop.permute.xlu0 %2112  ;;  %v7761_v27 = vld [vmem:[#allocation4 + $0x64] sm:$0xf0] }
 0x4ee   : > { %v1369_v36 = vpop.permute.xlu2 %1368  ;;  %v2563_v28 = vpop.permute.xlu1 %2562  ;;  %2195 = vst.msk [vmem:[#allocation4 + $0x70] sm:$0xf] %vm2180_vm7, %v2113_v13  ;;  %v7367_v12 = vor.u32 %v7761_v27, %v7366_v26 }
 0x4ef   : > { %1405 = vst.msk [vmem:[#allocation2 + $0x12c] sm:$0x1] %vm723_vm3, %v1369_v36 }
 0x4f0   : > { %2420 = vst.msk [vmem:[#allocation4 + $0x70] sm:$0xf] %vm12092_vm8, %v2338_v56  ;;  %3773 = vmatmul.bf16.gmra.mxu2 %v7367_v12 }
 0x4f1   : > { %2645 = vst.msk [vmem:[#allocation4 + $0x70] sm:$0xf] %vm12091_vm9, %v2563_v28 }
 0x4f3   : > { %2347 = vrot.lane.b32.xlu0 %v9728_v51, %s8043_s19 }
 0x4f4   : > { %2345 = vrot.lane.b32.xlu2 %v9066_v9, %s8043_s19  ;;  %1308 = vrot.lane.b32.xlu1 %v8598_v20, %s8044_s21 }
 0x4f5   : > { %v2340_v1 = vpop.permute.xlu0 %2339 }
 0x4f6   : > { %v1561_v53 = vpop.permute.xlu2 %1560  ;;  %v1305_v7 = vpop.permute.xlu1 %1304  ;;  %2421 = vst.msk [vmem:[#allocation4 + $0x78] sm:$0xf] %vm12092_vm8, %v2340_v1 }
 0x4f7   : > { %1597 = vst.msk [vmem:[#allocation2 + $0x12f] sm:$0x1] %vm723_vm3, %v1561_v53 }
 0x4f8   : > { %1341 = vst.msk [vmem:[#allocation2 + $0x12b] sm:$0x1] %vm723_vm3, %v1305_v7 }
 0x4f9   : > { %2646 = vst.msk [vmem:[#allocation4 + $0x78] sm:$0xf] %vm12091_vm9, %v2565_v5  ;;  %v9886_v5 = vpack.c.bf16 %v3132_v34, %v3132_v34 }
 0x4fb   : > { %1244 = vrot.lane.b32.xlu0 %v8598_v20, %s8045_s15 }
 0x4fc   : > { %2572 = vrot.lane.b32.xlu2 %v9799_v11, %s8045_s15  ;;  %1500 = vrot.lane.b32.xlu1 %v8598_v20, %s8047_s24 }
 0x4fd   : > { %v1241_v63 = vpop.permute.xlu0 %1240 }
 0x4fe   : > { %v1625_v9 = vpop.permute.xlu2 %1624  ;;  %v1497_v51 = vpop.permute.xlu1 %1496  ;;  %1277 = vst.msk [vmem:[#allocation2 + $0x12a] sm:$0x1] %vm723_vm3, %v1241_v63 }
 0x4ff   : > { %1661 = vst.msk [vmem:[#allocation2 + $0x130] sm:$0x1] %vm723_vm3, %v1625_v9  ;;  %v2683_v9 = vld [vmem:[#allocation2 + $0x10a] sm:$0xff]  ;;  %v3858_v63 = vpop.f32.mrf.mxu3 }
 0x500   : > { %1533 = vst.msk [vmem:[#allocation2 + $0x12e] sm:$0x1] %vm723_vm3, %v1497_v51  ;;  %v2715_v51 = vpack.c.bf16 %v2683_v9, %v2683_v9 }
 0x503   : > { %1436 = vrot.lane.b32.xlu0 %v8598_v20, %s12102_s27  ;;  %v3764_v61 = vpop.f32.mrf.mxu2 }
 0x504   : > { %1372 = vrot.lane.b32.xlu2 %v8598_v20, %s8043_s19  ;;  %2797 = vrot.lane.b32.xlu1 %v9699_v62, %s8041_s20  ;;  %v3765_v17 = vadd.f32 %v9507_v25, %v3764_v61 }
 0x505   : > { %v1433_v10 = vpop.permute.xlu0 %1432 }
 0x506   : > { %v3239_v38 = vpop.permute.xlu2 %3238  ;;  %v2790_v29 = vpop.permute.xlu1 %2789  ;;  %v9852_v3 = vadd.f32 %v3853_v52, %v3765_v17  ;;  %1469 = vst.msk [vmem:[#allocation2 + $0x12d] sm:$0x1] %vm723_vm3, %v1433_v10 }
 0x507   : > { %2871 = vst.msk [vmem:[#allocation4 + $0x78] sm:$0xf] %vm12090_vm10, %v2790_v29 }
 0x508   : > { %7504 = vmatmul.msk.f32.gmra.mxu1 %vm457_vm2, %v9852_v3 }
 0x50b   : > { %2795 = vrot.lane.b32.xlu0 %v2713_v39, %s8041_s20  ;;  %v3766_v32 = vpop.f32.mrf.mxu2 }
 0x50c   : > { %1564 = vrot.lane.b32.xlu2 %v8598_v20, %s12100_s30  ;;  %3023 = vrot.lane.b32.xlu1 %v9812_v54, %s8039_s16  ;;  %v3767_v40 = vadd.f32 %v9507_v25, %v3766_v32 }
 0x50d   : > { %v3360_v44 = vld [vmem:[#allocation2 + $0x12a] sm:$0xff]  ;;  %v2788_v37 = vpop.permute.xlu0 %2787 }
 0x50e   : > { %v1894_v46 = vpop.permute.xlu2 %1893  ;;  %v3016_v31 = vpop.permute.xlu1 %3015  ;;  %v9865_v45 = vadd.f32 %v3855_v15, %v3767_v40  ;;  %v9868_v49 = vpack.c.bf16 %v3360_v44, %v3360_v44  ;;  %2870 = vst.msk [vmem:[#allocation4 + $0x70] sm:$0xf] %vm12090_vm10, %v2788_v37  ;;  %v2910_v2 = vld [vmem:[#allocation2 + $0x128] sm:$0xff] }
 0x50f   : > { %1973 = vst.msk [vmem:[#allocation4 + $0x88] sm:$0xf] %vm1955_vm6, %v1894_v46  ;;  %v9896_v36 = vpack.c.bf16 %v2910_v2, %v2910_v2  ;;  %v3860_v46 = vpop.f32.mrf.mxu3  ;;  %v3135_v44 = vld [vmem:[#allocation2 + $0x129] sm:$0xff] }
 0x510   : > { %3097 = vst.msk [vmem:[#allocation4 + $0x78] sm:$0xf] %vm12089_vm11, %v3016_v31  ;;  %7505 = vmatmul.msk.f32.gmra.mxu1 %vm457_vm2, %v9865_v45 }
 0x511   : > { %3424 = vst.msk [vmem:[#allocation4 + $0xac] sm:$0xf] %vm1730_vm4, %v9868_v49 }
 0x512   : > { %1756 = vst.msk [vmem:[#allocation4 + $0xc8] sm:$0xf] %vm1730_vm4, %v9896_v36 }
 0x513   : > { %3021 = vrot.lane.b32.xlu0 %v9074_v33, %s8039_s16 }
 0x514   : > { %1628 = vrot.lane.b32.xlu2 %v8598_v20, %s8049_s17  ;;  %1899 = vrot.lane.b32.xlu1 %v9802_v4, %s8049_s17 }
 0x515   : > { %v3014_v19 = vpop.permute.xlu0 %3013 }
 0x516   : > { %v2342_v56 = vpop.permute.xlu2 %2341  ;;  %v1892_v60 = vpop.permute.xlu1 %1891  ;;  %3096 = vst.msk [vmem:[#allocation4 + $0x70] sm:$0xf] %vm12089_vm11, %v3014_v19 }
 0x517   : > { %1972 = vst.msk [vmem:[#allocation4 + $0x80] sm:$0xf] %vm1955_vm6, %v1892_v60  ;;  %v3134_v60 = vld [vmem:[#allocation2 + $0x121] sm:$0xff] }
 0x518   : > { %3321 = vst.msk [vmem:[#allocation4 + $0x70] sm:$0xf] %vm12088_vm12, %v3239_v38  ;;  %v7400_v22 = vld [vmem:[#allocation4 + $0xa8] sm:$0xf0] }
 0x519   : > { %v7403_v20 = vor.u32 %v7768_v6, %v7400_v22  ;;  %v9969_v6 = vpack.c.bf16 %v3134_v60, %v3134_v60 }
 0x51b   : > { %3248 = vrot.lane.b32.xlu0 %v9883_v0, %s12101_s14  ;;  %7490 = vmatmul.msk.bf16.gmra.mxu3 %vm457_vm2, %v7403_v20 }
 0x51c   : > { %3246 = vrot.lane.b32.xlu2 %v9886_v5, %s12101_s14  ;;  %2126 = vrot.lane.b32.xlu1 %v9699_v62, %s8047_s24 }
 0x51d   : > { %v3241_v8 = vpop.permute.xlu0 %3240 }
 0x51e   : > { %v2569_v4 = vpop.permute.xlu2 %2568  ;;  %v2119_v23 = vpop.permute.xlu1 %2118  ;;  %3322 = vst.msk [vmem:[#allocation4 + $0x78] sm:$0xf] %vm12088_vm12, %v3241_v8 }
 0x51f   : > { %2198 = vst.msk [vmem:[#allocation4 + $0x88] sm:$0xf] %vm2180_vm7, %v2119_v23  ;;  %v7374_v26 = vld [vmem:[#allocation4 + $0x70] sm:$0xf] }
 0x523   : > { %2124 = vrot.lane.b32.xlu0 %v2713_v39, %s8047_s24 }
 0x524   : > { %1901 = vrot.lane.b32.xlu2 %v9799_v11, %s8049_s17  ;;  %2574 = vrot.lane.b32.xlu1 %v9886_v5, %s8045_s15 }
 0x525   : > { %v2117_v13 = vpop.permute.xlu0 %2116  ;;  %v7763_v27 = vld [vmem:[#allocation4 + $0x74] sm:$0xf0] }
 0x526   : > { %v1371_v62 = vpop.permute.xlu2 %1370  ;;  %v2567_v28 = vpop.permute.xlu1 %2566  ;;  %2197 = vst.msk [vmem:[#allocation4 + $0x80] sm:$0xf] %vm2180_vm7, %v2117_v13  ;;  %v7375_v12 = vor.u32 %v7763_v27, %v7374_v26 }
 0x527   : > { %1406 = vst.msk [vmem:[#allocation2 + $0x144] sm:$0x1] %vm723_vm3, %v1371_v62 }
 0x528   : > { %2422 = vst.msk [vmem:[#allocation4 + $0x80] sm:$0xf] %vm12092_vm8, %v2342_v56  ;;  %3778 = vmatmul.bf16.gmra.mxu2 %v7375_v12 }
 0x529   : > { %2647 = vst.msk [vmem:[#allocation4 + $0x80] sm:$0xf] %vm12091_vm9, %v2567_v28 }
 0x52b   : > { %2351 = vrot.lane.b32.xlu0 %v9812_v54, %s8043_s19 }
 0x52c   : > { %2349 = vrot.lane.b32.xlu2 %v9074_v33, %s8043_s19  ;;  %1246 = vrot.lane.b32.xlu1 %v8600_v21, %s8045_s15 }
 0x52d   : > { %v2344_v7 = vpop.permute.xlu0 %2343 }
 0x52e   : > { %v1563_v11 = vpop.permute.xlu2 %1562  ;;  %v1307_v53 = vpop.permute.xlu1 %1306  ;;  %2423 = vst.msk [vmem:[#allocation4 + $0x88] sm:$0xf] %vm12092_vm8, %v2344_v7 }
 0x52f   : > { %1598 = vst.msk [vmem:[#allocation2 + $0x147] sm:$0x1] %vm723_vm3, %v1563_v11  ;;  %v3863_v7 = vpop.f32.mrf.mxu3 }
 0x530   : > { %1342 = vst.msk [vmem:[#allocation2 + $0x143] sm:$0x1] %vm723_vm3, %v1307_v53 }
 0x531   : > { %2648 = vst.msk [vmem:[#allocation4 + $0x88] sm:$0xf] %vm12091_vm9, %v2569_v4 }
 0x533   : > { %1182 = vrot.lane.b32.xlu0 %v8600_v21, %s12103_s23 }
 0x534   : > { %2576 = vrot.lane.b32.xlu2 %v9883_v0, %s8045_s15  ;;  %1438 = vrot.lane.b32.xlu1 %v8600_v21, %s12102_s27 }
 0x535   : > { %v1243_v1 = vpop.permute.xlu0 %1242 }
 0x536   : > { %v1627_v33 = vpop.permute.xlu2 %1626  ;;  %v1499_v54 = vpop.permute.xlu1 %1498  ;;  %1278 = vst.msk [vmem:[#allocation2 + $0x142] sm:$0x1] %vm723_vm3, %v1243_v1  ;;  %v10022_v1 = vld [vmem:[%s12064_s5] ss:$0 sm:$0xff] }
 0x537   : > { %1662 = vst.msk [vmem:[#allocation2 + $0x148] sm:$0x1] %vm723_vm3, %v1627_v33 }
 0x538   : > { %1534 = vst.msk [vmem:[#allocation2 + $0x146] sm:$0x1] %vm723_vm3, %v1499_v54 }
 0x53b   : > { %1374 = vrot.lane.b32.xlu0 %v8600_v21, %s8043_s19  ;;  %v3769_v52 = vpop.f32.mrf.mxu2 }
 0x53c   : > { %1310 = vrot.lane.b32.xlu2 %v8600_v21, %s8044_s21  ;;  %2799 = vrot.lane.b32.xlu1 %v2715_v51, %s8041_s20  ;;  %v3770_v17 = vadd.f32 %v9507_v25, %v3769_v52 }
 0x53d   : > { %v1435_v16 = vpop.permute.xlu0 %1434 }
 0x53e   : > { %v3243_v61 = vpop.permute.xlu2 %3242  ;;  %v2794_v38 = vpop.permute.xlu1 %2793  ;;  %v9936_v29 = vadd.f32 %v3858_v63, %v3770_v17  ;;  %1470 = vst.msk [vmem:[#allocation2 + $0x145] sm:$0x1] %vm723_vm3, %v1435_v16  ;;  %v542_v63 = vld [vmem:[%s8207_s25 + $0xe8] sm:$0xff] }
 0x53f   : > { %2873 = vst.msk [vmem:[#allocation4 + $0x88] sm:$0xf] %vm12090_vm10, %v2794_v38 }
 0x540   : > { %7506 = vmatmul.msk.f32.gmra.mxu1 %vm457_vm2, %v9936_v29  ;;  %576 = vst.msk [vmem:[#allocation2 + $0x171] sm:$0xff] %vm546_vm1, %v542_v63 }
 0x543   : > { %1566 = vrot.lane.b32.xlu0 %v8600_v21, %s12100_s30  ;;  %v3771_v10 = vpop.f32.mrf.mxu2 }
 0x544   : > { %1502 = vrot.lane.b32.xlu2 %v8600_v21, %s8047_s24  ;;  %3025 = vrot.lane.b32.xlu1 %v9078_v58, %s8039_s16  ;;  %v3772_v32 = vadd.f32 %v9507_v25, %v3771_v10  ;;  %v9961_v25 = vpack.c.bf16 %v3135_v44, %v3135_v44 }
 0x545   : > { %v3362_v15 = vld [vmem:[#allocation2 + $0x142] sm:$0xff]  ;;  %v2792_v31 = vpop.permute.xlu0 %2791 }
 0x546   : > { %v1898_v39 = vpop.permute.xlu2 %1897  ;;  %v3020_v40 = vpop.permute.xlu1 %3019  ;;  %v9950_v37 = vpack.c.bf16 %v3362_v15, %v3362_v15  ;;  %v9952_v56 = vadd.f32 %v3860_v46, %v3772_v32  ;;  %2872 = vst.msk [vmem:[#allocation4 + $0x80] sm:$0xf] %vm12090_vm10, %v2792_v31  ;;  %v3136_v15 = vld [vmem:[#allocation2 + $0x139] sm:$0xff] }
 0x547   : > { %1975 = vst.msk [vmem:[#allocation4 + $0x98] sm:$0xf] %vm1955_vm6, %v1898_v39  ;;  %v2685_v39 = vld [vmem:[#allocation2 + $0x122] sm:$0xff]  ;;  %v3865_v32 = vpop.f32.mrf.mxu3 }
 0x548   : > { %3099 = vst.msk [vmem:[#allocation4 + $0x88] sm:$0xf] %vm12089_vm11, %v3020_v40  ;;  %7507 = vmatmul.msk.f32.gmra.mxu1 %vm457_vm2, %v9952_v56 }
 0x549   : > { %3426 = vst.msk [vmem:[#allocation4 + $0xbc] sm:$0xf] %vm1730_vm4, %v9950_v37 }
 0x54b   : > { %1630 = vrot.lane.b32.xlu0 %v8600_v21, %s8049_s17  ;;  %v7770_v21 = vld [vmem:[#allocation4 + $0xb4] sm:$0xf] }
 0x54c   : > { %2801 = vrot.lane.b32.xlu2 %v9784_v42, %s8041_s20  ;;  %3252 = vrot.lane.b32.xlu1 %v9961_v25, %s12101_s14 }
 0x54d   : > { %v3018_v19 = vpop.permute.xlu0 %3017 }
 0x54e   : > { %v2346_v57 = vpop.permute.xlu2 %2345  ;;  %v1896_v34 = vpop.permute.xlu1 %1895  ;;  %3098 = vst.msk [vmem:[#allocation4 + $0x80] sm:$0xf] %vm12089_vm11, %v3018_v19 }
 0x54f   : > { %1974 = vst.msk [vmem:[#allocation4 + $0x90] sm:$0xf] %vm1955_vm6, %v1896_v34 }
 0x550   : > { %3323 = vst.msk [vmem:[#allocation4 + $0x80] sm:$0xf] %vm12088_vm12, %v3243_v61  ;;  %v7408_v22 = vld [vmem:[#allocation4 + $0xb8] sm:$0xf0] }
 0x551   : > { %v7411_v20 = vor.u32 %v7770_v21, %v7408_v22  ;;  %v7772_v21 = vld [vmem:[#allocation4 + $0xc4] sm:$0xf] }
 0x553   : > { %3250 = vrot.lane.b32.xlu0 %v9969_v6, %s12101_s14  ;;  %7491 = vmatmul.msk.bf16.gmra.mxu3 %vm457_vm2, %v7411_v20  ;;  %v10061_v20 = vpop.f32.mrf.mxu1 }
 0x554   : > { %3027 = vrot.lane.b32.xlu2 %v9896_v36, %s8039_s16  ;;  %2128 = vrot.lane.b32.xlu1 %v2715_v51, %s8047_s24 }
 0x555   : > { %v3245_v2 = vpop.permute.xlu0 %3244 }
 0x556   : > { %v2573_v4 = vpop.permute.xlu2 %2572  ;;  %v2123_v23 = vpop.permute.xlu1 %2122  ;;  %3324 = vst.msk [vmem:[#allocation4 + $0x88] sm:$0xf] %vm12088_vm12, %v3245_v2 }
 0x557   : > { %2200 = vst.msk [vmem:[#allocation4 + $0x98] sm:$0xf] %vm2180_vm7, %v2123_v23  ;;  %v7382_v13 = vld [vmem:[#allocation4 + $0x80] sm:$0xf] }
 0x55b   : > { %1905 = vrot.lane.b32.xlu0 %v9883_v0, %s8049_s17 }
 0x55c   : > { %1903 = vrot.lane.b32.xlu2 %v9886_v5, %s8049_s17  ;;  %2355 = vrot.lane.b32.xlu1 %v9896_v36, %s8043_s19 }
 0x55d   : > { %v2121_v28 = vpop.permute.xlu0 %2120  ;;  %v7765_v26 = vld [vmem:[#allocation4 + $0x84] sm:$0xf0] }
 0x55e   : > { %v1373_v8 = vpop.permute.xlu2 %1372  ;;  %v2571_v62 = vpop.permute.xlu1 %2570  ;;  %2199 = vst.msk [vmem:[#allocation4 + $0x90] sm:$0xf] %vm2180_vm7, %v2121_v28  ;;  %v7383_v27 = vor.u32 %v7765_v26, %v7382_v13 }
 0x55f   : > { %1407 = vst.msk [vmem:[#allocation2 + $0x15c] sm:$0x1] %vm723_vm3, %v1373_v8  ;;  %v3137_v8 = vld [vmem:[#allocation2 + $0x141] sm:$0xff]  ;;  %v10078_v13 = vpop.f32.mrf.mxu1 }
 0x560   : > { %2424 = vst.msk [vmem:[#allocation4 + $0x90] sm:$0xf] %vm12092_vm8, %v2346_v57  ;;  %3783 = vmatmul.bf16.gmra.mxu2 %v7383_v27  ;;  %v10053_v57 = vpack.c.bf16 %v3136_v15, %v3136_v15  ;;  %v10072_v28 = vpack.c.bf16 %v3137_v8, %v3137_v8 }
 0x561   : > { %2649 = vst.msk [vmem:[#allocation4 + $0x90] sm:$0xf] %vm12091_vm9, %v2571_v62 }
 0x563   : > { %2353 = vrot.lane.b32.xlu0 %v9078_v58, %s8043_s19  ;;  %v2912_v58 = vld [vmem:[#allocation2 + $0x140] sm:$0xff] }
 0x564   : > { %2130 = vrot.lane.b32.xlu2 %v9784_v42, %s8047_s24  ;;  %1184 = vrot.lane.b32.xlu1 %v8623_v35, %s12103_s23  ;;  %v10006_v12 = vpack.c.bf16 %v2912_v58, %v2912_v58 }
 0x565   : > { %v2348_v36 = vpop.permute.xlu0 %2347 }
 0x566   : > { %v1565_v0 = vpop.permute.xlu2 %1564  ;;  %v1309_v5 = vpop.permute.xlu1 %1308  ;;  %2425 = vst.msk [vmem:[#allocation4 + $0x98] sm:$0xf] %vm12092_vm8, %v2348_v36 }
 0x567   : > { %1599 = vst.msk [vmem:[#allocation2 + $0x15f] sm:$0x1] %vm723_vm3, %v1565_v0 }
 0x568   : > { %1343 = vst.msk [vmem:[#allocation2 + $0x15b] sm:$0x1] %vm723_vm3, %v1309_v5 }
 0x569   : > { %2650 = vst.msk [vmem:[#allocation4 + $0x98] sm:$0xf] %vm12091_vm9, %v2573_v4 }
 0x56a   : > { %1758 = vst.msk [vmem:[#allocation4 + $0xd8] sm:$0xf] %vm1730_vm4, %v10006_v12 }
 0x56b   : > { %2580 = vrot.lane.b32.xlu0 %v9961_v25, %s8045_s15 }
 0x56c   : > { %2578 = vrot.lane.b32.xlu2 %v9969_v6, %s8045_s15  ;;  %1376 = vrot.lane.b32.xlu1 %v8623_v35, %s8043_s19 }
 0x56d   : > { %v1245_v53 = vpop.permute.xlu0 %1244 }
 0x56e   : > { %v1629_v42 = vpop.permute.xlu2 %1628  ;;  %v1501_v11 = vpop.permute.xlu1 %1500  ;;  %1279 = vst.msk [vmem:[#allocation2 + $0x15a] sm:$0x1] %vm723_vm3, %v1245_v53 }
 0x56f   : > { %1663 = vst.msk [vmem:[#allocation2 + $0x160] sm:$0x1] %vm723_vm3, %v1629_v42 }
 0x570   : > { %1535 = vst.msk [vmem:[#allocation2 + $0x15e] sm:$0x1] %vm723_vm3, %v1501_v11 }
 0x573   : > { %1312 = vrot.lane.b32.xlu0 %v8623_v35, %s8044_s21  ;;  %v3774_v33 = vpop.f32.mrf.mxu2 }
 0x574   : > { %1248 = vrot.lane.b32.xlu2 %v8623_v35, %s8045_s15  ;;  %1568 = vrot.lane.b32.xlu1 %v8623_v35, %s12100_s30  ;;  %v3775_v9 = vadd.f32 %v10022_v1, %v3774_v33 }
 0x575   : > { %v1437_v52 = vpop.permute.xlu0 %1436 }
 0x576   : > { %v3247_v54 = vpop.permute.xlu2 %3246  ;;  %v2798_v51 = vpop.permute.xlu1 %2797  ;;  %v10027_v61 = vadd.f32 %v3863_v7, %v3775_v9  ;;  %1471 = vst.msk [vmem:[#allocation2 + $0x15d] sm:$0x1] %vm723_vm3, %v1437_v52 }
 0x577   : > { %2875 = vst.msk [vmem:[#allocation4 + $0x98] sm:$0xf] %vm12090_vm10, %v2798_v51  ;;  %v3868_v52 = vpop.f32.mrf.mxu3 }
 0x578   : > { %7508 = vmatmul.msk.f32.gmra.mxu1 %vm457_vm2, %v10027_v61 }
 0x57b   : > { %1504 = vrot.lane.b32.xlu0 %v8623_v35, %s8047_s24  ;;  %v3776_v17 = vpop.f32.mrf.mxu2 }
 0x57c   : > { %1440 = vrot.lane.b32.xlu2 %v8623_v35, %s12102_s27  ;;  %1632 = vrot.lane.b32.xlu1 %v8623_v35, %s8049_s17  ;;  %v3777_v16 = vadd.f32 %v10022_v1, %v3776_v17  ;;  %v2717_v35 = vpack.c.bf16 %v2685_v39, %v2685_v39  ;;  %v544_v17 = vld [vmem:[%s8207_s25 + $0xf8] sm:$0xff] }
 0x57d   : > { %v3364_v40 = vld [vmem:[#allocation2 + $0x15a] sm:$0xff]  ;;  %v2796_v46 = vpop.permute.xlu0 %2795  ;;  %578 = vst.msk [vmem:[#allocation2 + $0x189] sm:$0xff] %vm546_vm1, %v544_v17 }
 0x57e   : > { %v1902_v38 = vpop.permute.xlu2 %1901  ;;  %v3024_v10 = vpop.permute.xlu1 %3023  ;;  %v10042_v31 = vpack.c.bf16 %v3364_v40, %v3364_v40  ;;  %v10044_v44 = vadd.f32 %v3865_v32, %v3777_v16  ;;  %2874 = vst.msk [vmem:[#allocation4 + $0x90] sm:$0xf] %vm12090_vm10, %v2796_v46  ;;  %v2914_v58 = vld [vmem:[#allocation2 + $0x158] sm:$0xff] }
 0x57f   : > { %1977 = vst.msk [vmem:[#allocation4 + $0xa8] sm:$0xf] %vm1955_vm6, %v1902_v38  ;;  %v3139_v51 = vld [vmem:[#allocation2 + $0x159] sm:$0xff] }
 0x580   : > { %3101 = vst.msk [vmem:[#allocation4 + $0x98] sm:$0xf] %vm12089_vm11, %v3024_v10  ;;  %7509 = vmatmul.msk.f32.gmra.mxu1 %vm457_vm2, %v10044_v44  ;;  %v3138_v10 = vld [vmem:[#allocation2 + $0x151] sm:$0xff] }
 0x581   : > { %3428 = vst.msk [vmem:[#allocation4 + $0xcc] sm:$0xf] %vm1730_vm4, %v10042_v31 }
 0x583   : > { %2805 = vrot.lane.b32.xlu0 %v9868_v49, %s8041_s20 }
 0x584   : > { %2803 = vrot.lane.b32.xlu2 %v2717_v35, %s8041_s20  ;;  %3254 = vrot.lane.b32.xlu1 %v10053_v57, %s12101_s14 }
 0x585   : > { %v3022_v19 = vpop.permute.xlu0 %3021 }
 0x586   : > { %v2350_v60 = vpop.permute.xlu2 %2349  ;;  %v1900_v34 = vpop.permute.xlu1 %1899  ;;  %3100 = vst.msk [vmem:[#allocation4 + $0x90] sm:$0xf] %vm12089_vm11, %v3022_v19 }
 0x587   : > { %1976 = vst.msk [vmem:[#allocation4 + $0xa0] sm:$0xf] %vm1955_vm6, %v1900_v34  ;;  %v10131_v34 = vpack.c.bf16 %v3138_v10, %v3138_v10 }
 0x588   : > { %3325 = vst.msk [vmem:[#allocation4 + $0x90] sm:$0xf] %vm12088_vm12, %v3247_v54  ;;  %v7416_v22 = vld [vmem:[#allocation4 + $0xc8] sm:$0xf0]  ;;  %v2687_v54 = vld [vmem:[#allocation2 + $0x13a] sm:$0xff] }
 0x589   : > { %v7419_v4 = vor.u32 %v7772_v21, %v7416_v22  ;;  %v2719_v63 = vpack.c.bf16 %v2687_v54, %v2687_v54 }
 0x58b   : > { %3031 = vrot.lane.b32.xlu0 %v10006_v12, %s8039_s16  ;;  %7492 = vmatmul.msk.bf16.gmra.mxu3 %vm457_vm2, %v7419_v4 }
 0x58c   : > { %3029 = vrot.lane.b32.xlu2 %v9087_v43, %s8039_s16  ;;  %1909 = vrot.lane.b32.xlu1 %v9961_v25, %s8049_s17 }
 0x58d   : > { %v3249_v62 = vpop.permute.xlu0 %3248 }
 0x58e   : > { %v2577_v23 = vpop.permute.xlu2 %2576  ;;  %v2127_v2 = vpop.permute.xlu1 %2126  ;;  %3326 = vst.msk [vmem:[#allocation4 + $0x98] sm:$0xf] %vm12088_vm12, %v3249_v62 }
 0x58f   : > { %2202 = vst.msk [vmem:[#allocation4 + $0xa8] sm:$0xf] %vm2180_vm7, %v2127_v2  ;;  %v7390_v0 = vld [vmem:[#allocation4 + $0x90] sm:$0xf] }
 0x593   : > { %1907 = vrot.lane.b32.xlu0 %v9969_v6, %s8049_s17  ;;  %v10085_v6 = vpack.c.bf16 %v2914_v58, %v2914_v58 }
 0x594   : > { %3256 = vrot.lane.b32.xlu2 %v10072_v28, %s12101_s14  ;;  %2357 = vrot.lane.b32.xlu1 %v9087_v43, %s8043_s19  ;;  %v10093_v43 = vpop.f32.mrf.mxu1 }
 0x595   : > { %v2125_v27 = vpop.permute.xlu0 %2124  ;;  %v7767_v5 = vld [vmem:[#allocation4 + $0x94] sm:$0xf0]  ;;  %1760 = vst.msk [vmem:[#allocation4 + $0xe8] sm:$0xf] %vm1730_vm4, %v10085_v6 }
 0x596   : > { %v1311_v25 = vpop.permute.xlu2 %1310  ;;  %v2575_v26 = vpop.permute.xlu1 %2574  ;;  %2201 = vst.msk [vmem:[#allocation4 + $0xa0] sm:$0xf] %vm2180_vm7, %v2125_v27  ;;  %v7391_v36 = vor.u32 %v7767_v5, %v7390_v0  ;;  %v2689_v0 = vld [vmem:[#allocation2 + $0x152] sm:$0xff] }
 0x597   : > { %1344 = vst.msk [vmem:[#allocation2 + $0x173] sm:$0x1] %vm723_vm3, %v1311_v25 }
 0x598   : > { %2426 = vst.msk [vmem:[#allocation4 + $0xa0] sm:$0xf] %vm12092_vm8, %v2350_v60  ;;  %3788 = vmatmul.bf16.gmra.mxu2 %v7391_v36 }
 0x599   : > { %2651 = vst.msk [vmem:[#allocation4 + $0xa0] sm:$0xf] %vm12091_vm9, %v2575_v26 }
 0x59b   : > { %2134 = vrot.lane.b32.xlu0 %v9868_v49, %s8047_s24 }
 0x59c   : > { %2132 = vrot.lane.b32.xlu2 %v2717_v35, %s8047_s24  ;;  %2584 = vrot.lane.b32.xlu1 %v10072_v28, %s8045_s15  ;;  %v10107_v7 = vpop.f32.mrf.mxu1 }
 0x59d   : > { %v2352_v53 = vpop.permute.xlu0 %2351 }
 0x59e   : > { %v1503_v42 = vpop.permute.xlu2 %1502  ;;  %v1247_v11 = vpop.permute.xlu1 %1246  ;;  %2427 = vst.msk [vmem:[#allocation4 + $0xa8] sm:$0xf] %vm12092_vm8, %v2352_v53 }
 0x59f   : > { %1536 = vst.msk [vmem:[#allocation2 + $0x176] sm:$0x1] %vm723_vm3, %v1503_v42 }
 0x5a0   : > { %1280 = vst.msk [vmem:[#allocation2 + $0x172] sm:$0x1] %vm723_vm3, %v1247_v11 }
 0x5a1   : > { %2652 = vst.msk [vmem:[#allocation4 + $0xa8] sm:$0xf] %vm12091_vm9, %v2577_v23  ;;  %v3870_v23 = vpop.f32.mrf.mxu3 }
 0x5a3   : > { %2582 = vrot.lane.b32.xlu0 %v10053_v57, %s8045_s15 }
 0x5a4   : > { %2359 = vrot.lane.b32.xlu2 %v10006_v12, %s8043_s19  ;;  %3033 = vrot.lane.b32.xlu1 %v9090_v18, %s8039_s16  ;;  %v10114_v12 = vpack.c.bf16 %v3139_v51, %v3139_v51  ;;  %v10121_v39 = vpop.f32.mrf.mxu1 }
 0x5a5   : > { %v1183_v9 = vpop.permute.xlu0 %1182 }
 0x5a6   : > { %v2802_v49 = vpop.permute.xlu2 %2801  ;;  %v1439_v33 = vpop.permute.xlu1 %1438  ;;  %1216 = vst.msk [vmem:[#allocation2 + $0x171] sm:$0x1] %vm723_vm3, %v1183_v9 }
 0x5a7   : > { %2877 = vst.msk [vmem:[#allocation4 + $0xa8] sm:$0xf] %vm12090_vm10, %v2802_v49 }
 0x5a8   : > { %1472 = vst.msk [vmem:[#allocation2 + $0x175] sm:$0x1] %vm723_vm3, %v1439_v33 }
 0x5ab   : > { %2809 = vrot.lane.b32.xlu0 %v9950_v37, %s8041_s20  ;;  %v3779_v38 = vpop.f32.mrf.mxu2 }
 0x5ac   : > { %2807 = vrot.lane.b32.xlu2 %v2719_v63, %s8041_s20  ;;  %3260 = vrot.lane.b32.xlu1 %v10114_v12, %s12101_s14  ;;  %v3780_v32 = vadd.f32 %v10022_v1, %v3779_v38  ;;  %v10145_v8 = vpop.f32.mrf.mxu1 }
 0x5ad   : > { %v3365_v46 = vld [vmem:[#allocation2 + $0x16a] sm:$0xff]  ;;  %v1375_v15 = vpop.permute.xlu0 %1374 }
 0x5ae   : > { %v3028_v16 = vpop.permute.xlu2 %3027  ;;  %v2800_v40 = vpop.permute.xlu1 %2799  ;;  %v10126_v35 = vpack.c.bf16 %v3365_v46, %v3365_v46  ;;  %v10128_v60 = vadd.f32 %v3868_v52, %v3780_v32  ;;  %1408 = vst.msk [vmem:[#allocation2 + $0x174] sm:$0x1] %vm723_vm3, %v1375_v15 }
 0x5af   : > { %3103 = vst.msk [vmem:[#allocation4 + $0xa8] sm:$0xf] %vm12089_vm11, %v3028_v16 }
 0x5b0   : > { %2876 = vst.msk [vmem:[#allocation4 + $0xa0] sm:$0xf] %vm12090_vm10, %v2800_v40  ;;  %7510 = vmatmul.msk.f32.gmra.mxu1 %vm457_vm2, %v10128_v60  ;;  %v3140_v40 = vld [vmem:[#allocation2 + $0x169] sm:$0xff] }
 0x5b1   : > { %3429 = vst.msk [vmem:[#allocation4 + $0xd4] sm:$0xf] %vm1730_vm4, %v10126_v35 }
 0x5b3   : > { %3258 = vrot.lane.b32.xlu0 %v10131_v34, %s12101_s14  ;;  %v3781_v19 = vpop.f32.mrf.mxu2 }
 0x5b4   : > { %3035 = vrot.lane.b32.xlu2 %v10085_v6, %s8039_s16  ;;  %2136 = vrot.lane.b32.xlu1 %v2719_v63, %s8047_s24  ;;  %v3782_v22 = vadd.f32 %v10022_v1, %v3781_v19  ;;  %v10159_v36 = vpop.f32.mrf.mxu1  ;;  %v10204_v19 = vpack.c.bf16 %v3140_v40, %v3140_v40 }
 0x5b5   : > { %v1567_v2 = vpop.permute.xlu0 %1566 }
 0x5b6   : > { %v1904_v21 = vpop.permute.xlu2 %1903  ;;  %v3026_v4 = vpop.permute.xlu1 %3025  ;;  %v10147_v62 = vadd.f32 %v3870_v23, %v3782_v22  ;;  %1600 = vst.msk [vmem:[#allocation2 + $0x177] sm:$0x1] %vm723_vm3, %v1567_v2 }
 0x5b7   : > { %1978 = vst.msk [vmem:[#allocation4 + $0xb0] sm:$0xf] %vm1955_vm6, %v1904_v21 }
 0x5b8   : > { %3102 = vst.msk [vmem:[#allocation4 + $0xa0] sm:$0xf] %vm12089_vm11, %v3026_v4  ;;  %7511 = vmatmul.msk.f32.gmra.mxu1 %vm457_vm2, %v10147_v62  ;;  %v7774_v63 = vld [vmem:[#allocation4 + $0xd4] sm:$0xf] }
 0x5bb   : > { %1913 = vrot.lane.b32.xlu0 %v10072_v28, %s8049_s17 }
 0x5bc   : > { %1911 = vrot.lane.b32.xlu2 %v10053_v57, %s8049_s17  ;;  %2363 = vrot.lane.b32.xlu1 %v10085_v6, %s8043_s19  ;;  %v2721_v57 = vpack.c.bf16 %v2689_v0, %v2689_v0  ;;  %v3873_v0 = vpop.f32.mrf.mxu3 }
 0x5bd   : > { %v1631_v27 = vpop.permute.xlu0 %1630  ;;  %v2916_v5 = vld [vmem:[#allocation2 + $0x170] sm:$0xff] }
 0x5be   : > { %v2131_v25 = vpop.permute.xlu2 %2130  ;;  %v3253_v26 = vpop.permute.xlu1 %3252  ;;  %1664 = vst.msk [vmem:[#allocation2 + $0x178] sm:$0x1] %vm723_vm3, %v1631_v27  ;;  %v10162_v58 = vpack.c.bf16 %v2916_v5, %v2916_v5 }
 0x5bf   : > { %3328 = vst.msk [vmem:[#allocation4 + $0xa8] sm:$0xf] %vm12088_vm12, %v3253_v26  ;;  %v4127_v26 = vsel %vm457_vm2, %v10093_v43, 0.0  ;;  %v4131_v43 = vsel %vm457_vm2, %v10121_v39, 0.0  ;;  %v4135_v39 = vsel %vm457_vm2, %v10159_v36, 0.0 }
 0x5c0   : > { %1762 = vst.msk [vmem:[#allocation4 + $0xf8] sm:$0xf] %vm1730_vm4, %v10162_v58 }
 0x5c3   : > { %2361 = vrot.lane.b32.xlu0 %v9090_v18, %s8043_s19  ;;  %v10175_v18 = vpop.f32.mrf.mxu1 }
 0x5c4   : > { %2138 = vrot.lane.b32.xlu2 %v9950_v37, %s8047_s24  ;;  %2811 = vrot.lane.b32.xlu1 %v2721_v57, %s8041_s20  ;;  %v3875_v36 = vpop.f32.mrf.mxu3 }
 0x5c5   : > { %v3366_v42 = vld [vmem:[#allocation2 + $0x172] sm:$0xff]  ;;  %v3251_v11 = vpop.permute.xlu0 %3250 }
 0x5c6   : > { %v2579_v28 = vpop.permute.xlu2 %2578  ;;  %v2129_v6 = vpop.permute.xlu1 %2128  ;;  %v10172_v53 = vpack.c.bf16 %v3366_v42, %v3366_v42  ;;  %3327 = vst.msk [vmem:[#allocation4 + $0xa0] sm:$0xf] %vm12088_vm12, %v3251_v11  ;;  %v7769_v9 = vld [vmem:[#allocation4 + $0xa4] sm:$0xf0]  ;;  %v3141_v10 = vld [vmem:[#allocation2 + $0x171] sm:$0xff]  ;;  %v4133_v11 = vsel %vm457_vm2, %v10145_v8, 0.0 }
 0x5c7   : > { %2203 = vst.msk [vmem:[#allocation4 + $0xb0] sm:$0xf] %vm2180_vm7, %v2129_v6  ;;  %v10201_v15 = vpack.c.bf16 %v3141_v10, %v3141_v10  ;;  %v4137_v8 = vsel %vm457_vm2, %v10175_v18, 0.0  ;;  %v3142_v10 = vld [vmem:[#allocation2 + $0x181] sm:$0xff] }
 0x5c8   : > { %3430 = vst.msk [vmem:[#allocation4 + $0xdc] sm:$0xf] %vm1730_vm4, %v10172_v53 }
 0x5cb   : > { %2588 = vrot.lane.b32.xlu0 %v10114_v12, %s8045_s15  ;;  %v10188_v17 = vpop.f32.mrf.mxu1 }
 0x5cc   : > { %2586 = vrot.lane.b32.xlu2 %v10131_v34, %s8045_s15  ;;  %3039 = vrot.lane.b32.xlu1 %v10162_v58, %s8039_s16 }
 0x5cd   : > { %v1906_v33 = vpop.permute.xlu0 %1905  ;;  %v7398_v54 = vld [vmem:[#allocation4 + $0xa0] sm:$0xf] }
 0x5ce   : > { %v1249_v37 = vpop.permute.xlu2 %1248  ;;  %v2356_v49 = vpop.permute.xlu1 %2355  ;;  %1979 = vst.msk [vmem:[#allocation4 + $0xb8] sm:$0xf] %vm1955_vm6, %v1906_v33  ;;  %v7399_v51 = vor.u32 %v7769_v9, %v7398_v54 }
 0x5cf   : > { %1281 = vst.msk [vmem:[#allocation2 + $0x18a] sm:$0x1] %vm723_vm3, %v1249_v37  ;;  %v7424_v52 = vld [vmem:[#allocation4 + $0xd8] sm:$0xf0] }
 0x5d0   : > { %2204 = vst.msk [vmem:[#allocation4 + $0xb8] sm:$0xf] %vm2180_vm7, %v2131_v25  ;;  %3793 = vmatmul.bf16.gmra.mxu2 %v7399_v51  ;;  %v7427_v38 = vor.u32 %v7774_v63, %v7424_v52  ;;  %v4125_v25 = vsel %vm457_vm2, %v10078_v13, 0.0  ;;  %v4129_v13 = vsel %vm457_vm2, %v10107_v7, 0.0  ;;  %v4139_v63 = vsel %vm457_vm2, %v10188_v17, 0.0 }
 0x5d1   : > { %2429 = vst.msk [vmem:[#allocation4 + $0xb8] sm:$0xf] %vm12092_vm8, %v2356_v49  ;;  %v10267_v17 = vpack.c.bf16 %v3142_v10, %v3142_v10 }
 0x5d2   : > { %7493 = vmatmul.msk.bf16.gmra.mxu3 %vm457_vm2, %v7427_v38 }
 0x5d3   : > { %3037 = vrot.lane.b32.xlu0 %v9094_v47, %s8039_s16 }
 0x5d4   : > { %2813 = vrot.lane.b32.xlu2 %v10042_v31, %s8041_s20  ;;  %1915 = vrot.lane.b32.xlu1 %v10131_v34, %s8049_s17  ;;  %v4055_v34 = vpop.f32.mrf.mxu1 }
 0x5d5   : > { %v2354_v46 = vpop.permute.xlu0 %2353  ;;  %v4141_v18 = vsel %vm457_vm2, %v4055_v34, 0.0 }
 0x5d6   : > { %v1441_v16 = vpop.permute.xlu2 %1440  ;;  %v1185_v32 = vpop.permute.xlu1 %1184  ;;  %2428 = vst.msk [vmem:[#allocation4 + $0xb0] sm:$0xf] %vm12092_vm8, %v2354_v46 }
 0x5d7   : > { %1473 = vst.msk [vmem:[#allocation2 + $0x18d] sm:$0x1] %vm723_vm3, %v1441_v16 }
 0x5d8   : > { %1217 = vst.msk [vmem:[#allocation2 + $0x189] sm:$0x1] %vm723_vm3, %v1185_v32 }
 0x5d9   : > { %2653 = vst.msk [vmem:[#allocation4 + $0xb0] sm:$0xf] %vm12091_vm9, %v2579_v28 }
 0x5db   : > { %3264 = vrot.lane.b32.xlu0 %v10201_v15, %s12101_s14 }
 0x5dc   : > { %3262 = vrot.lane.b32.xlu2 %v10204_v19, %s12101_s14  ;;  %2142 = vrot.lane.b32.xlu1 %v10042_v31, %s8047_s24  ;;  %v4124_v31 = vsel %vm457_vm2, %v10061_v20, 0.0  ;;  %v4058_v5 = vpop.f32.mrf.mxu1 }
 0x5dd   : > { %v2581_v2 = vpop.permute.xlu0 %2580  ;;  %v4126_v27 = vadd.f32 %v4125_v25, %v4124_v31  ;;  %v4143_v46 = vsel %vm457_vm2, %v4058_v5, 0.0  ;;  %v2917_v25 = vld [vmem:[#allocation2 + $0x180] sm:$0xff] }
 0x5de   : > { %v2804_v21 = vpop.permute.xlu2 %2803  ;;  %v1377_v4 = vpop.permute.xlu1 %1376  ;;  %2654 = vst.msk [vmem:[#allocation4 + $0xb8] sm:$0xf] %vm12091_vm9, %v2581_v2 }
 0x5df   : > { %v3367_v22 = vld [vmem:[#allocation2 + $0x182] sm:$0xff]  ;;  %2878 = vst.msk [vmem:[#allocation4 + $0xb0] sm:$0xf] %vm12090_vm10, %v2804_v21  ;;  %v4128_v28 = vadd.f32 %v4127_v26, %v4126_v27 }
 0x5e0   : > { %v10213_v23 = vpack.c.bf16 %v3367_v22, %v3367_v22  ;;  %1409 = vst.msk [vmem:[#allocation2 + $0x18c] sm:$0x1] %vm723_vm3, %v1377_v4 }
 0x5e2   : > { %3431 = vst.msk [vmem:[#allocation4 + $0xe4] sm:$0xf] %vm1730_vm4, %v10213_v23 }
 0x5e3   : > { %2140 = vrot.lane.b32.xlu0 %v2721_v57, %s8047_s24  ;;  %v3784_v6 = vpop.f32.mrf.mxu2 }
 0x5e4   : > { %1917 = vrot.lane.b32.xlu2 %v10114_v12, %s8049_s17  ;;  %2590 = vrot.lane.b32.xlu1 %v10204_v19, %s8045_s15  ;;  %v3785_v57 = vadd.f32 %v10022_v1, %v3784_v6  ;;  %v4130_v12 = vadd.f32 %v4129_v13, %v4128_v28  ;;  %v4061_v16 = vpop.f32.mrf.mxu1 }
 0x5e5   : > { %v1313_v7 = vpop.permute.xlu0 %1312  ;;  %v4145_v34 = vsel %vm457_vm2, %v4061_v16, 0.0 }
 0x5e6   : > { %v3030_v20 = vpop.permute.xlu2 %3029  ;;  %v1569_v42 = vpop.permute.xlu1 %1568  ;;  %v10239_v37 = vadd.f32 %v3873_v0, %v3785_v57  ;;  %1345 = vst.msk [vmem:[#allocation2 + $0x18b] sm:$0x1] %vm723_vm3, %v1313_v7  ;;  %v4132_v49 = vadd.f32 %v4131_v43, %v4130_v12  ;;  %v2949_v43 = vpack.c.bf16 %v2917_v25, %v2917_v25 }
 0x5e7   : > { %3104 = vst.msk [vmem:[#allocation4 + $0xb0] sm:$0xf] %vm12089_vm11, %v3030_v20 }
 0x5e8   : > { %1601 = vst.msk [vmem:[#allocation2 + $0x18f] sm:$0x1] %vm723_vm3, %v1569_v42  ;;  %7512 = vmatmul.msk.f32.gmra.mxu1 %vm457_vm2, %v10239_v37  ;;  %v4134_v33 = vadd.f32 %v4133_v11, %v4132_v49 }
 0x5ea   : > { %v4136_v54 = vadd.f32 %v4135_v39, %v4134_v33  ;;  %v7776_v33 = vld [vmem:[#allocation4 + $0xe4] sm:$0xf] }
 0x5eb   : > { %2367 = vrot.lane.b32.xlu0 %v10162_v58, %s8043_s19  ;;  %v3786_v9 = vpop.f32.mrf.mxu2 }
 0x5ec   : > { %2365 = vrot.lane.b32.xlu2 %v9094_v47, %s8043_s19  ;;  %2817 = vrot.lane.b32.xlu1 %v10172_v53, %s8041_s20  ;;  %v3787_v52 = vadd.f32 %v10022_v1, %v3786_v9  ;;  %v4138_v38 = vadd.f32 %v4137_v8, %v4136_v54 }
 0x5ed   : > { %v1505_v47 = vpop.permute.xlu0 %1504 }
 0x5ee   : > { %v3257_v51 = vpop.permute.xlu2 %3256  ;;  %v1633_v58 = vpop.permute.xlu1 %1632  ;;  %v10259_v32 = vadd.f32 %v3875_v36, %v3787_v52  ;;  %1537 = vst.msk [vmem:[#allocation2 + $0x18e] sm:$0x1] %vm723_vm3, %v1505_v47  ;;  %v4140_v40 = vadd.f32 %v4139_v63, %v4138_v38  ;;  %v2919_v38 = vld [vmem:[#allocation2 + $0x198] sm:$0xff] }
 0x5ef   : > { %1665 = vst.msk [vmem:[#allocation2 + $0x190] sm:$0x1] %vm723_vm3, %v1633_v58  ;;  %v2951_v10 = vpack.c.bf16 %v2919_v38, %v2919_v38 }
 0x5f0   : > { %7513 = vmatmul.msk.f32.gmra.mxu1 %vm457_vm2, %v10259_v32  ;;  %v4142_v21 = vadd.f32 %v4141_v18, %v4140_v40 }
 0x5f2   : > { %v4144_v22 = vadd.f32 %v4143_v46, %v4142_v21  ;;  %v3878_v21 = vpop.f32.mrf.mxu3 }
 0x5f3   : > { %2815 = vrot.lane.b32.xlu0 %v10126_v35, %s8041_s20 }
 0x5f4   : > { %2592 = vrot.lane.b32.xlu2 %v10201_v15, %s8045_s15  ;;  %3266 = vrot.lane.b32.xlu1 %v10267_v17, %s12101_s14  ;;  %v4146_v31 = vadd.f32 %v4145_v34, %v4144_v22  ;;  %v2920_v34 = vld [vmem:[#allocation2 + $0x1a0] sm:$0xff] }
 0x5f5   : > { %v4064_v27 = vpop.f32.mrf.mxu1  ;;  %v2806_v13 = vpop.permute.xlu0 %2805  ;;  %v2918_v0 = vld [vmem:[#allocation2 + $0x188] sm:$0xff] }
 0x5f6   : > { %v2133_v4 = vpop.permute.xlu2 %2132  ;;  %v3255_v2 = vpop.permute.xlu1 %3254  ;;  %v3368_v26 = vld [vmem:[#allocation2 + $0x18a] sm:$0xff]  ;;  %v4147_v28 = vsel %vm457_vm2, %v4064_v27, 0.0  ;;  %2879 = vst.msk [vmem:[#allocation4 + $0xb8] sm:$0xf] %vm12090_vm10, %v2806_v13  ;;  %v2950_v6 = vpack.c.bf16 %v2918_v0, %v2918_v0  ;;  %v2952_v27 = vpack.c.bf16 %v2920_v34, %v2920_v34 }
 0x5f7   : > { %3329 = vst.msk [vmem:[#allocation4 + $0xb0] sm:$0xf] %vm12088_vm12, %v3255_v2  ;;  %v3400_v5 = vpack.c.bf16 %v3368_v26, %v3368_v26  ;;  %v4148_v20 = vadd.f32 %v4147_v28, %v4146_v31  ;;  %v3143_v12 = vld [vmem:[#allocation2 + $0x189] sm:$0xff] }
 0x5f8   : > { %v3175_v54 = vpack.c.bf16 %v3143_v12, %v3143_v12 }
 0x5f9   : > { %3432 = vst.msk [vmem:[#allocation4 + $0xec] sm:$0xf] %vm1730_vm4, %v3400_v5 }
 0x5fb   : > { %3043 = vrot.lane.b32.xlu0 %v2950_v6, %s8039_s16 }
 0x5fc   : > { %3041 = vrot.lane.b32.xlu2 %v2949_v43, %s8039_s16  ;;  %1921 = vrot.lane.b32.xlu1 %v10201_v15, %s8049_s17 }
 0x5fd   : > { %v4067_v7 = vpop.f32.mrf.mxu1  ;;  %v3032_v11 = vpop.permute.xlu0 %3031 }
 0x5fe   : > { %v2360_v57 = vpop.permute.xlu2 %2359  ;;  %v1910_v42 = vpop.permute.xlu1 %1909  ;;  %v4149_v49 = vsel %vm457_vm2, %v4067_v7, 0.0  ;;  %3105 = vst.msk [vmem:[#allocation4 + $0xb8] sm:$0xf] %vm12089_vm11, %v3032_v11  ;;  %v7406_v52 = vld [vmem:[#allocation4 + $0xb0] sm:$0xf] }
 0x5ff   : > { %1981 = vst.msk [vmem:[#allocation4 + $0xc8] sm:$0xf] %vm1955_vm6, %v1910_v42  ;;  %v10285_v39 = vadd.f32 %v4149_v49, %v4148_v20 }
 0x600   : > { %3330 = vst.msk [vmem:[#allocation4 + $0xb8] sm:$0xf] %vm12088_vm12, %v3257_v51  ;;  %v7432_v8 = vld [vmem:[#allocation4 + $0xe8] sm:$0xf0] }
 0x601   : > { %v7435_v9 = vor.u32 %v7776_v33, %v7432_v8 }
 0x603   : > { %1919 = vrot.lane.b32.xlu0 %v10204_v19, %s8049_s17  ;;  %7494 = vmatmul.msk.bf16.gmra.mxu3 %vm457_vm2, %v7435_v9 }
 0x604   : > { %3268 = vrot.lane.b32.xlu2 %v3175_v54, %s12101_s14  ;;  %2369 = vrot.lane.b32.xlu1 %v2949_v43, %s8043_s19 }
 0x605   : > { %v1908_v63 = vpop.permute.xlu0 %1907 }
 0x606   : > { %v2808_v15 = vpop.permute.xlu2 %2807  ;;  %v2358_v36 = vpop.permute.xlu1 %2357  ;;  %1980 = vst.msk [vmem:[#allocation4 + $0xc0] sm:$0xf] %vm1955_vm6, %v1908_v63 }
 0x607   : > { %v7771_v51 = vld [vmem:[#allocation4 + $0xb4] sm:$0xf0]  ;;  %2205 = vst.msk [vmem:[#allocation4 + $0xc0] sm:$0xf] %vm2180_vm7, %v2133_v4 }
 0x608   : > { %v7407_v58 = vor.u32 %v7771_v51, %v7406_v52  ;;  %2430 = vst.msk [vmem:[#allocation4 + $0xc0] sm:$0xf] %vm12092_vm8, %v2358_v36 }
 0x60a   : > { %3798 = vmatmul.bf16.gmra.mxu2 %v7407_v58 }
 0x60b   : > { %2146 = vrot.lane.b32.xlu0 %v10172_v53, %s8047_s24  ;;  %v3145_v53 = vld [vmem:[#allocation2 + $0x1a1] sm:$0xff] }
 0x60c   : > { %2144 = vrot.lane.b32.xlu2 %v10126_v35, %s8047_s24  ;;  %2596 = vrot.lane.b32.xlu1 %v3175_v54, %s8045_s15  ;;  %v3177_v46 = vpack.c.bf16 %v3145_v53, %v3145_v53 }
 0x60d   : > { %v2135_v47 = vpop.permute.xlu0 %2134 }
 0x60e   : > { %v3036_v19 = vpop.permute.xlu2 %3035  ;;  %v2585_v16 = vpop.permute.xlu1 %2584  ;;  %2206 = vst.msk [vmem:[#allocation4 + $0xc8] sm:$0xf] %vm2180_vm7, %v2135_v47 }
 0x60f   : > { %2431 = vst.msk [vmem:[#allocation4 + $0xc8] sm:$0xf] %vm12092_vm8, %v2360_v57 }
 0x610   : > { %2656 = vst.msk [vmem:[#allocation4 + $0xc8] sm:$0xf] %vm12091_vm9, %v2585_v16 }
 0x613   : > { %2594 = vrot.lane.b32.xlu0 %v10267_v17, %s8045_s15  ;;  %v3144_v17 = vld [vmem:[#allocation2 + $0x199] sm:$0xff] }
 0x614   : > { %2371 = vrot.lane.b32.xlu2 %v2950_v6, %s8043_s19  ;;  %3045 = vrot.lane.b32.xlu1 %v2951_v10, %s8039_s16  ;;  %v3176_v31 = vpack.c.bf16 %v3144_v17, %v3144_v17  ;;  %v3880_v6 = vpop.f32.mrf.mxu3 }
 0x615   : > { %v2583_v40 = vpop.permute.xlu0 %2582 }
 0x616   : > { %v1912_v35 = vpop.permute.xlu2 %1911  ;;  %v3034_v18 = vpop.permute.xlu1 %3033  ;;  %2655 = vst.msk [vmem:[#allocation4 + $0xc0] sm:$0xf] %vm12091_vm9, %v2583_v40 }
 0x617   : > { %1982 = vst.msk [vmem:[#allocation4 + $0xd0] sm:$0xf] %vm1955_vm6, %v1912_v35 }
 0x618   : > { %2880 = vst.msk [vmem:[#allocation4 + $0xc0] sm:$0xf] %vm12090_vm10, %v2808_v15 }
 0x619   : > { %3106 = vst.msk [vmem:[#allocation4 + $0xc0] sm:$0xf] %vm12089_vm11, %v3034_v18 }
 0x61b   : > { %2821 = vrot.lane.b32.xlu0 %v3400_v5, %s8041_s20  ;;  %v3789_v22 = vpop.f32.mrf.mxu2 }
 0x61c   : > { %2819 = vrot.lane.b32.xlu2 %v10213_v23, %s8041_s20  ;;  %3272 = vrot.lane.b32.xlu1 %v3177_v46, %s12101_s14  ;;  %v3790_v2 = vadd.f32 %v10022_v1, %v3789_v22  ;;  %v3883_v18 = vpop.f32.mrf.mxu3 }
 0x61d   : > { %v2810_v26 = vpop.permute.xlu0 %2809 }
 0x61e   : > { %v2139_v4 = vpop.permute.xlu2 %2138  ;;  %v3261_v25 = vpop.permute.xlu1 %3260  ;;  %v10317_v13 = vadd.f32 %v3878_v21, %v3790_v2  ;;  %2881 = vst.msk [vmem:[#allocation4 + $0xc8] sm:$0xf] %vm12090_vm10, %v2810_v26 }
 0x61f   : > { %3107 = vst.msk [vmem:[#allocation4 + $0xc8] sm:$0xf] %vm12089_vm11, %v3036_v19 }
 0x620   : > { %3332 = vst.msk [vmem:[#allocation4 + $0xc8] sm:$0xf] %vm12088_vm12, %v3261_v25  ;;  %7514 = vmatmul.msk.f32.gmra.mxu1 %vm457_vm2, %v10317_v13 }
 0x623   : > { %3270 = vrot.lane.b32.xlu0 %v3176_v31, %s12101_s14  ;;  %v3791_v23 = vpop.f32.mrf.mxu2 }
 0x624   : > { %3047 = vrot.lane.b32.xlu2 %v2952_v27, %s8039_s16  ;;  %v3792_v5 = vadd.f32 %v10022_v1, %v3791_v23  ;;  %v3885_v23 = vpop.f32.mrf.mxu3 }
 0x625   : > { %v3259_v20 = vpop.permute.xlu0 %3258 }
 0x626   : > { %v2587_v0 = vpop.permute.xlu2 %2586  ;;  %v2137_v28 = vpop.permute.xlu1 %2136  ;;  %v10328_v43 = vadd.f32 %v3880_v6, %v3792_v5  ;;  %3331 = vst.msk [vmem:[#allocation4 + $0xc0] sm:$0xf] %vm12088_vm12, %v3259_v20 }
 0x627   : > { %2207 = vst.msk [vmem:[#allocation4 + $0xd0] sm:$0xf] %vm2180_vm7, %v2137_v28  ;;  %v7773_v49 = vld [vmem:[#allocation4 + $0xc4] sm:$0xf0] }
 0x628   : > { %7515 = vmatmul.msk.f32.gmra.mxu1 %vm457_vm2, %v10328_v43 }
 0x62d   : > { %v4070_v12 = vpop.f32.mrf.mxu1  ;;  %v1914_v7 = vpop.permute.xlu0 %1913  ;;  %v7414_v11 = vld [vmem:[#allocation4 + $0xc0] sm:$0xf] }
 0x62e   : > { %v2814_v57 = vpop.permute.xlu2 %2813  ;;  %v2364_v42 = vpop.permute.xlu1 %2363  ;;  %v4151_v33 = vsel %vm457_vm2, %v4070_v12, 0.0  ;;  %1983 = vst.msk [vmem:[#allocation4 + $0xd8] sm:$0xf] %vm1955_vm6, %v1914_v7  ;;  %v7415_v8 = vor.u32 %v7773_v49, %v7414_v11 }
 0x62f   : > { %v4152_v54 = vadd.f32 %v4151_v33, %v10285_v39  ;;  %2208 = vst.msk [vmem:[#allocation4 + $0xd8] sm:$0xf] %vm2180_vm7, %v2139_v4 }
 0x630   : > { %2433 = vst.msk [vmem:[#allocation4 + $0xd8] sm:$0xf] %vm12092_vm8, %v2364_v42  ;;  %3803 = vmatmul.bf16.gmra.mxu2 %v7415_v8 }
 0x635   : > { %v4073_v36 = vpop.f32.mrf.mxu1  ;;  %v2362_v63 = vpop.permute.xlu0 %2361 }
 0x636   : > { %v3263_v9 = vpop.permute.xlu2 %3262  ;;  %v2812_v15 = vpop.permute.xlu1 %2811  ;;  %v4153_v52 = vsel %vm457_vm2, %v4073_v36, 0.0  ;;  %2432 = vst.msk [vmem:[#allocation4 + $0xd0] sm:$0xf] %vm12092_vm8, %v2362_v63 }
 0x637   : > { %v4154_v51 = vadd.f32 %v4153_v52, %v4152_v54  ;;  %2657 = vst.msk [vmem:[#allocation4 + $0xd0] sm:$0xf] %vm12091_vm9, %v2587_v0 }
 0x638   : > { %2882 = vst.msk [vmem:[#allocation4 + $0xd0] sm:$0xf] %vm12090_vm10, %v2812_v15 }
 0x63d   : > { %v2589_v19 = vpop.permute.xlu0 %2588 }
 0x63e   : > { %v1918_v58 = vpop.permute.xlu2 %1917  ;;  %v3040_v39 = vpop.permute.xlu1 %3039  ;;  %2658 = vst.msk [vmem:[#allocation4 + $0xd8] sm:$0xf] %vm12091_vm9, %v2589_v19 }
 0x63f   : > { %1985 = vst.msk [vmem:[#allocation4 + $0xe8] sm:$0xf] %vm1955_vm6, %v1918_v58  ;;  %v3370_v58 = vld [vmem:[#allocation2 + $0x1a2] sm:$0xff] }
 0x640   : > { %2883 = vst.msk [vmem:[#allocation4 + $0xd8] sm:$0xf] %vm12090_vm10, %v2814_v57 }
 0x641   : > { %3109 = vst.msk [vmem:[#allocation4 + $0xd8] sm:$0xf] %vm12089_vm11, %v3040_v39 }
 0x645   : > { %v3038_v16 = vpop.permute.xlu0 %3037 }
 0x646   : > { %v1916_v38 = vpop.permute.xlu1 %1915  ;;  %3108 = vst.msk [vmem:[#allocation4 + $0xd0] sm:$0xf] %vm12089_vm11, %v3038_v16  ;;  %v2366_v47 = vpop.permute.xlu2 %2365 }
 0x647   : > { %1984 = vst.msk [vmem:[#allocation4 + $0xe0] sm:$0xf] %vm1955_vm6, %v1916_v38  ;;  %v3402_v38 = vpack.c.bf16 %v3370_v58, %v3370_v58 }
 0x648   : > { %3333 = vst.msk [vmem:[#allocation4 + $0xd0] sm:$0xf] %vm12088_vm12, %v3263_v9 }
 0x649   : > { %3434 = vst.msk [vmem:[#allocation4 + $0xfc] sm:$0xf] %vm1730_vm4, %v3402_v38 }
 0x64d   : > { %v3265_v35 = vpop.permute.xlu0 %3264 }
 0x64e   : > { %v2143_v10 = vpop.permute.xlu1 %2142  ;;  %3334 = vst.msk [vmem:[#allocation4 + $0xd8] sm:$0xf] %vm12088_vm12, %v3265_v35  ;;  %v2593_v53 = vpop.permute.xlu2 %2592 }
 0x64f   : > { %2210 = vst.msk [vmem:[#allocation4 + $0xe8] sm:$0xf] %vm2180_vm7, %v2143_v10  ;;  %v7422_v34 = vld [vmem:[#allocation4 + $0xd0] sm:$0xf] }
 0x653   : > { %v3794_v40 = vpop.f32.mrf.mxu2 }
 0x654   : > { %v3795_v46 = vadd.f32 %v10022_v1, %v3794_v40 }
 0x655   : > { %v2141_v21 = vpop.permute.xlu0 %2140  ;;  %v7775_v22 = vld [vmem:[#allocation4 + $0xd4] sm:$0xf0] }
 0x656   : > { %v2591_v17 = vpop.permute.xlu1 %2590  ;;  %v10352_v4 = vadd.f32 %v3883_v18, %v3795_v46  ;;  %2209 = vst.msk [vmem:[#allocation4 + $0xe0] sm:$0xf] %vm2180_vm7, %v2141_v21  ;;  %v7423_v2 = vor.u32 %v7775_v22, %v7422_v34  ;;  %v3042_v31 = vpop.permute.xlu2 %3041  ;;  %v7440_v18 = vld [vmem:[#allocation4 + $0xf8] sm:$0xf0] }
 0x657   : > { %2434 = vst.msk [vmem:[#allocation4 + $0xe0] sm:$0xf] %vm12092_vm8, %v2366_v47 }
 0x658   : > { %2659 = vst.msk [vmem:[#allocation4 + $0xe0] sm:$0xf] %vm12091_vm9, %v2591_v17  ;;  %3808 = vmatmul.bf16.gmra.mxu2 %v7423_v2  ;;  %7516 = vmatmul.msk.f32.gmra.mxu1 %vm457_vm2, %v10352_v4  ;;  %v3888_v17 = vpop.f32.mrf.mxu3 }
 0x65b   : > { %v3796_v25 = vpop.f32.mrf.mxu2 }
 0x65c   : > { %v3797_v26 = vadd.f32 %v10022_v1, %v3796_v25 }
 0x65d   : > { %v2368_v0 = vpop.permute.xlu0 %2367 }
 0x65e   : > { %v2818_v27 = vpop.permute.xlu1 %2817  ;;  %v10360_v5 = vadd.f32 %v3885_v23, %v3797_v26  ;;  %2435 = vst.msk [vmem:[#allocation4 + $0xe8] sm:$0xf] %vm12092_vm8, %v2368_v0  ;;  %v3269_v57 = vpop.permute.xlu2 %3268 }
 0x65f   : > { %2660 = vst.msk [vmem:[#allocation4 + $0xe8] sm:$0xf] %vm12091_vm9, %v2593_v53 }
 0x660   : > { %2885 = vst.msk [vmem:[#allocation4 + $0xe8] sm:$0xf] %vm12090_vm10, %v2818_v27  ;;  %7517 = vmatmul.msk.f32.gmra.mxu1 %vm457_vm2, %v10360_v5  ;;  %v3890_v0 = vpop.f32.mrf.mxu3 }
 0x665   : > { %v4076_v6 = vpop.f32.mrf.mxu1  ;;  %v2816_v20 = vpop.permute.xlu0 %2815 }
 0x666   : > { %v3267_v28 = vpop.permute.xlu1 %3266  ;;  %v4155_v42 = vsel %vm457_vm2, %v4076_v6, 0.0  ;;  %2884 = vst.msk [vmem:[#allocation4 + $0xe0] sm:$0xf] %vm12090_vm10, %v2816_v20  ;;  %v2145_v54 = vpop.permute.xlu2 %2144 }
 0x667   : > { %v4156_v12 = vadd.f32 %v4155_v42, %v4154_v51  ;;  %3110 = vst.msk [vmem:[#allocation4 + $0xe0] sm:$0xf] %vm12089_vm11, %v3042_v31  ;;  %v3369_v51 = vld [vmem:[#allocation2 + $0x19a] sm:$0xff] }
 0x668   : > { %3335 = vst.msk [vmem:[#allocation4 + $0xe0] sm:$0xf] %vm12088_vm12, %v3267_v28  ;;  %v3401_v19 = vpack.c.bf16 %v3369_v51, %v3369_v51 }
 0x66a   : > { %3433 = vst.msk [vmem:[#allocation4 + $0xf4] sm:$0xf] %vm1730_vm4, %v3401_v19 }
 0x66d   : > { %v4079_v11 = vpop.f32.mrf.mxu1  ;;  %v3044_v49 = vpop.permute.xlu0 %3043 }
 0x66e   : > { %v1922_v7 = vpop.permute.xlu1 %1921  ;;  %v4157_v33 = vsel %vm457_vm2, %v4079_v11, 0.0  ;;  %3111 = vst.msk [vmem:[#allocation4 + $0xe8] sm:$0xf] %vm12089_vm11, %v3044_v49  ;;  %v2372_v39 = vpop.permute.xlu2 %2371 }
 0x66f   : > { %1987 = vst.msk [vmem:[#allocation4 + $0xf8] sm:$0xf] %vm1955_vm6, %v1922_v7  ;;  %v4158_v8 = vadd.f32 %v4157_v33, %v4156_v12  ;;  %v7430_v36 = vld [vmem:[#allocation4 + $0xe0] sm:$0xf] }
 0x670   : > { %3336 = vst.msk [vmem:[#allocation4 + $0xe8] sm:$0xf] %vm12088_vm12, %v3269_v57 }
 0x671   : > { %v7778_v10 = vld [vmem:[#allocation4 + $0xf4] sm:$0xf] }
 0x672   : > { %v7443_v46 = vor.u32 %v7778_v10, %v7440_v18 }
 0x674   : > { %7495 = vmatmul.msk.bf16.gmra.mxu3 %vm457_vm2, %v7443_v46 }
 0x675   : > { %v1920_v15 = vpop.permute.xlu0 %1919 }
 0x676   : > { %v2370_v9 = vpop.permute.xlu1 %2369  ;;  %1986 = vst.msk [vmem:[#allocation4 + $0xf0] sm:$0xf] %vm1955_vm6, %v1920_v15  ;;  %v2820_v35 = vpop.permute.xlu2 %2819 }
 0x677   : > { %v7777_v63 = vld [vmem:[#allocation4 + $0xe4] sm:$0xf0]  ;;  %2211 = vst.msk [vmem:[#allocation4 + $0xf0] sm:$0xf] %vm2180_vm7, %v2145_v54  ;;  %v3893_v54 = vpop.f32.mrf.mxu3 }
 0x678   : > { %v7431_v52 = vor.u32 %v7777_v63, %v7430_v36  ;;  %2436 = vst.msk [vmem:[#allocation4 + $0xf0] sm:$0xf] %vm12092_vm8, %v2370_v9 }
 0x67a   : > { %3813 = vmatmul.bf16.gmra.mxu2 %v7431_v52 }
 0x67d   : > { %v2147_v47 = vpop.permute.xlu0 %2146 }
 0x67e   : > { %v2597_v16 = vpop.permute.xlu1 %2596  ;;  %2212 = vst.msk [vmem:[#allocation4 + $0xf8] sm:$0xf] %vm2180_vm7, %v2147_v47  ;;  %v3048_v34 = vpop.permute.xlu2 %3047  ;;  %v7969_v47 = vld [vmem:[%s12064_s5] ss:$0 sm:$0xff] }
 0x67f   : > { %2437 = vst.msk [vmem:[#allocation4 + $0xf8] sm:$0xf] %vm12092_vm8, %v2372_v39  ;;  %v3895_v51 = vpop.f32.mrf.mxu3 }
 0x680   : > { %2662 = vst.msk [vmem:[#allocation4 + $0xf8] sm:$0xf] %vm12091_vm9, %v2597_v16 }
 0x685   : > { %v2595_v40 = vpop.permute.xlu0 %2594 }
 0x686   : > { %v3046_v53 = vpop.permute.xlu1 %3045  ;;  %2661 = vst.msk [vmem:[#allocation4 + $0xf0] sm:$0xf] %vm12091_vm9, %v2595_v40 }
 0x687   : > { %2886 = vst.msk [vmem:[#allocation4 + $0xf0] sm:$0xf] %vm12090_vm10, %v2820_v35  ;;  %v3898_v38 = vpop.f32.mrf.mxu3 }
 0x688   : > { %3112 = vst.msk [vmem:[#allocation4 + $0xf0] sm:$0xf] %vm12089_vm11, %v3046_v53 }
 0x68d   : > { %v3799_v21 = vpop.f32.mrf.mxu2  ;;  %v2822_v2 = vpop.permute.xlu0 %2821 }
 0x68e   : > { %v3800_v22 = vadd.f32 %v10022_v1, %v3799_v21  ;;  %v3273_v25 = vpop.permute.xlu1 %3272  ;;  %2887 = vst.msk [vmem:[#allocation4 + $0xf8] sm:$0xf] %vm12090_vm10, %v2822_v2 }
 0x68f   : > { %3113 = vst.msk [vmem:[#allocation4 + $0xf8] sm:$0xf] %vm12089_vm11, %v3048_v34  ;;  %v3900_v18 = vpop.f32.mrf.mxu3 }
 0x690   : > { %v10389_v31 = vadd.f32 %v3888_v17, %v3800_v22  ;;  %3338 = vst.msk [vmem:[#allocation4 + $0xf8] sm:$0xf] %vm12088_vm12, %v3273_v25 }
 0x692   : > { %7518 = vmatmul.msk.f32.gmra.mxu1 %vm457_vm2, %v10389_v31 }
 0x695   : > { %v3801_v26 = vpop.f32.mrf.mxu2  ;;  %v3271_v23 = vpop.permute.xlu0 %3270 }
 0x696   : > { %v3802_v27 = vadd.f32 %v10022_v1, %v3801_v26  ;;  %3337 = vst.msk [vmem:[#allocation4 + $0xf0] sm:$0xf] %vm12088_vm12, %v3271_v23 }
 0x697   : > { %v7779_v6 = vld [vmem:[#allocation4 + $0xf4] sm:$0xf0]  ;;  %v3903_v46 = vpop.f32.mrf.mxu3 }
 0x698   : > { %v10397_v28 = vadd.f32 %v3890_v0, %v3802_v27 }
 0x69a   : > { %7519 = vmatmul.msk.f32.gmra.mxu1 %vm457_vm2, %v10397_v28 }
 0x69d   : > { %v4082_v20 = vpop.f32.mrf.mxu1  ;;  %v7438_v57 = vld [vmem:[#allocation4 + $0xf0] sm:$0xf] }
 0x69e   : > { %v4159_v42 = vsel %vm457_vm2, %v4082_v20, 0.0  ;;  %v7439_v12 = vor.u32 %v7779_v6, %v7438_v57 }
 0x69f   : > { %v4160_v7 = vadd.f32 %v4159_v42, %v4158_v8  ;;  %v3905_v25 = vpop.f32.mrf.mxu3 }
 0x6a0   : > { %3818 = vmatmul.bf16.gmra.mxu2 %v7439_v12 }
 0x6a5   : > { %v4085_v11 = vpop.f32.mrf.mxu1 }
 0x6a6   : > { %v4161_v49 = vsel %vm457_vm2, %v4085_v11, 0.0 }
 0x6a7   : > { %v4162_v33 = vadd.f32 %v4161_v49, %v4160_v7 }
 0x6b3   : > { %v3804_v9 = vpop.f32.mrf.mxu2 }
 0x6b4   : > { %v3805_v15 = vadd.f32 %v10022_v1, %v3804_v9 }
 0x6b6   : > { %v10404_v36 = vadd.f32 %v3893_v54, %v3805_v15 }
 0x6b8   : > { %7520 = vmatmul.msk.f32.gmra.mxu1 %vm457_vm2, %v10404_v36 }
 0x6bb   : > { %v3806_v63 = vpop.f32.mrf.mxu2 }
 0x6bc   : > { %v3807_v52 = vadd.f32 %v10022_v1, %v3806_v63 }
 0x6be   : > { %v10409_v58 = vadd.f32 %v3895_v51, %v3807_v52 }
 0x6c0   : > { %7521 = vmatmul.msk.f32.gmra.mxu1 %vm457_vm2, %v10409_v58 }
 0x6d5   : > { %v4088_v8 = vpop.f32.mrf.mxu1 }
 0x6d6   : > { %v4163_v39 = vsel %vm457_vm2, %v4088_v8, 0.0 }
 0x6d7   : > { %v4164_v19 = vadd.f32 %v4163_v39, %v4162_v33 }
 0x6db   : > { %v3809_v16 = vpop.f32.mrf.mxu2 }
 0x6dc   : > { %v3810_v10 = vadd.f32 %v7969_v47, %v3809_v16 }
 0x6dd   : > { %v4091_v7 = vpop.f32.mrf.mxu1 }
 0x6de   : > { %v10417_v35 = vadd.f32 %v3898_v38, %v3810_v10  ;;  %v4165_v52 = vsel %vm457_vm2, %v4091_v7, 0.0 }
 0x6df   : > { %v4166_v8 = vadd.f32 %v4165_v52, %v4164_v19 }
 0x6e0   : > { %7522 = vmatmul.msk.f32.gmra.mxu1 %vm457_vm2, %v10417_v35 }
 0x6e3   : > { %v3811_v1 = vpop.f32.mrf.mxu2 }
 0x6e4   : > { %v3812_v53 = vadd.f32 %v7969_v47, %v3811_v1 }
 0x6e6   : > { %v10421_v40 = vadd.f32 %v3900_v18, %v3812_v53 }
 0x6e8   : > { %7523 = vmatmul.msk.f32.gmra.mxu1 %vm457_vm2, %v10421_v40 }
 0x6f7   : > { %v3908_v27 = vpop.f32.mrf.mxu3 }
 0x6fd   : > { %v3814_v17 = vpop.f32.mrf.mxu2 }
 0x6fe   : > { %v3815_v21 = vadd.f32 %v7969_v47, %v3814_v17  ;;  %v8050_v17 = vmov 256.0  }
 0x6ff   : > { %v3910_v42 = vpop.f32.mrf.mxu3  ;;  %7888 = vrcp.f32 %v8050_v17 }
 0x700   : > { %v10425_v34 = vadd.f32 %v3903_v46, %v3815_v21 }
 0x702   : > { %7524 = vmatmul.msk.f32.gmra.mxu1 %vm457_vm2, %v10425_v34 }
 0x705   : > { %v3816_v22 = vpop.f32.mrf.mxu2 }
 0x706   : > { %v3817_v2 = vadd.f32 %v7969_v47, %v3816_v22 }
 0x708   : > { %v10429_v26 = vadd.f32 %v3905_v25, %v3817_v2 }
 0x70a   : > { %7525 = vmatmul.msk.f32.gmra.mxu1 %vm457_vm2, %v10429_v26 }
 0x70f   : > { %v4094_v11 = vpop.f32.mrf.mxu1 }
 0x710   : > { %v4167_v51 = vsel %vm457_vm2, %v4094_v11, 0.0 }
 0x711   : > { %v4168_v38 = vadd.f32 %v4167_v51, %v4166_v8 }
 0x717   : > { %v4097_v49 = vpop.f32.mrf.mxu1 }
 0x718   : > { %v4169_v39 = vsel %vm457_vm2, %v4097_v49, 0.0 }
 0x719   : > { %v4170_v10 = vadd.f32 %v4169_v39, %v4168_v38 }
 0x723   : > { %v3819_v23 = vpop.f32.mrf.mxu2 }
 0x724   : > { %v3820_v0 = vadd.f32 %v7969_v47, %v3819_v23  ;;  %v7889_v23 = vpop.eup %7888 }
 0x725   : > { %vm4198_vm13 = vweird.f32 %v7889_v23 }
 0x726   : > { %v10433_v6 = vadd.f32 %v3908_v27, %v3820_v0 }
 0x728   : > { %7526 = vmatmul.msk.f32.gmra.mxu1 %vm457_vm2, %v10433_v6 }
 0x72b   : > { %v3821_v20 = vpop.f32.mrf.mxu2 }
 0x72c   : > { %v3822_v57 = vadd.f32 %v7969_v47, %v3821_v20 }
 0x72e   : > { %v10437_v12 = vadd.f32 %v3910_v42, %v3822_v57  ;;  %v4194_v42 = vmul.f32 256.0, %v7889_v23 }
 0x730   : > { %7527 = vmatmul.msk.f32.gmra.mxu1 %vm457_vm2, %v10437_v12 }
 0x735   : > { %v4100_v33 = vpop.f32.mrf.mxu1 }
 0x736   : > { %v4171_v47 = vsel %vm457_vm2, %v4100_v33, 0.0 }
 0x737   : > { %v4172_v53 = vadd.f32 %v4171_v47, %v4170_v10 }
 0x73d   : > { %v4103_v54 = vpop.f32.mrf.mxu1 }
 0x73e   : > { %v4173_v1 = vsel %vm457_vm2, %v4103_v54, 0.0  ;;  %v4195_v54 = vsub.f32 1.0, %v4194_v42 }
 0x73f   : > { %v4174_v46 = vadd.f32 %v4173_v1, %v4172_v53 }
 0x740   : > { %v4196_v52 = vmul.f32 %v7889_v23, %v4195_v54 }
 0x742   : > { %v4197_v8 = vadd.f32 %v7889_v23, %v4196_v52 }
 0x75d   : > { %v4106_v9 = vpop.f32.mrf.mxu1 }
 0x75e   : > { %v4175_v18 = vsel %vm457_vm2, %v4106_v9, 0.0 }
 0x75f   : > { %v4176_v22 = vadd.f32 %v4175_v18, %v4174_v46 }
 0x765   : > { %v4109_v15 = vpop.f32.mrf.mxu1 }
 0x766   : > { %v4177_v21 = vsel %vm457_vm2, %v4109_v15, 0.0 }
 0x767   : > { %v4178_v25 = vadd.f32 %v4177_v21, %v4176_v22 }
 0x77f   : > { %v4112_v63 = vpop.f32.mrf.mxu1 }
 0x780   : > { %v4179_v19 = vsel %vm457_vm2, %v4112_v63, 0.0 }
 0x781   : > { %v4180_v0 = vadd.f32 %v4179_v19, %v4178_v25 }
 0x787   : > { %v4115_v16 = vpop.f32.mrf.mxu1 }
 0x788   : > { %v4181_v27 = vsel %vm457_vm2, %v4115_v16, 0.0  ;;  %v10452_v16 = vsel %vm4198_vm13, %v7889_v23, %v4197_v8 }
 0x789   : > { %v4182_v57 = vadd.f32 %v4181_v27, %v4180_v0  ;;  %12104 = vst [vmem:[#allocation14_spill] sm:$0xff] %v10452_v16 }
 0x7a5   : > { %v4118_v2 = vpop.f32.mrf.mxu1 }
 0x7a6   : > { %v4183_v20 = vsel %vm457_vm2, %v4118_v2, 0.0 }
 0x7a7   : > { %v4184_v7 = vadd.f32 %v4183_v20, %v4182_v57 }
 0x7ad   : > { %v4121_v11 = vpop.f32.mrf.mxu1 }
 0x7ae   : > { %v4185_v49 = vsel %vm457_vm2, %v4121_v11, 0.0 }
 0x7af   : > { %v4186_v33 = vadd.f32 %v4185_v49, %v4184_v7 }
 0x7b1   : > { %v4187_v9 = vrot.slane %v4186_v33, 4 }
 0x7b3   : > { %v4188_v15 = vadd.f32 %v4187_v9, %v4186_v33 }
 0x7b5   : > { %v4189_v51 = vrot.slane %v4188_v15, 2 }
 0x7b7   : > { %v4190_v63 = vadd.f32 %v4189_v51, %v4188_v15 }
 0x7b9   : > { %v4191_v39 = vrot.slane %v4190_v63, 1 }
 0x7bb   : > { %v4192_v38 = vadd.f32 %v4191_v39, %v4190_v63 }
 0x7bd   : > { %v10455_v47 = vmul.f32 %v10452_v16, %v4192_v38 }
 0x7bf   : > { %v10459_v10 = vsub.f32 %v9517_v24, %v10455_v47  ;;  %v10466_v53 = vsub.f32 %v9531_v14, %v10455_v47  ;;  %v10473_v46 = vsub.f32 %v9600_v59, %v10455_v47  ;;  %v10480_v17 = vsub.f32 %v9612_v50, %v10455_v47 }
 0x7c0   : > { %v10487_v21 = vsub.f32 %v9684_v41, %v10455_v47  ;;  %v10494_v22 = vsub.f32 %v9696_v55, %v10455_v47  ;;  %v10501_v2 = vsub.f32 %v9768_v30, %v10455_v47  ;;  %v10508_v19 = vsub.f32 %v9781_v48, %v10455_v47 }
 0x7c1   : > { %v4233_v1 = vmul.f32 %v10459_v10, %v10459_v10  ;;  %v4234_v18 = vmul.f32 %v10466_v53, %v10466_v53  ;;  %v4235_v24 = vmul.f32 %v10473_v46, %v10473_v46  ;;  %v4236_v14 = vmul.f32 %v10480_v17, %v10480_v17 }
 0x7c2   : > { %v4237_v59 = vmul.f32 %v10487_v21, %v10487_v21  ;;  %v4238_v50 = vmul.f32 %v10494_v22, %v10494_v22  ;;  %v4239_v41 = vmul.f32 %v10501_v2, %v10501_v2  ;;  %v4240_v55 = vmul.f32 %v10508_v19, %v10508_v19 }
 0x7c3   : > { %7528 = vmatmul.msk.f32.vlgmr.msrb.gmra.mxu0 %vm457_vm2, %v4233_v1  ;;  %v10515_v25 = vsub.f32 %v9852_v3, %v10455_v47  ;;  %v10522_v27 = vsub.f32 %v9865_v45, %v10455_v47  ;;  %v10529_v23 = vsub.f32 %v9936_v29, %v10455_v47  ;;  %v10536_v0 = vsub.f32 %v9952_v56, %v10455_v47 }
 0x7c4   : > { %v10543_v20 = vsub.f32 %v10027_v61, %v10455_v47  ;;  %v10550_v57 = vsub.f32 %v10044_v44, %v10455_v47  ;;  %v10557_v42 = vsub.f32 %v10128_v60, %v10455_v47  ;;  %v10564_v7 = vsub.f32 %v10147_v62, %v10455_v47 }
 0x7c5   : > { %v4241_v30 = vmul.f32 %v10515_v25, %v10515_v25  ;;  %v4242_v48 = vmul.f32 %v10522_v27, %v10522_v27  ;;  %v4243_v3 = vmul.f32 %v10529_v23, %v10529_v23  ;;  %v4244_v45 = vmul.f32 %v10536_v0, %v10536_v0 }
 0x7c6   : > { %v4245_v29 = vmul.f32 %v10543_v20, %v10543_v20  ;;  %v4246_v56 = vmul.f32 %v10550_v57, %v10550_v57  ;;  %v4247_v61 = vmul.f32 %v10557_v42, %v10557_v42  ;;  %v4248_v44 = vmul.f32 %v10564_v7, %v10564_v7 }
 0x7c7   : > { %v10571_v11 = vsub.f32 %v10239_v37, %v10455_v47  ;;  %v10578_v33 = vsub.f32 %v10259_v32, %v10455_v47  ;;  %v10585_v37 = vsub.f32 %v10317_v13, %v10455_v47  ;;  %v10592_v32 = vsub.f32 %v10328_v43, %v10455_v47 }
 0x7c8   : > { %v10599_v13 = vsub.f32 %v10352_v4, %v10455_v47  ;;  %v10606_v43 = vsub.f32 %v10360_v5, %v10455_v47  ;;  %v10613_v4 = vsub.f32 %v10389_v31, %v10455_v47  ;;  %v10620_v5 = vsub.f32 %v10397_v28, %v10455_v47 }
 0x7c9   : > { %v4249_v49 = vmul.f32 %v10571_v11, %v10571_v11  ;;  %v4250_v54 = vmul.f32 %v10578_v33, %v10578_v33  ;;  %v4251_v15 = vmul.f32 %v10585_v37, %v10585_v37  ;;  %v4252_v51 = vmul.f32 %v10592_v32, %v10592_v32 }
 0x7ca   : > { %v4253_v8 = vmul.f32 %v10599_v13, %v10599_v13  ;;  %v4254_v38 = vmul.f32 %v10606_v43, %v10606_v43  ;;  %v10627_v31 = vsub.f32 %v10404_v36, %v10455_v47  ;;  %v10634_v28 = vsub.f32 %v10409_v58, %v10455_v47 }
 0x7cb   : > { %7529 = vmatmul.msk.f32.gmra.mxu0 %vm457_vm2, %v4234_v18  ;;  %v4255_v18 = vmul.f32 %v10613_v4, %v10613_v4 }
 0x7d3   : > { %7530 = vmatmul.msk.f32.gmra.mxu0 %vm457_vm2, %v4235_v24 }
 0x7db   : > { %7531 = vmatmul.msk.f32.gmra.mxu0 %vm457_vm2, %v4236_v14  ;;  %v4256_v14 = vmul.f32 %v10620_v5, %v10620_v5 }
 0x7e3   : > { %7532 = vmatmul.msk.f32.gmra.mxu0 %vm457_vm2, %v4237_v59 }
 0x7eb   : > { %7533 = vmatmul.msk.f32.gmra.mxu0 %vm457_vm2, %v4238_v50  ;;  %v4257_v50 = vmul.f32 %v10627_v31, %v10627_v31 }
 0x7f3   : > { %7534 = vmatmul.msk.f32.gmra.mxu0 %vm457_vm2, %v4239_v41 }
 0x7fb   : > { %7535 = vmatmul.msk.f32.gmra.mxu0 %vm457_vm2, %v4240_v55  ;;  %v4258_v55 = vmul.f32 %v10634_v28, %v10634_v28 }
 0x803   : > { %7536 = vmatmul.msk.f32.gmra.mxu0 %vm457_vm2, %v4241_v30 }
 0x80b   : > { %7537 = vmatmul.msk.f32.gmra.mxu0 %vm457_vm2, %v4242_v48 }
 0x813   : > { %7538 = vmatmul.msk.f32.gmra.mxu0 %vm457_vm2, %v4243_v3 }
 0x81b   : > { %7539 = vmatmul.msk.f32.gmra.mxu0 %vm457_vm2, %v4244_v45  ;;  %v10644_v45 = vsub.f32 %v10417_v35, %v10455_v47  ;;  %v10655_v35 = vsub.f32 %v10421_v40, %v10455_v47  ;;  %v10666_v40 = vsub.f32 %v10425_v34, %v10455_v47 }
 0x823   : > { %7540 = vmatmul.msk.f32.gmra.mxu0 %vm457_vm2, %v4245_v29 }
 0x82b   : > { %7541 = vmatmul.msk.f32.gmra.mxu0 %vm457_vm2, %v4246_v56 }
 0x833   : > { %7542 = vmatmul.msk.f32.gmra.mxu0 %vm457_vm2, %v4247_v61 }
 0x83b   : > { %7543 = vmatmul.msk.f32.gmra.mxu0 %vm457_vm2, %v4248_v44 }
 0x840   : > { %v4378_v60 = vpop.f32.mrf.mxu0 }
 0x841   : > { %v4474_v48 = vsel %vm457_vm2, %v4378_v60, 0.0 }
 0x843   : > { %7544 = vmatmul.msk.f32.gmra.mxu0 %vm457_vm2, %v4249_v49  ;;  %v4259_v49 = vmul.f32 %v10644_v45, %v10644_v45 }
 0x848   : > { %v4381_v62 = vpop.f32.mrf.mxu0 }
 0x849   : > { %v4475_v30 = vsel %vm457_vm2, %v4381_v62, 0.0 }
 0x84a   : > { %v4476_v3 = vadd.f32 %v4475_v30, %v4474_v48  ;;  %v4261_v30 = vmul.f32 %v10666_v40, %v10666_v40 }
 0x84b   : > { %7545 = vmatmul.msk.f32.gmra.mxu0 %vm457_vm2, %v4250_v54 }
 0x850   : > { %v4384_v9 = vpop.f32.mrf.mxu0 }
 0x851   : > { %v4477_v36 = vsel %vm457_vm2, %v4384_v9, 0.0 }
 0x852   : > { %v4478_v29 = vadd.f32 %v4477_v36, %v4476_v3  ;;  %v10675_v36 = vsub.f32 %v10429_v26, %v10455_v47 }
 0x853   : > { %7546 = vmatmul.msk.f32.gmra.mxu0 %vm457_vm2, %v4251_v15 }
 0x854   : > { %v4262_v34 = vmul.f32 %v10675_v36, %v10675_v36 }
 0x858   : > { %v4387_v52 = vpop.f32.mrf.mxu0 }
 0x859   : > { %v4479_v58 = vsel %vm457_vm2, %v4387_v52, 0.0 }
 0x85a   : > { %v4480_v61 = vadd.f32 %v4479_v58, %v4478_v29 }
 0x85b   : > { %7547 = vmatmul.msk.f32.gmra.mxu0 %vm457_vm2, %v4252_v51 }
 0x860   : > { %v4390_v63 = vpop.f32.mrf.mxu0 }
 0x861   : > { %v4481_v56 = vsel %vm457_vm2, %v4390_v63, 0.0 }
 0x862   : > { %v4482_v62 = vadd.f32 %v4481_v56, %v4480_v61  ;;  %v10683_v56 = vsub.f32 %v10433_v6, %v10455_v47 }
 0x863   : > { %7548 = vmatmul.msk.f32.gmra.mxu0 %vm457_vm2, %v4253_v8 }
 0x868   : > { %v4393_v39 = vpop.f32.mrf.mxu0 }
 0x869   : > { %v4483_v60 = vsel %vm457_vm2, %v4393_v39, 0.0  ;;  %v4260_v39 = vmul.f32 %v10655_v35, %v10655_v35 }
 0x86a   : > { %v4484_v9 = vadd.f32 %v4483_v60, %v4482_v62  ;;  %v10691_v60 = vsub.f32 %v10437_v12, %v10455_v47 }
 0x86b   : > { %7549 = vmatmul.msk.f32.gmra.mxu0 %vm457_vm2, %v4254_v38 }
 0x870   : > { %v4396_v1 = vpop.f32.mrf.mxu0 }
 0x871   : > { %v4485_v54 = vsel %vm457_vm2, %v4396_v1, 0.0 }
 0x872   : > { %v4486_v52 = vadd.f32 %v4485_v54, %v4484_v9  ;;  %v4264_v54 = vmul.f32 %v10691_v60, %v10691_v60 }
 0x873   : > { %7550 = vmatmul.msk.f32.gmra.mxu0 %vm457_vm2, %v4255_v18 }
 0x878   : > { %v4399_v24 = vpop.f32.mrf.mxu0 }
 0x879   : > { %v4487_v15 = vsel %vm457_vm2, %v4399_v24, 0.0 }
 0x87a   : > { %v4488_v63 = vadd.f32 %v4487_v15, %v4486_v52 }
 0x87b   : > { %7551 = vmatmul.msk.f32.gmra.mxu0 %vm457_vm2, %v4256_v14 }
 0x880   : > { %v4402_v59 = vpop.f32.mrf.mxu0 }
 0x881   : > { %v4489_v51 = vsel %vm457_vm2, %v4402_v59, 0.0 }
 0x882   : > { %v4490_v1 = vadd.f32 %v4489_v51, %v4488_v63 }
 0x883   : > { %7552 = vmatmul.msk.f32.gmra.mxu0 %vm457_vm2, %v4257_v50 }
 0x888   : > { %v4405_v41 = vpop.f32.mrf.mxu0 }
 0x889   : > { %v4491_v38 = vsel %vm457_vm2, %v4405_v41, 0.0 }
 0x88a   : > { %v4492_v14 = vadd.f32 %v4491_v38, %v4490_v1 }
 0x88b   : > { %7553 = vmatmul.msk.f32.gmra.mxu0 %vm457_vm2, %v4258_v55 }
 0x890   : > { %v4408_v44 = vpop.f32.mrf.mxu0 }
 0x891   : > { %v4493_v18 = vsel %vm457_vm2, %v4408_v44, 0.0  ;;  %v4263_v44 = vmul.f32 %v10683_v56, %v10683_v56 }
 0x892   : > { %v4494_v59 = vadd.f32 %v4493_v18, %v4492_v14 }
 0x893   : > { %7554 = vmatmul.msk.f32.gmra.mxu0 %vm457_vm2, %v4259_v49 }
 0x898   : > { %v4411_v8 = vpop.f32.mrf.mxu0 }
 0x899   : > { %v4495_v24 = vsel %vm457_vm2, %v4411_v8, 0.0 }
 0x89a   : > { %v4496_v50 = vadd.f32 %v4495_v24, %v4494_v59 }
 0x89b   : > { %7555 = vmatmul.msk.f32.gmra.mxu0 %vm457_vm2, %v4260_v39 }
 0x8a0   : > { %v4414_v55 = vpop.f32.mrf.mxu0 }
 0x8a1   : > { %v4497_v41 = vsel %vm457_vm2, %v4414_v55, 0.0 }
 0x8a2   : > { %v4498_v48 = vadd.f32 %v4497_v41, %v4496_v50 }
 0x8a3   : > { %7556 = vmatmul.msk.f32.gmra.mxu0 %vm457_vm2, %v4261_v30 }
 0x8a8   : > { %v4417_v3 = vpop.f32.mrf.mxu0 }
 0x8a9   : > { %v4499_v58 = vsel %vm457_vm2, %v4417_v3, 0.0 }
 0x8aa   : > { %v4500_v29 = vadd.f32 %v4499_v58, %v4498_v48 }
 0x8ab   : > { %7557 = vmatmul.msk.f32.gmra.mxu0 %vm457_vm2, %v4262_v34 }
 0x8b0   : > { %v4420_v61 = vpop.f32.mrf.mxu0 }
 0x8b1   : > { %v4501_v26 = vsel %vm457_vm2, %v4420_v61, 0.0 }
 0x8b2   : > { %v4502_v49 = vadd.f32 %v4501_v26, %v4500_v29 }
 0x8b3   : > { %7558 = vmatmul.msk.f32.gmra.mxu0 %vm457_vm2, %v4263_v44 }
 0x8b8   : > { %v4423_v62 = vpop.f32.mrf.mxu0 }
 0x8b9   : > { %v4503_v6 = vsel %vm457_vm2, %v4423_v62, 0.0 }
 0x8ba   : > { %v4504_v9 = vadd.f32 %v4503_v6, %v4502_v49 }
 0x8bb   : > { %7559 = vmatmul.msk.f32.gmra.mxu0 %vm457_vm2, %v4264_v54 }
 0x8c0   : > { %v4426_v15 = vpop.f32.mrf.mxu0 }
 0x8c1   : > { %v4505_v52 = vsel %vm457_vm2, %v4426_v15, 0.0 }
 0x8c2   : > { %v4506_v51 = vadd.f32 %v4505_v52, %v4504_v9 }
 0x8c8   : > { %v4429_v63 = vpop.f32.mrf.mxu0 }
 0x8c9   : > { %v4507_v8 = vsel %vm457_vm2, %v4429_v63, 0.0 }
 0x8ca   : > { %v4508_v39 = vadd.f32 %v4507_v8, %v4506_v51 }
 0x8d0   : > { %v4432_v38 = vpop.f32.mrf.mxu0 }
 0x8d1   : > { %v4509_v12 = vsel %vm457_vm2, %v4432_v38, 0.0 }
 0x8d2   : > { %v4510_v47 = vadd.f32 %v4509_v12, %v4508_v39 }
 0x8d8   : > { %v4435_v1 = vpop.f32.mrf.mxu0 }
 0x8d9   : > { %v4511_v18 = vsel %vm457_vm2, %v4435_v1, 0.0 }
 0x8da   : > { %v4512_v14 = vadd.f32 %v4511_v18, %v4510_v47 }
 0x8e0   : > { %v4438_v24 = vpop.f32.mrf.mxu0 }
 0x8e1   : > { %v4513_v59 = vsel %vm457_vm2, %v4438_v24, 0.0 }
 0x8e2   : > { %v4514_v50 = vadd.f32 %v4513_v59, %v4512_v14 }
 0x8e8   : > { %v4441_v55 = vpop.f32.mrf.mxu0 }
 0x8e9   : > { %v4515_v61 = vsel %vm457_vm2, %v4441_v55, 0.0 }
 0x8ea   : > { %v4516_v26 = vadd.f32 %v4515_v61, %v4514_v50  ;;  %v5034_v61 = vld [vmem:[#allocation3 + $0x1] sm:$0xff] }
 0x8f0   : > { %v4444_v30 = vpop.f32.mrf.mxu0 }
 0x8f1   : > { %v4517_v44 = vsel %vm457_vm2, %v4444_v30, 0.0 }
 0x8f2   : > { %v4518_v62 = vadd.f32 %v4517_v44, %v4516_v26 }
 0x8f8   : > { %v4447_v41 = vpop.f32.mrf.mxu0 }
 0x8f9   : > { %v4519_v49 = vsel %vm457_vm2, %v4447_v41, 0.0 }
 0x8fa   : > { %v4520_v9 = vadd.f32 %v4519_v49, %v4518_v62  ;;  %v5035_v62 = vld [vmem:[#allocation3 + $0x9] sm:$0xff] }
 0x900   : > { %v4450_v48 = vpop.f32.mrf.mxu0 }
 0x901   : > { %v4521_v6 = vsel %vm457_vm2, %v4450_v48, 0.0 }
 0x902   : > { %v4522_v52 = vadd.f32 %v4521_v6, %v4520_v9 }
 0x908   : > { %v4453_v3 = vpop.f32.mrf.mxu0 }
 0x909   : > { %v4523_v15 = vsel %vm457_vm2, %v4453_v3, 0.0 }
 0x90a   : > { %v4524_v63 = vadd.f32 %v4523_v15, %v4522_v52  ;;  %v6186_v15 = vld [vmem:[#allocation3 + $0x1a0] sm:$0xff] }
 0x910   : > { %v4456_v34 = vpop.f32.mrf.mxu0 }
 0x911   : > { %v4525_v51 = vsel %vm457_vm2, %v4456_v34, 0.0 }
 0x912   : > { %v4526_v39 = vadd.f32 %v4525_v51, %v4524_v63  ;;  %v6218_v51 = vpack.c.bf16 %v6186_v15, %v6186_v15 }
 0x918   : > { %v4459_v58 = vpop.f32.mrf.mxu0 }
 0x919   : > { %v4527_v8 = vsel %vm457_vm2, %v4459_v58, 0.0 }
 0x91a   : > { %v4528_v47 = vadd.f32 %v4527_v8, %v4526_v39 }
 0x920   : > { %v4462_v29 = vpop.f32.mrf.mxu0 }
 0x921   : > { %v4529_v12 = vsel %vm457_vm2, %v4462_v29, 0.0  ;;  %v5066_v29 = vpack.c.bf16 %v5034_v61, %v5034_v61 }
 0x922   : > { %v4530_v18 = vadd.f32 %v4529_v12, %v4528_v47 }
 0x923   : > { %5130 = vrot.lane.b32.xlu2 %v5066_v29, %s8049_s17 }
 0x928   : > { %v4465_v54 = vpop.f32.mrf.mxu0 }
 0x929   : > { %v4531_v1 = vsel %vm457_vm2, %v4465_v54, 0.0  ;;  %v5067_v54 = vpack.c.bf16 %v5035_v62, %v5035_v62 }
 0x92a   : > { %v4532_v24 = vadd.f32 %v4531_v1, %v4530_v18 }
 0x92b   : > { %5132 = vrot.lane.b32.xlu0 %v5067_v54, %s8049_s17  ;;  %6313 = vrot.lane.b32.xlu2 %v6218_v51, %s8039_s16 }
 0x930   : > { %v4468_v38 = vpop.f32.mrf.mxu0 }
 0x931   : > { %v4533_v14 = vsel %vm457_vm2, %v4468_v38, 0.0 }
 0x932   : > { %v4534_v59 = vadd.f32 %v4533_v14, %v4532_v24 }
 0x938   : > { %v4471_v50 = vpop.f32.mrf.mxu0 }
 0x939   : > { %v4535_v55 = vsel %vm457_vm2, %v4471_v50, 0.0 }
 0x93a   : > { %v4536_v30 = vadd.f32 %v4535_v55, %v4534_v59 }
 0x93c   : > { %v4537_v41 = vrot.slane %v4536_v30, 4 }
 0x93e   : > { %v4538_v48 = vadd.f32 %v4537_v41, %v4536_v30 }
 0x940   : > { %v4539_v3 = vrot.slane %v4538_v48, 2 }
 0x942   : > { %v4540_v34 = vadd.f32 %v4539_v3, %v4538_v48 }
 0x944   : > { %v4541_v58 = vrot.slane %v4540_v34, 1 }
 0x946   : > { %v4542_v44 = vadd.f32 %v4541_v58, %v4540_v34 }
 0x948   : > { %v4543_v26 = vmul.f32 %v4542_v44, %v10452_v16 }
 0x94a   : > { %v4544_v49 = vadd.f32 1e-05, %v4543_v26 }
 0x94c   : > { %7890 = vrsqrt.f32 %v4544_v49  ;;  %vm4551_vm15 = vweird.f32 %v4544_v49 }
 0x952   : > { %v7891_v6 = vpop.eup %7890 }
 0x953   : > { %v4546_v9 = vmul.f32 %v7891_v6, %v4544_v49  ;;  %vm4552_vm14 = vweird.f32 %v7891_v6 }
 0x954   : > { %vm4553_vm0 = vmor %vm4551_vm15, %vm4552_vm14 }
 0x955   : > { %v4547_v52 = vmul.f32 %v7891_v6, %v4546_v9 }
 0x957   : > { %v4548_v63 = vmul.f32 0.5, %v4547_v52 }
 0x959   : > { %v4549_v8 = vsub.f32 1.5, %v4548_v63 }
 0x95b   : > { %v4550_v39 = vmul.f32 %v7891_v6, %v4549_v8 }
 0x95d   : > { %v4554_v38 = vsel %vm4553_vm0, %v7891_v6, %v4550_v39 }
 0x95e   : > { %v4555_v12 = vmul.f32 %v4554_v38, %v10459_v10  ;;  %v4556_v47 = vmul.f32 %v4554_v38, %v10466_v53  ;;  %v4557_v1 = vmul.f32 %v4554_v38, %v10473_v46  ;;  %v4558_v18 = vmul.f32 %v4554_v38, %v10480_v17 }
 0x95f   : > { %v4559_v14 = vmul.f32 %v4554_v38, %v10487_v21  ;;  %v4560_v24 = vmul.f32 %v4554_v38, %v10494_v22  ;;  %v4561_v59 = vmul.f32 %v4554_v38, %v10501_v2  ;;  %v4562_v50 = vmul.f32 %v4554_v38, %v10508_v19  ;;  %v7886_v22 = vld [vmem:[%s12065_s6] ss:$0 sm:$0xff] }
 0x960   : > { %v4563_v55 = vmul.f32 %v4554_v38, %v10515_v25  ;;  %v4564_v30 = vmul.f32 %v4554_v38, %v10522_v27  ;;  %v4565_v10 = vmul.f32 %v4554_v38, %v10529_v23  ;;  %v4566_v53 = vmul.f32 %v4554_v38, %v10536_v0 }
 0x961   : > { %v4567_v46 = vmul.f32 %v4554_v38, %v10543_v20  ;;  %v4568_v17 = vmul.f32 %v4554_v38, %v10550_v57  ;;  %v4569_v21 = vmul.f32 %v4554_v38, %v10557_v42  ;;  %v4570_v2 = vmul.f32 %v4554_v38, %v10564_v7 }
 0x962   : > { %v4571_v19 = vmul.f32 %v4554_v38, %v10571_v11  ;;  %v4572_v25 = vmul.f32 %v4554_v38, %v10578_v33  ;;  %v4573_v27 = vmul.f32 %v4554_v38, %v10585_v37  ;;  %v4574_v23 = vmul.f32 %v4554_v38, %v10592_v32 }
 0x963   : > { %v4575_v0 = vmul.f32 %v4554_v38, %v10599_v13  ;;  %v4576_v20 = vmul.f32 %v4554_v38, %v10606_v43  ;;  %v4577_v57 = vmul.f32 %v4554_v38, %v10613_v4  ;;  %v4578_v42 = vmul.f32 %v4554_v38, %v10620_v5 }
 0x964   : > { %v4579_v41 = vmul.f32 %v4554_v38, %v10627_v31  ;;  %v4580_v7 = vmul.f32 %v4554_v38, %v10634_v28  ;;  %v4581_v11 = vmul.f32 %v4554_v38, %v10644_v45  ;;  %v4582_v33 = vmul.f32 %v4554_v38, %v10655_v35 }
 0x965   : > { %v4583_v37 = vmul.f32 %v4554_v38, %v10666_v40  ;;  %v4584_v32 = vmul.f32 %v4554_v38, %v10675_v36  ;;  %v4585_v13 = vmul.f32 %v4554_v38, %v10683_v56  ;;  %v4586_v43 = vmul.f32 %v4554_v38, %v10691_v60  ;;  %v7887_v36 = vld [vmem:[%s12066_s7] ss:$0 sm:$0xff] }
 0x966   : > { %v4591_v48 = vmul.f32 %v7886_v22, %v4555_v12  ;;  %v4592_v4 = vmul.f32 %v7886_v22, %v4556_v47  ;;  %v4593_v3 = vmul.f32 %v7886_v22, %v4557_v1  ;;  %v4594_v5 = vmul.f32 %v7886_v22, %v4558_v18 }
 0x967   : > { %v4595_v34 = vmul.f32 %v7886_v22, %v4559_v14  ;;  %v4596_v31 = vmul.f32 %v7886_v22, %v4560_v24  ;;  %v4597_v58 = vmul.f32 %v7886_v22, %v4561_v59  ;;  %v4598_v28 = vmul.f32 %v7886_v22, %v4562_v50 }
 0x968   : > { %v4599_v61 = vmul.f32 %v7886_v22, %v4563_v55  ;;  %v4600_v45 = vmul.f32 %v7886_v22, %v4564_v30  ;;  %v4601_v44 = vmul.f32 %v7886_v22, %v4565_v10  ;;  %v4602_v35 = vmul.f32 %v7886_v22, %v4566_v53 }
 0x969   : > { %v4603_v29 = vmul.f32 %v7886_v22, %v4567_v46  ;;  %v4604_v40 = vmul.f32 %v7886_v22, %v4568_v17  ;;  %v4605_v26 = vmul.f32 %v7886_v22, %v4569_v21  ;;  %v4606_v56 = vmul.f32 %v7886_v22, %v4570_v2 }
 0x96a   : > { %v4607_v60 = vmul.f32 %v7886_v22, %v4571_v19  ;;  %v4608_v49 = vmul.f32 %v7886_v22, %v4572_v25  ;;  %v4609_v62 = vmul.f32 %v7886_v22, %v4573_v27  ;;  %v4610_v54 = vmul.f32 %v7886_v22, %v4574_v23 }
 0x96b   : > { %v4611_v6 = vmul.f32 %v7886_v22, %v4575_v0  ;;  %v4612_v9 = vmul.f32 %v7886_v22, %v4576_v20  ;;  %v4613_v15 = vmul.f32 %v7886_v22, %v4577_v57  ;;  %v4614_v52 = vmul.f32 %v7886_v22, %v4578_v42 }
 0x96c   : > { %v4615_v51 = vmul.f32 %v7886_v22, %v4579_v41  ;;  %v4616_v63 = vmul.f32 %v7886_v22, %v4580_v7  ;;  %v4617_v8 = vmul.f32 %v7886_v22, %v4581_v11  ;;  %v4618_v39 = vmul.f32 %v7886_v22, %v4582_v33 }
 0x96d   : > { %v4619_v38 = vmul.f32 %v7886_v22, %v4583_v37  ;;  %v4620_v12 = vmul.f32 %v7886_v22, %v4584_v32  ;;  %v4621_v47 = vmul.f32 %v7886_v22, %v4585_v13  ;;  %v4622_v1 = vmul.f32 %v7886_v22, %v4586_v43 }
 0x96e   : > { %v10755_v18 = vadd.f32 %v7887_v36, %v4591_v48  ;;  %v10757_v14 = vadd.f32 %v7887_v36, %v4592_v4  ;;  %v10759_v24 = vadd.f32 %v7887_v36, %v4593_v3  ;;  %v10761_v59 = vadd.f32 %v7887_v36, %v4594_v5 }
 0x96f   : > { %v10763_v50 = vadd.f32 %v7887_v36, %v4595_v34  ;;  %v10765_v55 = vadd.f32 %v7887_v36, %v4596_v31  ;;  %v10767_v30 = vadd.f32 %v7887_v36, %v4597_v58  ;;  %v10769_v10 = vadd.f32 %v7887_v36, %v4598_v28 }
 0x970   : > { %v10771_v53 = vadd.f32 %v7887_v36, %v4599_v61  ;;  %v10773_v46 = vadd.f32 %v7887_v36, %v4600_v45  ;;  %v10775_v17 = vadd.f32 %v7887_v36, %v4601_v44  ;;  %v10777_v21 = vadd.f32 %v7887_v36, %v4602_v35 }
 0x971   : > { %v10779_v22 = vadd.f32 %v7887_v36, %v4603_v29  ;;  %v10781_v2 = vadd.f32 %v7887_v36, %v4604_v40  ;;  %v10783_v19 = vadd.f32 %v7887_v36, %v4605_v26  ;;  %v10785_v25 = vadd.f32 %v7887_v36, %v4606_v56  ;;  %v6410_v40 = vld [vmem:[#allocation3 + $0x1a1] sm:$0xff] }
 0x972   : > { %v10787_v27 = vadd.f32 %v7887_v36, %v4607_v60  ;;  %v10789_v23 = vadd.f32 %v7887_v36, %v4608_v49  ;;  %v10791_v0 = vadd.f32 %v7887_v36, %v4609_v62  ;;  %v10793_v20 = vadd.f32 %v7887_v36, %v4610_v54  ;;  %v6185_v49 = vld [vmem:[#allocation3 + $0x198] sm:$0xff] }
 0x973   : > { %v10795_v57 = vadd.f32 %v7887_v36, %v4611_v6  ;;  %v10797_v42 = vadd.f32 %v7887_v36, %v4612_v9  ;;  %v10799_v41 = vadd.f32 %v7887_v36, %v4613_v15  ;;  %v10801_v7 = vadd.f32 %v7887_v36, %v4614_v52 }
 0x974   : > { %v10803_v11 = vadd.f32 %v7887_v36, %v4615_v51  ;;  %v10805_v33 = vadd.f32 %v7887_v36, %v4616_v63  ;;  %v10807_v37 = vadd.f32 %v7887_v36, %v4617_v8  ;;  %v10809_v32 = vadd.f32 %v7887_v36, %v4618_v39 }
 0x975   : > { %v10811_v13 = vadd.f32 %v7887_v36, %v4619_v38  ;;  %v10813_v43 = vadd.f32 %v7887_v36, %v4620_v12  ;;  %v10815_v48 = vadd.f32 %v7887_v36, %v4621_v47  ;;  %v10817_v4 = vadd.f32 %v7887_v36, %v4622_v1 }
 0x976   : > { %v4691_v3 = vmin.f32 %v10755_v18, 0.0  ;;  %v4692_v5 = vmin.f32 %v10757_v14, 0.0  ;;  %v4693_v34 = vmin.f32 %v10759_v24, 0.0  ;;  %v4694_v31 = vmin.f32 %v10761_v59, 0.0 }
 0x977   : > { %v4695_v58 = vmin.f32 %v10763_v50, 0.0  ;;  %v4696_v28 = vmin.f32 %v10765_v55, 0.0  ;;  %v4697_v61 = vmin.f32 %v10767_v30, 0.0  ;;  %v4698_v45 = vmin.f32 %v10769_v10, 0.0 }
 0x978   : > { %v4699_v44 = vmin.f32 %v10771_v53, 0.0  ;;  %v4700_v35 = vmin.f32 %v10773_v46, 0.0  ;;  %v4701_v29 = vmin.f32 %v10775_v17, 0.0  ;;  %v4702_v26 = vmin.f32 %v10777_v21, 0.0 }
 0x979   : > { %v4703_v36 = vmin.f32 %v10779_v22, 0.0  ;;  %v4704_v56 = vmin.f32 %v10781_v2, 0.0  ;;  %v4705_v60 = vmin.f32 %v10783_v19, 0.0  ;;  %v4706_v62 = vmin.f32 %v10785_v25, 0.0 }
 0x97a   : > { %v4707_v54 = vmin.f32 %v10787_v27, 0.0  ;;  %v4708_v6 = vmin.f32 %v10789_v23, 0.0  ;;  %v4709_v9 = vmin.f32 %v10791_v0, 0.0  ;;  %v6442_v15 = vpack.c.bf16 %v6410_v40, %v6410_v40 }
 0x97b   : > { %v4723_v52 = vmul.f32 1.442695, %v4691_v3  ;;  %v4725_v51 = vmul.f32 1.442695, %v4692_v5  ;;  %v4727_v63 = vmul.f32 1.442695, %v4693_v34  ;;  %v6217_v12 = vpack.c.bf16 %v6185_v49, %v6185_v49 }
 0x97c   : > { %v4710_v8 = vmin.f32 %v10793_v20, 0.0  ;;  %v4711_v39 = vmin.f32 %v10795_v57, 0.0  ;;  %v4729_v38 = vmul.f32 1.442695, %v4694_v31  ;;  %v4712_v47 = vmin.f32 %v10797_v42, 0.0  ;;  %6537 = vrot.lane.b32.xlu0 %v6442_v15, %s12101_s14 }
 0x97d   : > { %v4713_v1 = vmin.f32 %v10799_v41, 0.0  ;;  %v4731_v16 = vmul.f32 1.442695, %v4695_v58  ;;  %7892 = vpow2.f32 %v4723_v52  ;;  %vm4659_vm1 = vcmp.gt.f32.partialorder %v10755_v18, 0.0  ;;  %6311 = vrot.lane.b32.xlu1 %v6217_v12, %s8039_s16 }
 0x97e   : > { %v4714_v3 = vmin.f32 %v10801_v7, 0.0  ;;  %v4715_v5 = vmin.f32 %v10803_v11, 0.0  ;;  %v4733_v34 = vmul.f32 1.442695, %v4696_v28  ;;  %7894 = vpow2.f32 %v4725_v51 }
 0x97f   : > { %vm4660_vm3 = vcmp.gt.f32.partialorder %v10757_v14, 0.0  ;;  %vm4661_vm5 = vcmp.gt.f32.partialorder %v10759_v24, 0.0  ;;  %v4735_v58 = vmul.f32 1.442695, %v4697_v61  ;;  %7896 = vpow2.f32 %v4727_v63 }
 0x980   : > { %vm4662_vm13 = vcmp.gt.f32.partialorder %v10761_v59, 0.0  ;;  %v4737_v28 = vmul.f32 1.442695, %v4698_v45  ;;  %7898 = vpow2.f32 %v4729_v38  ;;  %vm4663_vm14 = vcmp.gt.f32.partialorder %v10763_v50, 0.0 }
 0x981   : > { %v4739_v12 = vmul.f32 1.442695, %v4699_v44  ;;  %7900 = vpow2.f32 %v4731_v16  ;;  %vm4664_vm15 = vcmp.gt.f32.partialorder %v10765_v55, 0.0  ;;  %v4741_v63 = vmul.f32 1.442695, %v4700_v35 }
 0x982   : > { %v4743_v40 = vmul.f32 1.442695, %v4701_v29  ;;  %7902 = vpow2.f32 %v4733_v34  ;;  %vm4665_vm0 = vcmp.gt.f32.partialorder %v10767_v30, 0.0  ;;  %v4745_v45 = vmul.f32 1.442695, %v4702_v26  ;;  %v6409_v34 = vld [vmem:[#allocation3 + $0x199] sm:$0xff] }
 0x983   : > { %v7893_v49 = vpop.eup %7892  ;;  %v4747_v38 = vmul.f32 1.442695, %v4703_v36  ;;  %v4749_v15 = vmul.f32 1.442695, %v4704_v56  ;;  %7904 = vpow2.f32 %v4735_v58  ;;  %vm4666_vm12 = vcmp.gt.f32.partialorder %v10769_v10, 0.0 }
 0x984   : > { %v7895_v31 = vpop.eup %7894  ;;  %v4751_v51 = vmul.f32 1.442695, %v4705_v60  ;;  %v4753_v44 = vmul.f32 1.442695, %v4706_v62  ;;  %v4755_v16 = vmul.f32 1.442695, %v4707_v54  ;;  %7906 = vpow2.f32 %v4737_v28 }
 0x985   : > { %v7897_v52 = vpop.eup %7896  ;;  %vm4667_vm11 = vcmp.gt.f32.partialorder %v10771_v53, 0.0  ;;  %v4757_v35 = vmul.f32 1.442695, %v4708_v6  ;;  %v10862_v29 = vmul.f32 1.442695, %v4709_v9  ;;  %7908 = vpow2.f32 %v4739_v12 }
 0x986   : > { %v7560_v61 = vadd.f32 -1.0, %v7893_v49  ;;  %v7899_v26 = vpop.eup %7898  ;;  %vm4668_vm10 = vcmp.gt.f32.partialorder %v10773_v46, 0.0  ;;  %7910 = vpow2.f32 %v4741_v63  ;;  %v6441_v36 = vpack.c.bf16 %v6409_v34, %v6409_v34 }
 0x987   : > { %v7561_v56 = vadd.f32 -1.0, %v7895_v31  ;;  %v7562_v58 = vadd.f32 -1.0, %v7897_v52  ;;  %v7901_v60 = vpop.eup %7900  ;;  %vm4669_vm9 = vcmp.gt.f32.partialorder %v10775_v17, 0.0  ;;  %v10866_v62 = vmul.f32 1.442695, %v4710_v8 }
 0x988   : > { %7912 = vpow2.f32 %v4743_v40  ;;  %v7563_v54 = vadd.f32 -1.0, %v7899_v26  ;;  %v4819_v6 = vsel %vm4659_vm1, %v10755_v18, %v7560_v61  ;;  %v7903_v9 = vpop.eup %7902  ;;  %vm4670_vm8 = vcmp.gt.f32.partialorder %v10777_v21, 0.0  ;;  %6535 = vrot.lane.b32.xlu2 %v6441_v36, %s12101_s14 }
 0x989   : > { %7914 = vpow2.f32 %v4745_v45  ;;  %v7564_v49 = vadd.f32 -1.0, %v7901_v60  ;;  %v4821_v31 = vsel %vm4661_vm5, %v10759_v24, %v7562_v58  ;;  %v4820_v8 = vsel %vm4660_vm3, %v10757_v14, %v7561_v56  ;;  %4906 = vst.msk [vmem:[#allocation3 + $0x19] sm:$0xff] %vm457_vm2, %v4819_v6  ;;  %v7905_v40 = vpop.eup %7904 }
 0x98a   : > { %vm4671_vm1 = vcmp.gt.f32.partialorder %v10779_v22, 0.0  ;;  %v4763_v18 = vmul.f32 1.442695, %v4711_v39  ;;  %7916 = vpow2.f32 %v4747_v38  ;;  %v7565_v28 = vadd.f32 -1.0, %v7903_v9  ;;  %4908 = vst.msk [vmem:[#allocation3 + $0x31] sm:$0xff] %vm457_vm2, %v4821_v31  ;;  %v7907_v52 = vpop.eup %7906 }
 0x98b   : > { %v4822_v24 = vsel %vm4662_vm13, %v10761_v59, %v7563_v54  ;;  %vm4672_vm5 = vcmp.gt.f32.partialorder %v10781_v2, 0.0  ;;  %v4765_v14 = vmul.f32 1.442695, %v4712_v47  ;;  %7918 = vpow2.f32 %v4749_v15  ;;  %4907 = vst.msk [vmem:[#allocation3 + $0x21] sm:$0xff] %vm457_vm2, %v4820_v8  ;;  %v7909_v61 = vpop.eup %7908 }
 0x98c   : > { %v7566_v12 = vadd.f32 -1.0, %v7905_v40  ;;  %v4823_v39 = vsel %vm4663_vm14, %v10763_v50, %v7564_v49  ;;  %vm4673_vm3 = vcmp.gt.f32.partialorder %v10783_v19, 0.0  ;;  %v4767_v59 = vmul.f32 1.442695, %v4713_v1  ;;  %4909 = vst.msk [vmem:[#allocation3 + $0x39] sm:$0xff] %vm457_vm2, %v4822_v24  ;;  %v7911_v15 = vpop.eup %7910 }
 0x98d   : > { %7920 = vpow2.f32 %v4751_v51  ;;  %v7567_v63 = vadd.f32 -1.0, %v7907_v52  ;;  %v4824_v47 = vsel %vm4664_vm15, %v10765_v55, %v7565_v28  ;;  %vm4674_vm13 = vcmp.gt.f32.partialorder %v10785_v25, 0.0  ;;  %4910 = vst.msk [vmem:[#allocation3 + $0x49] sm:$0xff] %vm457_vm2, %v4823_v39 }
 0x98e   : > { %v4769_v50 = vmul.f32 1.442695, %v4714_v3  ;;  %7922 = vpow2.f32 %v4753_v44  ;;  %v7568_v45 = vadd.f32 -1.0, %v7909_v61  ;;  %v4825_v1 = vsel %vm4665_vm0, %v10767_v30, %v7566_v12  ;;  %v7913_v51 = vpop.eup %7912  ;;  %4911 = vst.msk [vmem:[#allocation3 + $0x51] sm:$0xff] %vm457_vm2, %v4824_v47 }
 0x98f   : > { %vm4675_vm14 = vcmp.gt.f32.partialorder %v10787_v27, 0.0  ;;  %v4771_v55 = vmul.f32 1.442695, %v4715_v5  ;;  %7924 = vpow2.f32 %v4755_v16  ;;  %v7569_v38 = vadd.f32 -1.0, %v7911_v15  ;;  %v7915_v44 = vpop.eup %7914  ;;  %4912 = vst.msk [vmem:[#allocation3 + $0x61] sm:$0xff] %vm457_vm2, %v4825_v1 }
 0x990   : > { %v4826_v3 = vsel %vm4666_vm12, %v10769_v10, %v7567_v63  ;;  %vm4676_vm15 = vcmp.gt.f32.partialorder %v10789_v23, 0.0  ;;  %v12105_v30 = vmin.f32 %v10805_v33, 0.0  ;;  %7926 = vpow2.f32 %v4757_v35  ;;  %v7917_v16 = vpop.eup %7916  ;;  %v5036_v58 = vld [vmem:[#allocation3 + $0x19] sm:$0xff] }
 0x991   : > { %v7570_v26 = vadd.f32 -1.0, %v7913_v51  ;;  %v4827_v5 = vsel %vm4667_vm11, %v10771_v53, %v7568_v45  ;;  %vm4677_vm0 = vcmp.gt.f32.partialorder %v10791_v0, 0.0  ;;  %v12106_v10 = vmin.f32 %v10807_v37, 0.0  ;;  %4913 = vst.msk [vmem:[#allocation3 + $0x69] sm:$0xff] %vm457_vm2, %v4826_v3  ;;  %v7919_v60 = vpop.eup %7918  ;;  %v5038_v54 = vld [vmem:[#allocation3 + $0x31] sm:$0xff] }
 0x992   : > { %v4773_v34 = vmul.f32 1.442695, %v12105_v30  ;;  %7928 = vpow2.f32 %v10862_v29  ;;  %v7571_v56 = vadd.f32 -1.0, %v7915_v44  ;;  %v4828_v35 = vsel %vm4668_vm10, %v10773_v46, %v7569_v38  ;;  %4914 = vst.msk [vmem:[#allocation3 + $0x79] sm:$0xff] %vm457_vm2, %v4827_v5 }
 0x993   : > { %v4775_v36 = vmul.f32 1.442695, %v12106_v10  ;;  %vm4678_vm11 = vcmp.gt.f32.partialorder %v10793_v20, 0.0  ;;  %7930 = vpow2.f32 %v10866_v62  ;;  %v7572_v53 = vadd.f32 -1.0, %v7917_v16  ;;  %v7921_v9 = vpop.eup %7920  ;;  %v5037_v62 = vld [vmem:[#allocation3 + $0x21] sm:$0xff]  ;;  %4915 = vst.msk [vmem:[#allocation3 + $0x81] sm:$0xff] %vm457_vm2, %v4828_v35 }
 0x994   : > { %v4829_v6 = vsel %vm4669_vm9, %v10775_v17, %v7570_v26  ;;  %v5068_v29 = vpack.c.bf16 %v5036_v58, %v5036_v58  ;;  %vm4679_vm10 = vcmp.gt.f32.partialorder %v10795_v57, 0.0  ;;  %7932 = vpow2.f32 %v4763_v18  ;;  %v7923_v8 = vpop.eup %7922 }
 0x995   : > { %v7573_v46 = vadd.f32 -1.0, %v7919_v60  ;;  %v5070_v49 = vpack.c.bf16 %v5038_v54, %v5038_v54  ;;  %v4830_v31 = vsel %vm4670_vm8, %v10777_v21, %v7571_v56  ;;  %vm4680_vm12 = vcmp.gt.f32.partialorder %v10797_v42, 0.0  ;;  %4916 = vst.msk [vmem:[#allocation3 + $0x91] sm:$0xff] %vm457_vm2, %v4829_v6  ;;  %v7925_v18 = vpop.eup %7924 }
 0x996   : > { %7934 = vpow2.f32 %v4765_v14  ;;  %v7574_v17 = vadd.f32 -1.0, %v7921_v9  ;;  %v4831_v40 = vsel %vm4671_vm1, %v10779_v22, %v7572_v53  ;;  %v5069_v28 = vpack.c.bf16 %v5037_v62, %v5037_v62  ;;  %5134 = vrot.lane.b32.xlu1 %v5068_v29, %s8049_s17  ;;  %4917 = vst.msk [vmem:[#allocation3 + $0x99] sm:$0xff] %vm457_vm2, %v4830_v31  ;;  %v7927_v22 = vpop.eup %7926  ;;  %v5042_v62 = vld [vmem:[#allocation3 + $0x61] sm:$0xff] }
 0x997   : > { %v12107_v21 = vmin.f32 %v10809_v32, 0.0  ;;  %7936 = vpow2.f32 %v4767_v59  ;;  %v7575_v52 = vadd.f32 -1.0, %v7923_v8  ;;  %5138 = vrot.lane.b32.xlu0 %v5070_v49, %s8049_s17  ;;  %v4832_v14 = vsel %vm4672_vm5, %v10781_v2, %v7573_v46  ;;  %4918 = vst.msk [vmem:[#allocation3 + $0xa9] sm:$0xff] %vm457_vm2, %v4831_v40 }
 0x998   : > { %v12108_v12 = vmin.f32 %v10811_v13, 0.0  ;;  %7938 = vpow2.f32 %v4769_v50  ;;  %v7576_v61 = vadd.f32 -1.0, %v7925_v18  ;;  %v4833_v63 = vsel %vm4673_vm3, %v10783_v19, %v7574_v17  ;;  %5136 = vrot.lane.b32.xlu2 %v5069_v28, %s8049_s17  ;;  %v7929_v59 = vpop.eup %7928  ;;  %4919 = vst.msk [vmem:[#allocation3 + $0xb1] sm:$0xff] %vm457_vm2, %v4832_v14  ;;  %v5039_v50 = vld [vmem:[#allocation3 + $0x39] sm:$0xff] }
 0x999   : > { %v4777_v24 = vmul.f32 1.442695, %v12107_v21  ;;  %v12109_v47 = vmin.f32 %v10813_v43, 0.0  ;;  %7940 = vpow2.f32 %v4771_v55  ;;  %v7577_v15 = vadd.f32 -1.0, %v7927_v22  ;;  %v7931_v1 = vpop.eup %7930  ;;  %4920 = vst.msk [vmem:[#allocation3 + $0xc1] sm:$0xff] %vm457_vm2, %v4833_v63  ;;  %v5041_v55 = vld [vmem:[#allocation3 + $0x51] sm:$0xff] }
 0x99a   : > { %v4779_v39 = vmul.f32 1.442695, %v12108_v12  ;;  %v4834_v45 = vsel %vm4674_vm13, %v10785_v25, %v7575_v52  ;;  %v12110_v19 = vmin.f32 %v10815_v48, 0.0  ;;  %7942 = vpow2.f32 %v4773_v34  ;;  %v7933_v44 = vpop.eup %7932  ;;  %v5040_v34 = vld [vmem:[#allocation3 + $0x49] sm:$0xff] }
 0x99b   : > { %v4781_v2 = vmul.f32 1.442695, %v12109_v47  ;;  %v7578_v38 = vadd.f32 -1.0, %v7929_v59  ;;  %v4835_v3 = vsel %vm4675_vm14, %v10787_v27, %v7576_v61  ;;  %v12111_v30 = vmin.f32 %v10817_v4, 0.0  ;;  %4921 = vst.msk [vmem:[#allocation3 + $0xc9] sm:$0xff] %vm457_vm2, %v4834_v45 }
 0x99c   : > { %v4783_v51 = vmul.f32 1.442695, %v12110_v19  ;;  %7944 = vpow2.f32 %v4775_v36  ;;  %v7579_v26 = vadd.f32 -1.0, %v7931_v1  ;;  %v4836_v5 = vsel %vm4676_vm15, %v10789_v23, %v7577_v15  ;;  %v7935_v16 = vpop.eup %7934  ;;  %4922 = vst.msk [vmem:[#allocation3 + $0xd9] sm:$0xff] %vm457_vm2, %v4835_v3 }
 0x99d   : > { %v4785_v25 = vmul.f32 1.442695, %v12111_v30  ;;  %7946 = vpow2.f32 %v4777_v24  ;;  %v7580_v10 = vadd.f32 -1.0, %v7933_v44  ;;  %v4837_v27 = vsel %vm4677_vm0, %v10791_v0, %v7578_v38  ;;  %v7937_v35 = vpop.eup %7936  ;;  %4923 = vst.msk [vmem:[#allocation3 + $0xe1] sm:$0xff] %vm457_vm2, %v4836_v5  ;;  %v5045_v38 = vld [vmem:[#allocation3 + $0x81] sm:$0xff]  ;;  %v5047_v44 = vld [vmem:[#allocation3 + $0x99] sm:$0xff] }
 0x99e   : > { %v5071_v56 = vpack.c.bf16 %v5039_v50, %v5039_v50  ;;  %7948 = vpow2.f32 %v4779_v39  ;;  %v7581_v36 = vadd.f32 -1.0, %v7935_v16  ;;  %v4838_v23 = vsel %vm4678_vm11, %v10793_v20, %v7579_v26  ;;  %v7939_v60 = vpop.eup %7938  ;;  %4924 = vst.msk [vmem:[#allocation3 + $0xf1] sm:$0xff] %vm457_vm2, %v4837_v27  ;;  %v5046_v30 = vld [vmem:[#allocation3 + $0x91] sm:$0xff] }
 0x99f   : > { %v5073_v58 = vpack.c.bf16 %v5041_v55, %v5041_v55  ;;  %7950 = vpow2.f32 %v4781_v2  ;;  %v7582_v53 = vadd.f32 -1.0, %v7937_v35  ;;  %v4839_v0 = vsel %vm4679_vm10, %v10795_v57, %v7580_v10  ;;  %v7941_v6 = vpop.eup %7940  ;;  %4925 = vst.msk [vmem:[#allocation3 + $0xf9] sm:$0xff] %vm457_vm2, %v4838_v23  ;;  %v6614_v35 = vld [vmem:[#allocation3 + $0xb2] sm:$0xff] }
 0x9a0   : > { %v5072_v54 = vpack.c.bf16 %v5040_v34, %v5040_v34  ;;  %5140 = vrot.lane.b32.xlu1 %v5071_v56, %s8049_s17  ;;  %vm4681_vm8 = vcmp.gt.f32.partialorder %v10799_v41, 0.0  ;;  %7952 = vpow2.f32 %v4783_v51  ;;  %v7583_v20 = vadd.f32 -1.0, %v7939_v60  ;;  %v7943_v9 = vpop.eup %7942  ;;  %4926 = vst.msk [vmem:[#allocation3 + $0x109] sm:$0xff] %vm457_vm2, %v4839_v0  ;;  %v5050_v60 = vld [vmem:[#allocation3 + $0xc1] sm:$0xff] }
 0x9a1   : > { %v4840_v29 = vsel %vm4680_vm12, %v10797_v42, %v7581_v36  ;;  %5144 = vrot.lane.b32.xlu0 %v5073_v58, %s8049_s17  ;;  %vm4682_vm9 = vcmp.gt.f32.partialorder %v10801_v7, 0.0  ;;  %7954 = vpow2.f32 %v4785_v25  ;;  %v7584_v57 = vadd.f32 -1.0, %v7941_v6  ;;  %v6613_v25 = vld [vmem:[#allocation3 + $0xaa] sm:$0xff] }
 0x9a2   : > { %v4841_v46 = vsel %vm4681_vm8, %v10799_v41, %v7582_v53  ;;  %5142 = vrot.lane.b32.xlu2 %v5072_v54, %s8049_s17  ;;  %v7945_v49 = vpop.eup %7944  ;;  %vm4683_vm1 = vcmp.gt.f32.partialorder %v10803_v11, 0.0  ;;  %v7585_v31 = vadd.f32 -1.0, %v7943_v9  ;;  %v4842_v42 = vsel %vm4682_vm9, %v10801_v7, %v7583_v20  ;;  %4927 = vst.msk [vmem:[#allocation3 + $0x111] sm:$0xff] %vm457_vm2, %v4840_v29  ;;  %v5044_v41 = vld [vmem:[#allocation3 + $0x79] sm:$0xff]  ;;  %v5043_v7 = vld [vmem:[#allocation3 + $0x69] sm:$0xff] }
 0x9a3   : > { %v7947_v8 = vpop.eup %7946  ;;  %vm4684_vm5 = vcmp.gt.f32.partialorder %v10805_v33, 0.0  ;;  %v7586_v17 = vadd.f32 -1.0, %v7945_v49  ;;  %v4843_v40 = vsel %vm4683_vm1, %v10803_v11, %v7584_v57  ;;  %4928 = vst.msk [vmem:[#allocation3 + $0x121] sm:$0xff] %vm457_vm2, %v4841_v46  ;;  %vm4685_vm3 = vcmp.gt.f32.partialorder %v10807_v37, 0.0  ;;  %v6615_v51 = vld [vmem:[#allocation3 + $0xc2] sm:$0xff]  ;;  %v6616_v55 = vld [vmem:[#allocation3 + $0xca] sm:$0xff] }
 0x9a4   : > { %v7949_v28 = vpop.eup %7948  ;;  %v7587_v18 = vadd.f32 -1.0, %v7947_v8  ;;  %v4844_v21 = vsel %vm4684_vm5, %v10805_v33, %v7585_v31  ;;  %4929 = vst.msk [vmem:[#allocation3 + $0x129] sm:$0xff] %vm457_vm2, %v4842_v42  ;;  %vm4686_vm13 = vcmp.gt.f32.partialorder %v10809_v32, 0.0  ;;  %v5074_v11 = vpack.c.bf16 %v5042_v62, %v5042_v62  ;;  %v6633_v33 = vld [vmem:[#allocation3 + $0x19a] sm:$0xff]  ;;  %v6618_v1 = vld [vmem:[#allocation3 + $0xe2] sm:$0xff]  ;;  %v5049_v46 = vld [vmem:[#allocation3 + $0xb1] sm:$0xff] }
 0x9a5   : > { %v7951_v24 = vpop.eup %7950  ;;  %v7588_v52 = vadd.f32 -1.0, %v7949_v28  ;;  %v4845_v14 = vsel %vm4685_vm3, %v10807_v37, %v7586_v17  ;;  %4930 = vst.msk [vmem:[#allocation3 + $0x139] sm:$0xff] %vm457_vm2, %v4843_v40  ;;  %vm4687_vm14 = vcmp.gt.f32.partialorder %v10811_v13, 0.0  ;;  %v5076_v61 = vpack.c.bf16 %v5044_v41, %v5044_v41  ;;  %v6634_v37 = vld [vmem:[#allocation3 + $0x1a2] sm:$0xff]  ;;  %v6617_v45 = vld [vmem:[#allocation3 + $0xda] sm:$0xff]  ;;  %v6611_v49 = vld [vmem:[#allocation3 + $0x92] sm:$0xff] }
 0x9a6   : > { %v7953_v22 = vpop.eup %7952  ;;  %v7589_v12 = vadd.f32 -1.0, %v7951_v24  ;;  %v4846_v39 = vsel %vm4686_vm13, %v10809_v32, %v7587_v18  ;;  %4931 = vst.msk [vmem:[#allocation3 + $0x141] sm:$0xff] %vm457_vm2, %v4844_v21  ;;  %vm4688_vm15 = vcmp.gt.f32.partialorder %v10813_v43, 0.0  ;;  %v5075_v2 = vpack.c.bf16 %v5043_v7, %v5043_v7  ;;  %v5048_v53 = vld [vmem:[#allocation3 + $0xa9] sm:$0xff]  ;;  %v6612_v8 = vld [vmem:[#allocation3 + $0x9a] sm:$0xff] }
 0x9a7   : > { %v7955_v63 = vpop.eup %7954  ;;  %v7590_v59 = vadd.f32 -1.0, %v7953_v22  ;;  %v4847_v47 = vsel %vm4687_vm14, %v10811_v13, %v7588_v52  ;;  %4932 = vst.msk [vmem:[#allocation3 + $0x151] sm:$0xff] %vm457_vm2, %v4845_v14  ;;  %vm4689_vm0 = vcmp.gt.f32.partialorder %v10815_v48, 0.0  ;;  %vm4690_vm11 = vcmp.gt.f32.partialorder %v10817_v4, 0.0 }
 0x9a8   : > { %5146 = vrot.lane.b32.xlu1 %v5074_v11, %s8049_s17  ;;  %v7591_v15 = vadd.f32 -1.0, %v7955_v63  ;;  %v4848_v32 = vsel %vm4688_vm15, %v10813_v43, %v7589_v12  ;;  %4933 = vst.msk [vmem:[#allocation3 + $0x159] sm:$0xff] %vm457_vm2, %v4846_v39  ;;  %v6665_v50 = vpack.c.bf16 %v6633_v33, %v6633_v33  ;;  %v6666_v43 = vpack.c.bf16 %v6634_v37, %v6634_v37  ;;  %v6609_v12 = vld [vmem:[#allocation3 + $0x7a] sm:$0xff] }
 0x9a9   : > { %5150 = vrot.lane.b32.xlu0 %v5076_v61, %s8049_s17  ;;  %v4849_v13 = vsel %vm4689_vm0, %v10815_v48, %v7590_v59  ;;  %4934 = vst.msk [vmem:[#allocation3 + $0x169] sm:$0xff] %vm457_vm2, %v4847_v47  ;;  %v6649_v3 = vpack.c.bf16 %v6617_v45, %v6617_v45  ;;  %v6650_v48 = vpack.c.bf16 %v6618_v1, %v6618_v1  ;;  %v5053_v33 = vld [vmem:[#allocation3 + $0xe1] sm:$0xff]  ;;  %v5051_v47 = vld [vmem:[#allocation3 + $0xc9] sm:$0xff]  ;;  %vm12113_vm10 = vcmask 650752  }
 0x9aa   : > { %5148 = vrot.lane.b32.xlu2 %v5075_v2, %s8049_s17  ;;  %v4850_v19 = vsel %vm4690_vm11, %v10817_v4, %v7591_v15  ;;  %4935 = vst.msk [vmem:[#allocation3 + $0x171] sm:$0xff] %vm457_vm2, %v4848_v32  ;;  %v11034_v26 = vpack.c.bf16 %v6615_v51, %v6615_v51  ;;  %v11036_v4 = vpack.c.bf16 %v5045_v38, %v5045_v38  ;;  %v6610_v61 = vld [vmem:[#allocation3 + $0x82] sm:$0xff]  ;;  %v6608_v38 = vld [vmem:[#allocation3 + $0x6a] sm:$0xff]  ;;  %vm12115_vm8 = vmmov %vm12113_vm10  ;;  %vm12116_vm9 = vcmask 781952  }
 0x9ab   : > { %4936 = vst.msk [vmem:[#allocation3 + $0x181] sm:$0xff] %vm457_vm2, %v4849_v13  ;;  %v11039_v5 = vpack.c.bf16 %v6616_v55, %v6616_v55  ;;  %v11041_v34 = vpack.c.bf16 %v5047_v44, %v5047_v44  ;;  %v11044_v16 = vpack.c.bf16 %v5046_v30, %v5046_v30  ;;  %v11048_v10 = vpack.c.bf16 %v6613_v25, %v6613_v25  ;;  %v6623_v37 = vld [vmem:[#allocation3 + $0x122] sm:$0xff]  ;;  %v6624_v2 = vld [vmem:[#allocation3 + $0x12a] sm:$0xff]  ;;  %v5052_v13 = vld [vmem:[#allocation3 + $0xd9] sm:$0xff] }
 0x9ac   : > { %4937 = vst.msk [vmem:[#allocation3 + $0x189] sm:$0xff] %vm457_vm2, %v4850_v19  ;;  %v11071_v57 = vpack.c.bf16 %v6614_v35, %v6614_v35  ;;  %v11077_v62 = vpack.c.bf16 %v5048_v53, %v5048_v53  ;;  %v11083_v28 = vpack.c.bf16 %v5050_v60, %v5050_v60  ;;  %v11087_v7 = vpack.c.bf16 %v5049_v46, %v5049_v46  ;;  %v6607_v1 = vld [vmem:[#allocation3 + $0x62] sm:$0xff]  ;;  %v6621_v30 = vld [vmem:[#allocation3 + $0x10a] sm:$0xff]  ;;  %v6622_v35 = vld [vmem:[#allocation3 + $0x112] sm:$0xff] }
 0x9ad   : > { %6697 = vst.msk [vmem:[#allocation5 + $0xf4] sm:$0xf] %vm1730_vm4, %v6665_v50  ;;  %v6625_v18 = vld [vmem:[#allocation3 + $0x13a] sm:$0xff]  ;;  %v11091_v24 = vpack.c.bf16 %v6611_v49, %v6611_v49  ;;  %v6626_v52 = vld [vmem:[#allocation3 + $0x142] sm:$0xff]  ;;  %v11098_v22 = vpack.c.bf16 %v6612_v8, %v6612_v8  ;;  %v11113_v45 = vpack.c.bf16 %v6609_v12, %v6609_v12  ;;  %v11117_v50 = vpack.c.bf16 %v6610_v61, %v6610_v61  ;;  %v6605_v60 = vld [vmem:[#allocation3 + $0x4a] sm:$0xff] }
 0x9ae   : > { %6698 = vst.msk [vmem:[#allocation5 + $0xfc] sm:$0xf] %vm1730_vm4, %v6666_v43  ;;  %v11104_v39 = vpack.c.bf16 %v6625_v18, %v6625_v18  ;;  %v11109_v59 = vpack.c.bf16 %v6626_v52, %v6626_v52  ;;  %v11121_v43 = vpack.c.bf16 %v5051_v47, %v5051_v47  ;;  %v6655_v51 = vpack.c.bf16 %v6623_v37, %v6623_v37  ;;  %v6606_v53 = vld [vmem:[#allocation3 + $0x52] sm:$0xff]  ;;  %v4941_v37 = vld [vmem:[#allocation3 + $0x20] sm:$0xff]  ;;  %vm12117_vm1 = vmmov %vm12116_vm9 }
 0x9af   : > { %6681 = vst.msk [vmem:[#allocation5 + $0x74] sm:$0xf] %vm1730_vm4, %v6649_v3  ;;  %v6627_v58 = vld [vmem:[#allocation3 + $0x152] sm:$0xff]  ;;  %v6628_v6 = vld [vmem:[#allocation3 + $0x15a] sm:$0xff]  ;;  %v11125_v44 = vpack.c.bf16 %v5053_v33, %v5053_v33  ;;  %v6654_v8 = vpack.c.bf16 %v6622_v35, %v6622_v35  ;;  %v11153_v52 = vpack.c.bf16 %v6606_v53, %v6606_v53  ;;  %vm12118_vm5 = vcmask 913152   ;;  %vm12123_vm0 = vmmov %vm12115_vm8 }
 0x9b0   : > { %5152 = vrot.lane.b32.xlu1 %v11036_v4, %s8049_s17  ;;  %6682 = vst.msk [vmem:[#allocation5 + $0x7c] sm:$0xf] %vm1730_vm4, %v6650_v48  ;;  %v11075_v42 = vpack.c.bf16 %v6627_v58, %v6627_v58  ;;  %v11081_v41 = vpack.c.bf16 %v6628_v6, %v6628_v6  ;;  %v6656_v48 = vpack.c.bf16 %v6624_v2, %v6624_v2  ;;  %v5496_v6 = vld [vmem:[#allocation3 + $0xc0] sm:$0xff]  ;;  %v6619_v46 = vld [vmem:[#allocation3 + $0xf2] sm:$0xff]  ;;  %vm12119_vm3 = vcmask 1044352   ;;  %vm12120_vm13 = vmmov %vm12118_vm5 }
 0x9b1   : > { %5156 = vrot.lane.b32.xlu0 %v11041_v34, %s8049_s17  ;;  %6679 = vst.msk [vmem:[#allocation5 + $0x64] sm:$0xf] %vm1730_vm4, %v11034_v26  ;;  %v6629_v27 = vld [vmem:[#allocation3 + $0x16a] sm:$0xff]  ;;  %v6630_v56 = vld [vmem:[#allocation3 + $0x172] sm:$0xff]  ;;  %v11139_v58 = vpack.c.bf16 %v6608_v38, %v6608_v38  ;;  %v6651_v12 = vpack.c.bf16 %v6619_v46, %v6619_v46  ;;  %v6604_v33 = vld [vmem:[#allocation3 + $0x3a] sm:$0xff] }
 0x9b2   : > { %5154 = vrot.lane.b32.xlu2 %v11044_v16, %s8049_s17  ;;  %6680 = vst.msk [vmem:[#allocation5 + $0x6c] sm:$0xf] %vm1730_vm4, %v11039_v5  ;;  %v11059_v36 = vpack.c.bf16 %v6629_v27, %v6629_v27  ;;  %v11061_v23 = vpack.c.bf16 %v6630_v56, %v6630_v56  ;;  %v11127_v27 = vpack.c.bf16 %v5052_v13, %v5052_v13  ;;  %v4942_v35 = vld [vmem:[#allocation3 + $0x30] sm:$0xff]  ;;  %vm12121_vm14 = vmmov %vm12119_vm3 }
 0x9b3   : > { %v6631_v0 = vld [vmem:[#allocation3 + $0x182] sm:$0xff]  ;;  %v6632_v54 = vld [vmem:[#allocation3 + $0x18a] sm:$0xff]  ;;  %6677 = vst.msk [vmem:[#allocation5 + $0x54] sm:$0xf] %vm1730_vm4, %v11048_v10  ;;  %v11133_v56 = vpack.c.bf16 %v6607_v1, %v6607_v1  ;;  %v6636_v13 = vpack.c.bf16 %v6604_v33, %v6604_v33 }
 0x9b4   : > { %v7819_v20 = vld [vmem:[#allocation5 + $0xf4] sm:$0xf]  ;;  %v11065_v29 = vpack.c.bf16 %v6631_v0, %v6631_v0  ;;  %v11067_v9 = vpack.c.bf16 %v6632_v54, %v6632_v54  ;;  %6693 = vst.msk [vmem:[#allocation5 + $0xd4] sm:$0xf] %vm1730_vm4, %v11059_v36  ;;  %v4947_v1 = vld [vmem:[#allocation3 + $0x68] sm:$0xff] }
 0x9b5   : > { %v7724_v31 = vld [vmem:[#allocation5 + $0xf8] sm:$0xf0]  ;;  %6694 = vst.msk [vmem:[#allocation5 + $0xdc] sm:$0xf] %vm1730_vm4, %v11061_v23 }
 0x9b6   : > { %v7727_v17 = vor.u32 %v7819_v20, %v7724_v31  ;;  %v7803_v40 = vld [vmem:[#allocation5 + $0x74] sm:$0xf]  ;;  %6695 = vst.msk [vmem:[#allocation5 + $0xe4] sm:$0xf] %vm1730_vm4, %v11065_v29  ;;  %v6653_v20 = vpack.c.bf16 %v6621_v30, %v6621_v30 }
 0x9b7   : > { %v7660_v21 = vld [vmem:[#allocation5 + $0x78] sm:$0xf0]  ;;  %6696 = vst.msk [vmem:[#allocation5 + $0xec] sm:$0xf] %vm1730_vm4, %v11067_v9 }
 0x9b8   : > { %5158 = vrot.lane.b32.xlu1 %v11077_v62, %s8049_s17  ;;  %v6947_v14 = vsel %vm457_vm2, %v7727_v17, 0  ;;  %v7663_v11 = vor.u32 %v7803_v40, %v7660_v21  ;;  %6678 = vst.msk [vmem:[#allocation5 + $0x5c] sm:$0xf] %vm1730_vm4, %v11071_v57  ;;  %v7801_v15 = vld [vmem:[#allocation5 + $0x64] sm:$0xf]  ;;  %v6620_v17 = vld [vmem:[#allocation3 + $0xfa] sm:$0xff]  ;;  %v11149_v21 = vpack.c.bf16 %v6605_v60, %v6605_v60 }
 0x9b9   : > { %5162 = vrot.lane.b32.xlu0 %v11083_v28, %s8049_s17  ;;  %6991 = vmatpush.bf16.xpose.msrb.mxu2 %v6947_v14  ;;  %6691 = vst.msk [vmem:[#allocation5 + $0xc4] sm:$0xf] %vm1730_vm4, %v11075_v42  ;;  %v7652_v32 = vld [vmem:[#allocation5 + $0x68] sm:$0xf0]  ;;  %v6603_v14 = vld [vmem:[#allocation3 + $0x32] sm:$0xff]  ;;  %v6652_v47 = vpack.c.bf16 %v6620_v17, %v6620_v17  ;;  %v4974_v17 = vpack.c.bf16 %v4942_v35, %v4942_v35  ;;  %v5494_v35 = vld [vmem:[#allocation3 + $0xa8] sm:$0xff] }
 0x9ba   : > { %5160 = vrot.lane.b32.xlu2 %v11087_v7, %s8049_s17  ;;  %v6923_v63 = vsel %vm457_vm2, %v7663_v11, 0  ;;  %6692 = vst.msk [vmem:[#allocation5 + $0xcc] sm:$0xf] %vm1730_vm4, %v11081_v41  ;;  %v7655_v55 = vor.u32 %v7801_v15, %v7652_v32  ;;  %v7799_v40 = vld [vmem:[#allocation5 + $0x54] sm:$0xf]  ;;  %v6635_v2 = vpack.c.bf16 %v6603_v14, %v6603_v14  ;;  %v4944_v15 = vld [vmem:[#allocation3 + $0x48] sm:$0xff] }
 0x9bb   : > { %6963 = vmatpush.bf16.xpose.msra.mxu1 %v6923_v63  ;;  %6675 = vst.msk [vmem:[#allocation5 + $0x44] sm:$0xf] %vm1730_vm4, %v11091_v24  ;;  %v7815_v54 = vld [vmem:[#allocation5 + $0xd4] sm:$0xf]  ;;  %v11156_v63 = vpack.c.bf16 %v5496_v6, %v5496_v6  ;;  %v5497_v32 = vld [vmem:[#allocation3 + $0xc8] sm:$0xff] }
 0x9bc   : > { %6676 = vst.msk [vmem:[#allocation5 + $0x4c] sm:$0xf] %vm1730_vm4, %v11098_v22  ;;  %v6920_v49 = vsel %vm457_vm2, %v7655_v55, 0  ;;  %v7708_v31 = vld [vmem:[#allocation5 + $0xd8] sm:$0xf0]  ;;  %v4940_v55 = vld [vmem:[#allocation3 + $0x18] sm:$0xff]  ;;  %v11179_v46 = vpack.c.bf16 %v5497_v32, %v5497_v32 }
 0x9bd   : > { %v7817_v19 = vld [vmem:[#allocation5 + $0xe4] sm:$0xf]  ;;  %6689 = vst.msk [vmem:[#allocation5 + $0xb4] sm:$0xf] %vm1730_vm4, %v11104_v39  ;;  %v7711_v11 = vor.u32 %v7815_v54, %v7708_v31  ;;  %v4943_v31 = vld [vmem:[#allocation3 + $0x38] sm:$0xff] }
 0x9be   : > { %v7716_v3 = vld [vmem:[#allocation5 + $0xe8] sm:$0xf0]  ;;  %6690 = vst.msk [vmem:[#allocation5 + $0xbc] sm:$0xf] %vm1730_vm4, %v11109_v59  ;;  %v5495_v54 = vld [vmem:[#allocation3 + $0xb0] sm:$0xff]  ;;  %v4975_v14 = vpack.c.bf16 %v4943_v31, %v4943_v31  ;;  %v11223_v31 = vpack.c.bf16 %v5494_v35, %v5494_v35  ;;  %v5507_v35 = vld [vmem:[#allocation3 + $0x140] sm:$0xff] }
 0x9bf   : > { %v7719_v25 = vor.u32 %v7817_v19, %v7716_v3  ;;  %6673 = vst.msk [vmem:[#allocation5 + $0x34] sm:$0xf] %vm1730_vm4, %v11113_v45  ;;  %v7644_v18 = vld [vmem:[#allocation5 + $0x58] sm:$0xf0]  ;;  %v4950_v19 = vld [vmem:[#allocation3 + $0x90] sm:$0xff]  ;;  %v4973_v3 = vpack.c.bf16 %v4941_v37, %v4941_v37 }
 0x9c0   : > { %5164 = vrot.lane.b32.xlu1 %v11121_v43, %s8049_s17  ;;  %6674 = vst.msk [vmem:[#allocation5 + $0x3c] sm:$0xf] %vm1730_vm4, %v11117_v50  ;;  %v7647_v61 = vor.u32 %v7799_v40, %v7644_v18  ;;  %v7813_v38 = vld [vmem:[#allocation5 + $0xc4] sm:$0xf]  ;;  %v11177_v6 = vpack.c.bf16 %v4950_v19, %v4950_v19  ;;  %v11185_v40 = vpack.c.bf16 %v5495_v54, %v5495_v54  ;;  %v6169_v18 = vld [vmem:[#allocation3 + $0xd8] sm:$0xff] }
 0x9c1   : > { %5168 = vrot.lane.b32.xlu0 %v11125_v44, %s8049_s17  ;;  %v6944_v0 = vsel %vm457_vm2, %v7719_v25, 0  ;;  %6687 = vst.msk [vmem:[#allocation5 + $0xa4] sm:$0xf] %vm1730_vm4, %v6655_v51  ;;  %v6941_v51 = vsel %vm457_vm2, %v7711_v11, 0  ;;  %v7700_v30 = vld [vmem:[#allocation5 + $0xc8] sm:$0xf0]  ;;  %v4976_v25 = vpack.c.bf16 %v4944_v15, %v4944_v15 }
 0x9c2   : > { %5166 = vrot.lane.b32.xlu2 %v11127_v27, %s8049_s17  ;;  %6992 = vmatpush.bf16.xpose.msrb.mxu2 %v6944_v0  ;;  %6688 = vst.msk [vmem:[#allocation5 + $0xac] sm:$0xf] %vm1730_vm4, %v6656_v48  ;;  %v6917_v48 = vsel %vm457_vm2, %v7647_v61, 0  ;;  %v7797_v60 = vld [vmem:[#allocation5 + $0x44] sm:$0xf]  ;;  %v11174_v0 = vpack.c.bf16 %v4947_v1, %v4947_v1  ;;  %v4938_v15 = vld [vmem:[#allocation3] sm:$0xff] }
 0x9c3   : > { %6964 = vmatpush.bf16.xpose.msra.mxu1 %v6920_v49  ;;  %6671 = vst.msk [vmem:[#allocation5 + $0x24] sm:$0xf] %vm1730_vm4, %v11133_v56  ;;  %v7636_v53 = vld [vmem:[#allocation5 + $0x48] sm:$0xf0]  ;;  %v4972_v49 = vpack.c.bf16 %v4940_v55, %v4940_v55  ;;  %v4945_v11 = vld [vmem:[#allocation3 + $0x50] sm:$0xff]  ;;  %v4970_v1 = vpack.c.bf16 %v4938_v15, %v4938_v15  ;;  %v5131_v55 = vpop.permute.xlu2 %5130 }
 0x9c4   : > { %6672 = vst.msk [vmem:[#allocation5 + $0x2c] sm:$0xf] %vm1730_vm4, %v11139_v58  ;;  %v7811_v61 = vld [vmem:[#allocation5 + $0xb4] sm:$0xf]  ;;  %v11201_v19 = vpack.c.bf16 %v4945_v11, %v4945_v11  ;;  %v5511_v11 = vld [vmem:[#allocation3 + $0x170] sm:$0xff] }
 0x9c5   : > { %6685 = vst.msk [vmem:[#allocation5 + $0x94] sm:$0xf] %vm1730_vm4, %v6653_v20  ;;  %v7703_v20 = vor.u32 %v7813_v38, %v7700_v30  ;;  %v4949_v38 = vld [vmem:[#allocation3 + $0x80] sm:$0xff]  ;;  %v4951_v30 = vld [vmem:[#allocation3 + $0x98] sm:$0xff]  ;;  %v5508_v15 = vld [vmem:[#allocation3 + $0x150] sm:$0xff] }
 0x9c6   : > { %6686 = vst.msk [vmem:[#allocation5 + $0x9c] sm:$0xf] %vm1730_vm4, %v6654_v8  ;;  %v7639_v8 = vor.u32 %v7797_v60, %v7636_v53  ;;  %v7795_v32 = vld [vmem:[#allocation5 + $0x34] sm:$0xf]  ;;  %v11214_v53 = vpack.c.bf16 %v4949_v38, %v4949_v38  ;;  %v11218_v54 = vpack.c.bf16 %v4951_v30, %v4951_v30 }
 0x9c7   : > { %6669 = vst.msk [vmem:[#allocation5 + $0x14] sm:$0xf] %vm1730_vm4, %v11149_v21  ;;  %v6938_v33 = vsel %vm457_vm2, %v7703_v20, 0 }
 0x9c8   : > { %5382 = vrot.lane.b32.xlu1 %v11048_v10, %s8047_s24  ;;  %6670 = vst.msk [vmem:[#allocation5 + $0x1c] sm:$0xf] %vm1730_vm4, %v11153_v52  ;;  %v6914_v37 = vsel %vm457_vm2, %v7639_v8, 0 }
 0x9c9   : > { %5606 = vrot.lane.b32.xlu0 %v11156_v63, %s8043_s19  ;;  %6683 = vst.msk [vmem:[#allocation5 + $0x84] sm:$0xf] %vm1730_vm4, %v6651_v12  ;;  %v4946_v12 = vld [vmem:[#allocation3 + $0x60] sm:$0xff]  ;;  %v7684_v8 = vld [vmem:[#allocation5 + $0xa8] sm:$0xf0] }
 0x9ca   : > { %5384 = vrot.lane.b32.xlu2 %v11071_v57, %s8047_s24  ;;  %6993 = vmatpush.bf16.xpose.msrb.mxu2 %v6941_v51  ;;  %6684 = vst.msk [vmem:[#allocation5 + $0x8c] sm:$0xf] %vm1730_vm4, %v6652_v47  ;;  %v4948_v47 = vld [vmem:[#allocation3 + $0x78] sm:$0xff]  ;;  %v6201_v51 = vpack.c.bf16 %v6169_v18, %v6169_v18  ;;  %v7793_v18 = vld [vmem:[#allocation5 + $0x24] sm:$0xf] }
 0x9cb   : > { %6965 = vmatpush.bf16.xpose.msra.mxu1 %v6917_v48  ;;  %6667 = vst.msk [vmem:[#allocation5 + $0x4] sm:$0xf] %vm1730_vm4, %v6635_v2  ;;  %v7692_v2 = vld [vmem:[#allocation5 + $0xb8] sm:$0xf0]  ;;  %v11205_v48 = vpack.c.bf16 %v4946_v12, %v4946_v12  ;;  %v11208_v60 = vpack.c.bf16 %v4948_v47, %v4948_v47  ;;  %v5133_v47 = vpop.permute.xlu0 %5132 }
 0x9cc   : > { %6668 = vst.msk [vmem:[#allocation5 + $0xc] sm:$0xf] %vm1730_vm4, %v6636_v13  ;;  %v7628_v13 = vld [vmem:[#allocation5 + $0x38] sm:$0xf0] }
 0x9cd   : > { %5005 = vst.msk [vmem:[#allocation5 + $0x18] sm:$0xf] %vm1730_vm4, %v4973_v3  ;;  %v7695_v3 = vor.u32 %v7811_v61, %v7692_v2  ;;  %v7676_v30 = vld [vmem:[#allocation5 + $0x98] sm:$0xf0] }
 0x9ce   : > { %5008 = vst.msk [vmem:[#allocation5 + $0x30] sm:$0xf] %vm1730_vm4, %v4976_v25  ;;  %v7631_v25 = vor.u32 %v7795_v32, %v7628_v13  ;;  %v11239_v32 = vpop.permute.xlu2 %6313  ;;  %v11242_v13 = vpack.c.bf16 %v5511_v11, %v5511_v11 }
 0x9cf   : > { %5011 = vst.msk [vmem:[#allocation5 + $0x48] sm:$0xf] %vm1730_vm4, %v11174_v0  ;;  %v6935_v20 = vsel %vm457_vm2, %v7695_v3, 0  ;;  %v4964_v3 = vld [vmem:[#allocation3 + $0x138] sm:$0xff] }
 0x9d0   : > { %5608 = vrot.lane.b32.xlu1 %v11179_v46, %s8043_s19  ;;  %5014 = vst.msk [vmem:[#allocation5 + $0x60] sm:$0xf] %vm1730_vm4, %v11177_v6 }
 0x9d1   : > { %5832 = vrot.lane.b32.xlu0 %v11121_v43, %s8045_s15  ;;  %5004 = vst.msk [vmem:[#allocation5 + $0x10] sm:$0xf] %vm1730_vm4, %v4972_v49  ;;  %v7809_v49 = vld [vmem:[#allocation5 + $0xa4] sm:$0xf] }
 0x9d2   : > { %5830 = vrot.lane.b32.xlu2 %v11083_v28, %s8045_s15  ;;  %6994 = vmatpush.bf16.xpose.msrb.mxu2 %v6938_v33  ;;  %5006 = vst.msk [vmem:[#allocation5 + $0x20] sm:$0xf] %vm1730_vm4, %v4974_v17  ;;  %v6170_v17 = vld [vmem:[#allocation3 + $0xe0] sm:$0xff]  ;;  %v7687_v12 = vor.u32 %v7809_v49, %v7684_v8  ;;  %v7612_v8 = vld [vmem:[#allocation5 + $0x18] sm:$0xf0] }
 0x9d3   : > { %6966 = vmatpush.bf16.xpose.msra.mxu1 %v6914_v37  ;;  %5017 = vst.msk [vmem:[#allocation5 + $0x78] sm:$0xf] %vm1730_vm4, %v11185_v40  ;;  %v6202_v33 = vpack.c.bf16 %v6170_v17, %v6170_v17  ;;  %v5510_v37 = vld [vmem:[#allocation3 + $0x168] sm:$0xff]  ;;  %v5504_v17 = vld [vmem:[#allocation3 + $0x120] sm:$0xff] }
 0x9d4   : > { %5007 = vst.msk [vmem:[#allocation5 + $0x28] sm:$0xf] %vm1730_vm4, %v4975_v14  ;;  %v7620_v14 = vld [vmem:[#allocation5 + $0x28] sm:$0xf0]  ;;  %v11247_v38 = vpack.c.bf16 %v5510_v37, %v5510_v37 }
 0x9d5   : > { %5002 = vst.msk [vmem:[#allocation5] sm:$0xf] %vm1730_vm4, %v4970_v1  ;;  %v7623_v2 = vor.u32 %v7793_v18, %v7620_v14  ;;  %v5509_v1 = vld [vmem:[#allocation3 + $0x158] sm:$0xff]  ;;  %v11266_v18 = vpack.c.bf16 %v5507_v35, %v5507_v35  ;;  %v5502_v14 = vld [vmem:[#allocation3 + $0x108] sm:$0xff] }
 0x9d6   : > { %5226 = vst.msk [vmem:[#allocation5] sm:$0xf] %vm1955_vm6, %v5131_v55  ;;  %v6932_v55 = vsel %vm457_vm2, %v7687_v12, 0  ;;  %v11258_v49 = vpack.c.bf16 %v5509_v1, %v5509_v1  ;;  %v5503_v12 = vld [vmem:[#allocation3 + $0x110] sm:$0xff]  ;;  %v11280_v37 = vpack.c.bf16 %v5502_v14, %v5502_v14  ;;  %v7668_v35 = vld [vmem:[#allocation5 + $0x88] sm:$0xf0] }
 0x9d7   : > { %5009 = vst.msk [vmem:[#allocation5 + $0x38] sm:$0xf] %vm1730_vm4, %v11201_v19 }
 0x9d8   : > { %6054 = vrot.lane.b32.xlu1 %v11034_v26, %s8041_s20  ;;  %5020 = vst.msk [vmem:[#allocation5 + $0x90] sm:$0xf] %vm1730_vm4, %v6201_v51  ;;  %v6911_v26 = vsel %vm457_vm2, %v7631_v25, 0  ;;  %v11254_v25 = vpack.c.bf16 %v5508_v15, %v5508_v15  ;;  %v11286_v15 = vpack.c.bf16 %v5503_v12, %v5503_v12  ;;  %v5064_v12 = vld [vmem:[#allocation3 + $0x169] sm:$0xff] }
 0x9d9   : > { %6279 = vrot.lane.b32.xlu0 %v6201_v51, %s8039_s16  ;;  %5010 = vst.msk [vmem:[#allocation5 + $0x40] sm:$0xf] %vm1730_vm4, %v11205_v48  ;;  %v7807_v51 = vld [vmem:[#allocation5 + $0x94] sm:$0xf] }
 0x9da   : > { %6056 = vrot.lane.b32.xlu2 %v11039_v5, %s8041_s20  ;;  %6995 = vmatpush.bf16.xpose.msrb.mxu2 %v6935_v20  ;;  %5012 = vst.msk [vmem:[#allocation5 + $0x50] sm:$0xf] %vm1730_vm4, %v11208_v60  ;;  %v4939_v5 = vld [vmem:[#allocation3 + $0x8] sm:$0xff]  ;;  %v7791_v20 = vld [vmem:[#allocation5 + $0x14] sm:$0xf] }
 0x9db   : > { %6967 = vmatpush.bf16.xpose.msra.mxu1 %v6911_v26  ;;  %5013 = vst.msk [vmem:[#allocation5 + $0x58] sm:$0xf] %vm1730_vm4, %v11214_v53  ;;  %v4971_v61 = vpack.c.bf16 %v4939_v5, %v4939_v5  ;;  %v4963_v26 = vld [vmem:[#allocation3 + $0x128] sm:$0xff]  ;;  %v7679_v5 = vor.u32 %v7807_v51, %v7676_v30  ;;  %v7805_v51 = vld [vmem:[#allocation5 + $0x84] sm:$0xf] }
 0x9dc   : > { %5015 = vst.msk [vmem:[#allocation5 + $0x68] sm:$0xf] %vm1730_vm4, %v11218_v54  ;;  %v11270_v11 = vpack.c.bf16 %v4963_v26, %v4963_v26  ;;  %v7604_v26 = vld [vmem:[#allocation5 + $0x8] sm:$0xf0] }
 0x9dd   : > { %5016 = vst.msk [vmem:[#allocation5 + $0x70] sm:$0xf] %vm1730_vm4, %v11223_v31  ;;  %v6929_v1 = vsel %vm457_vm2, %v7679_v5, 0 }
 0x9de   : > { %5018 = vst.msk [vmem:[#allocation5 + $0x80] sm:$0xf] %vm1730_vm4, %v11156_v63 }
 0x9df   : > { %5003 = vst.msk [vmem:[#allocation5 + $0x8] sm:$0xf] %vm1730_vm4, %v4971_v61  ;;  %v11274_v61 = vpack.c.bf16 %v5504_v17, %v5504_v17 }
 0x9e0   : > { %6281 = vrot.lane.b32.xlu1 %v6202_v33, %s8039_s16  ;;  %5227 = vst.msk [vmem:[#allocation5 + $0x8] sm:$0xf] %vm1955_vm6, %v5133_v47  ;;  %v4958_v47 = vld [vmem:[#allocation3 + $0xf0] sm:$0xff] }
 0x9e1   : > { %6505 = vrot.lane.b32.xlu0 %v11125_v44, %s12101_s14  ;;  %5019 = vst.msk [vmem:[#allocation5 + $0x88] sm:$0xf] %vm1730_vm4, %v11179_v46  ;;  %v6908_v44 = vsel %vm457_vm2, %v7623_v2, 0  ;;  %v5501_v2 = vld [vmem:[#allocation3 + $0xf8] sm:$0xff] }
 0x9e2   : > { %6503 = vrot.lane.b32.xlu2 %v11127_v27, %s12101_s14  ;;  %6996 = vmatpush.bf16.xpose.msrb.mxu2 %v6932_v55  ;;  %5021 = vst.msk [vmem:[#allocation5 + $0x98] sm:$0xf] %vm1730_vm4, %v6202_v33  ;;  %v11262_v27 = vpack.c.bf16 %v4964_v3, %v4964_v3  ;;  %v7615_v33 = vor.u32 %v7791_v20, %v7612_v8  ;;  %v11291_v3 = vpop.permute.xlu2 %6535  ;;  %v7789_v20 = vld [vmem:[#allocation5 + $0x4] sm:$0xf] }
 0x9e3   : > { %6968 = vmatpush.bf16.xpose.msra.mxu1 %v6908_v44  ;;  %5033 = vst.msk [vmem:[#allocation5 + $0xf8] sm:$0xf] %vm1730_vm4, %v11242_v13  ;;  %v11295_v55 = vpack.c.bf16 %v4958_v47, %v4958_v47  ;;  %v11300_v44 = vpack.c.bf16 %v5501_v2, %v5501_v2  ;;  %v7671_v8 = vor.u32 %v7805_v51, %v7668_v35  ;;  %v5065_v47 = vld [vmem:[#allocation3 + $0x171] sm:$0xff] }
 0x9e4   : > { %5032 = vst.msk [vmem:[#allocation5 + $0xf0] sm:$0xf] %vm1730_vm4, %v11247_v38  ;;  %v6905_v30 = vsel %vm457_vm2, %v7615_v33, 0  ;;  %v7607_v17 = vor.u32 %v7789_v20, %v7604_v26  ;;  %v11319_v2 = vpack.c.bf16 %v5064_v12, %v5064_v12  ;;  %v5512_v20 = vld [vmem:[#allocation3 + $0x180] sm:$0xff] }
 0x9e5   : > { %5030 = vst.msk [vmem:[#allocation5 + $0xe0] sm:$0xf] %vm1730_vm4, %v11254_v25  ;;  %v6926_v14 = vsel %vm457_vm2, %v7671_v8, 0  ;;  %v11341_v26 = vpack.c.bf16 %v5512_v20, %v5512_v20  ;;  %v5736_v12 = vld [vmem:[#allocation3 + $0x181] sm:$0xff] }
 0x9e6   : > { %5031 = vst.msk [vmem:[#allocation5 + $0xe8] sm:$0xf] %vm1730_vm4, %v11258_v49  ;;  %v6902_v5 = vsel %vm457_vm2, %v7607_v17, 0  ;;  %v5513_v17 = vld [vmem:[#allocation3 + $0x188] sm:$0xff] }
 0x9e7   : > { %5028 = vst.msk [vmem:[#allocation5 + $0xd0] sm:$0xf] %vm1730_vm4, %v11262_v27 }
 0x9e8   : > { %5378 = vrot.lane.b32.xlu1 %v11091_v24, %s8047_s24  ;;  %5029 = vst.msk [vmem:[#allocation5 + $0xd8] sm:$0xf] %vm1730_vm4, %v11266_v18 }
 0x9e9   : > { %5602 = vrot.lane.b32.xlu0 %v11223_v31, %s8043_s19  ;;  %5027 = vst.msk [vmem:[#allocation5 + $0xc8] sm:$0xf] %vm1730_vm4, %v11270_v11 }
 0x9ea   : > { %5380 = vrot.lane.b32.xlu2 %v11098_v22, %s8047_s24  ;;  %6997 = vmatpush.bf16.xpose.msrb.mxu2 %v6929_v1  ;;  %5026 = vst.msk [vmem:[#allocation5 + $0xc0] sm:$0xf] %vm1730_vm4, %v11274_v61  ;;  %v11321_v1 = vpack.c.bf16 %v5065_v47, %v5065_v47  ;;  %v5737_v47 = vld [vmem:[#allocation3 + $0x189] sm:$0xff] }
 0x9eb   : > { %6969 = vmatpush.bf16.xpose.msra.mxu1 %v6905_v30  ;;  %5024 = vst.msk [vmem:[#allocation5 + $0xb0] sm:$0xf] %vm1730_vm4, %v11280_v37 }
 0x9ec   : > { %5025 = vst.msk [vmem:[#allocation5 + $0xb8] sm:$0xf] %vm1730_vm4, %v11286_v15 }
 0x9ed   : > { %5022 = vst.msk [vmem:[#allocation5 + $0xa0] sm:$0xf] %vm1730_vm4, %v11295_v55 }
 0x9ee   : > { %5023 = vst.msk [vmem:[#allocation5 + $0xa8] sm:$0xf] %vm1730_vm4, %v11300_v44  ;;  %v11336_v35 = vpop.permute.xlu0 %6537  ;;  %vm12112_vm4 = vcmask 519552  }
 0x9ef   : > { %v11332_v30 = vpop.permute.xlu1 %6311  ;;  %vm12114_vm12 = vmmov %vm12112_vm4 }
 0x9f0   : > { %5604 = vrot.lane.b32.xlu1 %v11185_v40, %s8043_s19  ;;  %vm12122_vm15 = vmmov %vm12112_vm4 }
 0x9f1   : > { %5828 = vrot.lane.b32.xlu0 %v11087_v7, %s8045_s15  ;;  %vm12124_vm11 = vmmov %vm12112_vm4 }
 0x9f2   : > { %5826 = vrot.lane.b32.xlu2 %v11077_v62, %s8045_s15  ;;  %6998 = vmatpush.bf16.xpose.msrb.mxu2 %v6926_v14  ;;  %v5137_v33 = vpop.permute.xlu2 %5136 }
 0x9f3   : > { %6970 = vmatpush.bf16.xpose.msra.mxu1 %v6902_v5  ;;  %5229 = vst.msk [vmem:[#allocation5 + $0x18] sm:$0xf] %vm1955_vm6, %v5137_v33  ;;  %v11352_v5 = vpack.c.bf16 %v5513_v17, %v5513_v17 }
 0x9f8   : > { %5190 = vrot.lane.b32.xlu1 %v11319_v2, %s8049_s17 }
 0x9f9   : > { %6050 = vrot.lane.b32.xlu0 %v11048_v10, %s8041_s20 }
 0x9fa   : > { %5192 = vrot.lane.b32.xlu2 %v11321_v1, %s8049_s17 }
 0x9fc   : > { %v5143_v51 = vpop.permute.xlu2 %5142 }
 0x9fd   : > { %5232 = vst.msk [vmem:[#allocation5 + $0x30] sm:$0xf] %vm1955_vm6, %v5143_v51  ;;  %v11363_v51 = vpack.c.bf16 %v5736_v12, %v5736_v12 }
 0xa00   : > { %6052 = vrot.lane.b32.xlu1 %v11071_v57, %s8041_s20 }
 0xa01   : > { %5416 = vrot.lane.b32.xlu0 %v11061_v23, %s8047_s24 }
 0xa02   : > { %5414 = vrot.lane.b32.xlu2 %v11059_v36, %s8047_s24 }
 0xa04   : > { %v5149_v10 = vpop.permute.xlu2 %5148 }
 0xa05   : > { %5235 = vst.msk [vmem:[#allocation5 + $0x48] sm:$0xf] %vm1955_vm6, %v5149_v10  ;;  %v11365_v10 = vpack.c.bf16 %v5737_v47, %v5737_v47 }
 0xa08   : > { %6275 = vrot.lane.b32.xlu1 %v11156_v63, %s8039_s16  ;;  %v5135_v57 = vpop.permute.xlu1 %5134 }
 0xa09   : > { %5638 = vrot.lane.b32.xlu0 %v11341_v26, %s8043_s19  ;;  %5228 = vst.msk [vmem:[#allocation5 + $0x10] sm:$0xf] %vm1955_vm6, %v5135_v57  ;;  %v5139_v8 = vpop.permute.xlu0 %5138 }
 0xa0a   : > { %6277 = vrot.lane.b32.xlu2 %v11179_v46, %s8039_s16  ;;  %5230 = vst.msk [vmem:[#allocation5 + $0x20] sm:$0xf] %vm1955_vm6, %v5139_v8 }
 0xa0c   : > { %v5155_v14 = vpop.permute.xlu2 %5154 }
 0xa0d   : > { %5238 = vst.msk [vmem:[#allocation5 + $0x60] sm:$0xf] %vm1955_vm6, %v5155_v14 }
 0xa10   : > { %5640 = vrot.lane.b32.xlu1 %v11352_v5, %s8043_s19 }
 0xa11   : > { %6501 = vrot.lane.b32.xlu0 %v11121_v43, %s12101_s14 }
 0xa12   : > { %6499 = vrot.lane.b32.xlu2 %v11083_v28, %s12101_s14  ;;  %v5141_v63 = vpop.permute.xlu1 %5140 }
 0xa13   : > { %5231 = vst.msk [vmem:[#allocation5 + $0x28] sm:$0xf] %vm1955_vm6, %v5141_v63  ;;  %v5145_v46 = vpop.permute.xlu0 %5144  ;;  %v5062_v63 = vld [vmem:[#allocation3 + $0x151] sm:$0xff] }
 0xa14   : > { %v5161_v33 = vpop.permute.xlu2 %5160  ;;  %5233 = vst.msk [vmem:[#allocation5 + $0x38] sm:$0xf] %vm1955_vm6, %v5145_v46  ;;  %v11393_v46 = vpack.c.bf16 %v5062_v63, %v5062_v63 }
 0xa15   : > { %5241 = vst.msk [vmem:[#allocation5 + $0x78] sm:$0xf] %vm1955_vm6, %v5161_v33  ;;  %v5063_v33 = vld [vmem:[#allocation3 + $0x159] sm:$0xff] }
 0xa18   : > { %5862 = vrot.lane.b32.xlu1 %v11363_v51, %s8045_s15 }
 0xa19   : > { %6086 = vrot.lane.b32.xlu0 %v11065_v29, %s8041_s20 }
 0xa1a   : > { %5864 = vrot.lane.b32.xlu2 %v11365_v10, %s8045_s15  ;;  %v5147_v28 = vpop.permute.xlu1 %5146 }
 0xa1b   : > { %5234 = vst.msk [vmem:[#allocation5 + $0x40] sm:$0xf] %vm1955_vm6, %v5147_v28  ;;  %v5151_v43 = vpop.permute.xlu0 %5150  ;;  %v11403_v28 = vpack.c.bf16 %v5063_v33, %v5063_v33  ;;  %v5060_v33 = vld [vmem:[#allocation3 + $0x139] sm:$0xff] }
 0xa1c   : > { %v5167_v20 = vpop.permute.xlu2 %5166  ;;  %5236 = vst.msk [vmem:[#allocation5 + $0x50] sm:$0xf] %vm1955_vm6, %v5151_v43 }
 0xa1d   : > { %5244 = vst.msk [vmem:[#allocation5 + $0x90] sm:$0xf] %vm1955_vm6, %v5167_v20 }
 0xa20   : > { %6088 = vrot.lane.b32.xlu1 %v11067_v9, %s8041_s20 }
 0xa21   : > { %5376 = vrot.lane.b32.xlu0 %v11117_v50, %s8047_s24 }
 0xa22   : > { %5374 = vrot.lane.b32.xlu2 %v11113_v45, %s8047_s24  ;;  %v5153_v29 = vpop.permute.xlu1 %5152 }
 0xa23   : > { %5237 = vst.msk [vmem:[#allocation5 + $0x58] sm:$0xf] %vm1955_vm6, %v5153_v29  ;;  %v5157_v57 = vpop.permute.xlu0 %5156 }
 0xa24   : > { %v5385_v8 = vpop.permute.xlu2 %5384  ;;  %5239 = vst.msk [vmem:[#allocation5 + $0x68] sm:$0xf] %vm1955_vm6, %v5157_v57 }
 0xa25   : > { %5465 = vst.msk [vmem:[#allocation5 + $0x78] sm:$0xf] %vm2180_vm7, %v5385_v8 }
 0xa28   : > { %5600 = vrot.lane.b32.xlu1 %v11218_v54, %s8043_s19 }
 0xa29   : > { %5598 = vrot.lane.b32.xlu0 %v11177_v6, %s8043_s19 }
 0xa2a   : > { %5824 = vrot.lane.b32.xlu2 %v11041_v34, %s8045_s15  ;;  %v5159_v9 = vpop.permute.xlu1 %5158 }
 0xa2b   : > { %5240 = vst.msk [vmem:[#allocation5 + $0x70] sm:$0xf] %vm1955_vm6, %v5159_v9  ;;  %v5163_v17 = vpop.permute.xlu0 %5162 }
 0xa2c   : > { %v5831_v14 = vpop.permute.xlu2 %5830  ;;  %5242 = vst.msk [vmem:[#allocation5 + $0x80] sm:$0xf] %vm1955_vm6, %v5163_v17 }
 0xa30   : > { %5822 = vrot.lane.b32.xlu1 %v11044_v16, %s8045_s15 }
 0xa31   : > { %5186 = vrot.lane.b32.xlu0 %v11393_v46, %s8049_s17 }
 0xa32   : > { %6046 = vrot.lane.b32.xlu2 %v11091_v24, %s8041_s20  ;;  %v5165_v34 = vpop.permute.xlu1 %5164 }
 0xa33   : > { %5243 = vst.msk [vmem:[#allocation5 + $0x88] sm:$0xf] %vm1955_vm6, %v5165_v34  ;;  %v5169_v12 = vpop.permute.xlu0 %5168 }
 0xa34   : > { %v6057_v47 = vpop.permute.xlu2 %6056  ;;  %5245 = vst.msk [vmem:[#allocation5 + $0x98] sm:$0xf] %vm1955_vm6, %v5169_v12  ;;  %v5714_v12 = vld [vmem:[#allocation3 + $0x79] sm:$0xff] }
 0xa38   : > { %5188 = vrot.lane.b32.xlu1 %v11403_v28, %s8049_s17 }
 0xa39   : > { %6048 = vrot.lane.b32.xlu0 %v11098_v22, %s8041_s20 }
 0xa3a   : > { %5412 = vrot.lane.b32.xlu2 %v11081_v41, %s8047_s24  ;;  %v5383_v16 = vpop.permute.xlu1 %5382 }
 0xa3b   : > { %5464 = vst.msk [vmem:[#allocation5 + $0x70] sm:$0xf] %vm2180_vm7, %v5383_v16  ;;  %v5607_v24 = vpop.permute.xlu0 %5606 }
 0xa3c   : > { %v6504_v43 = vpop.permute.xlu2 %6503  ;;  %5688 = vst.msk [vmem:[#allocation5 + $0x70] sm:$0xf] %vm12112_vm4, %v5607_v24  ;;  %vm12125_vm4 = vmmov %vm12123_vm0 }
 0xa3d   : > { %5912 = vst.msk [vmem:[#allocation5 + $0x70] sm:$0xf] %vm12113_vm10, %v5831_v14  ;;  %vm12126_vm10 = vmmov %vm12117_vm1 }
 0xa40   : > { %5410 = vrot.lane.b32.xlu1 %v11075_v42, %s8047_s24 }
 0xa41   : > { %6271 = vrot.lane.b32.xlu0 %v11223_v31, %s8039_s16 }
 0xa42   : > { %5634 = vrot.lane.b32.xlu2 %v11247_v38, %s8043_s19  ;;  %v5609_v22 = vpop.permute.xlu1 %5608 }
 0xa43   : > { %5689 = vst.msk [vmem:[#allocation5 + $0x78] sm:$0xf] %vm12114_vm12, %v5609_v22  ;;  %v5833_v41 = vpop.permute.xlu0 %5832  ;;  %vm12127_vm12 = vmmov %vm12117_vm1 }
 0xa44   : > { %v5381_v20 = vpop.permute.xlu2 %5380  ;;  %5913 = vst.msk [vmem:[#allocation5 + $0x78] sm:$0xf] %vm12115_vm8, %v5833_v41  ;;  %vm12128_vm8 = vmmov %vm12118_vm5 }
 0xa45   : > { %5463 = vst.msk [vmem:[#allocation5 + $0x68] sm:$0xf] %vm2180_vm7, %v5381_v20 }
 0xa46   : > { %6137 = vst.msk [vmem:[#allocation5 + $0x78] sm:$0xf] %vm12116_vm9, %v6057_v47  ;;  %v11468_v47 = vpack.c.bf16 %v5714_v12, %v5714_v12  ;;  %vm12129_vm9 = vmmov %vm12118_vm5 }
 0xa48   : > { %6273 = vrot.lane.b32.xlu1 %v11185_v40, %s8039_s16 }
 0xa49   : > { %5636 = vrot.lane.b32.xlu0 %v11242_v13, %s8043_s19 }
 0xa4a   : > { %6497 = vrot.lane.b32.xlu2 %v11087_v7, %s12101_s14  ;;  %v6055_v42 = vpop.permute.xlu1 %6054 }
 0xa4b   : > { %6136 = vst.msk [vmem:[#allocation5 + $0x70] sm:$0xf] %vm12117_vm1, %v6055_v42  ;;  %v6280_v31 = vpop.permute.xlu0 %6279  ;;  %vm12130_vm1 = vmmov %vm12119_vm3 }
 0xa4c   : > { %v5827_v29 = vpop.permute.xlu2 %5826  ;;  %6361 = vst.msk [vmem:[#allocation5 + $0x70] sm:$0xf] %vm12118_vm5, %v6280_v31  ;;  %vm12131_vm5 = vmmov %vm12124_vm11 }
 0xa4d   : > { %6585 = vst.msk [vmem:[#allocation5 + $0x70] sm:$0xf] %vm12119_vm3, %v6504_v43  ;;  %v5061_v43 = vld [vmem:[#allocation3 + $0x141] sm:$0xff]  ;;  %vm12132_vm3 = vmmov %vm12131_vm5 }
 0xa4e   : > { %v11481_v22 = vpack.c.bf16 %v5061_v43, %v5061_v43 }
 0xa50   : > { %6495 = vrot.lane.b32.xlu1 %v11077_v62, %s12101_s14 }
 0xa51   : > { %5858 = vrot.lane.b32.xlu0 %v11319_v2, %s8045_s15 }
 0xa52   : > { %6082 = vrot.lane.b32.xlu2 %v11059_v36, %s8041_s20  ;;  %v6282_v40 = vpop.permute.xlu1 %6281 }
 0xa53   : > { %6362 = vst.msk [vmem:[#allocation5 + $0x78] sm:$0xf] %vm12120_vm13, %v6282_v40  ;;  %v6506_v7 = vpop.permute.xlu0 %6505  ;;  %vm12133_vm13 = vmmov %vm12123_vm0 }
 0xa54   : > { %v5193_v57 = vpop.permute.xlu2 %5192  ;;  %6586 = vst.msk [vmem:[#allocation5 + $0x78] sm:$0xf] %vm12121_vm14, %v6506_v7  ;;  %v7658_v8 = vld [vmem:[#allocation5 + $0x70] sm:$0xf]  ;;  %vm12134_vm14 = vmmov %vm12130_vm1 }
 0xa55   : > { %5257 = vst.msk [vmem:[#allocation5 + $0xf8] sm:$0xf] %vm1955_vm6, %v5193_v57 }
 0xa58   : > { %5860 = vrot.lane.b32.xlu1 %v11321_v1, %s8045_s15 }
 0xa59   : > { %6084 = vrot.lane.b32.xlu0 %v11061_v23, %s8041_s20 }
 0xa5a   : > { %5372 = vrot.lane.b32.xlu2 %v11139_v58, %s8047_s24  ;;  %v5379_v62 = vpop.permute.xlu1 %5378 }
 0xa5b   : > { %5462 = vst.msk [vmem:[#allocation5 + $0x60] sm:$0xf] %vm2180_vm7, %v5379_v62  ;;  %v5603_v36 = vpop.permute.xlu0 %5602  ;;  %v7804_v9 = vld [vmem:[#allocation5 + $0x74] sm:$0xf0]  ;;  %v6388_v62 = vld [vmem:[#allocation3 + $0x99] sm:$0xff] }
 0xa5c   : > { %v5415_v17 = vpop.permute.xlu2 %5414  ;;  %5686 = vst.msk [vmem:[#allocation5 + $0x60] sm:$0xf] %vm12122_vm15, %v5603_v36  ;;  %v7659_v14 = vor.u32 %v7804_v9, %v7658_v8  ;;  %vm12135_vm15 = vmmov %vm12123_vm0  ;;  %v6420_v36 = vpack.c.bf16 %v6388_v62, %v6388_v62 }
 0xa5d   : > { %5910 = vst.msk [vmem:[#allocation5 + $0x60] sm:$0xf] %vm12123_vm0, %v5827_v29  ;;  %vm12136_vm0 = vmmov %vm12126_vm10 }
 0xa5e   : > { %6949 = vmatpush.bf16.xpose.msrb.mxu3 %v7659_v14 }
 0xa60   : > { %5370 = vrot.lane.b32.xlu1 %v11133_v56, %s8047_s24 }
 0xa61   : > { %6307 = vrot.lane.b32.xlu0 %v11341_v26, %s8039_s16 }
 0xa62   : > { %5594 = vrot.lane.b32.xlu2 %v11208_v60, %s8043_s19  ;;  %v5605_v23 = vpop.permute.xlu1 %5604 }
 0xa63   : > { %5687 = vst.msk [vmem:[#allocation5 + $0x68] sm:$0xf] %vm12124_vm11, %v5605_v23  ;;  %v5829_v58 = vpop.permute.xlu0 %5828  ;;  %vm12137_vm11 = vmmov %vm12128_vm8 }
 0xa64   : > { %v6278_v63 = vpop.permute.xlu2 %6277  ;;  %5911 = vst.msk [vmem:[#allocation5 + $0x68] sm:$0xf] %vm12125_vm4, %v5829_v58  ;;  %vm12138_vm4 = vmmov %vm12130_vm1 }
 0xa68   : > { %6309 = vrot.lane.b32.xlu1 %v11352_v5, %s8039_s16  ;;  %v11470_v5 = vpack.c.bf16 %v5060_v33, %v5060_v33  ;;  %v5712_v33 = vld [vmem:[#allocation3 + $0x61] sm:$0xff] }
 0xa69   : > { %5596 = vrot.lane.b32.xlu0 %v11214_v53, %s8043_s19 }
 0xa6a   : > { %6533 = vrot.lane.b32.xlu2 %v11365_v10, %s12101_s14  ;;  %v5191_v56 = vpop.permute.xlu1 %5190 }
 0xa6b   : > { %5256 = vst.msk [vmem:[#allocation5 + $0xf0] sm:$0xf] %vm1955_vm6, %v5191_v56  ;;  %v6051_v26 = vpop.permute.xlu0 %6050 }
 0xa6c   : > { %v6500_v34 = vpop.permute.xlu2 %6499  ;;  %5480 = vst.msk [vmem:[#allocation5 + $0xf0] sm:$0xf] %vm2180_vm7, %v5415_v17 }
 0xa6d   : > { %6134 = vst.msk [vmem:[#allocation5 + $0x60] sm:$0xf] %vm12126_vm10, %v6051_v26  ;;  %vm12139_vm10 = vmmov %vm12136_vm0 }
 0xa70   : > { %6531 = vrot.lane.b32.xlu1 %v11363_v51, %s12101_s14 }
 0xa71   : > { %5818 = vrot.lane.b32.xlu0 %v11468_v47, %s8045_s15 }
 0xa72   : > { %5182 = vrot.lane.b32.xlu2 %v11470_v5, %s8049_s17  ;;  %v6053_v10 = vpop.permute.xlu1 %6052 }
 0xa73   : > { %6135 = vst.msk [vmem:[#allocation5 + $0x68] sm:$0xf] %vm12127_vm12, %v6053_v10  ;;  %v5417_v16 = vpop.permute.xlu0 %5416  ;;  %vm12140_vm12 = vmmov %vm12128_vm8  ;;  %v11549_v10 = vpack.c.bf16 %v5712_v33, %v5712_v33 }
 0xa74   : > { %v5865_v24 = vpop.permute.xlu2 %5864  ;;  %6360 = vst.msk [vmem:[#allocation5 + $0x68] sm:$0xf] %vm12128_vm8, %v6278_v63  ;;  %vm12141_vm8 = vmmov %vm12130_vm1 }
 0xa75   : > { %5481 = vst.msk [vmem:[#allocation5 + $0xf8] sm:$0xf] %vm2180_vm7, %v5417_v16  ;;  %v5713_v16 = vld [vmem:[#allocation3 + $0x69] sm:$0xff] }
 0xa78   : > { %5820 = vrot.lane.b32.xlu1 %v11036_v4, %s8045_s15 }
 0xa79   : > { %5184 = vrot.lane.b32.xlu0 %v11481_v22, %s8049_s17 }
 0xa7a   : > { %6044 = vrot.lane.b32.xlu2 %v11117_v50, %s8041_s20  ;;  %v6276_v51 = vpop.permute.xlu1 %6275 }
 0xa7b   : > { %6359 = vst.msk [vmem:[#allocation5 + $0x60] sm:$0xf] %vm12129_vm9, %v6276_v51  ;;  %v5639_v41 = vpop.permute.xlu0 %5638  ;;  %vm12142_vm9 = vmmov %vm12132_vm3 }
 0xa7c   : > { %v5375_v20 = vpop.permute.xlu2 %5374  ;;  %6583 = vst.msk [vmem:[#allocation5 + $0x60] sm:$0xf] %vm12130_vm1, %v6500_v34  ;;  %vm12143_vm1 = vmmov %vm12133_vm13 }
 0xa7d   : > { %5460 = vst.msk [vmem:[#allocation5 + $0x50] sm:$0xf] %vm2180_vm7, %v5375_v20 }
 0xa7e   : > { %5704 = vst.msk [vmem:[#allocation5 + $0xf0] sm:$0xf] %vm12131_vm5, %v5639_v41  ;;  %vm12144_vm5 = vmmov %vm12132_vm3  ;;  %v5058_v41 = vld [vmem:[#allocation3 + $0x121] sm:$0xff] }
 0xa80   : > { %6042 = vrot.lane.b32.xlu1 %v11113_v45, %s8041_s20 }
 0xa81   : > { %5406 = vrot.lane.b32.xlu0 %v11104_v39, %s8047_s24 }
 0xa82   : > { %6267 = vrot.lane.b32.xlu2 %v11177_v6, %s8039_s16  ;;  %v5641_v4 = vpop.permute.xlu1 %5640  ;;  %v6387_v6 = vld [vmem:[#allocation3 + $0x91] sm:$0xff] }
 0xa83   : > { %5705 = vst.msk [vmem:[#allocation5 + $0xf8] sm:$0xf] %vm12132_vm3, %v5641_v4  ;;  %v6502_v50 = vpop.permute.xlu0 %6501  ;;  %v7650_v29 = vld [vmem:[#allocation5 + $0x60] sm:$0xf]  ;;  %vm12145_vm3 = vmmov %vm12143_vm1  ;;  %v5936_v4 = vld [vmem:[#allocation3 + $0x62] sm:$0xff] }
 0xa84   : > { %v5825_v42 = vpop.permute.xlu2 %5824  ;;  %5929 = vst.msk [vmem:[#allocation5 + $0xf8] sm:$0xf] %vm12133_vm13, %v5865_v24  ;;  %vm12146_vm13 = vmmov %vm12136_vm0  ;;  %v5059_v24 = vld [vmem:[#allocation3 + $0x129] sm:$0xff] }
 0xa85   : > { %6584 = vst.msk [vmem:[#allocation5 + $0x68] sm:$0xf] %vm12134_vm14, %v6502_v50  ;;  %vm12147_vm14 = vmmov %vm12136_vm0  ;;  %v11563_v43 = vpack.c.bf16 %v5059_v24, %v5059_v24  ;;  %v5282_v50 = vld [vmem:[#allocation3 + $0x122] sm:$0xff] }
 0xa88   : > { %5408 = vrot.lane.b32.xlu1 %v11109_v59, %s8047_s24 }
 0xa89   : > { %6269 = vrot.lane.b32.xlu0 %v11218_v54, %s8039_s16  ;;  %v6419_v54 = vpack.c.bf16 %v6387_v6, %v6387_v6 }
 0xa8a   : > { %5632 = vrot.lane.b32.xlu2 %v11258_v49, %s8043_s19  ;;  %v5863_v39 = vpop.permute.xlu1 %5862 }
 0xa8b   : > { %5928 = vst.msk [vmem:[#allocation5 + $0xf0] sm:$0xf] %vm12135_vm15, %v5863_v39  ;;  %v6087_v45 = vpop.permute.xlu0 %6086  ;;  %vm12148_vm15 = vmmov %vm12144_vm5  ;;  %v11576_v39 = vpack.c.bf16 %v5282_v50, %v5282_v50  ;;  %v5711_v50 = vld [vmem:[#allocation3 + $0x51] sm:$0xff] }
 0xa8c   : > { %v6047_v31 = vpop.permute.xlu2 %6046  ;;  %6152 = vst.msk [vmem:[#allocation5 + $0xf0] sm:$0xf] %vm12136_vm0, %v6087_v45  ;;  %v7802_v40 = vld [vmem:[#allocation5 + $0x64] sm:$0xf0]  ;;  %vm12149_vm0 = vmmov %vm12137_vm11 }
 0xa8d   : > { %6377 = vst.msk [vmem:[#allocation5 + $0xf0] sm:$0xf] %vm12137_vm11, %v11332_v30  ;;  %v7651_v59 = vor.u32 %v7802_v40, %v7650_v29  ;;  %vm12150_vm11 = vmmov %vm12149_vm0  ;;  %v5283_v40 = vld [vmem:[#allocation3 + $0x12a] sm:$0xff] }
 0xa8e   : > { %6601 = vst.msk [vmem:[#allocation5 + $0xf0] sm:$0xf] %vm12138_vm4, %v11291_v3  ;;  %v5957_v3 = vld [vmem:[#allocation3 + $0x15a] sm:$0xff] }
 0xa8f   : > { %6950 = vmatpush.bf16.xpose.msrb.mxu3 %v7651_v59  ;;  %v5989_v8 = vpack.c.bf16 %v5957_v3, %v5957_v3 }
 0xa90   : > { %5630 = vrot.lane.b32.xlu1 %v11254_v25, %s8043_s19 }
 0xa91   : > { %6491 = vrot.lane.b32.xlu0 %v6419_v54, %s12101_s14  ;;  %v11586_v54 = vpack.c.bf16 %v5283_v40, %v5283_v40 }
 0xa92   : > { %5854 = vrot.lane.b32.xlu2 %v11393_v46, %s8045_s15  ;;  %v6089_v7 = vpop.permute.xlu1 %6088 }
 0xa93   : > { %6153 = vst.msk [vmem:[#allocation5 + $0xf8] sm:$0xf] %vm12139_vm10, %v6089_v7  ;;  %v5377_v57 = vpop.permute.xlu0 %5376  ;;  %vm12151_vm10 = vmmov %vm12144_vm5 }
 0xa94   : > { %v5413_v30 = vpop.permute.xlu2 %5412  ;;  %6378 = vst.msk [vmem:[#allocation5 + $0xf8] sm:$0xf] %vm12140_vm12, %v11239_v32  ;;  %v5956_v32 = vld [vmem:[#allocation3 + $0x152] sm:$0xff]  ;;  %vm12152_vm12 = vmmov %vm12138_vm4 }
 0xa95   : > { %6602 = vst.msk [vmem:[#allocation5 + $0xf8] sm:$0xf] %vm12141_vm8, %v11336_v35  ;;  %v7722_v35 = vld [vmem:[#allocation5 + $0xf0] sm:$0xf]  ;;  %v5988_v63 = vpack.c.bf16 %v5956_v32, %v5956_v32  ;;  %vm12153_vm8 = vmmov %vm12143_vm1 }
 0xa96   : > { %5461 = vst.msk [vmem:[#allocation5 + $0x58] sm:$0xf] %vm2180_vm7, %v5377_v57 }
 0xa98   : > { %6493 = vrot.lane.b32.xlu1 %v6420_v36, %s12101_s14 }
 0xa99   : > { %5856 = vrot.lane.b32.xlu0 %v11403_v28, %s8045_s15 }
 0xa9a   : > { %6080 = vrot.lane.b32.xlu2 %v5989_v8, %s8041_s20  ;;  %v5601_v9 = vpop.permute.xlu1 %5600 }
 0xa9b   : > { %5685 = vst.msk [vmem:[#allocation5 + $0x58] sm:$0xf] %vm12142_vm9, %v5601_v9  ;;  %v5599_v17 = vpop.permute.xlu0 %5598  ;;  %vm12154_vm9 = vmmov %vm12146_vm13 }
 0xa9c   : > { %v5635_v14 = vpop.permute.xlu2 %5634  ;;  %5909 = vst.msk [vmem:[#allocation5 + $0x58] sm:$0xf] %vm12143_vm1, %v5825_v42  ;;  %v7820_v23 = vld [vmem:[#allocation5 + $0xf4] sm:$0xf0]  ;;  %v11574_v42 = vpack.c.bf16 %v5058_v41, %v5058_v41 }
 0xa9d   : > { %5684 = vst.msk [vmem:[#allocation5 + $0x50] sm:$0xf] %vm12144_vm5, %v5599_v17  ;;  %v7723_v58 = vor.u32 %v7820_v23, %v7722_v35  ;;  %vm12155_vm5 = vmmov %vm12154_vm9  ;;  %v6386_v17 = vld [vmem:[#allocation3 + $0x81] sm:$0xff]  ;;  %v5262_v23 = vld [vmem:[#allocation3 + $0x32] sm:$0xff] }
 0xa9e   : > { %v6418_v32 = vpack.c.bf16 %v6386_v17, %v6386_v17  ;;  %v5954_v35 = vld [vmem:[#allocation3 + $0x13a] sm:$0xff] }
 0xa9f   : > { %6977 = vmatpush.bf16.xpose.msra.mxu0 %v7723_v58  ;;  %v5986_v58 = vpack.c.bf16 %v5954_v35, %v5954_v35 }
 0xaa0   : > { %6078 = vrot.lane.b32.xlu1 %v5988_v63, %s8041_s20  ;;  %v11613_v63 = vpack.c.bf16 %v5262_v23, %v5262_v23 }
 0xaa1   : > { %5366 = vrot.lane.b32.xlu0 %v11149_v21, %s8047_s24 }
 0xaa2   : > { %6303 = vrot.lane.b32.xlu2 %v11247_v38, %s8039_s16  ;;  %v5823_v56 = vpop.permute.xlu1 %5822 }
 0xaa3   : > { %5908 = vst.msk [vmem:[#allocation5 + $0x50] sm:$0xf] %vm12145_vm3, %v5823_v56  ;;  %v5187_v26 = vpop.permute.xlu0 %5186  ;;  %vm12156_vm3 = vmmov %vm12151_vm10 }
 0xaa4   : > { %v6498_v34 = vpop.permute.xlu2 %6497  ;;  %6132 = vst.msk [vmem:[#allocation5 + $0x50] sm:$0xf] %vm12146_vm13, %v6047_v31  ;;  %v5937_v31 = vld [vmem:[#allocation3 + $0x6a] sm:$0xff]  ;;  %vm12157_vm13 = vmmov %vm12149_vm0 }
 0xaa5   : > { %5254 = vst.msk [vmem:[#allocation5 + $0xe0] sm:$0xf] %vm1955_vm6, %v5187_v26  ;;  %v5969_v59 = vpack.c.bf16 %v5937_v31, %v5937_v31  ;;  %v5056_v31 = vld [vmem:[#allocation3 + $0x109] sm:$0xff] }
 0xaa8   : > { %5368 = vrot.lane.b32.xlu1 %v11153_v52, %s8047_s24 }
 0xaa9   : > { %6305 = vrot.lane.b32.xlu0 %v11242_v13, %s8039_s16 }
 0xaaa   : > { %5592 = vrot.lane.b32.xlu2 %v11174_v0, %s8043_s19  ;;  %v5189_v21 = vpop.permute.xlu1 %5188 }
 0xaab   : > { %5255 = vst.msk [vmem:[#allocation5 + $0xe8] sm:$0xf] %vm1955_vm6, %v5189_v21  ;;  %v6049_v38 = vpop.permute.xlu0 %6048 }
 0xaac   : > { %v6083_v12 = vpop.permute.xlu2 %6082  ;;  %5479 = vst.msk [vmem:[#allocation5 + $0xe8] sm:$0xf] %vm2180_vm7, %v5413_v30 }
 0xaad   : > { %6133 = vst.msk [vmem:[#allocation5 + $0x58] sm:$0xf] %vm12147_vm14, %v6049_v38  ;;  %vm12158_vm14 = vmmov %vm12149_vm0  ;;  %v5263_v38 = vld [vmem:[#allocation3 + $0x3a] sm:$0xff] }
 0xaae   : > { %v11622_v33 = vpack.c.bf16 %v5263_v38, %v5263_v38 }
 0xab0   : > { %5590 = vrot.lane.b32.xlu1 %v11205_v48, %s8043_s19  ;;  %v11561_v48 = vpack.c.bf16 %v5713_v16, %v5713_v16 }
 0xab1   : > { %6527 = vrot.lane.b32.xlu0 %v11319_v2, %s12101_s14 }
 0xab2   : > { %5814 = vrot.lane.b32.xlu2 %v11549_v10, %s8045_s15  ;;  %v5411_v52 = vpop.permute.xlu1 %5410 }
 0xab3   : > { %5478 = vst.msk [vmem:[#allocation5 + $0xe0] sm:$0xf] %vm2180_vm7, %v5411_v52  ;;  %v6272_v0 = vpop.permute.xlu0 %6271 }
 0xab4   : > { %v5373_v13 = vpop.permute.xlu2 %5372  ;;  %5702 = vst.msk [vmem:[#allocation5 + $0xe0] sm:$0xf] %vm12148_vm15, %v5635_v14  ;;  %vm12159_vm15 = vmmov %vm12138_vm4 }
 0xab5   : > { %5459 = vst.msk [vmem:[#allocation5 + $0x48] sm:$0xf] %vm2180_vm7, %v5373_v13 }
 0xab6   : > { %6357 = vst.msk [vmem:[#allocation5 + $0x50] sm:$0xf] %vm12149_vm0, %v6272_v0  ;;  %vm12160_vm0 = vmmov %vm12156_vm3 }
 0xab8   : > { %6529 = vrot.lane.b32.xlu1 %v11321_v1, %s12101_s14  ;;  %v5968_v1 = vpack.c.bf16 %v5936_v4, %v5936_v4 }
 0xab9   : > { %5816 = vrot.lane.b32.xlu0 %v11561_v48, %s8045_s15 }
 0xaba   : > { %5180 = vrot.lane.b32.xlu2 %v11563_v43, %s8049_s17  ;;  %v6274_v2 = vpop.permute.xlu1 %6273 }
 0xabb   : > { %6358 = vst.msk [vmem:[#allocation5 + $0x58] sm:$0xf] %vm12150_vm11, %v6274_v2  ;;  %v5637_v51 = vpop.permute.xlu0 %5636  ;;  %vm12161_vm11 = vmmov %vm12138_vm4 }
 0xabc   : > { %v5595_v20 = vpop.permute.xlu2 %5594  ;;  %6582 = vst.msk [vmem:[#allocation5 + $0x58] sm:$0xf] %vm12138_vm4, %v6498_v34  ;;  %v5955_v34 = vld [vmem:[#allocation3 + $0x142] sm:$0xff]  ;;  %vm12162_vm4 = vmmov %vm12143_vm1 }
 0xabd   : > { %5703 = vst.msk [vmem:[#allocation5 + $0xe8] sm:$0xf] %vm12151_vm10, %v5637_v51  ;;  %vm12163_vm10 = vmmov %vm12143_vm1  ;;  %v5486_v51 = vld [vmem:[#allocation3 + $0x48] sm:$0xff] }
 0xabe   : > { %v11632_v41 = vpack.c.bf16 %v5486_v51, %v5486_v51 }
 0xac0   : > { %5178 = vrot.lane.b32.xlu1 %v11574_v42, %s8049_s17 }
 0xac1   : > { %6038 = vrot.lane.b32.xlu0 %v5968_v1, %s8041_s20  ;;  %v11643_v1 = vpack.c.bf16 %v5711_v50, %v5711_v50 }
 0xac2   : > { %5402 = vrot.lane.b32.xlu2 %v11576_v39, %s8047_s24  ;;  %v6496_v45 = vpop.permute.xlu1 %6495 }
 0xac3   : > { %6581 = vst.msk [vmem:[#allocation5 + $0x50] sm:$0xf] %vm12152_vm12, %v6496_v45  ;;  %v5859_v6 = vpop.permute.xlu0 %5858  ;;  %v7800_v62 = vld [vmem:[#allocation5 + $0x54] sm:$0xf0]  ;;  %vm12164_vm12 = vmmov %vm12155_vm5 }
 0xac4   : > { %v6534_v29 = vpop.permute.xlu2 %6533  ;;  %5926 = vst.msk [vmem:[#allocation5 + $0xe0] sm:$0xf] %vm12153_vm8, %v5859_v6  ;;  %vm12165_vm8 = vmmov %vm12155_vm5  ;;  %v5710_v45 = vld [vmem:[#allocation3 + $0x49] sm:$0xff] }
 0xac5   : > { %6150 = vst.msk [vmem:[#allocation5 + $0xe0] sm:$0xf] %vm12154_vm9, %v6083_v12  ;;  %v5987_v12 = vpack.c.bf16 %v5955_v34, %v5955_v34  ;;  %vm12166_vm9 = vmmov %vm12157_vm13  ;;  %v11654_v40 = vpack.c.bf16 %v5710_v45, %v5710_v45 }
 0xac8   : > { %6040 = vrot.lane.b32.xlu1 %v5969_v59, %s8041_s20 }
 0xac9   : > { %5404 = vrot.lane.b32.xlu0 %v11586_v54, %s8047_s24 }
 0xaca   : > { %6265 = vrot.lane.b32.xlu2 %v11214_v53, %s8039_s16  ;;  %v5861_v7 = vpop.permute.xlu1 %5860  ;;  %v7642_v57 = vld [vmem:[#allocation5 + $0x50] sm:$0xf] }
 0xacb   : > { %5927 = vst.msk [vmem:[#allocation5 + $0xe8] sm:$0xf] %vm12143_vm1, %v5861_v7  ;;  %v6085_v30 = vpop.permute.xlu0 %6084  ;;  %v7643_v3 = vor.u32 %v7800_v62, %v7642_v57  ;;  %vm12167_vm1 = vmmov %vm12160_vm0  ;;  %v5057_v57 = vld [vmem:[#allocation3 + $0x111] sm:$0xff] }
 0xacc   : > { %v5183_v36 = vpop.permute.xlu2 %5182  ;;  %6151 = vst.msk [vmem:[#allocation5 + $0xe8] sm:$0xf] %vm12155_vm5, %v6085_v30  ;;  %vm12168_vm5 = vmmov %vm12166_vm9  ;;  %v5935_v30 = vld [vmem:[#allocation3 + $0x52] sm:$0xff] }
 0xacd   : > { %5252 = vst.msk [vmem:[#allocation5 + $0xd0] sm:$0xf] %vm1955_vm6, %v5183_v36  ;;  %6951 = vmatpush.bf16.xpose.msrb.mxu3 %v7643_v3  ;;  %v5281_v3 = vld [vmem:[#allocation3 + $0x112] sm:$0xff]  ;;  %v11666_v36 = vpack.c.bf16 %v5057_v57, %v5057_v57 }
 0xad0   : > { %6263 = vrot.lane.b32.xlu1 %v11208_v60, %s8039_s16 }
 0xad1   : > { %5626 = vrot.lane.b32.xlu0 %v11262_v27, %s8043_s19 }
 0xad2   : > { %6487 = vrot.lane.b32.xlu2 %v11468_v47, %s12101_s14  ;;  %v5371_v53 = vpop.permute.xlu1 %5370 }
 0xad3   : > { %5458 = vst.msk [vmem:[#allocation5 + $0x40] sm:$0xf] %vm2180_vm7, %v5371_v53  ;;  %v6308_v8 = vpop.permute.xlu0 %6307  ;;  %v5967_v53 = vpack.c.bf16 %v5935_v30, %v5935_v30  ;;  %v5054_v30 = vld [vmem:[#allocation3 + $0xf1] sm:$0xff] }
 0xad4   : > { %v6045_v9 = vpop.permute.xlu2 %6044  ;;  %5682 = vst.msk [vmem:[#allocation5 + $0x40] sm:$0xf] %vm12156_vm3, %v5595_v20  ;;  %vm12169_vm3 = vmmov %vm12160_vm0 }
 0xad5   : > { %6375 = vst.msk [vmem:[#allocation5 + $0xe0] sm:$0xf] %vm12157_vm13, %v6308_v8  ;;  %vm12170_vm13 = vmmov %vm12162_vm4  ;;  %v11668_v8 = vpack.c.bf16 %v5281_v3, %v5281_v3  ;;  %v11743_v3 = vpack.c.bf16 %v5054_v30, %v5054_v30 }
 0xad8   : > { %5628 = vrot.lane.b32.xlu1 %v11266_v18, %s8043_s19 }
 0xad9   : > { %6489 = vrot.lane.b32.xlu0 %v6418_v32, %s12101_s14  ;;  %v5280_v32 = vld [vmem:[#allocation3 + $0x10a] sm:$0xff] }
 0xada   : > { %5852 = vrot.lane.b32.xlu2 %v11481_v22, %s8045_s15  ;;  %v6310_v60 = vpop.permute.xlu1 %6309 }
 0xadb   : > { %6376 = vst.msk [vmem:[#allocation5 + $0xe8] sm:$0xf] %vm12158_vm14, %v6310_v60  ;;  %v5597_v47 = vpop.permute.xlu0 %5596  ;;  %vm12171_vm14 = vmmov %vm12161_vm11 }
 0xadc   : > { %v6268_v14 = vpop.permute.xlu2 %6267  ;;  %6600 = vst.msk [vmem:[#allocation5 + $0xe8] sm:$0xf] %vm12159_vm15, %v6534_v29  ;;  %v5934_v29 = vld [vmem:[#allocation3 + $0x4a] sm:$0xff]  ;;  %vm12172_vm15 = vmmov %vm12161_vm11 }
 0xadd   : > { %5683 = vst.msk [vmem:[#allocation5 + $0x48] sm:$0xf] %vm12160_vm0, %v5597_v47  ;;  %vm12173_vm0 = vmmov %vm12162_vm4  ;;  %v6159_v47 = vld [vmem:[#allocation3 + $0x60] sm:$0xff] }
 0xade   : > { %v6191_v35 = vpack.c.bf16 %v6159_v47, %v6159_v47 }
 0xae0   : > { %5850 = vrot.lane.b32.xlu1 %v11470_v5, %s8045_s15 }
 0xae1   : > { %6074 = vrot.lane.b32.xlu0 %v5986_v58, %s8041_s20 }
 0xae2   : > { %5362 = vrot.lane.b32.xlu2 %v11613_v63, %s8047_s24  ;;  %v6532_v56 = vpop.permute.xlu1 %6531 }
 0xae3   : > { %6599 = vst.msk [vmem:[#allocation5 + $0xe0] sm:$0xf] %vm12161_vm11, %v6532_v56  ;;  %v5819_v26 = vpop.permute.xlu0 %5818  ;;  %v7818_v13 = vld [vmem:[#allocation5 + $0xe4] sm:$0xf0]  ;;  %vm12174_vm11 = vmmov %vm12165_vm8 }
 0xae4   : > { %v5633_v21 = vpop.permute.xlu2 %5632  ;;  %5906 = vst.msk [vmem:[#allocation5 + $0x40] sm:$0xf] %vm12162_vm4, %v5819_v26  ;;  %vm12175_vm4 = vmmov %vm12165_vm8 }
 0xae8   : > { %6076 = vrot.lane.b32.xlu1 %v5987_v12, %s8041_s20 }
 0xae9   : > { %5364 = vrot.lane.b32.xlu0 %v11622_v33, %s8047_s24 }
 0xaea   : > { %6301 = vrot.lane.b32.xlu2 %v11258_v49, %s8039_s16  ;;  %v5821_v52 = vpop.permute.xlu1 %5820  ;;  %v7714_v0 = vld [vmem:[#allocation5 + $0xe0] sm:$0xf] }
 0xaeb   : > { %5907 = vst.msk [vmem:[#allocation5 + $0x48] sm:$0xf] %vm12163_vm10, %v5821_v52  ;;  %v5185_v16 = vpop.permute.xlu0 %5184  ;;  %v7715_v24 = vor.u32 %v7818_v13, %v7714_v0  ;;  %vm12176_vm10 = vmmov %vm12168_vm5 }
 0xaec   : > { %v5855_v2 = vpop.permute.xlu2 %5854  ;;  %6131 = vst.msk [vmem:[#allocation5 + $0x48] sm:$0xf] %vm12164_vm12, %v6045_v9  ;;  %vm12177_vm12 = vmmov %vm12167_vm1 }
 0xaed   : > { %5253 = vst.msk [vmem:[#allocation5 + $0xd8] sm:$0xf] %vm1955_vm6, %v5185_v16  ;;  %6978 = vmatpush.bf16.xpose.msra.mxu0 %v7715_v24 }
 0xaf0   : > { %6299 = vrot.lane.b32.xlu1 %v11254_v25, %s8039_s16 }
 0xaf1   : > { %5586 = vrot.lane.b32.xlu0 %v11632_v41, %s8043_s19 }
 0xaf2   : > { %6523 = vrot.lane.b32.xlu2 %v11393_v46, %s12101_s14  ;;  %v6043_v49 = vpop.permute.xlu1 %6042 }
 0xaf3   : > { %6130 = vst.msk [vmem:[#allocation5 + $0x40] sm:$0xf] %vm12165_vm8, %v6043_v49  ;;  %v5407_v20 = vpop.permute.xlu0 %5406  ;;  %vm12178_vm8 = vmmov %vm12168_vm5  ;;  %v5260_v49 = vld [vmem:[#allocation3 + $0x1a] sm:$0xff] }
 0xaf4   : > { %v6081_v4 = vpop.permute.xlu2 %6080  ;;  %6355 = vst.msk [vmem:[#allocation5 + $0x40] sm:$0xf] %vm12166_vm9, %v6268_v14  ;;  %v11678_v14 = vpack.c.bf16 %v5280_v32, %v5280_v32  ;;  %vm12179_vm9 = vmmov %vm12167_vm1  ;;  %v11716_v50 = vpack.c.bf16 %v5260_v49, %v5260_v49  ;;  %v5055_v32 = vld [vmem:[#allocation3 + $0xf9] sm:$0xff] }
 0xaf5   : > { %5476 = vst.msk [vmem:[#allocation5 + $0xd0] sm:$0xf] %vm2180_vm7, %v5407_v20 }
 0xaf8   : > { %5588 = vrot.lane.b32.xlu1 %v11201_v19, %s8043_s19  ;;  %v11656_v19 = vpack.c.bf16 %v5056_v31, %v5056_v31 }
 0xaf9   : > { %6525 = vrot.lane.b32.xlu0 %v11403_v28, %s12101_s14  ;;  %v5966_v28 = vpack.c.bf16 %v5934_v29, %v5934_v29 }
 0xafa   : > { %5812 = vrot.lane.b32.xlu2 %v11643_v1, %s8045_s15  ;;  %v5409_v25 = vpop.permute.xlu1 %5408 }
 0xafb   : > { %5477 = vst.msk [vmem:[#allocation5 + $0xd8] sm:$0xf] %vm2180_vm7, %v5409_v25  ;;  %v6270_v46 = vpop.permute.xlu0 %6269 }
 0xafc   : > { %v6304_v6 = vpop.permute.xlu2 %6303  ;;  %5701 = vst.msk [vmem:[#allocation5 + $0xd8] sm:$0xf] %vm12167_vm1, %v5633_v21  ;;  %v6160_v21 = vld [vmem:[#allocation3 + $0x68] sm:$0xff]  ;;  %vm12180_vm1 = vmmov %vm12173_vm0 }
 0xafd   : > { %6356 = vst.msk [vmem:[#allocation5 + $0x48] sm:$0xf] %vm12168_vm5, %v6270_v46  ;;  %v6192_v12 = vpack.c.bf16 %v6160_v21, %v6160_v21  ;;  %vm12181_vm5 = vmmov %vm12171_vm14  ;;  %v6158_v21 = vld [vmem:[#allocation3 + $0x50] sm:$0xff] }
 0xb00   : > { %5810 = vrot.lane.b32.xlu1 %v11654_v40, %s8045_s15 }
 0xb01   : > { %5174 = vrot.lane.b32.xlu0 %v11656_v19, %s8049_s17 }
 0xb02   : > { %6034 = vrot.lane.b32.xlu2 %v5966_v28, %s8041_s20  ;;  %v5631_v59 = vpop.permute.xlu1 %5630  ;;  %v5485_v28 = vld [vmem:[#allocation3 + $0x38] sm:$0xff] }
 0xb03   : > { %5700 = vst.msk [vmem:[#allocation5 + $0xd0] sm:$0xf] %vm12169_vm3, %v5631_v59  ;;  %v6492_v7 = vpop.permute.xlu0 %6491  ;;  %vm12182_vm3 = vmmov %vm12181_vm5  ;;  %v11729_v59 = vpack.c.bf16 %v5485_v28, %v5485_v28 }
 0xb04   : > { %v5593_v62 = vpop.permute.xlu2 %5592  ;;  %5924 = vst.msk [vmem:[#allocation5 + $0xd0] sm:$0xf] %vm12170_vm13, %v5855_v2  ;;  %v5261_v2 = vld [vmem:[#allocation3 + $0x22] sm:$0xff]  ;;  %vm12183_vm13 = vmmov %vm12173_vm0 }
 0xb05   : > { %6579 = vst.msk [vmem:[#allocation5 + $0x40] sm:$0xf] %vm12171_vm14, %v6492_v7  ;;  %v11706_v51 = vpack.c.bf16 %v5261_v2, %v5261_v2  ;;  %vm12184_vm14 = vmmov %vm12175_vm4 }
 0xb08   : > { %5176 = vrot.lane.b32.xlu1 %v11666_v36, %s8049_s17 }
 0xb09   : > { %6036 = vrot.lane.b32.xlu0 %v5967_v53, %s8041_s20 }
 0xb0a   : > { %5400 = vrot.lane.b32.xlu2 %v11668_v8, %s8047_s24  ;;  %v6494_v9 = vpop.permute.xlu1 %6493 }
 0xb0b   : > { %6580 = vst.msk [vmem:[#allocation5 + $0x48] sm:$0xf] %vm12172_vm15, %v6494_v9  ;;  %v5857_v17 = vpop.permute.xlu0 %5856  ;;  %vm12185_vm15 = vmmov %vm12175_vm4  ;;  %v5709_v9 = vld [vmem:[#allocation3 + $0x39] sm:$0xff] }
 0xb0c   : > { %v5815_v60 = vpop.permute.xlu2 %5814  ;;  %5925 = vst.msk [vmem:[#allocation5 + $0xd8] sm:$0xf] %vm12173_vm0, %v5857_v17  ;;  %v7634_v58 = vld [vmem:[#allocation5 + $0x40] sm:$0xf]  ;;  %vm12186_vm0 = vmmov %vm12178_vm8 }
 0xb0d   : > { %6149 = vst.msk [vmem:[#allocation5 + $0xd8] sm:$0xf] %vm12174_vm11, %v6081_v4  ;;  %v5484_v4 = vld [vmem:[#allocation3 + $0x30] sm:$0xff]  ;;  %vm12187_vm11 = vmmov %vm12186_vm0 }
 0xb0e   : > { %v11718_v25 = vpack.c.bf16 %v5484_v4, %v5484_v4 }
 0xb10   : > { %5398 = vrot.lane.b32.xlu1 %v11678_v14, %s8047_s24 }
 0xb11   : > { %6259 = vrot.lane.b32.xlu0 %v6191_v35, %s8039_s16 }
 0xb12   : > { %5622 = vrot.lane.b32.xlu2 %v11274_v61, %s8043_s19  ;;  %v6079_v23 = vpop.permute.xlu1 %6078  ;;  %v7798_v56 = vld [vmem:[#allocation5 + $0x44] sm:$0xf0] }
 0xb13   : > { %6148 = vst.msk [vmem:[#allocation5 + $0xd0] sm:$0xf] %vm12175_vm4, %v6079_v23  ;;  %v5367_v26 = vpop.permute.xlu0 %5366  ;;  %v7635_v34 = vor.u32 %v7798_v56, %v7634_v58  ;;  %vm12188_vm4 = vmmov %vm12182_vm3  ;;  %v5278_v58 = vld [vmem:[#allocation3 + $0xf2] sm:$0xff] }
 0xb14   : > { %v5181_v38 = vpop.permute.xlu2 %5180  ;;  %6373 = vst.msk [vmem:[#allocation5 + $0xd0] sm:$0xf] %vm12176_vm10, %v6304_v6  ;;  %vm12189_vm10 = vmmov %vm12179_vm9  ;;  %v11767_v56 = vpack.c.bf16 %v5278_v58, %v5278_v58 }
 0xb15   : > { %5251 = vst.msk [vmem:[#allocation5 + $0xc8] sm:$0xf] %vm1955_vm6, %v5181_v38  ;;  %6952 = vmatpush.bf16.xpose.msrb.mxu3 %v7635_v34  ;;  %v5279_v34 = vld [vmem:[#allocation3 + $0xfa] sm:$0xff] }
 0xb16   : > { %5456 = vst.msk [vmem:[#allocation5 + $0x30] sm:$0xf] %vm2180_vm7, %v5367_v26 }
 0xb18   : > { %6261 = vrot.lane.b32.xlu1 %v6192_v12, %s8039_s16 }
 0xb19   : > { %5624 = vrot.lane.b32.xlu0 %v11270_v11, %s8043_s19 }
 0xb1a   : > { %6485 = vrot.lane.b32.xlu2 %v11561_v48, %s12101_s14  ;;  %v5369_v52 = vpop.permute.xlu1 %5368 }
 0xb1b   : > { %5457 = vst.msk [vmem:[#allocation5 + $0x38] sm:$0xf] %vm2180_vm7, %v5369_v52  ;;  %v6306_v0 = vpop.permute.xlu0 %6305 }
 0xb1c   : > { %v5403_v13 = vpop.permute.xlu2 %5402  ;;  %5681 = vst.msk [vmem:[#allocation5 + $0x38] sm:$0xf] %vm12177_vm12, %v5593_v62  ;;  %v5708_v62 = vld [vmem:[#allocation3 + $0x31] sm:$0xff]  ;;  %vm12190_vm12 = vmmov %vm12179_vm9 }
 0xb1d   : > { %6374 = vst.msk [vmem:[#allocation5 + $0xd8] sm:$0xf] %vm12178_vm8, %v6306_v0  ;;  %vm12191_vm8 = vmmov %vm12180_vm1 }
 0xb20   : > { %6483 = vrot.lane.b32.xlu1 %v11549_v10, %s12101_s14 }
 0xb21   : > { %5846 = vrot.lane.b32.xlu0 %v11574_v42, %s8045_s15 }
 0xb22   : > { %6070 = vrot.lane.b32.xlu2 %v11576_v39, %s8041_s20  ;;  %v5591_v16 = vpop.permute.xlu1 %5590 }
 0xb23   : > { %5680 = vst.msk [vmem:[#allocation5 + $0x30] sm:$0xf] %vm12179_vm9, %v5591_v16  ;;  %v6528_v48 = vpop.permute.xlu0 %6527  ;;  %vm12192_vm9 = vmmov %vm12182_vm3 }
 0xb24   : > { %v6266_v24 = vpop.permute.xlu2 %6265  ;;  %5904 = vst.msk [vmem:[#allocation5 + $0x30] sm:$0xf] %vm12180_vm1, %v5815_v60  ;;  %v11754_v60 = vpack.c.bf16 %v5709_v9, %v5709_v9 }
 0xb25   : > { %6597 = vst.msk [vmem:[#allocation5 + $0xd0] sm:$0xf] %vm12181_vm5, %v6528_v48  ;;  %vm12193_vm5 = vmmov %vm12184_vm14 }
 0xb28   : > { %5848 = vrot.lane.b32.xlu1 %v11563_v43, %s8045_s15 }
 0xb29   : > { %6072 = vrot.lane.b32.xlu0 %v11586_v54, %s8041_s20 }
 0xb2a   : > { %5360 = vrot.lane.b32.xlu2 %v11706_v51, %s8047_s24  ;;  %v6530_v10 = vpop.permute.xlu1 %6529 }
 0xb2b   : > { %6598 = vst.msk [vmem:[#allocation5 + $0xd8] sm:$0xf] %vm12182_vm3, %v6530_v10  ;;  %v5817_v39 = vpop.permute.xlu0 %5816  ;;  %vm12194_vm3 = vmmov %vm12193_vm5 }
 0xb2c   : > { %v6488_v20 = vpop.permute.xlu2 %6487  ;;  %5905 = vst.msk [vmem:[#allocation5 + $0x38] sm:$0xf] %vm12183_vm13, %v5817_v39  ;;  %v7706_v46 = vld [vmem:[#allocation5 + $0xd0] sm:$0xf]  ;;  %vm12195_vm13 = vmmov %vm12186_vm0 }
 0xb2d   : > { %v5258_v39 = vld [vmem:[#allocation3 + $0x2] sm:$0xff] }
 0xb2e   : > { %v5290_v4 = vpack.c.bf16 %v5258_v39, %v5258_v39  ;;  %v5274_v39 = vld [vmem:[#allocation3 + $0xc2] sm:$0xff] }
 0xb30   : > { %5358 = vrot.lane.b32.xlu1 %v11716_v50, %s8047_s24 }
 0xb31   : > { %6295 = vrot.lane.b32.xlu0 %v11262_v27, %s8039_s16 }
 0xb32   : > { %5582 = vrot.lane.b32.xlu2 %v11718_v25, %s8043_s19  ;;  %v5179_v54 = vpop.permute.xlu1 %5178  ;;  %v7816_v45 = vld [vmem:[#allocation5 + $0xd4] sm:$0xf0] }
 0xb33   : > { %5250 = vst.msk [vmem:[#allocation5 + $0xc0] sm:$0xf] %vm1955_vm6, %v5179_v54  ;;  %v6039_v6 = vpop.permute.xlu0 %6038  ;;  %v7707_v31 = vor.u32 %v7816_v45, %v7706_v46 }
 0xb34   : > { %v5853_v29 = vpop.permute.xlu2 %5852  ;;  %5474 = vst.msk [vmem:[#allocation5 + $0xc0] sm:$0xf] %vm2180_vm7, %v5403_v13  ;;  %v11777_v13 = vpack.c.bf16 %v5279_v34, %v5279_v34 }
 0xb35   : > { %6128 = vst.msk [vmem:[#allocation5 + $0x30] sm:$0xf] %vm12184_vm14, %v6039_v6  ;;  %6979 = vmatpush.bf16.xpose.msra.mxu0 %v7707_v31  ;;  %vm12196_vm14 = vmmov %vm12186_vm0 }
 0xb38   : > { %6297 = vrot.lane.b32.xlu1 %v11266_v18, %s8039_s16  ;;  %v11741_v18 = vpack.c.bf16 %v5708_v62, %v5708_v62  ;;  %v5706_v62 = vld [vmem:[#allocation3 + $0x19] sm:$0xff] }
 0xb39   : > { %5584 = vrot.lane.b32.xlu0 %v11729_v59, %s8043_s19 }
 0xb3a   : > { %6521 = vrot.lane.b32.xlu2 %v11481_v22, %s12101_s14  ;;  %v6041_v27 = vpop.permute.xlu1 %6040 }
 0xb3b   : > { %6129 = vst.msk [vmem:[#allocation5 + $0x38] sm:$0xf] %vm12185_vm15, %v6041_v27  ;;  %v5405_v7 = vpop.permute.xlu0 %5404  ;;  %vm12197_vm15 = vmmov %vm12188_vm4 }
 0xb3c   : > { %v5363_v57 = vpop.permute.xlu2 %5362  ;;  %6354 = vst.msk [vmem:[#allocation5 + $0x38] sm:$0xf] %vm12186_vm0, %v6266_v24  ;;  %vm12198_vm0 = vmmov %vm12189_vm10 }
 0xb3d   : > { %5454 = vst.msk [vmem:[#allocation5 + $0x20] sm:$0xf] %vm2180_vm7, %v5363_v57 }
 0xb3e   : > { %5475 = vst.msk [vmem:[#allocation5 + $0xc8] sm:$0xf] %vm2180_vm7, %v5405_v7  ;;  %v5482_v7 = vld [vmem:[#allocation3 + $0x18] sm:$0xff] }
 0xb3f   : > { %v5514_v30 = vpack.c.bf16 %v5482_v7, %v5482_v7 }
 0xb40   : > { %6519 = vrot.lane.b32.xlu1 %v11470_v5, %s12101_s14  ;;  %v11756_v5 = vpack.c.bf16 %v5055_v32, %v5055_v32 }
 0xb41   : > { %5806 = vrot.lane.b32.xlu0 %v11741_v18, %s8045_s15 }
 0xb42   : > { %5170 = vrot.lane.b32.xlu2 %v11743_v3, %s8049_s17  ;;  %v6264_v22 = vpop.permute.xlu1 %6263 }
 0xb43   : > { %6353 = vst.msk [vmem:[#allocation5 + $0x30] sm:$0xf] %vm12187_vm11, %v6264_v22  ;;  %v5627_v53 = vpop.permute.xlu0 %5626  ;;  %vm12199_vm11 = vmmov %vm12198_vm0  ;;  %v5738_v22 = vpack.c.bf16 %v5706_v62, %v5706_v62 }
 0xb44   : > { %v6302_v17 = vpop.permute.xlu2 %6301  ;;  %6577 = vst.msk [vmem:[#allocation5 + $0x30] sm:$0xf] %vm12188_vm4, %v6488_v20  ;;  %vm12200_vm4 = vmmov %vm12180_vm1 }
 0xb45   : > { %5698 = vst.msk [vmem:[#allocation5 + $0xc0] sm:$0xf] %vm12189_vm10, %v5627_v53  ;;  %vm12201_vm10 = vmmov %vm12192_vm9 }
 0xb48   : > { %5808 = vrot.lane.b32.xlu1 %v11754_v60, %s8045_s15 }
 0xb49   : > { %5172 = vrot.lane.b32.xlu0 %v11756_v5, %s8049_s17 }
 0xb4a   : > { %6032 = vrot.lane.b32.xlu2 %v11622_v33, %s8041_s20  ;;  %v5629_v47 = vpop.permute.xlu1 %5628 }
 0xb4b   : > { %5699 = vst.msk [vmem:[#allocation5 + $0xc8] sm:$0xf] %vm12190_vm12, %v5629_v47  ;;  %v6490_v35 = vpop.permute.xlu0 %6489  ;;  %v7626_v12 = vld [vmem:[#allocation5 + $0x30] sm:$0xf]  ;;  %vm12202_vm12 = vmmov %vm12180_vm1 }
 0xb4c   : > { %v6524_v23 = vpop.permute.xlu2 %6523  ;;  %5923 = vst.msk [vmem:[#allocation5 + $0xc8] sm:$0xf] %vm12191_vm8, %v5853_v29  ;;  %vm12203_vm8 = vmmov %vm12194_vm3 }
 0xb4d   : > { %6578 = vst.msk [vmem:[#allocation5 + $0x38] sm:$0xf] %vm12192_vm9, %v6490_v35  ;;  %vm12204_vm9 = vmmov %vm12194_vm3 }
 0xb50   : > { %6030 = vrot.lane.b32.xlu1 %v11613_v63, %s8041_s20  ;;  %v6190_v63 = vpack.c.bf16 %v6158_v21, %v6158_v21 }
 0xb51   : > { %5394 = vrot.lane.b32.xlu0 %v11767_v56, %s8047_s24 }
 0xb52   : > { %6255 = vrot.lane.b32.xlu2 %v11632_v41, %s8039_s16  ;;  %v5851_v33 = vpop.permute.xlu1 %5850 }
 0xb53   : > { %5922 = vst.msk [vmem:[#allocation5 + $0xc0] sm:$0xf] %vm12180_vm1, %v5851_v33  ;;  %v6075_v26 = vpop.permute.xlu0 %6074  ;;  %vm12205_vm1 = vmmov %vm12198_vm0  ;;  %v5277_v33 = vld [vmem:[#allocation3 + $0xe2] sm:$0xff] }
 0xb54   : > { %v5813_v38 = vpop.permute.xlu2 %5812  ;;  %6146 = vst.msk [vmem:[#allocation5 + $0xc0] sm:$0xf] %vm12193_vm5, %v6075_v26  ;;  %v7796_v52 = vld [vmem:[#allocation5 + $0x34] sm:$0xf0]  ;;  %vm12206_vm5 = vmmov %vm12195_vm13  ;;  %v11847_v34 = vpack.c.bf16 %v5277_v33, %v5277_v33 }
 0xb55   : > { %v7627_v0 = vor.u32 %v7796_v52, %v7626_v12 }
 0xb57   : > { %6953 = vmatpush.bf16.xpose.msrb.mxu3 %v7627_v0 }
 0xb58   : > { %5396 = vrot.lane.b32.xlu1 %v11777_v13, %s8047_s24 }
 0xb59   : > { %6257 = vrot.lane.b32.xlu0 %v6190_v63, %s8039_s16 }
 0xb5a   : > { %5620 = vrot.lane.b32.xlu2 %v11286_v15, %s8043_s19  ;;  %v6077_v41 = vpop.permute.xlu1 %6076 }
 0xb5b   : > { %6147 = vst.msk [vmem:[#allocation5 + $0xc8] sm:$0xf] %vm12194_vm3, %v6077_v41  ;;  %v5365_v16 = vpop.permute.xlu0 %5364  ;;  %vm12207_vm3 = vmmov %vm12206_vm5 }
 0xb5c   : > { %v6035_v48 = vpop.permute.xlu2 %6034  ;;  %6372 = vst.msk [vmem:[#allocation5 + $0xc8] sm:$0xf] %vm12195_vm13, %v6302_v17  ;;  %v5707_v17 = vld [vmem:[#allocation3 + $0x21] sm:$0xff]  ;;  %vm12208_vm13 = vmmov %vm12201_vm10 }
 0xb5d   : > { %5455 = vst.msk [vmem:[#allocation5 + $0x28] sm:$0xf] %vm2180_vm7, %v5365_v16  ;;  %v5739_v32 = vpack.c.bf16 %v5707_v17, %v5707_v17 }
 0xb60   : > { %5618 = vrot.lane.b32.xlu1 %v11280_v37, %s8043_s19 }
 0xb61   : > { %6479 = vrot.lane.b32.xlu0 %v11654_v40, %s12101_s14 }
 0xb62   : > { %5842 = vrot.lane.b32.xlu2 %v11656_v19, %s8045_s15  ;;  %v6300_v24 = vpop.permute.xlu1 %6299 }
 0xb63   : > { %6371 = vst.msk [vmem:[#allocation5 + $0xc0] sm:$0xf] %vm12196_vm14, %v6300_v24  ;;  %v5587_v2 = vpop.permute.xlu0 %5586  ;;  %vm12209_vm14 = vmmov %vm12198_vm0  ;;  %v5275_v24 = vld [vmem:[#allocation3 + $0xca] sm:$0xff] }
 0xb64   : > { %v5401_v10 = vpop.permute.xlu2 %5400  ;;  %6595 = vst.msk [vmem:[#allocation5 + $0xc0] sm:$0xf] %vm12197_vm15, %v6524_v23  ;;  %v5276_v23 = vld [vmem:[#allocation3 + $0xda] sm:$0xff]  ;;  %vm12210_vm15 = vmmov %vm12201_vm10 }
 0xb65   : > { %5678 = vst.msk [vmem:[#allocation5 + $0x20] sm:$0xf] %vm12198_vm0, %v5587_v2  ;;  %v11836_v58 = vpack.c.bf16 %v5276_v23, %v5276_v23  ;;  %vm12211_vm0 = vmmov %vm12200_vm4  ;;  %v5307_v2 = vpack.c.bf16 %v5275_v24, %v5275_v24 }
 0xb68   : > { %6481 = vrot.lane.b32.xlu1 %v11643_v1, %s12101_s14  ;;  %v5259_v1 = vld [vmem:[#allocation3 + $0xa] sm:$0xff] }
 0xb69   : > { %5844 = vrot.lane.b32.xlu0 %v11666_v36, %s8045_s15  ;;  %v5291_v31 = vpack.c.bf16 %v5259_v1, %v5259_v1 }
 0xb6a   : > { %6068 = vrot.lane.b32.xlu2 %v11668_v8, %s8041_s20  ;;  %v5589_v40 = vpop.permute.xlu1 %5588 }
 0xb6b   : > { %5679 = vst.msk [vmem:[#allocation5 + $0x28] sm:$0xf] %vm12199_vm11, %v5589_v40  ;;  %v6526_v49 = vpop.permute.xlu0 %6525  ;;  %v7698_v45 = vld [vmem:[#allocation5 + $0xc0] sm:$0xf]  ;;  %vm12212_vm11 = vmmov %vm12203_vm8 }
 0xb6c   : > { %v5623_v20 = vpop.permute.xlu2 %5622  ;;  %5903 = vst.msk [vmem:[#allocation5 + $0x28] sm:$0xf] %vm12200_vm4, %v5813_v38  ;;  %vm12213_vm4 = vmmov %vm12211_vm0 }
 0xb6d   : > { %6596 = vst.msk [vmem:[#allocation5 + $0xc8] sm:$0xf] %vm12201_vm10, %v6526_v49  ;;  %vm12214_vm10 = vmmov %vm12203_vm8 }
 0xb70   : > { %6066 = vrot.lane.b32.xlu1 %v11678_v14, %s8041_s20  ;;  %v5483_v14 = vld [vmem:[#allocation3 + $0x20] sm:$0xff] }
 0xb71   : > { %5354 = vrot.lane.b32.xlu0 %v5290_v4, %s8047_s24  ;;  %v5515_v28 = vpack.c.bf16 %v5483_v14, %v5483_v14  ;;  %v5306_v4 = vpack.c.bf16 %v5274_v39, %v5274_v39 }
 0xb72   : > { %6291 = vrot.lane.b32.xlu2 %v11274_v61, %s8039_s16  ;;  %v5811_v8 = vpop.permute.xlu1 %5810 }
 0xb73   : > { %5902 = vst.msk [vmem:[#allocation5 + $0x20] sm:$0xf] %vm12202_vm12, %v5811_v8  ;;  %v5175_v54 = vpop.permute.xlu0 %5174  ;;  %vm12215_vm12 = vmmov %vm12205_vm1 }
 0xb74   : > { %v6486_v46 = vpop.permute.xlu2 %6485  ;;  %6126 = vst.msk [vmem:[#allocation5 + $0x20] sm:$0xf] %vm12203_vm8, %v6035_v48  ;;  %v7814_v6 = vld [vmem:[#allocation5 + $0xc4] sm:$0xf0]  ;;  %vm12216_vm8 = vmmov %vm12207_vm3 }
 0xb75   : > { %5248 = vst.msk [vmem:[#allocation5 + $0xb0] sm:$0xf] %vm1955_vm6, %v5175_v54  ;;  %v7699_v29 = vor.u32 %v7814_v6, %v7698_v45  ;;  %v5723_v6 = vld [vmem:[#allocation3 + $0xe1] sm:$0xff] }
 0xb77   : > { %6980 = vmatpush.bf16.xpose.msra.mxu0 %v7699_v29  ;;  %v5755_v29 = vpack.c.bf16 %v5723_v6, %v5723_v6  ;;  %v6733_v6 = vld [vmem:[%s12068_s9] sm:$0xff] }
 0xb78   : > { %5356 = vrot.lane.b32.xlu1 %v5291_v31, %s8047_s24 }
 0xb79   : > { %6293 = vrot.lane.b32.xlu0 %v11270_v11, %s8039_s16 }
 0xb7a   : > { %5580 = vrot.lane.b32.xlu2 %v5515_v28, %s8043_s19  ;;  %v5177_v61 = vpop.permute.xlu1 %5176 }
 0xb7b   : > { %5249 = vst.msk [vmem:[#allocation5 + $0xb8] sm:$0xf] %vm1955_vm6, %v5177_v61  ;;  %v6037_v27 = vpop.permute.xlu0 %6036 }
 0xb7c   : > { %v6071_v57 = vpop.permute.xlu2 %6070  ;;  %5473 = vst.msk [vmem:[#allocation5 + $0xb8] sm:$0xf] %vm2180_vm7, %v5401_v10 }
 0xb7d   : > { %6127 = vst.msk [vmem:[#allocation5 + $0x28] sm:$0xf] %vm12204_vm9, %v6037_v27  ;;  %vm12217_vm9 = vmmov %vm12207_vm3 }
 0xb80   : > { %5578 = vrot.lane.b32.xlu1 %v5514_v30, %s8043_s19 }
 0xb81   : > { %6515 = vrot.lane.b32.xlu0 %v11574_v42, %s12101_s14 }
 0xb82   : > { %5802 = vrot.lane.b32.xlu2 %v5738_v22, %s8045_s15  ;;  %v5399_v11 = vpop.permute.xlu1 %5398 }
 0xb83   : > { %5472 = vst.msk [vmem:[#allocation5 + $0xb0] sm:$0xf] %vm2180_vm7, %v5399_v11  ;;  %v6260_v53 = vpop.permute.xlu0 %6259 }
 0xb84   : > { %v5361_v9 = vpop.permute.xlu2 %5360  ;;  %5696 = vst.msk [vmem:[#allocation5 + $0xb0] sm:$0xf] %vm12205_vm1, %v5623_v20  ;;  %vm12218_vm1 = vmmov %vm12208_vm13  ;;  %v5498_v20 = vld [vmem:[#allocation3 + $0xd8] sm:$0xff] }
 0xb85   : > { %5453 = vst.msk [vmem:[#allocation5 + $0x18] sm:$0xf] %vm2180_vm7, %v5361_v9 }
 0xb86   : > { %6351 = vst.msk [vmem:[#allocation5 + $0x20] sm:$0xf] %vm12206_vm5, %v6260_v53  ;;  %vm12219_vm5 = vmmov %vm12215_vm12 }
 0xb88   : > { %6517 = vrot.lane.b32.xlu1 %v11563_v43, %s12101_s14 }
 0xb89   : > { %5804 = vrot.lane.b32.xlu0 %v5739_v32, %s8045_s15 }
 0xb8a   : > { %6028 = vrot.lane.b32.xlu2 %v11706_v51, %s8041_s20  ;;  %v6262_v42 = vpop.permute.xlu1 %6261 }
 0xb8b   : > { %6352 = vst.msk [vmem:[#allocation5 + $0x28] sm:$0xf] %vm12207_vm3, %v6262_v42  ;;  %v5625_v47 = vpop.permute.xlu0 %5624  ;;  %vm12220_vm3 = vmmov %vm12218_vm1 }
 0xb8c   : > { %v5583_v35 = vpop.permute.xlu2 %5582  ;;  %6576 = vst.msk [vmem:[#allocation5 + $0x28] sm:$0xf] %vm12208_vm13, %v6486_v46  ;;  %vm12221_vm13 = vmmov %vm12211_vm0  ;;  %v5499_v46 = vld [vmem:[#allocation3 + $0xe0] sm:$0xff] }
 0xb8d   : > { %5697 = vst.msk [vmem:[#allocation5 + $0xb8] sm:$0xf] %vm12209_vm14, %v5625_v47  ;;  %vm12222_vm14 = vmmov %vm12211_vm0  ;;  %v5531_v31 = vpack.c.bf16 %v5499_v46, %v5499_v46 }
 0xb90   : > { %6026 = vrot.lane.b32.xlu1 %v11716_v50, %s8041_s20 }
 0xb91   : > { %5390 = vrot.lane.b32.xlu0 %v11836_v58, %s8047_s24 }
 0xb92   : > { %6251 = vrot.lane.b32.xlu2 %v11718_v25, %s8039_s16  ;;  %v6484_v43 = vpop.permute.xlu1 %6483 }
 0xb93   : > { %6575 = vst.msk [vmem:[#allocation5 + $0x20] sm:$0xf] %vm12210_vm15, %v6484_v43  ;;  %v5847_v51 = vpop.permute.xlu0 %5846  ;;  %v7794_v21 = vld [vmem:[#allocation5 + $0x24] sm:$0xf0]  ;;  %vm12223_vm15 = vmmov %vm12214_vm10 }
 0xb94   : > { %v6522_v26 = vpop.permute.xlu2 %6521  ;;  %5920 = vst.msk [vmem:[#allocation5 + $0xb0] sm:$0xf] %vm12211_vm0, %v5847_v51  ;;  %vm12224_vm0 = vmmov %vm12214_vm10 }
 0xb95   : > { %6144 = vst.msk [vmem:[#allocation5 + $0xb0] sm:$0xf] %vm12212_vm11, %v6071_v57  ;;  %vm12225_vm11 = vmmov %vm12216_vm8 }
 0xb98   : > { %5392 = vrot.lane.b32.xlu1 %v11847_v34, %s8047_s24 }
 0xb99   : > { %6253 = vrot.lane.b32.xlu0 %v11729_v59, %s8039_s16 }
 0xb9a   : > { %5616 = vrot.lane.b32.xlu2 %v11300_v44, %s8043_s19  ;;  %v5849_v50 = vpop.permute.xlu1 %5848  ;;  %v7618_v25 = vld [vmem:[#allocation5 + $0x20] sm:$0xf] }
 0xb9b   : > { %5921 = vst.msk [vmem:[#allocation5 + $0xb8] sm:$0xf] %vm12213_vm4, %v5849_v50  ;;  %v6073_v38 = vpop.permute.xlu0 %6072  ;;  %v7619_v12 = vor.u32 %v7794_v21, %v7618_v25  ;;  %vm12227_vm4 = vmmov %vm12216_vm8 }
 0xb9c   : > { %v5171_v52 = vpop.permute.xlu2 %5170  ;;  %6145 = vst.msk [vmem:[#allocation5 + $0xb8] sm:$0xf] %vm12214_vm10, %v6073_v38  ;;  %vm12228_vm10 = vmmov %vm12219_vm5 }
 0xb9d   : > { %5246 = vst.msk [vmem:[#allocation5 + $0xa0] sm:$0xf] %vm1955_vm6, %v5171_v52  ;;  %6954 = vmatpush.bf16.xpose.msrb.mxu3 %v7619_v12 }
 0xba0   : > { %5614 = vrot.lane.b32.xlu1 %v11295_v55, %s8043_s19 }
 0xba1   : > { %6475 = vrot.lane.b32.xlu0 %v11741_v18, %s12101_s14 }
 0xba2   : > { %5838 = vrot.lane.b32.xlu2 %v11743_v3, %s8045_s15  ;;  %v5359_v59 = vpop.permute.xlu1 %5358 }
 0xba3   : > { %5452 = vst.msk [vmem:[#allocation5 + $0x10] sm:$0xf] %vm2180_vm7, %v5359_v59  ;;  %v6296_v0 = vpop.permute.xlu0 %6295 }
 0xba4   : > { %v6033_v63 = vpop.permute.xlu2 %6032  ;;  %5676 = vst.msk [vmem:[#allocation5 + $0x10] sm:$0xf] %vm12215_vm12, %v5583_v35  ;;  %vm12229_vm12 = vmmov %vm12221_vm13 }
 0xba5   : > { %6369 = vst.msk [vmem:[#allocation5 + $0xb0] sm:$0xf] %vm12216_vm8, %v6296_v0  ;;  %vm12230_vm8 = vmmov %vm12218_vm1 }
 0xba8   : > { %6477 = vrot.lane.b32.xlu1 %v11754_v60, %s12101_s14 }
 0xba9   : > { %5840 = vrot.lane.b32.xlu0 %v11756_v5, %s8045_s15 }
 0xbaa   : > { %6064 = vrot.lane.b32.xlu2 %v11777_v13, %s8041_s20  ;;  %v6298_v18 = vpop.permute.xlu1 %6297 }
 0xbab   : > { %6370 = vst.msk [vmem:[#allocation5 + $0xb8] sm:$0xf] %vm12217_vm9, %v6298_v18  ;;  %v5585_v41 = vpop.permute.xlu0 %5584  ;;  %vm12231_vm9 = vmmov %vm12218_vm1 }
 0xbac   : > { %v6256_v16 = vpop.permute.xlu2 %6255  ;;  %6594 = vst.msk [vmem:[#allocation5 + $0xb8] sm:$0xf] %vm12218_vm1, %v6522_v26  ;;  %vm12232_vm1 = vmmov %vm12229_vm12 }
 0xbad   : > { %5677 = vst.msk [vmem:[#allocation5 + $0x18] sm:$0xf] %vm12219_vm5, %v5585_v41 }
 0xbb0   : > { %6062 = vrot.lane.b32.xlu1 %v11767_v56, %s8041_s20 }
 0xbb1   : > { %6287 = vrot.lane.b32.xlu0 %v11280_v37, %s8039_s16 }
 0xbb2   : > { %6511 = vrot.lane.b32.xlu2 %v11656_v19, %s12101_s14  ;;  %v6520_v60 = vpop.permute.xlu1 %6519 }
 0xbb3   : > { %6593 = vst.msk [vmem:[#allocation5 + $0xb0] sm:$0xf] %vm12220_vm3, %v6520_v60  ;;  %v5807_v13 = vpop.permute.xlu0 %5806  ;;  %v7812_v19 = vld [vmem:[#allocation5 + $0xb4] sm:$0xf0]  ;;  %vm12234_vm3 = vmmov %vm12224_vm0 }
 0xbb4   : > { %v5621_v48 = vpop.permute.xlu2 %5620  ;;  %5900 = vst.msk [vmem:[#allocation5 + $0x10] sm:$0xf] %vm12221_vm13, %v5807_v13  ;;  %vm12235_vm13 = vmmov %vm12227_vm4 }
 0xbb8   : > { %6289 = vrot.lane.b32.xlu1 %v11286_v15, %s8039_s16  ;;  %v5722_v15 = vld [vmem:[#allocation3 + $0xd9] sm:$0xff] }
 0xbb9   : > { %6513 = vrot.lane.b32.xlu0 %v11666_v36, %s12101_s14  ;;  %v5530_v36 = vpack.c.bf16 %v5498_v20, %v5498_v20  ;;  %v5754_v1 = vpack.c.bf16 %v5722_v15, %v5722_v15 }
 0xbba   : > { %5388 = vrot.lane.b32.xlu2 %v5307_v2, %s8047_s24  ;;  %v5809_v37 = vpop.permute.xlu1 %5808  ;;  %v7690_v56 = vld [vmem:[#allocation5 + $0xb0] sm:$0xf] }
 0xbbb   : > { %5901 = vst.msk [vmem:[#allocation5 + $0x18] sm:$0xf] %vm12222_vm14, %v5809_v37  ;;  %v5173_v10 = vpop.permute.xlu0 %5172  ;;  %v7691_v40 = vor.u32 %v7812_v19, %v7690_v56  ;;  %v7594_v37 = vld [vmem:[%s12067_s8] sm:$0xf]  ;;  %v7822_v56 = vld [vmem:[%s12067_s8 + $0x4] sm:$0xf0] }
 0xbbc   : > { %v5843_v49 = vpop.permute.xlu2 %5842  ;;  %6125 = vst.msk [vmem:[#allocation5 + $0x18] sm:$0xf] %vm12223_vm15, %v6033_v63  ;;  %vm12237_vm15 = vmmov %vm12227_vm4  ;;  %v7595_v19 = vor.u32 %v7822_v56, %v7594_v37 }
 0xbbd   : > { %5247 = vst.msk [vmem:[#allocation5 + $0xa8] sm:$0xf] %vm1955_vm6, %v5173_v10  ;;  %6981 = vmatpush.bf16.xpose.msra.mxu0 %v7691_v40  ;;  %vm12226_vm6 = vmmov %vm12219_vm5 }
 0xbbe   : > { %vm12233_vm5 = vmmov %vm12224_vm0 }
 0xbbf   : > { %vm12236_vm14 = vmmov %vm12226_vm6 }
 0xbc0   : > { %5386 = vrot.lane.b32.xlu1 %v5306_v4, %s8047_s24  ;;  %v7821_v4 = vld [vmem:[%s12067_s8 + $0x4] sm:$0xf] }
 0xbc1   : > { %5610 = vrot.lane.b32.xlu0 %v5530_v36, %s8043_s19  ;;  %v7596_v36 = vld [vmem:[%s12067_s8 + $0x8] sm:$0xf0] }
 0xbc2   : > { %5834 = vrot.lane.b32.xlu2 %v5754_v1, %s8045_s15  ;;  %v6031_v8 = vpop.permute.xlu1 %6030  ;;  %v7599_v1 = vor.u32 %v7821_v4, %v7596_v36  ;;  %v7171_v36 = vld [vmem:[%s12070_s11] sm:$0xff] }
 0xbc3   : > { %6124 = vst.msk [vmem:[#allocation5 + $0x10] sm:$0xf] %vm12224_vm0, %v6031_v8  ;;  %v5395_v54 = vpop.permute.xlu0 %5394  ;;  %vm12238_vm0 = vmmov %vm12226_vm6 }
 0xbc4   : > { %v6069_v45 = vpop.permute.xlu2 %6068  ;;  %6349 = vst.msk [vmem:[#allocation5 + $0x10] sm:$0xf] %vm12225_vm11, %v6256_v16  ;;  %vm12239_vm11 = vmmov %vm12232_vm1  ;;  %7728 = vmatmul.msk.bf16.vlgmr.msra.gmra.mxu1 %vm457_vm2, %v7599_v1  ;;  %7729 = vmatmul.msk.bf16.vlgmr.msrb.gmra.mxu2 %vm457_vm2, %v7599_v1 }
 0xbc5   : > { %5470 = vst.msk [vmem:[#allocation5 + $0xa0] sm:$0xf] %vm2180_vm7, %v5395_v54 }
 0xbc8   : > { %5612 = vrot.lane.b32.xlu1 %v5531_v31, %s8043_s19  ;;  %v8051_v31 = vmov 0   ;;  %s7823_s19 = sshll.u32 %s8144_s29, 5 }
 0xbc9   : > { %5836 = vrot.lane.b32.xlu0 %v5755_v29, %s8045_s15  ;;  %7882 = vset.pattern.permute.xlu1 %v8051_v31  ;;  %s7227_s25 = scalar_lea.hbm %s12072_s13, %s7823_s19  ;;  %s7990_s19 = scalar_lea.hbm %s12072_s13, 64 }
 0xbca   : > { %6060 = vrot.lane.b32.xlu2 %v11847_v34, %s8041_s20  ;;  %v5397_v14 = vpop.permute.xlu1 %5396  ;;  %7884 = vset.pattern.permute.xlu0 %v8051_v31  ;;  %s7230_s30 = sshll.u32 %s7227_s25, 4  ;;  %s7231_s30 = int_to_ptr.hbm [resolvable:$true] %s7230_s30 }
 0xbcb   : > { %5471 = vst.msk [vmem:[#allocation5 + $0xa8] sm:$0xf] %vm2180_vm7, %v5397_v14  ;;  %v6258_v28 = vpop.permute.xlu0 %6257  ;;  %7883 = vset.pattern.permute.xlu2 %v8051_v31  ;;  %s7984_s27 = sshra.s32 %s7231_s30, 4  ;;  %s7985_s27 = int_to_ptr.hbm [resolvable:$true] %s7984_s27 }
 0xbcc   : > { %v6292_v61 = vpop.permute.xlu2 %6291  ;;  %5695 = vst.msk [vmem:[#allocation5 + $0xa8] sm:$0xf] %vm12226_vm6, %v5621_v48  ;;  %vm12240_vm6 = vmmov %vm12230_vm8  ;;  %s7986_s22 = scalar_lea.hbm %s7985_s27, 32  ;;  %p7991_p0 = scmp.lt.s32.totalorder %s7985_s27, %s12072_s13 }
 0xbcd   : > { %6350 = vst.msk [vmem:[#allocation5 + $0x18] sm:$0xf] %vm12227_vm4, %v6258_v28  ;;  %vm12241_vm4 = vmmov %vm12240_vm6  ;;  %p7987_p11 = scmp.ne.s32.totalorder %s7985_s27, %s7986_s22  ;;  %p7992_p1 = scmp.lt.s32.totalorder %s7990_s19, %s7986_s22 }
 0xbcf   : > { %p7988_p12 = pnand %p7987_p11, %p8161_p5  ;;  %p7993_p2 = por %p7992_p1, %p7991_p0 }
 0xbd0   : > { %6058 = vrot.lane.b32.xlu1 %v11836_v58, %s8041_s20 }
 0xbd1   : > { %6283 = vrot.lane.b32.xlu0 %v11295_v55, %s8039_s16  ;;  %p7989_p13 = pneg %p7988_p12 }
 0xbd2   : > { %6507 = vrot.lane.b32.xlu2 %v11743_v3, %s12101_s14  ;;  %v5619_v27 = vpop.permute.xlu1 %5618 }
 0xbd3   : > { %5694 = vst.msk [vmem:[#allocation5 + $0xa0] sm:$0xf] %vm12228_vm10, %v5619_v27  ;;  %v6480_v7 = vpop.permute.xlu0 %6479  ;;  %vm12242_vm10 = vmmov %vm12232_vm1  ;;  %p7994_p3 = pnand %p7993_p2, %p7989_p13 }
 0xbd4   : > { %v5581_v57 = vpop.permute.xlu2 %5580  ;;  %5918 = vst.msk [vmem:[#allocation5 + $0xa0] sm:$0xf] %vm12229_vm12, %v5843_v49  ;;  %vm12243_vm12 = vmmov %vm12234_vm3 }
 0xbd5   : > { %6573 = vst.msk [vmem:[#allocation5 + $0x10] sm:$0xf] %vm12230_vm8, %v6480_v7  ;;  %vm12244_vm8 = vmmov %vm12234_vm3 }
 0xbd8   : > { %6285 = vrot.lane.b32.xlu1 %v11300_v44, %s8039_s16  ;;  %s444_s16 = sand.u32 1, %s8024_s26  }
 0xbd9   : > { %6509 = vrot.lane.b32.xlu0 %v11756_v5, %s12101_s14  ;;  %s7309_s20 = sshll.u32 %s444_s16, 5  ;;  %s7216_s29 = scalar_lea.sflag [#allocation7], %s444_s16 }
 0xbda   : > { %v6482_v62 = vpop.permute.xlu1 %6481  ;;  %6737 = vperm.xlu2 %7883, %v6733_v6   ;;  %s446_s15 = scalar_lea.vmem [#allocation6], %s7309_s20 }
 0xbdb   : > { %6574 = vst.msk [vmem:[#allocation5 + $0x18] sm:$0xf] %vm12231_vm9, %v6482_v62  ;;  %v5845_v55 = vpop.permute.xlu0 %5844  ;;  %vm12245_vm9 = vmmov %vm12235_vm13  ;;  %s7228_s21 = sshll.u32 %s446_s15, 4  ;;  %s7229_s21 = int_to_ptr.vmem [resolvable:$true] %s7228_s21 }
 0xbdc   : > { %v5803_v3 = vpop.permute.xlu2 %5802  ;;  %5919 = vst.msk [vmem:[#allocation5 + $0xa8] sm:$0xf] %vm12232_vm1, %v5845_v55  ;;  %v7610_v22 = vld [vmem:[#allocation5 + $0x10] sm:$0xf]  ;;  %vm12246_vm1 = vmmov %vm12238_vm0 }
 0xbdd   : > { %6143 = vst.msk [vmem:[#allocation5 + $0xa8] sm:$0xf] %vm12233_vm5, %v6069_v45  ;;  %vm12247_vm5 = vmmov %vm12245_vm9  ;;  %v6734_v45 = vld [vmem:[%s12068_s9 + $0x8] sm:$0xff] }
 0xbe0   : > { %6742 = vperm.xlu1 %7882, %v6734_v45  }
 0xbe2   : > { %v6067_v30 = vpop.permute.xlu1 %6066  ;;  %v7792_v11 = vld [vmem:[#allocation5 + $0x14] sm:$0xf0] }
 0xbe3   : > { %6142 = vst.msk [vmem:[#allocation5 + $0xa0] sm:$0xf] %vm12234_vm3, %v6067_v30  ;;  %v5355_v53 = vpop.permute.xlu0 %5354  ;;  %v7611_v9 = vor.u32 %v7792_v11, %v7610_v22  ;;  %vm12248_vm3 = vmmov %vm12238_vm0 }
 0xbe4   : > { %v6029_v44 = vpop.permute.xlu2 %6028  ;;  %6367 = vst.msk [vmem:[#allocation5 + $0xa0] sm:$0xf] %vm12235_vm13, %v6292_v61  ;;  %vm12249_vm13 = vmmov %vm12242_vm10 }
 0xbe5   : > { %5450 = vst.msk [vmem:[#allocation5] sm:$0xf] %vm2180_vm7, %v5355_v53  ;;  %6955 = vmatpush.bf16.xpose.msrb.mxu3 %v7611_v9 }
 0xbea   : > { %v5357_v5 = vpop.permute.xlu1 %5356 }
 0xbeb   : > { %5451 = vst.msk [vmem:[#allocation5 + $0x8] sm:$0xf] %vm2180_vm7, %v5357_v5  ;;  %v6294_v17 = vpop.permute.xlu0 %6293 }
 0xbec   : > { %v6252_v32 = vpop.permute.xlu2 %6251  ;;  %5675 = vst.msk [vmem:[#allocation5 + $0x8] sm:$0xf] %vm12236_vm14, %v5581_v57  ;;  %vm12250_vm14 = vmmov %vm12241_vm4 }
 0xbed   : > { %6368 = vst.msk [vmem:[#allocation5 + $0xa8] sm:$0xf] %vm12237_vm15, %v6294_v17  ;;  %vm12251_vm15 = vmmov %vm12241_vm4 }
 0xbf2   : > { %v5579_v42 = vpop.permute.xlu1 %5578 }
 0xbf3   : > { %5674 = vst.msk [vmem:[#allocation5] sm:$0xf] %vm12238_vm0, %v5579_v42  ;;  %v6516_v47 = vpop.permute.xlu0 %6515  ;;  %vm12252_vm0 = vmmov %vm12242_vm10  ;;  %v7006_v42 = vld [vmem:[%s12071_s12 + $0x8] sm:$0xff] }
 0xbf4   : > { %v5617_v35 = vpop.permute.xlu2 %5616  ;;  %5898 = vst.msk [vmem:[#allocation5] sm:$0xf] %vm12239_vm11, %v5803_v3  ;;  %vm12253_vm11 = vmmov %vm12244_vm8 }
 0xbf5   : > { %6591 = vst.msk [vmem:[#allocation5 + $0xa0] sm:$0xf] %vm12240_vm6, %v6516_v47  ;;  %vm12254_vm6 = vmmov %vm12244_vm8 }
 0xbfa   : > { %v6518_v23 = vpop.permute.xlu1 %6517 }
 0xbfb   : > { %6592 = vst.msk [vmem:[#allocation5 + $0xa8] sm:$0xf] %vm12241_vm4, %v6518_v23  ;;  %v5805_v58 = vpop.permute.xlu0 %5804  ;;  %vm12255_vm4 = vmmov %vm12247_vm5 }
 0xbfc   : > { %v5839_v43 = vpop.permute.xlu2 %5838  ;;  %5899 = vst.msk [vmem:[#allocation5 + $0x8] sm:$0xf] %vm12242_vm10, %v5805_v58  ;;  %v7682_v33 = vld [vmem:[#allocation5 + $0xa0] sm:$0xf]  ;;  %vm12256_vm10 = vmmov %vm12250_vm14 }
 0xbfd   : > { %6123 = vst.msk [vmem:[#allocation5 + $0x8] sm:$0xf] %vm12243_vm12, %v6029_v44  ;;  %vm12257_vm12 = vmmov %vm12255_vm4 }
 0xc02   : > { %v6027_v51 = vpop.permute.xlu1 %6026  ;;  %v7810_v26 = vld [vmem:[#allocation5 + $0xa4] sm:$0xf0] }
 0xc03   : > { %6122 = vst.msk [vmem:[#allocation5] sm:$0xf] %vm12244_vm8, %v6027_v51  ;;  %v5391_v34 = vpop.permute.xlu0 %5390  ;;  %v7683_v50 = vor.u32 %v7810_v26, %v7682_v33  ;;  %vm12258_vm8 = vmmov %vm12256_vm10 }
 0xc04   : > { %v6065_v25 = vpop.permute.xlu2 %6064  ;;  %6347 = vst.msk [vmem:[#allocation5] sm:$0xf] %vm12245_vm9, %v6252_v32  ;;  %vm12259_vm9 = vmmov %vm12246_vm1  ;;  %v7005_v32 = vld [vmem:[%s12071_s12] sm:$0xff] }
 0xc05   : > { %5468 = vst.msk [vmem:[#allocation5 + $0x90] sm:$0xf] %vm2180_vm7, %v5391_v34  ;;  %6982 = vmatpush.bf16.xpose.msra.mxu0 %v7683_v50 }
 0xc0a   : > { %v5393_v21 = vpop.permute.xlu1 %5392 }
 0xc0b   : > { %5469 = vst.msk [vmem:[#allocation5 + $0x98] sm:$0xf] %vm2180_vm7, %v5393_v21  ;;  %v6254_v38 = vpop.permute.xlu0 %6253 }
 0xc0c   : > { %v6512_v12 = vpop.permute.xlu2 %6511  ;;  %5693 = vst.msk [vmem:[#allocation5 + $0x98] sm:$0xf] %vm12246_vm1, %v5617_v35  ;;  %vm12260_vm1 = vmmov %vm12252_vm0 }
 0xc0d   : > { %6348 = vst.msk [vmem:[#allocation5 + $0x8] sm:$0xf] %vm12247_vm5, %v6254_v38  ;;  %vm12262_vm5 = vmmov %vm12252_vm0 }
 0xc12   : > { %v5615_v52 = vpop.permute.xlu1 %5614 }
 0xc13   : > { %5692 = vst.msk [vmem:[#allocation5 + $0x90] sm:$0xf] %vm12248_vm3, %v5615_v52  ;;  %v6476_v59 = vpop.permute.xlu0 %6475  ;;  %v7156_v52 = vld [vmem:[%s12069_s10 + $0x8] sm:$0xff] }
 0xc14   : > { %v5389_v0 = vpop.permute.xlu2 %5388  ;;  %5916 = vst.msk [vmem:[#allocation5 + $0x90] sm:$0xf] %vm12249_vm13, %v5839_v43 }
 0xc15   : > { %5467 = vst.msk [vmem:[#allocation5 + $0x88] sm:$0xf] %vm2180_vm7, %v5389_v0 }
 0xc16   : > { %6571 = vst.msk [vmem:[#allocation5] sm:$0xf] %vm12250_vm14, %v6476_v59  ;;  %vm12265_vm14 = vmmov %vm12255_vm4  ;;  %v7172_v59 = vld [vmem:[%s12070_s11 + $0x8] sm:$0xff] }
 0xc1a   : > { %v6478_v63 = vpop.permute.xlu1 %6477 }
 0xc1b   : > { %6572 = vst.msk [vmem:[#allocation5 + $0x8] sm:$0xf] %vm12251_vm15, %v6478_v63  ;;  %v5841_v18 = vpop.permute.xlu0 %5840  ;;  %vm12266_vm15 = vmmov %vm12258_vm8  ;;  %v12269_v63 = vld [vmem:[#allocation14_spill] sm:$0xff] }
 0xc1c   : > { %5917 = vst.msk [vmem:[#allocation5 + $0x98] sm:$0xf] %vm12252_vm0, %v5841_v18  ;;  %v5835_v10 = vpop.permute.xlu2 %5834  ;;  %vm12267_vm0 = vmmov %vm12255_vm4 }
 0xc1d   : > { %6141 = vst.msk [vmem:[#allocation5 + $0x98] sm:$0xf] %vm12253_vm11, %v6065_v25  ;;  %v7602_v16 = vld [vmem:[#allocation5] sm:$0xf]  ;;  %vm12268_vm11 = vmmov %vm12258_vm8 }
 0xc22   : > { %v6063_v41 = vpop.permute.xlu1 %6062  ;;  %v7790_v60 = vld [vmem:[#allocation5 + $0x4] sm:$0xf0] }
 0xc23   : > { %6140 = vst.msk [vmem:[#allocation5 + $0x90] sm:$0xf] %vm12254_vm6, %v6063_v41  ;;  %v6288_v13 = vpop.permute.xlu0 %6287  ;;  %v7603_v48 = vor.u32 %v7790_v60, %v7602_v16 }
 0xc24   : > { %6365 = vst.msk [vmem:[#allocation5 + $0x90] sm:$0xf] %vm12255_vm4, %v6288_v13  ;;  %v6061_v8 = vpop.permute.xlu2 %6060 }
 0xc25   : > { %6589 = vst.msk [vmem:[#allocation5 + $0x90] sm:$0xf] %vm12256_vm10, %v6512_v12  ;;  %6956 = vmatpush.bf16.xpose.msrb.mxu3 %v7603_v48 }
 0xc2a   : > { %v6290_v24 = vpop.permute.xlu1 %6289 }
 0xc2b   : > { %6366 = vst.msk [vmem:[#allocation5 + $0x98] sm:$0xf] %vm12257_vm12, %v6290_v24  ;;  %v6514_v2 = vpop.permute.xlu0 %6513 }
 0xc2c   : > { %6590 = vst.msk [vmem:[#allocation5 + $0x98] sm:$0xf] %vm12258_vm8, %v6514_v2  ;;  %6957 = vmatmul.bf16.vlgmr.msrb.gmra.mxu3 %v7595_v19  ;;  %v7674_v49 = vld [vmem:[#allocation5 + $0x90] sm:$0xf]  ;;  %v6508_v28 = vpop.permute.xlu2 %6507 }
 0xc32   : > { %v5387_v40 = vpop.permute.xlu1 %5386 }
 0xc33   : > { %5466 = vst.msk [vmem:[#allocation5 + $0x80] sm:$0xf] %vm2180_vm7, %v5387_v40  ;;  %v5611_v39 = vpop.permute.xlu0 %5610  ;;  %v7808_v20 = vld [vmem:[#allocation5 + $0x94] sm:$0xf0]  ;;  %vm12261_vm7 = vmmov %vm12248_vm3 }
 0xc34   : > { %5690 = vst.msk [vmem:[#allocation5 + $0x80] sm:$0xf] %vm12259_vm9, %v5611_v39  ;;  %v7675_v15 = vor.u32 %v7808_v20, %v7674_v49  ;;  %vm12263_vm3 = vmmov %vm12254_vm6  ;;  %v6738_v22 = vpop.permute.xlu2 %6737 }
 0xc35   : > { %5914 = vst.msk [vmem:[#allocation5 + $0x80] sm:$0xf] %vm12260_vm1, %v5835_v10  ;;  %vm12264_vm13 = vmmov %vm12263_vm3  ;;  %v7155_v10 = vld [vmem:[%s12069_s10] sm:$0xff] }
 0xc36   : > { %6983 = vmatpush.bf16.xpose.msra.mxu0 %v7675_v15 }
 0xc3a   : > { %v5613_v54 = vpop.permute.xlu1 %5612 }
 0xc3b   : > { %5691 = vst.msk [vmem:[#allocation5 + $0x88] sm:$0xf] %vm12261_vm7, %v5613_v54  ;;  %v5837_v46 = vpop.permute.xlu0 %5836 }
 0xc3c   : > { %5915 = vst.msk [vmem:[#allocation5 + $0x88] sm:$0xf] %vm12262_vm5, %v5837_v46 }
 0xc3d   : > { %6139 = vst.msk [vmem:[#allocation5 + $0x88] sm:$0xf] %vm12263_vm3, %v6061_v8 }
 0xc41   : > { %v6972_v3 = vpop.f32.mrf.mxu1 }
 0xc42   : > { %v6059_v29 = vpop.permute.xlu1 %6058 }
 0xc43   : > { %6138 = vst.msk [vmem:[#allocation5 + $0x80] sm:$0xf] %vm12264_vm13, %v6059_v29  ;;  %v6284_v14 = vpop.permute.xlu0 %6283 }
 0xc44   : > { %6363 = vst.msk [vmem:[#allocation5 + $0x80] sm:$0xf] %vm12265_vm14, %v6284_v14 }
 0xc45   : > { %6587 = vst.msk [vmem:[#allocation5 + $0x80] sm:$0xf] %vm12266_vm15, %v6508_v28 }
 0xc47   : > { %v7000_v35 = vpop.f32.mrf.mxu2 }
 0xc49   : > { %v6974_v44 = vpop.f32.mrf.mxu1 }
 0xc4a   : > { %v6286_v61 = vpop.permute.xlu1 %6285 }
 0xc4b   : > { %6364 = vst.msk [vmem:[#allocation5 + $0x88] sm:$0xf] %vm12267_vm0, %v6286_v61  ;;  %v6510_v27 = vpop.permute.xlu0 %6509 }
 0xc4c   : > { %6588 = vst.msk [vmem:[#allocation5 + $0x88] sm:$0xf] %vm12268_vm11, %v6510_v27  ;;  %v7666_v7 = vld [vmem:[#allocation5 + $0x80] sm:$0xf] }
 0xc4f   : > { %v7002_v51 = vpop.f32.mrf.mxu2 }
 0xc52   : > { %v6743_v30 = vpop.permute.xlu1 %6742 }
 0xc53   : > { %v7806_v57 = vld [vmem:[#allocation5 + $0x84] sm:$0xf0] }
 0xc54   : > { %v7667_v62 = vor.u32 %v7806_v57, %v7666_v7 }
 0xc56   : > { %6984 = vmatpush.bf16.xpose.msra.mxu0 %v7667_v62 }
 0xc5d   : > { %6985 = vmatmul.bf16.vlgmr.msra.gmra.mxu0 %v7595_v19 }
 0xcaf   : > { %v6958_v55 = vpop.f32.mrf.mxu3 }
 0xcb0   : > { %v6959_v53 = vadd.f32 %v6958_v55, %v6738_v22 }
 0xcb2   : > { %v6973_v17 = vadd.f32 %v6972_v3, %v6959_v53 }
 0xcb7   : > { %v6960_v11 = vpop.f32.mrf.mxu3 }
 0xcb8   : > { %v6961_v9 = vadd.f32 %v6960_v11, %v6743_v30 }
 0xcba   : > { %v6975_v5 = vadd.f32 %v6974_v44, %v6961_v9 }
 0xcbc   : > { %7027 = vmatpush.msra.mxu3 %v6975_v5 }
 0xcbe   : > { %7028 = vmatpush.msra.mxu3 %v6973_v17 }
 0xcbf   : > { %7730 = vmatmul.msk.f32.vlgmr.msra.gmra.mxu3 %vm457_vm2, %v7005_v32 }
 0xcc7   : > { %7731 = vmatmul.msk.f32.gmra.mxu3 %vm457_vm2, %v7006_v42 }
 0xcda   : > { %v6986_v47 = vpop.f32.mrf.mxu0 }
 0xcdb   : > { %v6987_v58 = vadd.f32 %v6986_v47, %v6738_v22 }
 0xcdd   : > { %v7001_v26 = vadd.f32 %v7000_v35, %v6987_v58 }
 0xce2   : > { %v6988_v23 = vpop.f32.mrf.mxu0 }
 0xce3   : > { %v6989_v43 = vadd.f32 %v6988_v23, %v6743_v30 }
 0xce5   : > { %v7003_v33 = vadd.f32 %v7002_v51, %v6989_v43 }
 0xce7   : > { %7050 = vmatpush.msrb.mxu1 %v7003_v33 }
 0xce9   : > { %7051 = vmatpush.msrb.mxu1 %v7001_v26 }
 0xcea   : > { %7732 = vmatmul.msk.f32.vlgmr.msrb.gmra.mxu1 %vm457_vm2, %v7005_v32 }
 0xcf2   : > { %7733 = vmatmul.msk.f32.gmra.mxu1 %vm457_vm2, %v7006_v42 }
 0xd42   : > { %v7030_v34 = vpop.f32.mrf.mxu3 }
 0xd4a   : > { %v7033_v21 = vpop.f32.mrf.mxu3 }
 0xd67   : > { %v7053_v50 = vpop.f32.mrf.mxu1 }
 0xd68   : > { %v7059_v25 = vadd.f32 %v7053_v50, %v7030_v34 }
 0xd6a   : > { %7060 = vadd.xlane.f32.xlu1 %v7059_v25 }
 0xd6f   : > { %v7056_v38 = vpop.f32.mrf.mxu1 }
 0xd70   : > { %v7062_v12 = vadd.f32 %v7056_v38, %v7033_v21 }
 0xd72   : > { %7063 = vadd.xlane.f32.xlu0 %v7062_v12 }
 0xd83   : > { %7164 = vperm.xlu1 %7882, %v7156_v52  }
 0xd86   : > { %7159 = vperm.xlu0 %7884, %v7155_v10  }
 0xd8b   : > { %7180 = vperm.xlu1 %7882, %v7172_v59  }
 0xddd   : > { %v7061_v0 = vpop.xlane.xlu1 %7060 }
 0xdde   : > { %v7065_v18 = vmul.f32 %v7061_v0, %v12269_v63 }
 0xde0   : > { %v7067_v60 = vsub.f32 %v6973_v17, %v7065_v18  ;;  %v7068_v13 = vsub.f32 %v7001_v26, %v7065_v18 }
 0xde2   : > { %v7071_v56 = vmul.f32 %v7067_v60, %v7067_v60  ;;  %v7072_v19 = vmul.f32 %v7068_v13, %v7068_v13 }
 0xde5   : > { %v7064_v41 = vpop.xlane.xlu0 %7063 }
 0xde6   : > { %v7066_v16 = vmul.f32 %v7064_v41, %v12269_v63 }
 0xde8   : > { %v12000_v48 = vsub.f32 %v6975_v5, %v7066_v16  ;;  %v12002_v24 = vsub.f32 %v7003_v33, %v7066_v16 }
 0xdea   : > { %v7073_v2 = vmul.f32 %v12000_v48, %v12000_v48  ;;  %v7074_v37 = vmul.f32 %v12002_v24, %v12002_v24 }
 0xdec   : > { %7089 = vmatpush.msrb.mxu3 %v7073_v2  ;;  %7112 = vmatpush.msrb.mxu0 %v7074_v37 }
 0xdee   : > { %7090 = vmatpush.msrb.mxu3 %v7071_v56  ;;  %7113 = vmatpush.msrb.mxu0 %v7072_v19 }
 0xdef   : > { %7734 = vmatmul.msk.f32.vlgmr.msrb.gmra.mxu3 %vm457_vm2, %v7005_v32  ;;  %7736 = vmatmul.msk.f32.vlgmr.msrb.gmra.mxu0 %vm457_vm2, %v7005_v32 }
 0xdf5   : > { %v7165_v11 = vpop.permute.xlu1 %7164 }
 0xdf7   : > { %7735 = vmatmul.msk.f32.gmra.mxu3 %vm457_vm2, %v7006_v42  ;;  %7737 = vmatmul.msk.f32.gmra.mxu0 %vm457_vm2, %v7006_v42 }
 0xdf8   : > { %v7160_v3 = vpop.permute.xlu0 %7159 }
 0xdfd   : > { %v7181_v25 = vpop.permute.xlu1 %7180 }
 0xe6c   : > { %v7115_v40 = vpop.f32.mrf.mxu0 }
 0xe72   : > { %v7092_v39 = vpop.f32.mrf.mxu3 }
 0xe73   : > { %v7121_v49 = vadd.f32 %v7115_v40, %v7092_v39 }
 0xe74   : > { %v7118_v20 = vpop.f32.mrf.mxu0 }
 0xe75   : > { %7122 = vadd.xlane.f32.xlu2 %v7121_v49 }
 0xe7a   : > { %v7095_v15 = vpop.f32.mrf.mxu3 }
 0xe7b   : > { %v7124_v4 = vadd.f32 %v7118_v20, %v7095_v15 }
 0xe7d   : > { %7125 = vadd.xlane.f32.xlu2 %v7124_v4 }
 0xe95   : > { %7175 = vperm.xlu2 %7883, %v7171_v36  }
 0xee8   : > { %v7123_v1 = vpop.xlane.xlu2 %7122 }
 0xee9   : > { %v7127_v8 = vmul.f32 %v7123_v1, %v12269_v63 }
 0xeeb   : > { %v7129_v54 = vadd.f32 1e-05, %v7127_v8 }
 0xeed   : > { %7956 = vrsqrt.f32 %v7129_v54  ;;  %vm7137_vm6 = vweird.f32 %v7129_v54 }
 0xef0   : > { %v7126_v46 = vpop.xlane.xlu2 %7125 }
 0xef1   : > { %v7128_v45 = vmul.f32 %v7126_v46, %v12269_v63 }
 0xef3   : > { %v7957_v6 = vpop.eup %7956  ;;  %v7130_v31 = vadd.f32 1e-05, %v7128_v45 }
 0xef4   : > { %v7132_v29 = vmul.f32 %v7957_v6, %v7129_v54  ;;  %vm7138_vm2 = vweird.f32 %v7957_v6 }
 0xef5   : > { %7958 = vrsqrt.f32 %v7130_v31  ;;  %vm7139_vm4 = vmor %vm7137_vm6, %vm7138_vm2  ;;  %vm7147_vm12 = vweird.f32 %v7130_v31 }
 0xef6   : > { %v7133_v14 = vmul.f32 %v7957_v6, %v7132_v29 }
 0xef8   : > { %v7134_v28 = vmul.f32 0.5, %v7133_v14  ;;  %v7176_v17 = vpop.permute.xlu2 %7175 }
 0xefa   : > { %v7135_v61 = vsub.f32 1.5, %v7134_v28 }
 0xefb   : > { %v7959_v27 = vpop.eup %7958 }
 0xefc   : > { %v7142_v7 = vmul.f32 %v7959_v27, %v7130_v31  ;;  %v7136_v57 = vmul.f32 %v7957_v6, %v7135_v61  ;;  %vm7148_vm10 = vweird.f32 %v7959_v27 }
 0xefd   : > { %vm7149_vm8 = vmor %vm7147_vm12, %vm7148_vm10 }
 0xefe   : > { %v7143_v62 = vmul.f32 %v7959_v27, %v7142_v7  ;;  %v7140_v55 = vsel %vm7139_vm4, %v7957_v6, %v7136_v57 }
 0xeff   : > { %v7151_v30 = vmul.f32 %v7140_v55, %v7067_v60  ;;  %v7152_v22 = vmul.f32 %v7140_v55, %v7068_v13 }
 0xf00   : > { %v7144_v53 = vmul.f32 0.5, %v7143_v62 }
 0xf01   : > { %v7167_v9 = vmul.f32 %v7160_v3, %v7151_v30  ;;  %v7168_v44 = vmul.f32 %v7160_v3, %v7152_v22 }
 0xf02   : > { %v7145_v5 = vsub.f32 1.5, %v7144_v53 }
 0xf03   : > { %v7183_v32 = vadd.f32 %v7176_v17, %v7167_v9  ;;  %v7184_v42 = vadd.f32 %v7176_v17, %v7168_v44 }
 0xf04   : > { %v7146_v47 = vmul.f32 %v7959_v27, %v7145_v5 }
 0xf05   : > { %v7191_v35 = vmin.f32 %v7183_v32, 0.0  ;;  %v7192_v23 = vmin.f32 %v7184_v42, 0.0  ;;  %vm7187_vm9 = vcmp.gt.f32.partialorder %v7183_v32, 0.0  ;;  %vm7188_vm1 = vcmp.gt.f32.partialorder %v7184_v42, 0.0 }
 0xf06   : > { %v7150_v58 = vsel %vm7149_vm8, %v7959_v27, %v7146_v47 }
 0xf07   : > { %v7153_v43 = vmul.f32 %v7150_v58, %v12000_v48  ;;  %v7154_v51 = vmul.f32 %v7150_v58, %v12002_v24  ;;  %v7195_v33 = vmul.f32 1.442695, %v7191_v35  ;;  %v7197_v26 = vmul.f32 1.442695, %v7192_v23 }
 0xf09   : > { %v7169_v34 = vmul.f32 %v7165_v11, %v7153_v43  ;;  %v7170_v50 = vmul.f32 %v7165_v11, %v7154_v51  ;;  %7960 = vpow2.f32 %v7195_v33 }
 0xf0a   : > { %7962 = vpow2.f32 %v7197_v26 }
 0xf0b   : > { %v7185_v21 = vadd.f32 %v7181_v25, %v7169_v34  ;;  %v7186_v38 = vadd.f32 %v7181_v25, %v7170_v50 }
 0xf0d   : > { %v7193_v12 = vmin.f32 %v7185_v21, 0.0  ;;  %v7194_v52 = vmin.f32 %v7186_v38, 0.0  ;;  %vm7189_vm7 = vcmp.gt.f32.partialorder %v7185_v21, 0.0  ;;  %vm7190_vm5 = vcmp.gt.f32.partialorder %v7186_v38, 0.0 }
 0xf0f   : > { %v7961_v59 = vpop.eup %7960  ;;  %v7199_v0 = vmul.f32 1.442695, %v7193_v12  ;;  %v7201_v63 = vmul.f32 1.442695, %v7194_v52 }
 0xf10   : > { %v7963_v18 = vpop.eup %7962  ;;  %v7738_v41 = vadd.f32 -1.0, %v7961_v59 }
 0xf11   : > { %7964 = vpow2.f32 %v7199_v0  ;;  %v7739_v16 = vadd.f32 -1.0, %v7963_v18 }
 0xf12   : > { %7966 = vpow2.f32 %v7201_v63  ;;  %v7207_v60 = vsel %vm7187_vm9, %v7183_v32, %v7738_v41 }
 0xf13   : > { %v7208_v13 = vsel %vm7188_vm1, %v7184_v42, %v7739_v16  ;;  %7211 = vst [vmem:[%s446_s15] sm:$0xff] %v7207_v60 }
 0xf14   : > { %7212 = vst [vmem:[%s446_s15 + $0x8] sm:$0xff] %v7208_v13 }
 0xf17   : > { %v7965_v48 = vpop.eup %7964 }
 0xf18   : > { %v7967_v24 = vpop.eup %7966  ;;  %v7740_v2 = vadd.f32 -1.0, %v7965_v48 }
 0xf19   : > { %v7741_v37 = vadd.f32 -1.0, %v7967_v24 }
 0xf1a   : > { %v7209_v56 = vsel %vm7189_vm7, %v7185_v21, %v7740_v2 }
 0xf1b   : > { %v7210_v19 = vsel %vm7190_vm5, %v7186_v38, %v7741_v37  ;;  %7213 = vst [vmem:[%s446_s15 + $0x10] sm:$0xff] %v7209_v56 }
 0xf1c   : > { %7214 = vst [vmem:[%s446_s15 + $0x18] sm:$0xff] %v7210_v19 }
 0xf1d   : > { %7997 = shalt.err (!%p7994_p3)
}
 0xf1e   : > { %s8052_s16 = smov 256  }
 0xf1f   : > { %7824 = dma.vmem_to_hbm [thread:$0]  (%p8161_p5), %s7229_s21, 512, %s7231_s30, %s7216_s29, %s8052_s16, %s8052_s16, %s8049_s17  }
 0xf20 PF: > { %s12270_s15 = sld [smem:[#allocation9_spill]]  ;;  %p7830_p4 = scmp.ge.s32.totalorder %s8032_s28, 2 }
 0xf22   : > { %p7827_p7 = pnand %p7830_p4, %p8165_p6 }
 0xf24   : > { %p7828_p8 = pneg %p7827_p7 }
 0xf26   : > { %s7245_s23 = sand.u32 1, %s12270_s15  }
 0xf27   : > { %s7246_s20 = scalar_lea.sflag [#allocation7], %s7245_s23 }
 0xf28   : > { %8015 = dma.done.wait (%p7828_p8), %s7246_s20, 512  }
 0xf29   : > { %8017 = vsyncadd (%p7828_p8), %s7246_s20, 4294966784  ;;  %s12272_s28 = sld [smem:[#allocation11_spill]]  ;;  %s12275_s25 = smov %s8024_s26 }
 0xf2a   : > { %s12273_s27 = sld [smem:[#allocation10_spill]] }
 0xf2b   : > { %s12274_s22 = sld [smem:[#allocation12_spill]] }
 0xf2f   : > { %p23_p9 = scmp.ge.s32.totalorder %s12272_s28, 4  }
 0xf30   : > { %s12276_s26 = smov %s12273_s27 }
 0xf31   : > { %s12277_s27 = smov %s12274_s22  ;;  %25 = sbr.rel (!%p23_p9) target bundleno = 3 (0x3), region = 114 }
 0xf36   :  { %7252 = vsyncpa [#allocation7], 1 }
 0xf37   :  { %7254 = vsyncpa [#allocation7 + $0x1], 1 }

</bundles_post_ra>
